<compile_context>
chip_gen: v7x
topology: tpu7x:2x2x1
jax: 0.10.0
libtpu: 0.0.40
codegen_flags: <defaults>
</compile_context>

<pallas_src>
import jax
import jax.numpy as jnp
from jax.experimental import pallas as pl
from jax.experimental.pallas import tpu as pltpu

EPS = 1e-5
NEG_SLOPE = 0.01
LANE = 128                       # lane-dense channel padding target
VMEM_LIMIT = 32 * 1024 * 1024    # safe on v5e/v6e/v7x; actual usage is a few MiB


def _round_up(n, m):
    return ((n + m - 1) // m) * m


def _pad_last(a, target):
    if a.shape[-1] == target:
        return a
    pad = [(0, 0)] * a.ndim
    pad[-1] = (0, target - a.shape[-1])
    return jnp.pad(a, pad)


# ---------------------------------------------------------------------------
# Kernel 1: matmul + bias (the kernel==stride ConvTranspose3d is exactly a
# per-voxel (M, Cin) @ (Cin, K*Cout) matmul).  bf16 operands, f32 accumulate,
# bf16 store (consumed only as a bf16 MXU operand downstream).
# ---------------------------------------------------------------------------
def _matmul_bias_kernel(x_ref, w_ref, b_ref, o_ref):
    acc = jnp.dot(x_ref[...], w_ref[...], preferred_element_type=jnp.float32)
    o_ref[...] = (acc + b_ref[...]).astype(o_ref.dtype)


def matmul_bias(x, w, b, out_dtype=jnp.bfloat16, tm=512):
    M, K = x.shape
    _, Np = w.shape
    tm = min(tm, _round_up(M, 8))
    return pl.pallas_call(
        _matmul_bias_kernel,
        out_shape=jax.ShapeDtypeStruct((M, Np), out_dtype),
        grid=(pl.cdiv(M, tm),),
        in_specs=[
            pl.BlockSpec((tm, K), lambda i: (i, 0)),
            pl.BlockSpec((K, Np), lambda i: (0, 0)),
            pl.BlockSpec((1, Np), lambda i: (0, 0)),
        ],
        out_specs=pl.BlockSpec((tm, Np), lambda i: (i, 0)),
        compiler_params=pltpu.CompilerParams(
            dimension_semantics=("parallel",),
            vmem_limit_bytes=VMEM_LIMIT),
    )(x, w, b)


# ---------------------------------------------------------------------------
# Kernel 2: fused Conv3d(k=3, p=1, s=1) + bias + BN partial statistics.
# grid = (N, D), both parallel.  The three depth taps arrive as three
# depth-shifted slabs of the same padded input; they are channel-concatenated
# once so each of the 9 in-plane taps is a single K=3*CIN_P matmul (fills the
# 256-wide MXU on v6e/v7x).  f32 accumulation, bf16 output, BN batch-stat
# partial sums computed from the f32 value.
# ---------------------------------------------------------------------------
def _make_conv_kernel(HO, WO):
    def kernel(x0_ref, x1_ref, x2_ref, w_ref, b_ref, y_ref, ps_ref, pss_ref):
        # one channel-concat of the 3 depth taps -> (HO+2, WO+2, 3*CIN_P) bf16
        xcat = jnp.concatenate([x0_ref[...], x1_ref[...], x2_ref[...]], axis=-1)
        acc = None
        for kh in range(3):
            for kw in range(3):
                xs = xcat[kh:kh + HO, kw:kw + WO, :]        # (HO, WO, 3*CIN_P)
                xs = xs.reshape(HO * WO, xs.shape[-1])
                part = jnp.dot(xs, w_ref[kh, kw, :, :],
                               preferred_element_type=jnp.float32)
                acc = part if acc is None else acc + part
        y = acc + b_ref[...]                                # (HO*WO, COUT_P) f32
        y_ref[...] = y.astype(y_ref.dtype)
        # fused BatchNorm batch statistics (per (n, d)-plane partials, f32)
        ps_ref[...] = jnp.sum(y, axis=0, keepdims=True)
        pss_ref[...] = jnp.sum(y * y, axis=0, keepdims=True)
    return kernel


def conv3x3x3_bn(x, w, b, gamma, beta):
    """Conv3d(k=3, p=1) + bias, with fused train-mode BN batch statistics.

    x: (N, D, H, W, C) with C == Cin or already lane-padded to CIN_P (padded
       channels must be zero).  w: torch layout (Cout, Cin, 3, 3, 3).
    Returns (y, scale, shift): y is the pre-BN activation (N, D, H*W, COUT_P)
    in bf16 (padded channels exactly 0), scale/shift fold BN affine + stats.
    """
    N, D, H, W, Cx = x.shape
    Cout, Cin = w.shape[0], w.shape[1]
    CIN_P = _round_up(Cin, LANE)
    COUT_P = _round_up(Cout, LANE)
    assert Cx in (Cin, CIN_P)

    # single fused pad: 1-voxel spatial halo + channel lane padding (bf16)
    xp = jnp.pad(x.astype(jnp.bfloat16),
                 ((0, 0), (1, 1), (1, 1), (1, 1), (0, CIN_P - Cx)))

    # weights: (Cout, Cin, 3,3,3) -> (kH, kW, kD*CIN_P, COUT_P), zero-pad, bf16
    wk = jnp.transpose(w, (3, 4, 2, 1, 0))                  # (kH,kW,kD,Cin,Cout)
    wk = jnp.pad(wk, ((0, 0), (0, 0), (0, 0),
                      (0, CIN_P - Cin), (0, COUT_P - Cout)))
    wk = wk.reshape(3, 3, 3 * CIN_P, COUT_P).astype(jnp.bfloat16)
    bp = jnp.pad(b, (0, COUT_P - Cout)).reshape(1, COUT_P).astype(jnp.float32)

    def x_spec(kd):
        # same padded array, depth-shifted window: depth d+kd of (D+2) planes
        return pl.BlockSpec((None, None, H + 2, W + 2, CIN_P),
                            lambda n, d: (n, d + kd, 0, 0, 0))

    y, psum, psumsq = pl.pallas_call(
        _make_conv_kernel(H, W),
        out_shape=(
            jax.ShapeDtypeStruct((N, D, H * W, COUT_P), jnp.bfloat16),
            jax.ShapeDtypeStruct((N, D, 1, COUT_P), jnp.float32),
            jax.ShapeDtypeStruct((N, D, 1, COUT_P), jnp.float32),
        ),
        grid=(N, D),
        in_specs=[
            x_spec(0), x_spec(1), x_spec(2),
            # full weight resident in VMEM for the whole grid (constant index)
            pl.BlockSpec((3, 3, 3 * CIN_P, COUT_P), lambda n, d: (0, 0, 0, 0)),
            pl.BlockSpec((1, COUT_P), lambda n, d: (0, 0)),
        ],
        out_specs=(
            pl.BlockSpec((None, None, H * W, COUT_P), lambda n, d: (n, d, 0, 0)),
            pl.BlockSpec((None, None, 1, COUT_P), lambda n, d: (n, d, 0, 0)),
            pl.BlockSpec((None, None, 1, COUT_P), lambda n, d: (n, d, 0, 0)),
        ),
        compiler_params=pltpu.CompilerParams(
            dimension_semantics=("parallel", "parallel"),
            vmem_limit_bytes=VMEM_LIMIT),
    )(xp, xp, xp, wk, bp)

    # BatchNorm batch statistics from the fused per-plane partial sums.
    M = N * D * H * W
    s = jnp.sum(psum, axis=(0, 1, 2))                  # (COUT_P,)
    ss = jnp.sum(psumsq, axis=(0, 1, 2))
    mean = s / M
    var = jnp.maximum(ss / M - mean * mean, 0.0)       # biased var; clamp guards f32 cancellation
    inv_std = jax.lax.rsqrt(var + EPS)
    gamma_p = jnp.pad(gamma, (0, COUT_P - Cout))       # padded lanes: gamma=beta=0 -> output stays 0
    beta_p = jnp.pad(beta, (0, COUT_P - Cout))
    scale = (gamma_p * inv_std).reshape(1, COUT_P).astype(jnp.float32)
    shift = (beta_p - mean * gamma_p * inv_std).reshape(1, COUT_P).astype(jnp.float32)
    return y, scale, shift


# ---------------------------------------------------------------------------
# Kernel 3a: fused BatchNorm affine + LeakyReLU (f32 math, bf16 in/out,
# output aliased onto the input).
# ---------------------------------------------------------------------------
def _bn_lrelu_kernel(y_ref, scale_ref, shift_ref, o_ref):
    z = y_ref[...].astype(jnp.float32) * scale_ref[...] + shift_ref[...]
    o_ref[...] = jnp.where(z >= 0, z, NEG_SLOPE * z).astype(o_ref.dtype)


def bn_lrelu(y, scale, shift):
    N, D, HW, C = y.shape
    return pl.pallas_call(
        _bn_lrelu_kernel,
        out_shape=jax.ShapeDtypeStruct((N, D, HW, C), y.dtype),
        grid=(N, D),
        in_specs=[
            pl.BlockSpec((None, None, HW, C), lambda n, d: (n, d, 0, 0)),
            pl.BlockSpec((1, C), lambda n, d: (0, 0)),
            pl.BlockSpec((1, C), lambda n, d: (0, 0)),
        ],
        out_specs=pl.BlockSpec((None, None, HW, C), lambda n, d: (n, d, 0, 0)),
        input_output_aliases={0: 0},
        compiler_params=pltpu.CompilerParams(
            dimension_semantics=("parallel", "parallel"),
            vmem_limit_bytes=VMEM_LIMIT),
    )(y, scale, shift)


# ---------------------------------------------------------------------------
# Kernel 3b: final BatchNorm affine + LeakyReLU that emits ONLY the real
# c_out channels, transposed in-kernel to a lane-dense (c_out, D*H*W) layout
# so no XLA slice/transpose pass is needed to reach NCDHW.
# ---------------------------------------------------------------------------
def _make_bn_lrelu_nc_kernel(c_out):
    def kernel(y_ref, scale_ref, shift_ref, o_ref):
        z = y_ref[...].astype(jnp.float32) * scale_ref[...] + shift_ref[...]
        z = jnp.where(z >= 0, z, NEG_SLOPE * z)        # (HW, COUT_P) f32
        zt = jnp.transpose(z)                          # (COUT_P, HW) via XLU
        o_ref[...] = zt[:c_out, :]
    return kernel


def bn_lrelu_to_nc(y, scale, shift, c_out):
    N, D, HW, C = y.shape
    return pl.pallas_call(
        _make_bn_lrelu_nc_kernel(c_out),
        out_shape=jax.ShapeDtypeStruct((N, c_out, D * HW), jnp.float32),
        grid=(N, D),
        in_specs=[
            pl.BlockSpec((None, None, HW, C), lambda n, d: (n, d, 0, 0)),
            pl.BlockSpec((1, C), lambda n, d: (0, 0)),
            pl.BlockSpec((1, C), lambda n, d: (0, 0)),
        ],
        out_specs=pl.BlockSpec((None, c_out, HW), lambda n, d: (n, 0, d)),
        compiler_params=pltpu.CompilerParams(
            dimension_semantics=("parallel", "parallel"),
            vmem_limit_bytes=VMEM_LIMIT),
    )(y, scale, shift)


# ---------------------------------------------------------------------------
# Layers
# ---------------------------------------------------------------------------
def conv_transpose_up(x1, w, b):
    """ConvTranspose3d with kernel_size == stride (non-overlapping upsample).

    x1: (N, D, H, W, Cin) NDHWC.  w: torch layout (Cin, Cout, kD, kH, kW).
    Returns (N, D*kD, H*kH, W*kW, Cout) in bf16.
    """
    N, D, H, W, Cin = x1.shape
    _, Cout, KD, KH, KW = w.shape
    K = KD * KH * KW
    KIN_P = _round_up(Cin, LANE)
    KOUT_P = _round_up(K * Cout, LANE)

    xf = _pad_last(x1.reshape(N * D * H * W, Cin).astype(jnp.bfloat16), KIN_P)
    wm = jnp.transpose(w, (0, 2, 3, 4, 1)).reshape(Cin, K * Cout)
    wm = jnp.pad(wm, ((0, KIN_P - Cin), (0, KOUT_P - K * Cout))).astype(jnp.bfloat16)
    bv = jnp.pad(jnp.tile(b, K), (0, KOUT_P - K * Cout)).astype(jnp.float32)
    bv = bv.reshape(1, KOUT_P)

    y = matmul_bias(xf, wm, bv)                                # (M, KOUT_P) bf16
    # TODO(synk): fuse this tap de-interleave + downstream concat into a Pallas
    # scatter that writes the conv1 input directly (one XLA transpose remains).
    y = y[:, :K * Cout].reshape(N, D, H, W, KD, KH, KW, Cout)
    y = jnp.transpose(y, (0, 1, 4, 2, 5, 3, 6, 7))             # interleave taps
    return y.reshape(N, D * KD, H * KH, W * KW, Cout)


# TODO(synk): BatchNorm running-stat buffer updates (momentum EMA) are in-place
# module state in PyTorch and do not affect the forward output; not reproduced.
@jax.jit
def up_forward(x1_ncdhw, x2_ncdhw, params):
    x1 = jnp.transpose(x1_ncdhw, (0, 2, 3, 4, 1))      # NCDHW -> NDHWC
    x2 = jnp.transpose(x2_ncdhw, (0, 2, 3, 4, 1)).astype(jnp.bfloat16)

    x1u = conv_transpose_up(x1, params["w_up"], params["b_up"])        # bf16
    x = jnp.concatenate([x2, x1u], axis=-1)            # torch.cat([x2, x1], dim=1)

    # DoubleConv block 1: conv + BN(batch stats) + LeakyReLU
    y1, s1, t1 = conv3x3x3_bn(x, params["w1"], params["b1"],
                              params["g1"], params["be1"])
    z1 = bn_lrelu(y1, s1, t1)                          # bf16 (N, D, H*W, 128)

    # DoubleConv block 2
    N, D, Hh, Ww = x.shape[0], x.shape[1], x.shape[2], x.shape[3]
    z1sp = z1.reshape(N, D, Hh, Ww, z1.shape[-1])      # free metadata reshape
    y2, s2, t2 = conv3x3x3_bn(z1sp, params["w2"], params["b2"],
                              params["g2"], params["be2"])

    c_out = params["w2"].shape[0]
    out = bn_lrelu_to_nc(y2, s2, t2, c_out)            # (N, c_out, D*H*W) f32
    return out.reshape(N, c_out, D, Hh, Ww)            # free metadata reshape


def init_params(key, in_ch, out_ch, reduce_depth=False, increase_channels=True):
    if increase_channels:
        mid = in_ch if in_ch % out_ch == 0 else in_ch + 96
    else:
        mid = in_ch + in_ch // 2
    kshape = (2, 2, 2) if reduce_depth else (1, 2, 2)
    c_up = in_ch // 2
    ks = jax.random.split(key, 6)
    fan_up = in_ch * kshape[0] * kshape[1] * kshape[2]
    fan1, fan2 = mid * 27, out_ch * 27
    return {
        # ConvTranspose3d weight layout: (in, out, kD, kH, kW)
        "w_up": jax.random.normal(ks[0], (in_ch, c_up) + kshape, jnp.float32) * fan_up ** -0.5,
        "b_up": jax.random.normal(ks[1], (c_up,), jnp.float32) * 0.01,
        # DoubleConv(mid, out): Conv3d(mid->out), Conv3d(out->out); torch (out, in, 3,3,3)
        "w1": jax.random.normal(ks[2], (out_ch, mid, 3, 3, 3), jnp.float32) * fan1 ** -0.5,
        "b1": jax.random.normal(ks[3], (out_ch,), jnp.float32) * 0.01,
        "g1": jnp.ones((out_ch,), jnp.float32),
        "be1": jnp.zeros((out_ch,), jnp.float32),
        "w2": jax.random.normal(ks[4], (out_ch, out_ch, 3, 3, 3), jnp.float32) * fan2 ** -0.5,
        "b2": jax.random.normal(ks[5], (out_ch,), jnp.float32) * 0.01,
        "g2": jnp.ones((out_ch,), jnp.float32),
        "be2": jnp.zeros((out_ch,), jnp.float32),
    }


if __name__ == "__main__":
    key = jax.random.PRNGKey(0)
    k1, k2, kp = jax.random.split(key, 3)

    # Up(in_channels=8, out_channels=4, reduce_depth=False, increase_channels=True)
    # -> mid_channel = 8 (since 8 % 4 == 0), up: ConvTranspose3d(8, 4, k=s=(1,2,2))
    in_ch, out_ch = 8, 4
    N, D, H, W = 2, 4, 8, 8
    x1 = jax.random.normal(k1, (N, in_ch, D, H, W), jnp.float32)                 # coarse input
    x2 = jax.random.normal(k2, (N, in_ch - in_ch // 2, D, 2 * H, 2 * W), jnp.float32)  # skip

    params = init_params(kp, in_ch, out_ch, reduce_depth=False, increase_channels=True)

    out = up_forward(x1, x2, params)
    out = jax.block_until_ready(out)

    expected = (N, out_ch, D, 2 * H, 2 * W)
    assert out.shape == expected, (out.shape, expected)
    assert bool(jnp.all(jnp.isfinite(out)))
    print("KERNEL_OK")
</pallas_src>

<mosaic_0001>
module attributes {stable_mosaic.version = 11 : i64} {
  func.func @_matmul_bias_kernel(%arg0: i32, %arg1: memref<512x128xbf16, #tpu.memory_space<vmem>>, %arg2: memref<128x128xbf16, #tpu.memory_space<vmem>>, %arg3: memref<1x128xf32, #tpu.memory_space<vmem>>, %arg4: memref<512x128xbf16, #tpu.memory_space<vmem>>) attributes {dimension_semantics = [#tpu.dimension_semantics<parallel>], iteration_bounds = array<i64: 1>, scalar_prefetch = 0 : i64, scratch_operands = 0 : i64, tpu.core_type = #tpu.core_type<tc>, window_params = [{transform_indices = @transform_0, window_bounds = array<i64: 512, 128>}, {pipeline_mode = #tpu.pipeline_mode<synchronous>, transform_indices = @transform_1, window_bounds = array<i64: 128, 128>}, {pipeline_mode = #tpu.pipeline_mode<synchronous>, transform_indices = @transform_2, window_bounds = array<i64: 1, 128>}, {transform_indices = @transform_3, window_bounds = array<i64: 512, 128>}]} {
    %c0 = arith.constant 0 : index
    %c0_0 = arith.constant 0 : index
    %0 = vector.load %arg1[%c0, %c0_0] : memref<512x128xbf16, #tpu.memory_space<vmem>>, vector<512x128xbf16>
    %c0_1 = arith.constant 0 : index
    %c0_2 = arith.constant 0 : index
    %1 = vector.load %arg2[%c0_1, %c0_2] : memref<128x128xbf16, #tpu.memory_space<vmem>>, vector<128x128xbf16>
    %cst = arith.constant dense<0.000000e+00> : vector<512x128xf32>
    %2 = tpu.matmul %0, %1, %cst {dimension_numbers = #tpu.dot_dimension_numbers<[1], [0], [0], [1], [0, 0, 1, 1], [], []>} : vector<512x128xbf16>, vector<128x128xbf16>, vector<512x128xf32> -> vector<512x128xf32>
    %c0_3 = arith.constant 0 : index
    %c0_4 = arith.constant 0 : index
    %3 = vector.load %arg3[%c0_3, %c0_4] : memref<1x128xf32, #tpu.memory_space<vmem>>, vector<1x128xf32>
    %4 = vector.broadcast %3 : vector<1x128xf32> to vector<512x128xf32>
    %5 = arith.addf %2, %4 : vector<512x128xf32>
    %6 = arith.truncf %5 : vector<512x128xf32> to vector<512x128xbf16>
    %c0_5 = arith.constant 0 : index
    %c0_6 = arith.constant 0 : index
    %7 = vector.load %arg4[%c0_5, %c0_6] : memref<512x128xbf16, #tpu.memory_space<vmem>>, vector<512x128xbf16>
    tpu.vector_store %arg4[%c0_5, %c0_6], %6 {strides = array<i32>} : memref<512x128xbf16, #tpu.memory_space<vmem>>, vector<512x128xbf16>,
    return
  }
  func.func @transform_0(%arg0: i32) -> (i32, i32) {
    %c0_i32 = arith.constant 0 : i32
    %c0_i32_0 = arith.constant 0 : i32
    return %arg0, %c0_i32 : i32, i32
  }
  func.func @transform_1(%arg0: i32) -> (i32, i32) {
    %c0_i32 = arith.constant 0 : i32
    %c0_i32_0 = arith.constant 0 : i32
    %c0_i32_1 = arith.constant 0 : i32
    return %c0_i32, %c0_i32_0 : i32, i32
  }
  func.func @transform_2(%arg0: i32) -> (i32, i32) {
    %c0_i32 = arith.constant 0 : i32
    %c0_i32_0 = arith.constant 0 : i32
    %c0_i32_1 = arith.constant 0 : i32
    return %c0_i32, %c0_i32_0 : i32, i32
  }
  func.func @transform_3(%arg0: i32) -> (i32, i32) {
    %c0_i32 = arith.constant 0 : i32
    %c0_i32_0 = arith.constant 0 : i32
    return %arg0, %c0_i32 : i32, i32
  }
}

module attributes {stable_mosaic.version = 11 : i64} {
  func.func @kernel(%arg0: i32, %arg1: i32, %arg2: memref<1x1x18x18x128xbf16, #tpu.memory_space<vmem>>, %arg3: memref<1x1x18x18x128xbf16, #tpu.memory_space<vmem>>, %arg4: memref<1x1x18x18x128xbf16, #tpu.memory_space<vmem>>, %arg5: memref<3x3x384x128xbf16, #tpu.memory_space<vmem>>, %arg6: memref<1x128xf32, #tpu.memory_space<vmem>>, %arg7: memref<1x1x256x128xbf16, #tpu.memory_space<vmem>>, %arg8: memref<1x1x1x128xf32, #tpu.memory_space<vmem>>, %arg9: memref<1x1x1x128xf32, #tpu.memory_space<vmem>>) attributes {dimension_semantics = [#tpu.dimension_semantics<parallel>, #tpu.dimension_semantics<parallel>], iteration_bounds = array<i64: 2, 4>, scalar_prefetch = 0 : i64, scratch_operands = 0 : i64, tpu.core_type = #tpu.core_type<tc>, window_params = [{transform_indices = @transform_0, window_bounds = array<i64: 1, 1, 18, 18, 128>}, {transform_indices = @transform_1, window_bounds = array<i64: 1, 1, 18, 18, 128>}, {transform_indices = @transform_2, window_bounds = array<i64: 1, 1, 18, 18, 128>}, {pipeline_mode = #tpu.pipeline_mode<synchronous>, transform_indices = @transform_3, window_bounds = array<i64: 3, 3, 384, 128>}, {pipeline_mode = #tpu.pipeline_mode<synchronous>, transform_indices = @transform_4, window_bounds = array<i64: 1, 128>}, {transform_indices = @transform_5, window_bounds = array<i64: 1, 1, 256, 128>}, {transform_indices = @transform_6, window_bounds = array<i64: 1, 1, 1, 128>}, {transform_indices = @transform_7, window_bounds = array<i64: 1, 1, 1, 128>}]} {
    %c0 = arith.constant 0 : index
    %c0_0 = arith.constant 0 : index
    %c0_1 = arith.constant 0 : index
    %c0_2 = arith.constant 0 : index
    %c0_3 = arith.constant 0 : index
    %0 = vector.load %arg2[%c0, %c0_0, %c0_1, %c0_2, %c0_3] : memref<1x1x18x18x128xbf16, #tpu.memory_space<vmem>>, vector<1x1x18x18x128xbf16>
    %1 = vector.shape_cast %0 : vector<1x1x18x18x128xbf16> to vector<18x18x128xbf16>
    %c0_4 = arith.constant 0 : index
    %c0_5 = arith.constant 0 : index
    %c0_6 = arith.constant 0 : index
    %c0_7 = arith.constant 0 : index
    %c0_8 = arith.constant 0 : index
    %2 = vector.load %arg3[%c0_4, %c0_5, %c0_6, %c0_7, %c0_8] : memref<1x1x18x18x128xbf16, #tpu.memory_space<vmem>>, vector<1x1x18x18x128xbf16>
    %3 = vector.shape_cast %2 : vector<1x1x18x18x128xbf16> to vector<18x18x128xbf16>
    %c0_9 = arith.constant 0 : index
    %c0_10 = arith.constant 0 : index
    %c0_11 = arith.constant 0 : index
    %c0_12 = arith.constant 0 : index
    %c0_13 = arith.constant 0 : index
    %4 = vector.load %arg4[%c0_9, %c0_10, %c0_11, %c0_12, %c0_13] : memref<1x1x18x18x128xbf16, #tpu.memory_space<vmem>>, vector<1x1x18x18x128xbf16>
    %5 = vector.shape_cast %4 : vector<1x1x18x18x128xbf16> to vector<18x18x128xbf16>
    %6 = tpu.concatenate %1, %3, %5 in 2 : vector<18x18x128xbf16>, vector<18x18x128xbf16>, vector<18x18x128xbf16> -> vector<18x18x384xbf16>
    %7 = vector.extract_strided_slice %6 {offsets = [0, 0, 0], sizes = [16, 16, 384], strides = [1, 1, 1]} : vector<18x18x384xbf16> to vector<16x16x384xbf16>
    %8 = vector.shape_cast %7 : vector<16x16x384xbf16> to vector<256x384xbf16>
    %c0_14 = arith.constant 0 : index
    %c0_15 = arith.constant 0 : index
    %c0_16 = arith.constant 0 : index
    %c0_17 = arith.constant 0 : index
    %9 = vector.load %arg5[%c0_14, %c0_15, %c0_16, %c0_17] : memref<3x3x384x128xbf16, #tpu.memory_space<vmem>>, vector<1x1x384x128xbf16>
    %10 = vector.shape_cast %9 : vector<1x1x384x128xbf16> to vector<384x128xbf16>
    %cst = arith.constant dense<0.000000e+00> : vector<256x128xf32>
    %11 = tpu.matmul %8, %10, %cst {dimension_numbers = #tpu.dot_dimension_numbers<[1], [0], [0], [1], [0, 0, 1, 1], [], []>} : vector<256x384xbf16>, vector<384x128xbf16>, vector<256x128xf32> -> vector<256x128xf32>
    %12 = vector.extract_strided_slice %6 {offsets = [0, 1, 0], sizes = [16, 16, 384], strides = [1, 1, 1]} : vector<18x18x384xbf16> to vector<16x16x384xbf16>
    %13 = vector.shape_cast %12 : vector<16x16x384xbf16> to vector<256x384xbf16>
    %c0_18 = arith.constant 0 : index
    %c1 = arith.constant 1 : index
    %c0_19 = arith.constant 0 : index
    %c0_20 = arith.constant 0 : index
    %14 = vector.load %arg5[%c0_18, %c1, %c0_19, %c0_20] : memref<3x3x384x128xbf16, #tpu.memory_space<vmem>>, vector<1x1x384x128xbf16>
    %15 = vector.shape_cast %14 : vector<1x1x384x128xbf16> to vector<384x128xbf16>
    %cst_21 = arith.constant dense<0.000000e+00> : vector<256x128xf32>
    %16 = tpu.matmul %13, %15, %cst_21 {dimension_numbers = #tpu.dot_dimension_numbers<[1], [0], [0], [1], [0, 0, 1, 1], [], []>} : vector<256x384xbf16>, vector<384x128xbf16>, vector<256x128xf32> -> vector<256x128xf32>
    %17 = arith.addf %11, %16 : vector<256x128xf32>
    %18 = vector.extract_strided_slice %6 {offsets = [0, 2, 0], sizes = [16, 16, 384], strides = [1, 1, 1]} : vector<18x18x384xbf16> to vector<16x16x384xbf16>
    %19 = vector.shape_cast %18 : vector<16x16x384xbf16> to vector<256x384xbf16>
    %c0_22 = arith.constant 0 : index
    %c2 = arith.constant 2 : index
    %c0_23 = arith.constant 0 : index
    %c0_24 = arith.constant 0 : index
    %20 = vector.load %arg5[%c0_22, %c2, %c0_23, %c0_24] : memref<3x3x384x128xbf16, #tpu.memory_space<vmem>>, vector<1x1x384x128xbf16>
    %21 = vector.shape_cast %20 : vector<1x1x384x128xbf16> to vector<384x128xbf16>
    %cst_25 = arith.constant dense<0.000000e+00> : vector<256x128xf32>
    %22 = tpu.matmul %19, %21, %cst_25 {dimension_numbers = #tpu.dot_dimension_numbers<[1], [0], [0], [1], [0, 0, 1, 1], [], []>} : vector<256x384xbf16>, vector<384x128xbf16>, vector<256x128xf32> -> vector<256x128xf32>
    %23 = arith.addf %17, %22 : vector<256x128xf32>
    %24 = vector.extract_strided_slice %6 {offsets = [1, 0, 0], sizes = [16, 16, 384], strides = [1, 1, 1]} : vector<18x18x384xbf16> to vector<16x16x384xbf16>
    %25 = vector.shape_cast %24 : vector<16x16x384xbf16> to vector<256x384xbf16>
    %c1_26 = arith.constant 1 : index
    %c0_27 = arith.constant 0 : index
    %c0_28 = arith.constant 0 : index
    %c0_29 = arith.constant 0 : index
    %26 = vector.load %arg5[%c1_26, %c0_27, %c0_28, %c0_29] : memref<3x3x384x128xbf16, #tpu.memory_space<vmem>>, vector<1x1x384x128xbf16>
    %27 = vector.shape_cast %26 : vector<1x1x384x128xbf16> to vector<384x128xbf16>
    %cst_30 = arith.constant dense<0.000000e+00> : vector<256x128xf32>
    %28 = tpu.matmul %25, %27, %cst_30 {dimension_numbers = #tpu.dot_dimension_numbers<[1], [0], [0], [1], [0, 0, 1, 1], [], []>} : vector<256x384xbf16>, vector<384x128xbf16>, vector<256x128xf32> -> vector<256x128xf32>
    %29 = arith.addf %23, %28 : vector<256x128xf32>
    %30 = vector.extract_strided_slice %6 {offsets = [1, 1, 0], sizes = [16, 16, 384], strides = [1, 1, 1]} : vector<18x18x384xbf16> to vector<16x16x384xbf16>
    %31 = vector.shape_cast %30 : vector<16x16x384xbf16> to vector<256x384xbf16>
    %c1_31 = arith.constant 1 : index
    %c1_32 = arith.constant 1 : index
    %c0_33 = arith.constant 0 : index
    %c0_34 = arith.constant 0 : index
    %32 = vector.load %arg5[%c1_31, %c1_32, %c0_33, %c0_34] : memref<3x3x384x128xbf16, #tpu.memory_space<vmem>>, vector<1x1x384x128xbf16>
    %33 = vector.shape_cast %32 : vector<1x1x384x128xbf16> to vector<384x128xbf16>
    %cst_35 = arith.constant dense<0.000000e+00> : vector<256x128xf32>
    %34 = tpu.matmul %31, %33, %cst_35 {dimension_numbers = #tpu.dot_dimension_numbers<[1], [0], [0], [1], [0, 0, 1, 1], [], []>} : vector<256x384xbf16>, vector<384x128xbf16>, vector<256x128xf32> -> vector<256x128xf32>
    %35 = arith.addf %29, %34 : vector<256x128xf32>
    %36 = vector.extract_strided_slice %6 {offsets = [1, 2, 0], sizes = [16, 16, 384], strides = [1, 1, 1]} : vector<18x18x384xbf16> to vector<16x16x384xbf16>
    %37 = vector.shape_cast %36 : vector<16x16x384xbf16> to vector<256x384xbf16>
    %c1_36 = arith.constant 1 : index
    %c2_37 = arith.constant 2 : index
    %c0_38 = arith.constant 0 : index
    %c0_39 = arith.constant 0 : index
    %38 = vector.load %arg5[%c1_36, %c2_37, %c0_38, %c0_39] : memref<3x3x384x128xbf16, #tpu.memory_space<vmem>>, vector<1x1x384x128xbf16>
    %39 = vector.shape_cast %38 : vector<1x1x384x128xbf16> to vector<384x128xbf16>
    %cst_40 = arith.constant dense<0.000000e+00> : vector<256x128xf32>
    %40 = tpu.matmul %37, %39, %cst_40 {dimension_numbers = #tpu.dot_dimension_numbers<[1], [0], [0], [1], [0, 0, 1, 1], [], []>} : vector<256x384xbf16>, vector<384x128xbf16>, vector<256x128xf32> -> vector<256x128xf32>
    %41 = arith.addf %35, %40 : vector<256x128xf32>
    %42 = vector.extract_strided_slice %6 {offsets = [2, 0, 0], sizes = [16, 16, 384], strides = [1, 1, 1]} : vector<18x18x384xbf16> to vector<16x16x384xbf16>
    %43 = vector.shape_cast %42 : vector<16x16x384xbf16> to vector<256x384xbf16>
    %c2_41 = arith.constant 2 : index
    %c0_42 = arith.constant 0 : index
    %c0_43 = arith.constant 0 : index
    %c0_44 = arith.constant 0 : index
    %44 = vector.load %arg5[%c2_41, %c0_42, %c0_43, %c0_44] : memref<3x3x384x128xbf16, #tpu.memory_space<vmem>>, vector<1x1x384x128xbf16>
    %45 = vector.shape_cast %44 : vector<1x1x384x128xbf16> to vector<384x128xbf16>
    %cst_45 = arith.constant dense<0.000000e+00> : vector<256x128xf32>
    %46 = tpu.matmul %43, %45, %cst_45 {dimension_numbers = #tpu.dot_dimension_numbers<[1], [0], [0], [1], [0, 0, 1, 1], [], []>} : vector<256x384xbf16>, vector<384x128xbf16>, vector<256x128xf32> -> vector<256x128xf32>
    %47 = arith.addf %41, %46 : vector<256x128xf32>
    %48 = vector.extract_strided_slice %6 {offsets = [2, 1, 0], sizes = [16, 16, 384], strides = [1, 1, 1]} : vector<18x18x384xbf16> to vector<16x16x384xbf16>
    %49 = vector.shape_cast %48 : vector<16x16x384xbf16> to vector<256x384xbf16>
    %c2_46 = arith.constant 2 : index
    %c1_47 = arith.constant 1 : index
    %c0_48 = arith.constant 0 : index
    %c0_49 = arith.constant 0 : index
    %50 = vector.load %arg5[%c2_46, %c1_47, %c0_48, %c0_49] : memref<3x3x384x128xbf16, #tpu.memory_space<vmem>>, vector<1x1x384x128xbf16>
    %51 = vector.shape_cast %50 : vector<1x1x384x128xbf16> to vector<384x128xbf16>
    %cst_50 = arith.constant dense<0.000000e+00> : vector<256x128xf32>
    %52 = tpu.matmul %49, %51, %cst_50 {dimension_numbers = #tpu.dot_dimension_numbers<[1], [0], [0], [1], [0, 0, 1, 1], [], []>} : vector<256x384xbf16>, vector<384x128xbf16>, vector<256x128xf32> -> vector<256x128xf32>
    %53 = arith.addf %47, %52 : vector<256x128xf32>
    %54 = vector.extract_strided_slice %6 {offsets = [2, 2, 0], sizes = [16, 16, 384], strides = [1, 1, 1]} : vector<18x18x384xbf16> to vector<16x16x384xbf16>
    %55 = vector.shape_cast %54 : vector<16x16x384xbf16> to vector<256x384xbf16>
    %c2_51 = arith.constant 2 : index
    %c2_52 = arith.constant 2 : index
    %c0_53 = arith.constant 0 : index
    %c0_54 = arith.constant 0 : index
    %56 = vector.load %arg5[%c2_51, %c2_52, %c0_53, %c0_54] : memref<3x3x384x128xbf16, #tpu.memory_space<vmem>>, vector<1x1x384x128xbf16>
    %57 = vector.shape_cast %56 : vector<1x1x384x128xbf16> to vector<384x128xbf16>
    %cst_55 = arith.constant dense<0.000000e+00> : vector<256x128xf32>
    %58 = tpu.matmul %55, %57, %cst_55 {dimension_numbers = #tpu.dot_dimension_numbers<[1], [0], [0], [1], [0, 0, 1, 1], [], []>} : vector<256x384xbf16>, vector<384x128xbf16>, vector<256x128xf32> -> vector<256x128xf32>
    %59 = arith.addf %53, %58 : vector<256x128xf32>
    %c0_56 = arith.constant 0 : index
    %c0_57 = arith.constant 0 : index
    %60 = vector.load %arg6[%c0_56, %c0_57] : memref<1x128xf32, #tpu.memory_space<vmem>>, vector<1x128xf32>
    %61 = vector.broadcast %60 : vector<1x128xf32> to vector<256x128xf32>
    %62 = arith.addf %59, %61 : vector<256x128xf32>
    %63 = arith.truncf %62 : vector<256x128xf32> to vector<256x128xbf16>
    %c0_58 = arith.constant 0 : index
    %c0_59 = arith.constant 0 : index
    %c0_60 = arith.constant 0 : index
    %c0_61 = arith.constant 0 : index
    %64 = vector.load %arg7[%c0_58, %c0_59, %c0_60, %c0_61] : memref<1x1x256x128xbf16, #tpu.memory_space<vmem>>, vector<1x1x256x128xbf16>
    %65 = vector.shape_cast %64 : vector<1x1x256x128xbf16> to vector<256x128xbf16>
    %66 = vector.shape_cast %63 : vector<256x128xbf16> to vector<1x1x256x128xbf16>
    tpu.vector_store %arg7[%c0_58, %c0_59, %c0_60, %c0_61], %66 {strides = array<i32>} : memref<1x1x256x128xbf16, #tpu.memory_space<vmem>>, vector<1x1x256x128xbf16>,
    %cst_62 = arith.constant dense<0.000000e+00> : vector<128xf32>
    %67 = vector.multi_reduction <add>, %62, %cst_62 [0] : vector<256x128xf32> to vector<128xf32>
    %68 = vector.shape_cast %67 : vector<128xf32> to vector<1x128xf32>
    %c0_63 = arith.constant 0 : index
    %c0_64 = arith.constant 0 : index
    %c0_65 = arith.constant 0 : index
    %c0_66 = arith.constant 0 : index
    %69 = vector.load %arg8[%c0_63, %c0_64, %c0_65, %c0_66] : memref<1x1x1x128xf32, #tpu.memory_space<vmem>>, vector<1x1x1x128xf32>
    %70 = vector.shape_cast %69 : vector<1x1x1x128xf32> to vector<1x128xf32>
    %71 = vector.shape_cast %68 : vector<1x128xf32> to vector<1x1x1x128xf32>
    tpu.vector_store %arg8[%c0_63, %c0_64, %c0_65, %c0_66], %71 {strides = array<i32>} : memref<1x1x1x128xf32, #tpu.memory_space<vmem>>, vector<1x1x1x128xf32>,
    %72 = arith.mulf %62, %62 : vector<256x128xf32>
    %cst_67 = arith.constant dense<0.000000e+00> : vector<128xf32>
    %73 = vector.multi_reduction <add>, %72, %cst_67 [0] : vector<256x128xf32> to vector<128xf32>
    %74 = vector.shape_cast %73 : vector<128xf32> to vector<1x128xf32>
    %c0_68 = arith.constant 0 : index
    %c0_69 = arith.constant 0 : index
    %c0_70 = arith.constant 0 : index
    %c0_71 = arith.constant 0 : index
    %75 = vector.load %arg9[%c0_68, %c0_69, %c0_70, %c0_71] : memref<1x1x1x128xf32, #tpu.memory_space<vmem>>, vector<1x1x1x128xf32>
    %76 = vector.shape_cast %75 : vector<1x1x1x128xf32> to vector<1x128xf32>
    %77 = vector.shape_cast %74 : vector<1x128xf32> to vector<1x1x1x128xf32>
    tpu.vector_store %arg9[%c0_68, %c0_69, %c0_70, %c0_71], %77 {strides = array<i32>} : memref<1x1x1x128xf32, #tpu.memory_space<vmem>>, vector<1x1x1x128xf32>,
    return
  }
  func.func @transform_0(%arg0: i32, %arg1: i32) -> (i32, i32, i32, i32, i32) {
    %c0_i32 = arith.constant 0 : i32
    %0 = arith.addi %arg1, %c0_i32 : i32
    %c0_i32_0 = arith.constant 0 : i32
    %c0_i32_1 = arith.constant 0 : i32
    %c0_i32_2 = arith.constant 0 : i32
    %c0_i32_3 = arith.constant 0 : i32
    return %arg0, %0, %c0_i32_0, %c0_i32_1, %c0_i32_2 : i32, i32, i32, i32, i32
  }
  func.func @transform_1(%arg0: i32, %arg1: i32) -> (i32, i32, i32, i32, i32) {
    %c1_i32 = arith.constant 1 : i32
    %0 = arith.addi %arg1, %c1_i32 : i32
    %c0_i32 = arith.constant 0 : i32
    %c0_i32_0 = arith.constant 0 : i32
    %c0_i32_1 = arith.constant 0 : i32
    %c0_i32_2 = arith.constant 0 : i32
    return %arg0, %0, %c0_i32, %c0_i32_0, %c0_i32_1 : i32, i32, i32, i32, i32
  }
  func.func @transform_2(%arg0: i32, %arg1: i32) -> (i32, i32, i32, i32, i32) {
    %c2_i32 = arith.constant 2 : i32
    %0 = arith.addi %arg1, %c2_i32 : i32
    %c0_i32 = arith.constant 0 : i32
    %c0_i32_0 = arith.constant 0 : i32
    %c0_i32_1 = arith.constant 0 : i32
    %c0_i32_2 = arith.constant 0 : i32
    return %arg0, %0, %c0_i32, %c0_i32_0, %c0_i32_1 : i32, i32, i32, i32, i32
  }
  func.func @transform_3(%arg0: i32, %arg1: i32) -> (i32, i32, i32, i32) {
    %c0_i32 = arith.constant 0 : i32
    %c0_i32_0 = arith.constant 0 : i32
    %c0_i32_1 = arith.constant 0 : i32
    %c0_i32_2 = arith.constant 0 : i32
    %c0_i32_3 = arith.constant 0 : i32
    return %c0_i32, %c0_i32_0, %c0_i32_1, %c0_i32_2 : i32, i32, i32, i32
  }
  func.func @transform_4(%arg0: i32, %arg1: i32) -> (i32, i32) {
    %c0_i32 = arith.constant 0 : i32
    %c0_i32_0 = arith.constant 0 : i32
    %c0_i32_1 = arith.constant 0 : i32
    return %c0_i32, %c0_i32_0 : i32, i32
  }
  func.func @transform_5(%arg0: i32, %arg1: i32) -> (i32, i32, i32, i32) {
    %c0_i32 = arith.constant 0 : i32
    %c0_i32_0 = arith.constant 0 : i32
    %c0_i32_1 = arith.constant 0 : i32
    return %arg0, %arg1, %c0_i32, %c0_i32_0 : i32, i32, i32, i32
  }
  func.func @transform_6(%arg0: i32, %arg1: i32) -> (i32, i32, i32, i32) {
    %c0_i32 = arith.constant 0 : i32
    %c0_i32_0 = arith.constant 0 : i32
    %c0_i32_1 = arith.constant 0 : i32
    return %arg0, %arg1, %c0_i32, %c0_i32_0 : i32, i32, i32, i32
  }
  func.func @transform_7(%arg0: i32, %arg1: i32) -> (i32, i32, i32, i32) {
    %c0_i32 = arith.constant 0 : i32
    %c0_i32_0 = arith.constant 0 : i32
    %c0_i32_1 = arith.constant 0 : i32
    return %arg0, %arg1, %c0_i32, %c0_i32_0 : i32, i32, i32, i32
  }
}

module attributes {stable_mosaic.version = 11 : i64} {
  func.func @_bn_lrelu_kernel(%arg0: i32, %arg1: i32, %arg2: memref<1x1x256x128xbf16, #tpu.memory_space<vmem>>, %arg3: memref<1x128xf32, #tpu.memory_space<vmem>>, %arg4: memref<1x128xf32, #tpu.memory_space<vmem>>, %arg5: memref<1x1x256x128xbf16, #tpu.memory_space<vmem>>) attributes {dimension_semantics = [#tpu.dimension_semantics<parallel>, #tpu.dimension_semantics<parallel>], iteration_bounds = array<i64: 2, 4>, scalar_prefetch = 0 : i64, scratch_operands = 0 : i64, tpu.core_type = #tpu.core_type<tc>, window_params = [{transform_indices = @transform_0, window_bounds = array<i64: 1, 1, 256, 128>}, {pipeline_mode = #tpu.pipeline_mode<synchronous>, transform_indices = @transform_1, window_bounds = array<i64: 1, 128>}, {pipeline_mode = #tpu.pipeline_mode<synchronous>, transform_indices = @transform_2, window_bounds = array<i64: 1, 128>}, {transform_indices = @transform_3, window_bounds = array<i64: 1, 1, 256, 128>}]} {
    %c0 = arith.constant 0 : index
    %c0_0 = arith.constant 0 : index
    %c0_1 = arith.constant 0 : index
    %c0_2 = arith.constant 0 : index
    %0 = vector.load %arg2[%c0, %c0_0, %c0_1, %c0_2] : memref<1x1x256x128xbf16, #tpu.memory_space<vmem>>, vector<1x1x256x128xbf16>
    %1 = vector.shape_cast %0 : vector<1x1x256x128xbf16> to vector<256x128xbf16>
    %2 = arith.extf %1 : vector<256x128xbf16> to vector<256x128xf32>
    %c0_3 = arith.constant 0 : index
    %c0_4 = arith.constant 0 : index
    %3 = vector.load %arg3[%c0_3, %c0_4] : memref<1x128xf32, #tpu.memory_space<vmem>>, vector<1x128xf32>
    %4 = vector.broadcast %3 : vector<1x128xf32> to vector<256x128xf32>
    %5 = arith.mulf %2, %4 : vector<256x128xf32>
    %c0_5 = arith.constant 0 : index
    %c0_6 = arith.constant 0 : index
    %6 = vector.load %arg4[%c0_5, %c0_6] : memref<1x128xf32, #tpu.memory_space<vmem>>, vector<1x128xf32>
    %7 = vector.broadcast %6 : vector<1x128xf32> to vector<256x128xf32>
    %8 = arith.addf %5, %7 : vector<256x128xf32>
    %cst = arith.constant 0.000000e+00 : f32
    %9 = vector.broadcast %cst : f32 to vector<256x128xf32>
    %10 = arith.cmpf oge, %8, %9 : vector<256x128xf32>
    %cst_7 = arith.constant 0.00999999977 : f32
    %11 = vector.broadcast %cst_7 : f32 to vector<256x128xf32>
    %12 = arith.mulf %11, %8 : vector<256x128xf32>
    %13 = arith.select %10, %8, %12 : vector<256x128xi1>, vector<256x128xf32>
    %14 = arith.truncf %13 : vector<256x128xf32> to vector<256x128xbf16>
    %c0_8 = arith.constant 0 : index
    %c0_9 = arith.constant 0 : index
    %c0_10 = arith.constant 0 : index
    %c0_11 = arith.constant 0 : index
    %15 = vector.load %arg5[%c0_8, %c0_9, %c0_10, %c0_11] : memref<1x1x256x128xbf16, #tpu.memory_space<vmem>>, vector<1x1x256x128xbf16>
    %16 = vector.shape_cast %15 : vector<1x1x256x128xbf16> to vector<256x128xbf16>
    %17 = vector.shape_cast %14 : vector<256x128xbf16> to vector<1x1x256x128xbf16>
    tpu.vector_store %arg5[%c0_8, %c0_9, %c0_10, %c0_11], %17 {strides = array<i32>} : memref<1x1x256x128xbf16, #tpu.memory_space<vmem>>, vector<1x1x256x128xbf16>,
    return
  }
  func.func @transform_0(%arg0: i32, %arg1: i32) -> (i32, i32, i32, i32) {
    %c0_i32 = arith.constant 0 : i32
    %c0_i32_0 = arith.constant 0 : i32
    %c0_i32_1 = arith.constant 0 : i32
    return %arg0, %arg1, %c0_i32, %c0_i32_0 : i32, i32, i32, i32
  }
  func.func @transform_1(%arg0: i32, %arg1: i32) -> (i32, i32) {
    %c0_i32 = arith.constant 0 : i32
    %c0_i32_0 = arith.constant 0 : i32
    %c0_i32_1 = arith.constant 0 : i32
    return %c0_i32, %c0_i32_0 : i32, i32
  }
  func.func @transform_2(%arg0: i32, %arg1: i32) -> (i32, i32) {
    %c0_i32 = arith.constant 0 : i32
    %c0_i32_0 = arith.constant 0 : i32
    %c0_i32_1 = arith.constant 0 : i32
    return %c0_i32, %c0_i32_0 : i32, i32
  }
  func.func @transform_3(%arg0: i32, %arg1: i32) -> (i32, i32, i32, i32) {
    %c0_i32 = arith.constant 0 : i32
    %c0_i32_0 = arith.constant 0 : i32
    %c0_i32_1 = arith.constant 0 : i32
    return %arg0, %arg1, %c0_i32, %c0_i32_0 : i32, i32, i32, i32
  }
}

module attributes {stable_mosaic.version = 11 : i64} {
  func.func @kernel(%arg0: i32, %arg1: i32, %arg2: memref<1x1x256x128xbf16, #tpu.memory_space<vmem>>, %arg3: memref<1x128xf32, #tpu.memory_space<vmem>>, %arg4: memref<1x128xf32, #tpu.memory_space<vmem>>, %arg5: memref<1x4x256xf32, #tpu.memory_space<vmem>>) attributes {dimension_semantics = [#tpu.dimension_semantics<parallel>, #tpu.dimension_semantics<parallel>], iteration_bounds = array<i64: 2, 4>, scalar_prefetch = 0 : i64, scratch_operands = 0 : i64, tpu.core_type = #tpu.core_type<tc>, window_params = [{transform_indices = @transform_0, window_bounds = array<i64: 1, 1, 256, 128>}, {pipeline_mode = #tpu.pipeline_mode<synchronous>, transform_indices = @transform_1, window_bounds = array<i64: 1, 128>}, {pipeline_mode = #tpu.pipeline_mode<synchronous>, transform_indices = @transform_2, window_bounds = array<i64: 1, 128>}, {transform_indices = @transform_3, window_bounds = array<i64: 1, 4, 256>}]} {
    %c0 = arith.constant 0 : index
    %c0_0 = arith.constant 0 : index
    %c0_1 = arith.constant 0 : index
    %c0_2 = arith.constant 0 : index
    %0 = vector.load %arg2[%c0, %c0_0, %c0_1, %c0_2] : memref<1x1x256x128xbf16, #tpu.memory_space<vmem>>, vector<1x1x256x128xbf16>
    %1 = vector.shape_cast %0 : vector<1x1x256x128xbf16> to vector<256x128xbf16>
    %2 = arith.extf %1 : vector<256x128xbf16> to vector<256x128xf32>
    %c0_3 = arith.constant 0 : index
    %c0_4 = arith.constant 0 : index
    %3 = vector.load %arg3[%c0_3, %c0_4] : memref<1x128xf32, #tpu.memory_space<vmem>>, vector<1x128xf32>
    %4 = vector.broadcast %3 : vector<1x128xf32> to vector<256x128xf32>
    %5 = arith.mulf %2, %4 : vector<256x128xf32>
    %c0_5 = arith.constant 0 : index
    %c0_6 = arith.constant 0 : index
    %6 = vector.load %arg4[%c0_5, %c0_6] : memref<1x128xf32, #tpu.memory_space<vmem>>, vector<1x128xf32>
    %7 = vector.broadcast %6 : vector<1x128xf32> to vector<256x128xf32>
    %8 = arith.addf %5, %7 : vector<256x128xf32>
    %cst = arith.constant 0.000000e+00 : f32
    %9 = vector.broadcast %cst : f32 to vector<256x128xf32>
    %10 = arith.cmpf oge, %8, %9 : vector<256x128xf32>
    %cst_7 = arith.constant 0.00999999977 : f32
    %11 = vector.broadcast %cst_7 : f32 to vector<256x128xf32>
    %12 = arith.mulf %11, %8 : vector<256x128xf32>
    %13 = arith.select %10, %8, %12 : vector<256x128xi1>, vector<256x128xf32>
    %14 = tpu.transpose %13, [1, 0] : vector<256x128xf32> -> vector<128x256xf32>
    %15 = vector.extract_strided_slice %14 {offsets = [0, 0], sizes = [4, 256], strides = [1, 1]} : vector<128x256xf32> to vector<4x256xf32>
    %c0_8 = arith.constant 0 : index
    %c0_9 = arith.constant 0 : index
    %c0_10 = arith.constant 0 : index
    %16 = vector.load %arg5[%c0_8, %c0_9, %c0_10] : memref<1x4x256xf32, #tpu.memory_space<vmem>>, vector<1x4x256xf32>
    %17 = vector.shape_cast %16 : vector<1x4x256xf32> to vector<4x256xf32>
    %18 = vector.shape_cast %15 : vector<4x256xf32> to vector<1x4x256xf32>
    tpu.vector_store %arg5[%c0_8, %c0_9, %c0_10], %18 {strides = array<i32>} : memref<1x4x256xf32, #tpu.memory_space<vmem>>, vector<1x4x256xf32>,
    return
  }
  func.func @transform_0(%arg0: i32, %arg1: i32) -> (i32, i32, i32, i32) {
    %c0_i32 = arith.constant 0 : i32
    %c0_i32_0 = arith.constant 0 : i32
    %c0_i32_1 = arith.constant 0 : i32
    return %arg0, %arg1, %c0_i32, %c0_i32_0 : i32, i32, i32, i32
  }
  func.func @transform_1(%arg0: i32, %arg1: i32) -> (i32, i32) {
    %c0_i32 = arith.constant 0 : i32
    %c0_i32_0 = arith.constant 0 : i32
    %c0_i32_1 = arith.constant 0 : i32
    return %c0_i32, %c0_i32_0 : i32, i32
  }
  func.func @transform_2(%arg0: i32, %arg1: i32) -> (i32, i32) {
    %c0_i32 = arith.constant 0 : i32
    %c0_i32_0 = arith.constant 0 : i32
    %c0_i32_1 = arith.constant 0 : i32
    return %c0_i32, %c0_i32_0 : i32, i32
  }
  func.func @transform_3(%arg0: i32, %arg1: i32) -> (i32, i32, i32) {
    %c0_i32 = arith.constant 0 : i32
    %c0_i32_0 = arith.constant 0 : i32
    return %arg0, %c0_i32, %arg1 : i32, i32, i32
  }
}

</mosaic_0001>

<bundles_post_ra>
// kernel: tile.8
= control target key start
LH: loop header
LB: loop body
LE: loop exit
PB: predicated region body
PF: predicated region fallthrough
CT: control target
= control target key end

     0   :  { %2 = vsyncpa [#allocation1], 0  ;;  %s44_s6 = smov [#allocation0]   ;;  %s70_s0 = inlined_call_operand.hbm [shape: f32[4], index: 0, kind: input, shape index: {}]   ;;  %s71_s1 = inlined_call_operand.vmem [shape: f32[4,4], index: 1, kind: output, shape index: {}]  }
   0x1   :  { %s9_s7 = sshll.u32 %s44_s6, 4  ;;  %s20_s10 = scalar_lea.hbm %s70_s0, 16  ;;  %s10_s7 = int_to_ptr.vmem [resolvable:$true] %s9_s7 }
   0x2   :  { %p21_p0 = scmp.ne.s32.totalorder %s70_s0, %s20_s10  ;;  %p24_p1 = scmp.lt.u32.totalorder %s20_s10, %s70_s0 }
   0x4   :  { %p26_p2 = pnand %p24_p1, %p21_p0 }
   0x6   :  { %29 = shalt.err (!%p26_p2)
}
   0x7   :  { %s30_s15 = scalar_lea.vmem %s10_s7, 16  ;;  %s34_s16 = scalar_lea.vmem %s10_s7, 32 }
   0x8   :  { %p31_p3 = scmp.ne.s32.totalorder %s10_s7, %s30_s15  ;;  %p35_p4 = scmp.lt.s32.totalorder %s10_s7, %s10_s7 }
   0x9   :  { %p36_p5 = scmp.lt.s32.totalorder %s34_s16, %s30_s15 }
   0xb   :  { %p37_p6 = por %p36_p5, %p35_p4 }
   0xd   :  { %p38_p7 = pnand %p37_p6, %p31_p3 }
   0xf   :  { %41 = shalt.err (!%p38_p7)
}
  0x10   :  { %12 = dma.hbm_to_vmem [thread:$0]  %s70_s0, 16, %s10_s7, [#allocation1]  }
  0x11   :  { %42 = dma.done.wait [#allocation1], 16  }
  0x12   :  { %43 = vsyncadd [#allocation1], 4294967280  ;;  %v16_v0 = vld [vmem:[#allocation0] ss:$0 sm:$0xff] }
  0x13   :  { %17 = vst [vmem:[%s71_s1] sm:$0xf] %v16_v0 }
  0x14   :  { %18 = vsyncpa [#allocation1], 1 }

// kernel: tile.9
= control target key start
LH: loop header
LB: loop body
LE: loop exit
PB: predicated region body
PF: predicated region fallthrough
CT: control target
= control target key end

     0   :  { %vm7_vm0 = vcmask 31744   ;;  %s37_s8 = smov 4   ;;  %s38_s9 = smov 8   ;;  %vm13_vm1 = vcmask 130144   ;;  %vm19_vm2 = vcmask 97344   ;;  %vm25_vm3 = vcmask 64544   ;;  %s55_s0 = inlined_call_operand.vmem [shape: f32[4,4], index: 0, kind: input, shape index: {}]   ;;  %s56_s1 = inlined_call_operand.vmem [shape: f32[16], index: 1, kind: output, shape index: {}]  }
   0x1   :  { %v4_v0 = vld [vmem:[%s55_s0] sm:$0xf]  ;;  %s36_s0 = smov 12  }
   0x2   :  { %5 = vst [vmem:[#allocation1] sm:$0xf] %v4_v0 }
   0x9   :  { %v10_v1 = vld [vmem:[#allocation1 + $0x3] sm:$0x1]   ;;  %v22_v2 = vld [vmem:[#allocation1 + $0x1] sm:$0x1]   ;;  %v6_v3 = vld [vmem:[#allocation1] sm:$0x1]  }
   0xa   :  { %11 = vrot.lane.b32.xlu0 %v10_v1, %s36_s0  ;;  %23 = vrot.lane.b32.xlu1 %v22_v2, %s37_s8  ;;  %v16_v4 = vld [vmem:[#allocation1 + $0x2] sm:$0x1]   ;;  %8 = vst.msk [vmem:[#allocation0] sm:$0x1] %vm7_vm0, %v6_v3  }
   0xe   :  { %17 = vrot.lane.b32.xlu0 %v16_v4, %s38_s9 }
  0x7c   :  { %v12_v5 = vpop.permute.xlu0 %11   ;;  %v24_v6 = vpop.permute.xlu1 %23  }
  0x7d   :  { %14 = vst.msk [vmem:[#allocation0] sm:$0x1] %vm13_vm1, %v12_v5  }
  0x80   :  { %v18_v7 = vpop.permute.xlu0 %17  }
  0x81   :  { %20 = vst.msk [vmem:[#allocation0] sm:$0x1] %vm19_vm2, %v18_v7  }
  0x82   :  { %26 = vst.msk [vmem:[#allocation0] sm:$0x1] %vm25_vm3, %v24_v6  }
  0x89   :  { %v30_v8 = vld [vmem:[#allocation0] sm:$0x1] }
  0x8a   :  { %32 = vst [vmem:[%s56_s1] sm:$0x1] %v30_v8 }

// kernel: up_forward.5
= control target key start
LH: loop header
LB: loop body
LE: loop exit
PB: predicated region body
PF: predicated region fallthrough
CT: control target
= control target key end

     0   :  { %s1796_s1 = inlined_call_operand.vmem [shape: bf16[128,128], index: 1, kind: input, shape index: {}]   ;;  %s1797_s0 = inlined_call_operand.vmem [shape: bf16[512,128], index: 0, kind: input, shape index: {}]   ;;  %s1798_s2 = inlined_call_operand.vmem [shape: f32[1,128], index: 2, kind: input, shape index: {}]   ;;  %s1799_s3 = inlined_call_operand.vmem [shape: bf16[512,128], index: 3, kind: output, shape index: {}]  }
   0x1   :  { %v1451_v0 = vld [vmem:[%s1796_s1] sm:$0xff]   ;;  %v1452_v1 = vld [vmem:[%s1796_s1 + $0x8] sm:$0xff]   ;;  %v1453_v2 = vld [vmem:[%s1796_s1 + $0x10] sm:$0xff]  }
   0x2   :  { %1355 = vmatprep.subr.bf16.mxu0 %v1451_v0  ;;  %1435 = vmatprep.subr.bf16.mxu1 %v1451_v0  ;;  %v1454_v3 = vld [vmem:[%s1796_s1 + $0x18] sm:$0xff]   ;;  %v1459_v4 = vld [vmem:[%s1797_s0] sm:$0xff]   ;;  %v1456_v7 = vld [vmem:[%s1796_s1 + $0x28] sm:$0xff]  }
   0x3   :  { %1356 = vmatpush3.bf16.msra.mxu0 %v1451_v0  ;;  %1443 = vmatpush3.bf16.msra.mxu1 %v1451_v0  ;;  %v1460_v5 = vld [vmem:[%s1797_s0 + $0x80] sm:$0xff]   ;;  %v1457_v8 = vld [vmem:[%s1796_s1 + $0x30] sm:$0xff]   ;;  %v1458_v9 = vld [vmem:[%s1796_s1 + $0x38] sm:$0xff]  }
   0x4   :  { %1357 = vmatprep.subr.bf16.mxu0 %v1452_v1  ;;  %1436 = vmatprep.subr.bf16.mxu1 %v1452_v1  ;;  %v1455_v6 = vld [vmem:[%s1796_s1 + $0x20] sm:$0xff]   ;;  %v1461_v10 = vld [vmem:[%s1797_s0 + $0x8] sm:$0xff]   ;;  %v1463_v12 = vld [vmem:[%s1797_s0 + $0x10] sm:$0xff]  }
   0x5   :  { %1371 = vmatprep.mubr.bf16.mxu0 %v1459_v4  ;;  %1403 = vmatprep.mubr.bf16.mxu1 %v1460_v5  ;;  %v1462_v11 = vld [vmem:[%s1797_s0 + $0x88] sm:$0xff]   ;;  %v1464_v13 = vld [vmem:[%s1797_s0 + $0x90] sm:$0xff]   ;;  %v1465_v14 = vld [vmem:[%s1797_s0 + $0x18] sm:$0xff]  }
   0x6   :  { %v1466_v15 = vld [vmem:[%s1797_s0 + $0x98] sm:$0xff]   ;;  %v1467_v16 = vld [vmem:[%s1797_s0 + $0x20] sm:$0xff]   ;;  %v1469_v18 = vld [vmem:[%s1797_s0 + $0x28] sm:$0xff]  }
   0x7   :  { %1358 = vmatpush3.bf16.msra.mxu0 %v1452_v1  ;;  %1444 = vmatpush3.bf16.msra.mxu1 %v1452_v1  ;;  %v1468_v17 = vld [vmem:[%s1797_s0 + $0xa0] sm:$0xff]   ;;  %v1470_v19 = vld [vmem:[%s1797_s0 + $0xa8] sm:$0xff]   ;;  %v1471_v20 = vld [vmem:[%s1797_s0 + $0x30] sm:$0xff]  }
   0x8   :  { %1359 = vmatprep.subr.bf16.mxu0 %v1453_v2  ;;  %1437 = vmatprep.subr.bf16.mxu1 %v1453_v2  ;;  %v1472_v21 = vld [vmem:[%s1797_s0 + $0xb0] sm:$0xff]   ;;  %v1473_v22 = vld [vmem:[%s1797_s0 + $0x38] sm:$0xff]   ;;  %v1475_v24 = vld [vmem:[%s1797_s0 + $0x40] sm:$0xff]  }
   0x9   :  { %v1474_v23 = vld [vmem:[%s1797_s0 + $0xb8] sm:$0xff]   ;;  %v1476_v25 = vld [vmem:[%s1797_s0 + $0xc0] sm:$0xff]   ;;  %v1477_v26 = vld [vmem:[%s1797_s0 + $0x48] sm:$0xff]  }
   0xa   :  { %v1478_v27 = vld [vmem:[%s1797_s0 + $0xc8] sm:$0xff]   ;;  %v1479_v28 = vld [vmem:[%s1797_s0 + $0x50] sm:$0xff]   ;;  %v1481_v30 = vld [vmem:[%s1797_s0 + $0x58] sm:$0xff]  }
   0xb   :  { %1360 = vmatpush3.bf16.msra.mxu0 %v1453_v2  ;;  %1445 = vmatpush3.bf16.msra.mxu1 %v1453_v2  ;;  %v1480_v29 = vld [vmem:[%s1797_s0 + $0xd0] sm:$0xff]   ;;  %v1482_v31 = vld [vmem:[%s1797_s0 + $0xd8] sm:$0xff]   ;;  %v1483_v32 = vld [vmem:[%s1797_s0 + $0x60] sm:$0xff]  }
   0xc   :  { %1361 = vmatprep.subr.bf16.mxu0 %v1454_v3  ;;  %1438 = vmatprep.subr.bf16.mxu1 %v1454_v3  ;;  %v1484_v33 = vld [vmem:[%s1797_s0 + $0xe0] sm:$0xff]   ;;  %v1485_v34 = vld [vmem:[%s1797_s0 + $0x68] sm:$0xff]   ;;  %v1487_v36 = vld [vmem:[%s1797_s0 + $0x70] sm:$0xff]  }
   0xd   :  { %v1486_v35 = vld [vmem:[%s1797_s0 + $0xe8] sm:$0xff]   ;;  %v1488_v37 = vld [vmem:[%s1797_s0 + $0xf0] sm:$0xff]   ;;  %v1489_v38 = vld [vmem:[%s1797_s0 + $0x78] sm:$0xff]  }
   0xe   :  { %v1490_v39 = vld [vmem:[%s1797_s0 + $0xf8] sm:$0xff]   ;;  %v1634_v41 = vld [vmem:[%s1798_s2] ss:$0 sm:$0xff] }
   0xf   :  { %1362 = vmatpush3.bf16.msra.mxu0 %v1454_v3  ;;  %1446 = vmatpush3.bf16.msra.mxu1 %v1454_v3 }
  0x10   :  { %1363 = vmatprep.subr.bf16.mxu0 %v1455_v6  ;;  %1439 = vmatprep.subr.bf16.mxu1 %v1455_v6 }
  0x13   :  { %1364 = vmatpush3.bf16.msra.mxu0 %v1455_v6  ;;  %1447 = vmatpush3.bf16.msra.mxu1 %v1455_v6 }
  0x14   :  { %1365 = vmatprep.subr.bf16.mxu0 %v1456_v7  ;;  %1440 = vmatprep.subr.bf16.mxu1 %v1456_v7 }
  0x17   :  { %1366 = vmatpush3.bf16.msra.mxu0 %v1456_v7  ;;  %1448 = vmatpush3.bf16.msra.mxu1 %v1456_v7 }
  0x18   :  { %1367 = vmatprep.subr.bf16.mxu0 %v1457_v8  ;;  %1441 = vmatprep.subr.bf16.mxu1 %v1457_v8 }
  0x1b   :  { %1368 = vmatpush3.bf16.msra.mxu0 %v1457_v8  ;;  %1449 = vmatpush3.bf16.msra.mxu1 %v1457_v8 }
  0x1c   :  { %1369 = vmatprep.subr.bf16.mxu0 %v1458_v9  ;;  %1442 = vmatprep.subr.bf16.mxu1 %v1458_v9 }
  0x1f   :  { %1370 = vmatpush3.bf16.msra.mxu0 %v1458_v9  ;;  %1450 = vmatpush3.bf16.msra.mxu1 %v1458_v9 }
  0x22   :  { %1372 = vmatmul.mubr.bf16.vlgmr.msra.gmra.mrb[0].mxu0 %v1461_v10  ;;  %1404 = vmatmul.mubr.bf16.vlgmr.msra.gmra.mrb[0].mxu1 %v1462_v11 }
  0x23   :  { %1375 = vmatprep.mubr.bf16.mxu0 %v1463_v12  ;;  %1407 = vmatprep.mubr.bf16.mxu1 %v1464_v13 }
  0x2a   :  { %1376 = vmatmul.mubr.bf16.gmra.mrb[4].mxu0 %v1465_v14  ;;  %1408 = vmatmul.mubr.bf16.gmra.mrb[4].mxu1 %v1466_v15 }
  0x2b   :  { %1379 = vmatprep.mubr.bf16.mxu0 %v1467_v16  ;;  %1411 = vmatprep.mubr.bf16.mxu1 %v1468_v17 }
  0x32   :  { %1380 = vmatmul.mubr.bf16.gmra.mrb[8].mxu0 %v1469_v18  ;;  %1412 = vmatmul.mubr.bf16.gmra.mrb[8].mxu1 %v1470_v19 }
  0x33   :  { %1383 = vmatprep.mubr.bf16.mxu0 %v1471_v20  ;;  %1415 = vmatprep.mubr.bf16.mxu1 %v1472_v21 }
  0x3a   :  { %1384 = vmatmul.mubr.bf16.gmra.mrb[12].mxu0 %v1473_v22  ;;  %1416 = vmatmul.mubr.bf16.gmra.mrb[12].mxu1 %v1474_v23 }
  0x3b   :  { %1387 = vmatprep.mubr.bf16.mxu0 %v1475_v24  ;;  %1419 = vmatprep.mubr.bf16.mxu1 %v1476_v25 }
  0x42   :  { %1388 = vmatmul.mubr.bf16.gmra.mrb[16].mxu0 %v1477_v26  ;;  %1420 = vmatmul.mubr.bf16.gmra.mrb[16].mxu1 %v1478_v27 }
  0x43   :  { %1391 = vmatprep.mubr.bf16.mxu0 %v1479_v28  ;;  %1423 = vmatprep.mubr.bf16.mxu1 %v1480_v29 }
  0x4a   :  { %1392 = vmatmul.mubr.bf16.gmra.mrb[20].mxu0 %v1481_v30  ;;  %1424 = vmatmul.mubr.bf16.gmra.mrb[20].mxu1 %v1482_v31 }
  0x4b   :  { %1395 = vmatprep.mubr.bf16.mxu0 %v1483_v32  ;;  %1427 = vmatprep.mubr.bf16.mxu1 %v1484_v33 }
  0x52   :  { %1396 = vmatmul.mubr.bf16.gmra.mrb[24].mxu0 %v1485_v34  ;;  %1428 = vmatmul.mubr.bf16.gmra.mrb[24].mxu1 %v1486_v35 }
  0x53   :  { %1399 = vmatprep.mubr.bf16.mxu0 %v1487_v36  ;;  %1431 = vmatprep.mubr.bf16.mxu1 %v1488_v37 }
  0x5a   :  { %1400 = vmatmul.mubr.bf16.gmra.mrb[28].mxu0 %v1489_v38  ;;  %1432 = vmatmul.mubr.bf16.gmra.mrb[28].mxu1 %v1490_v39 }
  0xf5   :  { %v1373_v40 = vpop.f32.mrb[0].mxu0  ;;  %v1405_v42 = vpop.f32.mrb[0].mxu1 }
  0xf6   :  { %v376_v43 = vpop.f32.mrb[1].mxu0  ;;  %v504_v44 = vpop.f32.mrb[1].mxu1  ;;  %v385_v47 = vadd.f32 %v1373_v40, %v1634_v41  ;;  %v513_v48 = vadd.f32 %v1405_v42, %v1634_v41 }
  0xf7   :  { %v1374_v45 = vpop.f32.mrb[2].mxu0  ;;  %v1406_v46 = vpop.f32.mrb[2].mxu1  ;;  %v377_v53 = vadd.f32 %v1634_v41, %v376_v43  ;;  %v505_v54 = vadd.f32 %v1634_v41, %v504_v44 }
  0xf8   :  { %v388_v49 = vadd.f32 %v1374_v45, %v1634_v41  ;;  %v516_v50 = vadd.f32 %v1406_v46, %v1634_v41  ;;  %v379_v51 = vpop.f32.mrb[3].mxu0  ;;  %v507_v52 = vpop.f32.mrb[3].mxu1 }
  0xf9   :  { %v380_v55 = vadd.f32 %v1634_v41, %v379_v51  ;;  %v508_v56 = vadd.f32 %v1634_v41, %v507_v52 }
  0xfa   :  { %v1132_v57 = vpack.c.bf16 %v388_v49, %v385_v47  ;;  %v1212_v58 = vpack.c.bf16 %v516_v50, %v513_v48 }
  0xfb   :  { %v1127_v59 = vpack.c.bf16 %v380_v55, %v377_v53  ;;  %v1207_v60 = vpack.c.bf16 %v508_v56, %v505_v54 }
  0xfc   :  { %1284 = vst [vmem:[%s1799_s3 + $0x8] sm:$0xff] %v1132_v57   ;;  %1300 = vst [vmem:[%s1799_s3 + $0x88] sm:$0xff] %v1212_v58  }
  0xfd   :  { %1128 = vst [vmem:[%s1799_s3] sm:$0xff] %v1127_v59   ;;  %1299 = vst [vmem:[%s1799_s3 + $0x80] sm:$0xff] %v1207_v60   ;;  %v1377_v61 = vpop.f32.mrb[4].mxu0  ;;  %v1409_v62 = vpop.f32.mrb[4].mxu1 }
  0xfe   :  { %v392_v63 = vpop.f32.mrb[5].mxu0  ;;  %v520_v0 = vpop.f32.mrb[5].mxu1  ;;  %v401_v3 = vadd.f32 %v1377_v61, %v1634_v41  ;;  %v529_v4 = vadd.f32 %v1409_v62, %v1634_v41 }
  0xff   :  { %v1378_v1 = vpop.f32.mrb[6].mxu0  ;;  %v1410_v2 = vpop.f32.mrb[6].mxu1  ;;  %v393_v9 = vadd.f32 %v1634_v41, %v392_v63  ;;  %v521_v10 = vadd.f32 %v1634_v41, %v520_v0 }
 0x100   :  { %v404_v5 = vadd.f32 %v1378_v1, %v1634_v41  ;;  %v532_v6 = vadd.f32 %v1410_v2, %v1634_v41  ;;  %v395_v7 = vpop.f32.mrb[7].mxu0  ;;  %v523_v8 = vpop.f32.mrb[7].mxu1 }
 0x101   :  { %v396_v11 = vadd.f32 %v1634_v41, %v395_v7  ;;  %v524_v12 = vadd.f32 %v1634_v41, %v523_v8 }
 0x102   :  { %v1142_v13 = vpack.c.bf16 %v404_v5, %v401_v3  ;;  %v1222_v14 = vpack.c.bf16 %v532_v6, %v529_v4 }
 0x103   :  { %v1137_v15 = vpack.c.bf16 %v396_v11, %v393_v9  ;;  %v1217_v16 = vpack.c.bf16 %v524_v12, %v521_v10 }
 0x104   :  { %1286 = vst [vmem:[%s1799_s3 + $0x18] sm:$0xff] %v1142_v13   ;;  %1302 = vst [vmem:[%s1799_s3 + $0x98] sm:$0xff] %v1222_v14  }
 0x105   :  { %1285 = vst [vmem:[%s1799_s3 + $0x10] sm:$0xff] %v1137_v15   ;;  %1301 = vst [vmem:[%s1799_s3 + $0x90] sm:$0xff] %v1217_v16   ;;  %v1381_v17 = vpop.f32.mrb[8].mxu0  ;;  %v1413_v18 = vpop.f32.mrb[8].mxu1 }
 0x106   :  { %v408_v19 = vpop.f32.mrb[9].mxu0  ;;  %v536_v20 = vpop.f32.mrb[9].mxu1  ;;  %v417_v23 = vadd.f32 %v1381_v17, %v1634_v41  ;;  %v545_v24 = vadd.f32 %v1413_v18, %v1634_v41 }
 0x107   :  { %v1382_v21 = vpop.f32.mrb[10].mxu0  ;;  %v1414_v22 = vpop.f32.mrb[10].mxu1  ;;  %v409_v29 = vadd.f32 %v1634_v41, %v408_v19  ;;  %v537_v30 = vadd.f32 %v1634_v41, %v536_v20 }
 0x108   :  { %v420_v25 = vadd.f32 %v1382_v21, %v1634_v41  ;;  %v548_v26 = vadd.f32 %v1414_v22, %v1634_v41  ;;  %v411_v27 = vpop.f32.mrb[11].mxu0  ;;  %v539_v28 = vpop.f32.mrb[11].mxu1 }
 0x109   :  { %v412_v31 = vadd.f32 %v1634_v41, %v411_v27  ;;  %v540_v32 = vadd.f32 %v1634_v41, %v539_v28 }
 0x10a   :  { %v1152_v33 = vpack.c.bf16 %v420_v25, %v417_v23  ;;  %v1232_v34 = vpack.c.bf16 %v548_v26, %v545_v24 }
 0x10b   :  { %v1147_v35 = vpack.c.bf16 %v412_v31, %v409_v29  ;;  %v1227_v36 = vpack.c.bf16 %v540_v32, %v537_v30 }
 0x10c   :  { %1288 = vst [vmem:[%s1799_s3 + $0x28] sm:$0xff] %v1152_v33   ;;  %1304 = vst [vmem:[%s1799_s3 + $0xa8] sm:$0xff] %v1232_v34  }
 0x10d   :  { %1287 = vst [vmem:[%s1799_s3 + $0x20] sm:$0xff] %v1147_v35   ;;  %1303 = vst [vmem:[%s1799_s3 + $0xa0] sm:$0xff] %v1227_v36   ;;  %v1385_v37 = vpop.f32.mrb[12].mxu0  ;;  %v1417_v38 = vpop.f32.mrb[12].mxu1 }
 0x10e   :  { %v424_v39 = vpop.f32.mrb[13].mxu0  ;;  %v552_v40 = vpop.f32.mrb[13].mxu1  ;;  %v433_v44 = vadd.f32 %v1385_v37, %v1634_v41  ;;  %v561_v45 = vadd.f32 %v1417_v38, %v1634_v41 }
 0x10f   :  { %v1386_v42 = vpop.f32.mrb[14].mxu0  ;;  %v1418_v43 = vpop.f32.mrb[14].mxu1  ;;  %v425_v50 = vadd.f32 %v1634_v41, %v424_v39  ;;  %v553_v51 = vadd.f32 %v1634_v41, %v552_v40 }
 0x110   :  { %v436_v46 = vadd.f32 %v1386_v42, %v1634_v41  ;;  %v564_v47 = vadd.f32 %v1418_v43, %v1634_v41  ;;  %v427_v48 = vpop.f32.mrb[15].mxu0  ;;  %v555_v49 = vpop.f32.mrb[15].mxu1 }
 0x111   :  { %v428_v52 = vadd.f32 %v1634_v41, %v427_v48  ;;  %v556_v53 = vadd.f32 %v1634_v41, %v555_v49 }
 0x112   :  { %v1162_v54 = vpack.c.bf16 %v436_v46, %v433_v44  ;;  %v1242_v55 = vpack.c.bf16 %v564_v47, %v561_v45 }
 0x113   :  { %v1157_v56 = vpack.c.bf16 %v428_v52, %v425_v50  ;;  %v1237_v57 = vpack.c.bf16 %v556_v53, %v553_v51 }
 0x114   :  { %1290 = vst [vmem:[%s1799_s3 + $0x38] sm:$0xff] %v1162_v54   ;;  %1306 = vst [vmem:[%s1799_s3 + $0xb8] sm:$0xff] %v1242_v55  }
 0x115   :  { %1289 = vst [vmem:[%s1799_s3 + $0x30] sm:$0xff] %v1157_v56   ;;  %1305 = vst [vmem:[%s1799_s3 + $0xb0] sm:$0xff] %v1237_v57   ;;  %v1389_v58 = vpop.f32.mrb[16].mxu0  ;;  %v1421_v59 = vpop.f32.mrb[16].mxu1 }
 0x116   :  { %v440_v60 = vpop.f32.mrb[17].mxu0  ;;  %v568_v61 = vpop.f32.mrb[17].mxu1  ;;  %v449_v0 = vadd.f32 %v1389_v58, %v1634_v41  ;;  %v577_v1 = vadd.f32 %v1421_v59, %v1634_v41 }
 0x117   :  { %v1390_v62 = vpop.f32.mrb[18].mxu0  ;;  %v1422_v63 = vpop.f32.mrb[18].mxu1  ;;  %v441_v6 = vadd.f32 %v1634_v41, %v440_v60  ;;  %v569_v7 = vadd.f32 %v1634_v41, %v568_v61 }
 0x118   :  { %v452_v2 = vadd.f32 %v1390_v62, %v1634_v41  ;;  %v580_v3 = vadd.f32 %v1422_v63, %v1634_v41  ;;  %v443_v4 = vpop.f32.mrb[19].mxu0  ;;  %v571_v5 = vpop.f32.mrb[19].mxu1 }
 0x119   :  { %v444_v8 = vadd.f32 %v1634_v41, %v443_v4  ;;  %v572_v9 = vadd.f32 %v1634_v41, %v571_v5 }
 0x11a   :  { %v1172_v10 = vpack.c.bf16 %v452_v2, %v449_v0  ;;  %v1252_v11 = vpack.c.bf16 %v580_v3, %v577_v1 }
 0x11b   :  { %v1167_v12 = vpack.c.bf16 %v444_v8, %v441_v6  ;;  %v1247_v13 = vpack.c.bf16 %v572_v9, %v569_v7 }
 0x11c   :  { %1292 = vst [vmem:[%s1799_s3 + $0x48] sm:$0xff] %v1172_v10   ;;  %1308 = vst [vmem:[%s1799_s3 + $0xc8] sm:$0xff] %v1252_v11  }
 0x11d   :  { %1291 = vst [vmem:[%s1799_s3 + $0x40] sm:$0xff] %v1167_v12   ;;  %1307 = vst [vmem:[%s1799_s3 + $0xc0] sm:$0xff] %v1247_v13   ;;  %v1393_v14 = vpop.f32.mrb[20].mxu0  ;;  %v1425_v15 = vpop.f32.mrb[20].mxu1 }
 0x11e   :  { %v456_v16 = vpop.f32.mrb[21].mxu0  ;;  %v584_v17 = vpop.f32.mrb[21].mxu1  ;;  %v465_v20 = vadd.f32 %v1393_v14, %v1634_v41  ;;  %v593_v21 = vadd.f32 %v1425_v15, %v1634_v41 }
 0x11f   :  { %v1394_v18 = vpop.f32.mrb[22].mxu0  ;;  %v1426_v19 = vpop.f32.mrb[22].mxu1  ;;  %v457_v26 = vadd.f32 %v1634_v41, %v456_v16  ;;  %v585_v27 = vadd.f32 %v1634_v41, %v584_v17 }
 0x120   :  { %v468_v22 = vadd.f32 %v1394_v18, %v1634_v41  ;;  %v596_v23 = vadd.f32 %v1426_v19, %v1634_v41  ;;  %v459_v24 = vpop.f32.mrb[23].mxu0  ;;  %v587_v25 = vpop.f32.mrb[23].mxu1 }
 0x121   :  { %v460_v28 = vadd.f32 %v1634_v41, %v459_v24  ;;  %v588_v29 = vadd.f32 %v1634_v41, %v587_v25 }
 0x122   :  { %v1182_v30 = vpack.c.bf16 %v468_v22, %v465_v20  ;;  %v1262_v31 = vpack.c.bf16 %v596_v23, %v593_v21 }
 0x123   :  { %v1177_v32 = vpack.c.bf16 %v460_v28, %v457_v26  ;;  %v1257_v33 = vpack.c.bf16 %v588_v29, %v585_v27 }
 0x124   :  { %1294 = vst [vmem:[%s1799_s3 + $0x58] sm:$0xff] %v1182_v30   ;;  %1310 = vst [vmem:[%s1799_s3 + $0xd8] sm:$0xff] %v1262_v31  }
 0x125   :  { %1293 = vst [vmem:[%s1799_s3 + $0x50] sm:$0xff] %v1177_v32   ;;  %1309 = vst [vmem:[%s1799_s3 + $0xd0] sm:$0xff] %v1257_v33   ;;  %v1397_v34 = vpop.f32.mrb[24].mxu0  ;;  %v1429_v35 = vpop.f32.mrb[24].mxu1 }
 0x126   :  { %v472_v36 = vpop.f32.mrb[25].mxu0  ;;  %v600_v37 = vpop.f32.mrb[25].mxu1  ;;  %v481_v40 = vadd.f32 %v1397_v34, %v1634_v41  ;;  %v609_v42 = vadd.f32 %v1429_v35, %v1634_v41 }
 0x127   :  { %v1398_v38 = vpop.f32.mrb[26].mxu0  ;;  %v1430_v39 = vpop.f32.mrb[26].mxu1  ;;  %v473_v47 = vadd.f32 %v1634_v41, %v472_v36  ;;  %v601_v48 = vadd.f32 %v1634_v41, %v600_v37 }
 0x128   :  { %v484_v43 = vadd.f32 %v1398_v38, %v1634_v41  ;;  %v612_v44 = vadd.f32 %v1430_v39, %v1634_v41  ;;  %v475_v45 = vpop.f32.mrb[27].mxu0  ;;  %v603_v46 = vpop.f32.mrb[27].mxu1 }
 0x129   :  { %v476_v49 = vadd.f32 %v1634_v41, %v475_v45  ;;  %v604_v50 = vadd.f32 %v1634_v41, %v603_v46 }
 0x12a   :  { %v1192_v51 = vpack.c.bf16 %v484_v43, %v481_v40  ;;  %v1272_v52 = vpack.c.bf16 %v612_v44, %v609_v42 }
 0x12b   :  { %v1187_v53 = vpack.c.bf16 %v476_v49, %v473_v47  ;;  %v1267_v54 = vpack.c.bf16 %v604_v50, %v601_v48 }
 0x12c   :  { %1296 = vst [vmem:[%s1799_s3 + $0x68] sm:$0xff] %v1192_v51   ;;  %1312 = vst [vmem:[%s1799_s3 + $0xe8] sm:$0xff] %v1272_v52  }
 0x12d   :  { %1295 = vst [vmem:[%s1799_s3 + $0x60] sm:$0xff] %v1187_v53   ;;  %1311 = vst [vmem:[%s1799_s3 + $0xe0] sm:$0xff] %v1267_v54   ;;  %v1401_v55 = vpop.f32.mrb[28].mxu0  ;;  %v1433_v56 = vpop.f32.mrb[28].mxu1 }
 0x12e   :  { %v488_v57 = vpop.f32.mrb[29].mxu0  ;;  %v616_v58 = vpop.f32.mrb[29].mxu1  ;;  %v497_v61 = vadd.f32 %v1401_v55, %v1634_v41  ;;  %v625_v62 = vadd.f32 %v1433_v56, %v1634_v41 }
 0x12f   :  { %v1402_v59 = vpop.f32.mrb[30].mxu0  ;;  %v1434_v60 = vpop.f32.mrb[30].mxu1  ;;  %v489_v3 = vadd.f32 %v1634_v41, %v488_v57  ;;  %v617_v4 = vadd.f32 %v1634_v41, %v616_v58 }
 0x130   :  { %v500_v63 = vadd.f32 %v1402_v59, %v1634_v41  ;;  %v628_v0 = vadd.f32 %v1434_v60, %v1634_v41  ;;  %v491_v1 = vpop.f32.mrb[31].mxu0  ;;  %v619_v2 = vpop.f32.mrb[31].mxu1 }
 0x131   :  { %v492_v5 = vadd.f32 %v1634_v41, %v491_v1  ;;  %v620_v6 = vadd.f32 %v1634_v41, %v619_v2 }
 0x132   :  { %v1202_v7 = vpack.c.bf16 %v500_v63, %v497_v61  ;;  %v1282_v8 = vpack.c.bf16 %v628_v0, %v625_v62 }
 0x133   :  { %v1197_v9 = vpack.c.bf16 %v492_v5, %v489_v3  ;;  %v1277_v10 = vpack.c.bf16 %v620_v6, %v617_v4 }
 0x134   :  { %1298 = vst [vmem:[%s1799_s3 + $0x78] sm:$0xff] %v1202_v7   ;;  %1314 = vst [vmem:[%s1799_s3 + $0xf8] sm:$0xff] %v1282_v8  }
 0x135   :  { %1297 = vst [vmem:[%s1799_s3 + $0x70] sm:$0xff] %v1197_v9   ;;  %1313 = vst [vmem:[%s1799_s3 + $0xf0] sm:$0xff] %v1277_v10  }

// kernel: up_forward.7
= control target key start
LH: loop header
LB: loop body
LE: loop exit
PB: predicated region body
PF: predicated region fallthrough
CT: control target
= control target key end

     0   :  { %s1053_s12 = smov 0   ;;  %s1055_s13 = smov 0   ;;  %s1269_s0 = inlined_call_operand.vmem [shape: bf16[2,4,256,128], index: 0, kind: input, shape index: {}, may-alias: {0,3}]   ;;  %s1270_s1 = inlined_call_operand.vmem [shape: f32[1,128], index: 1, kind: input, shape index: {}]   ;;  %s1271_s2 = inlined_call_operand.vmem [shape: f32[1,128], index: 2, kind: input, shape index: {}]   ;;  %s1272_s3 = inlined_call_operand.vmem [shape: bf16[2,4,256,128], index: 3, kind: output, shape index: {}, may-alias: {0,3}]  }
   0x1   :  { %s1057_s14 = smov 0   ;;  %s1059_s15 = smov 0  }
   0x2   :  { %s1061_s16 = smov 0  }
   0x3 LB: > { %s22_s17 = sadd.s32 1, %s1023_s14  ;;  %s25_s18 = sadd.s32 1, %s1027_s15  ;;  %s1031_s16 = sphi %s1061_s16, %s13_s16   ;;  %s1027_s15 = sphi %s1059_s15, %s1276_s15   ;;  %s1023_s14 = sphi %s1057_s14, %s1275_s14   ;;  %s1019_s13 = sphi %s1055_s13, %s1274_s13   ;;  %s1015_s12 = sphi %s1053_s12, %s1273_s12  }
   0x4   : > { %p23_p0 = scmp.ge.s32.totalorder %s22_s17, 4  ;;  %p704_p1 = scmp.ge.s32.totalorder %s1031_s16, 1 }
   0x5   : > { %p157_p2 = scmp.lt.s32.totalorder %s1031_s16, 9 }
   0x6   : > { %s1278_s17 = smov (%p23_p0, %s22_s17), 0  ;;  %s1280_s18 = smov (!%p23_p0, %s25_s18), %s1027_s15 }
   0x7   : > { %p158_p3 = pnand %p704_p1, %p157_p2  ;;  %p27_p4 = scmp.ge.s32.totalorder %s1280_s18, 2 }
   0x8   : > { %p189_p5 = scmp.lt.s32.totalorder (!%p158_p3), %s1019_s13, 1  ;;  %p191_p6 = scmp.lt.s32.totalorder (!%p158_p3), %s1015_s12, 3  ;;  %v711_v40 = vld [vmem:[%s1270_s1] ss:$0 sm:$0xff] (!%p158_p3) }
   0x9   : > { %s1282_s18 = smov (%p27_p4, %s1280_s18), 0  ;;  %161 = sbr.rel (%p158_p3) target bundleno = 79 (0x4f), region = 32 }
  0x10   : > { %s1284_s13 = smov (!%p189_p5, %s1019_s13), 1  ;;  %s1286_s12 = smov (!%p191_p6, %s1015_s12), 3 }
  0x11   : > { %s706_s19 = sshll.u32 %s1284_s13, 7  ;;  %s705_s20 = sshll.u32 %s1286_s12, 5 }
  0x12   : > { %s1083_s21 = sadd.s32 %s706_s19, %s705_s20 }
  0x13   : > { %s707_s22 = sshll.u32 %s1083_s21, 2 }
  0x14   : > { %s1091_s25 = scalar_lea.vmem %s1269_s0, %s707_s22  ;;  %s1164_s5 = scalar_lea.vmem %s1272_s3, %s707_s22 }
  0x15   : > { %v780_v0 = vld [vmem:[%s1091_s25] sm:$0xff]   ;;  %v923_v1 = vld [vmem:[%s1091_s25 + $0x8] sm:$0xff]   ;;  %v924_v2 = vld [vmem:[%s1091_s25 + $0x10] sm:$0xff]  }
  0x16   : > { %v781_v3 = vunpack.c.l.bf16 %v780_v0  ;;  %v782_v4 = vunpack.c.h.bf16 %v780_v0  ;;  %v785_v5 = vunpack.c.l.bf16 %v923_v1  ;;  %v786_v6 = vunpack.c.h.bf16 %v923_v1  ;;  %v925_v7 = vld [vmem:[%s1091_s25 + $0x18] sm:$0xff]   ;;  %v926_v8 = vld [vmem:[%s1091_s25 + $0x20] sm:$0xff]   ;;  %v927_v9 = vld [vmem:[%s1091_s25 + $0x28] sm:$0xff]  }
  0x17   : > { %v789_v10 = vunpack.c.l.bf16 %v924_v2  ;;  %v790_v11 = vunpack.c.h.bf16 %v924_v2  ;;  %v793_v12 = vunpack.c.l.bf16 %v925_v7  ;;  %v794_v13 = vunpack.c.h.bf16 %v925_v7  ;;  %v928_v14 = vld [vmem:[%s1091_s25 + $0x30] sm:$0xff]   ;;  %v929_v15 = vld [vmem:[%s1091_s25 + $0x38] sm:$0xff]   ;;  %v930_v16 = vld [vmem:[%s1091_s25 + $0x40] sm:$0xff]  }
  0x18   : > { %v797_v17 = vunpack.c.l.bf16 %v926_v8  ;;  %v798_v18 = vunpack.c.h.bf16 %v926_v8  ;;  %v801_v19 = vunpack.c.l.bf16 %v927_v9  ;;  %v802_v20 = vunpack.c.h.bf16 %v927_v9  ;;  %v931_v21 = vld [vmem:[%s1091_s25 + $0x48] sm:$0xff]   ;;  %v932_v22 = vld [vmem:[%s1091_s25 + $0x50] sm:$0xff]   ;;  %v933_v23 = vld [vmem:[%s1091_s25 + $0x58] sm:$0xff]  }
  0x19   : > { %v805_v24 = vunpack.c.l.bf16 %v928_v14  ;;  %v806_v25 = vunpack.c.h.bf16 %v928_v14  ;;  %v809_v26 = vunpack.c.l.bf16 %v929_v15  ;;  %v810_v27 = vunpack.c.h.bf16 %v929_v15  ;;  %v934_v28 = vld [vmem:[%s1091_s25 + $0x60] sm:$0xff]   ;;  %v935_v29 = vld [vmem:[%s1091_s25 + $0x68] sm:$0xff]   ;;  %v936_v34 = vld [vmem:[%s1091_s25 + $0x70] sm:$0xff]  }
  0x1a   : > { %v813_v30 = vunpack.c.l.bf16 %v930_v16  ;;  %v814_v31 = vunpack.c.h.bf16 %v930_v16  ;;  %v817_v32 = vunpack.c.l.bf16 %v931_v21  ;;  %v818_v33 = vunpack.c.h.bf16 %v931_v21  ;;  %v937_v35 = vld [vmem:[%s1091_s25 + $0x78] sm:$0xff]   ;;  %v712_v9 = vld [vmem:[%s1271_s2] ss:$0 sm:$0xff] }
  0x1b   : > { %v821_v36 = vunpack.c.l.bf16 %v932_v22  ;;  %v822_v37 = vunpack.c.h.bf16 %v932_v22  ;;  %v825_v38 = vunpack.c.l.bf16 %v933_v23  ;;  %v826_v39 = vunpack.c.h.bf16 %v933_v23 }
  0x1c   : > { %v829_v41 = vunpack.c.l.bf16 %v934_v28  ;;  %v830_v42 = vunpack.c.h.bf16 %v934_v28  ;;  %v833_v43 = vunpack.c.l.bf16 %v935_v29  ;;  %v834_v44 = vunpack.c.h.bf16 %v935_v29 }
  0x1d   : > { %v837_v45 = vunpack.c.l.bf16 %v936_v34  ;;  %v838_v46 = vunpack.c.h.bf16 %v936_v34  ;;  %v841_v47 = vunpack.c.l.bf16 %v937_v35  ;;  %v842_v48 = vunpack.c.h.bf16 %v937_v35 }
  0x1e   : > { %v278_v49 = vmul.f32 %v781_v3, %v711_v40  ;;  %v279_v50 = vmul.f32 %v782_v4, %v711_v40  ;;  %v280_v51 = vmul.f32 %v785_v5, %v711_v40  ;;  %v281_v52 = vmul.f32 %v786_v6, %v711_v40 }
  0x1f   : > { %v282_v53 = vmul.f32 %v789_v10, %v711_v40  ;;  %v283_v54 = vmul.f32 %v790_v11, %v711_v40  ;;  %v284_v55 = vmul.f32 %v793_v12, %v711_v40  ;;  %v285_v56 = vmul.f32 %v794_v13, %v711_v40 }
  0x20   : > { %v286_v57 = vmul.f32 %v797_v17, %v711_v40  ;;  %v287_v58 = vmul.f32 %v798_v18, %v711_v40  ;;  %v288_v59 = vmul.f32 %v801_v19, %v711_v40  ;;  %v289_v60 = vmul.f32 %v802_v20, %v711_v40 }
  0x21   : > { %v290_v61 = vmul.f32 %v805_v24, %v711_v40  ;;  %v291_v62 = vmul.f32 %v806_v25, %v711_v40  ;;  %v292_v63 = vmul.f32 %v809_v26, %v711_v40  ;;  %v293_v0 = vmul.f32 %v810_v27, %v711_v40 }
  0x22   : > { %v294_v1 = vmul.f32 %v813_v30, %v711_v40  ;;  %v295_v2 = vmul.f32 %v814_v31, %v711_v40  ;;  %v296_v7 = vmul.f32 %v817_v32, %v711_v40  ;;  %v297_v8 = vmul.f32 %v818_v33, %v711_v40 }
  0x23   : > { %v298_v3 = vmul.f32 %v821_v36, %v711_v40  ;;  %v299_v4 = vmul.f32 %v822_v37, %v711_v40  ;;  %v300_v5 = vmul.f32 %v825_v38, %v711_v40  ;;  %v301_v6 = vmul.f32 %v826_v39, %v711_v40 }
  0x24   : > { %v302_v10 = vmul.f32 %v829_v41, %v711_v40  ;;  %v303_v11 = vmul.f32 %v830_v42, %v711_v40  ;;  %v304_v12 = vmul.f32 %v833_v43, %v711_v40  ;;  %v305_v13 = vmul.f32 %v834_v44, %v711_v40 }
  0x25   : > { %v306_v14 = vmul.f32 %v837_v45, %v711_v40  ;;  %v307_v15 = vmul.f32 %v838_v46, %v711_v40  ;;  %v308_v16 = vmul.f32 %v841_v47, %v711_v40  ;;  %v309_v17 = vmul.f32 %v842_v48, %v711_v40 }
  0x26   : > { %v317_v18 = vadd.f32 %v712_v9, %v278_v49  ;;  %v318_v19 = vadd.f32 %v712_v9, %v279_v50  ;;  %v319_v20 = vadd.f32 %v712_v9, %v280_v51  ;;  %v320_v21 = vadd.f32 %v712_v9, %v281_v52 }
  0x27   : > { %v321_v22 = vadd.f32 %v712_v9, %v282_v53  ;;  %v322_v23 = vadd.f32 %v712_v9, %v283_v54  ;;  %v323_v24 = vadd.f32 %v712_v9, %v284_v55  ;;  %v324_v25 = vadd.f32 %v712_v9, %v285_v56 }
  0x28   : > { %v325_v26 = vadd.f32 %v712_v9, %v286_v57  ;;  %v326_v27 = vadd.f32 %v712_v9, %v287_v58  ;;  %v1115_v28 = vadd.f32 %v712_v9, %v288_v59  ;;  %v1117_v29 = vadd.f32 %v712_v9, %v289_v60 }
  0x29   : > { %v1119_v30 = vadd.f32 %v712_v9, %v290_v61  ;;  %v1121_v31 = vadd.f32 %v712_v9, %v291_v62  ;;  %v1123_v32 = vadd.f32 %v712_v9, %v292_v63  ;;  %v1125_v33 = vadd.f32 %v712_v9, %v293_v0 }
  0x2a   : > { %v1127_v34 = vadd.f32 %v712_v9, %v294_v1  ;;  %v1129_v35 = vadd.f32 %v712_v9, %v295_v2  ;;  %v1131_v36 = vadd.f32 %v712_v9, %v296_v7  ;;  %v1133_v37 = vadd.f32 %v712_v9, %v297_v8 }
  0x2b   : > { %v1135_v38 = vadd.f32 %v712_v9, %v298_v3  ;;  %v1137_v39 = vadd.f32 %v712_v9, %v299_v4  ;;  %v1139_v40 = vadd.f32 %v712_v9, %v300_v5  ;;  %v1141_v41 = vadd.f32 %v712_v9, %v301_v6 }
  0x2c   : > { %v1143_v42 = vadd.f32 %v712_v9, %v302_v10  ;;  %v1145_v43 = vadd.f32 %v712_v9, %v303_v11  ;;  %v1147_v44 = vadd.f32 %v712_v9, %v304_v12  ;;  %v1149_v45 = vadd.f32 %v712_v9, %v305_v13 }
  0x2d   : > { %v1151_v46 = vadd.f32 %v712_v9, %v306_v14  ;;  %v1153_v47 = vadd.f32 %v712_v9, %v307_v15  ;;  %v1155_v48 = vadd.f32 %v712_v9, %v308_v16  ;;  %v1157_v49 = vadd.f32 %v712_v9, %v309_v17 }
  0x2e   : > { %vm349_vm0 = vcmp.ge.f32.partialorder %v317_v18, 0.0  ;;  %vm350_vm1 = vcmp.ge.f32.partialorder %v318_v19, 0.0  ;;  %v381_v50 = vmul.f32 0.01, %v317_v18  ;;  %v382_v51 = vmul.f32 0.01, %v318_v19 }
  0x2f   : > { %vm351_vm2 = vcmp.ge.f32.partialorder %v319_v20, 0.0  ;;  %vm352_vm3 = vcmp.ge.f32.partialorder %v320_v21, 0.0  ;;  %v383_v52 = vmul.f32 0.01, %v319_v20  ;;  %v384_v53 = vmul.f32 0.01, %v320_v21 }
  0x30   : > { %v413_v54 = vsel %vm349_vm0, %v317_v18, %v381_v50  ;;  %v414_v55 = vsel %vm350_vm1, %v318_v19, %v382_v51  ;;  %vm353_vm4 = vcmp.ge.f32.partialorder %v321_v22, 0.0  ;;  %vm354_vm5 = vcmp.ge.f32.partialorder %v322_v23, 0.0 }
  0x31   : > { %v846_v56 = vpack.c.bf16 %v414_v55, %v413_v54  ;;  %v415_v57 = vsel %vm351_vm2, %v319_v20, %v383_v52  ;;  %v416_v58 = vsel %vm352_vm3, %v320_v21, %v384_v53  ;;  %v385_v59 = vmul.f32 0.01, %v321_v22 }
  0x32   : > { %v851_v60 = vpack.c.bf16 %v416_v58, %v415_v57  ;;  %v386_v61 = vmul.f32 0.01, %v322_v23  ;;  %vm355_vm6 = vcmp.ge.f32.partialorder %v323_v24, 0.0  ;;  %vm356_vm7 = vcmp.ge.f32.partialorder %v324_v25, 0.0 }
  0x33   : > { %847 = vst [vmem:[%s1164_s5] sm:$0xff] %v846_v56   ;;  %v417_v62 = vsel %vm353_vm4, %v321_v22, %v385_v59  ;;  %v387_v63 = vmul.f32 0.01, %v323_v24  ;;  %v388_v0 = vmul.f32 0.01, %v324_v25  ;;  %vm357_vm8 = vcmp.ge.f32.partialorder %v325_v26, 0.0 }
  0x34   : > { %938 = vst [vmem:[%s1164_s5 + $0x8] sm:$0xff] %v851_v60   ;;  %v418_v1 = vsel %vm354_vm5, %v322_v23, %v386_v61  ;;  %vm358_vm9 = vcmp.ge.f32.partialorder %v326_v27, 0.0  ;;  %v389_v2 = vmul.f32 0.01, %v325_v26  ;;  %v390_v7 = vmul.f32 0.01, %v326_v27 }
  0x35   : > { %v856_v8 = vpack.c.bf16 %v418_v1, %v417_v62  ;;  %v419_v3 = vsel %vm355_vm6, %v323_v24, %v387_v63  ;;  %v420_v4 = vsel %vm356_vm7, %v324_v25, %v388_v0  ;;  %vm359_vm10 = vcmp.ge.f32.partialorder %v1115_v28, 0.0 }
  0x36   : > { %v861_v5 = vpack.c.bf16 %v420_v4, %v419_v3  ;;  %v421_v6 = vsel %vm357_vm8, %v325_v26, %v389_v2  ;;  %v422_v9 = vsel %vm358_vm9, %v326_v27, %v390_v7  ;;  %vm360_vm11 = vcmp.ge.f32.partialorder %v1117_v29, 0.0 }
  0x37   : > { %939 = vst [vmem:[%s1164_s5 + $0x10] sm:$0xff] %v856_v8   ;;  %v866_v10 = vpack.c.bf16 %v422_v9, %v421_v6  ;;  %v391_v11 = vmul.f32 0.01, %v1115_v28  ;;  %v392_v12 = vmul.f32 0.01, %v1117_v29  ;;  %vm361_vm12 = vcmp.ge.f32.partialorder %v1119_v30, 0.0 }
  0x38   : > { %940 = vst [vmem:[%s1164_s5 + $0x18] sm:$0xff] %v861_v5   ;;  %vm362_vm13 = vcmp.ge.f32.partialorder %v1121_v31, 0.0  ;;  %v393_v13 = vmul.f32 0.01, %v1119_v30  ;;  %v394_v14 = vmul.f32 0.01, %v1121_v31 }
  0x39   : > { %vm363_vm14 = vcmp.ge.f32.partialorder %v1123_v32, 0.0  ;;  %941 = vst [vmem:[%s1164_s5 + $0x20] sm:$0xff] %v866_v10   ;;  %v423_v15 = vsel %vm359_vm10, %v1115_v28, %v391_v11  ;;  %v424_v16 = vsel %vm360_vm11, %v1117_v29, %v392_v12  ;;  %vm364_vm15 = vcmp.ge.f32.partialorder %v1125_v33, 0.0 }
  0x3a   : > { %v395_v17 = vmul.f32 0.01, %v1123_v32  ;;  %v871_v18 = vpack.c.bf16 %v424_v16, %v423_v15  ;;  %v425_v19 = vsel %vm361_vm12, %v1119_v30, %v393_v13  ;;  %v426_v20 = vsel %vm362_vm13, %v1121_v31, %v394_v14 }
  0x3b   : > { %v396_v21 = vmul.f32 0.01, %v1125_v33  ;;  %v876_v22 = vpack.c.bf16 %v426_v20, %v425_v19  ;;  %vm365_vm0 = vcmp.ge.f32.partialorder %v1127_v34, 0.0  ;;  %vm366_vm1 = vcmp.ge.f32.partialorder %v1129_v35, 0.0 }
  0x3c   : > { %v427_v23 = vsel %vm363_vm14, %v1123_v32, %v395_v17  ;;  %942 = vst [vmem:[%s1164_s5 + $0x28] sm:$0xff] %v871_v18   ;;  %v397_v25 = vmul.f32 0.01, %v1127_v34  ;;  %v398_v26 = vmul.f32 0.01, %v1129_v35  ;;  %vm367_vm2 = vcmp.ge.f32.partialorder %v1131_v36, 0.0 }
  0x3d   : > { %v428_v24 = vsel %vm364_vm15, %v1125_v33, %v396_v21  ;;  %943 = vst [vmem:[%s1164_s5 + $0x30] sm:$0xff] %v876_v22   ;;  %vm368_vm3 = vcmp.ge.f32.partialorder %v1133_v37, 0.0  ;;  %v399_v28 = vmul.f32 0.01, %v1131_v36  ;;  %v400_v29 = vmul.f32 0.01, %v1133_v37 }
  0x3e   : > { %v881_v27 = vpack.c.bf16 %v428_v24, %v427_v23  ;;  %v429_v30 = vsel %vm365_vm0, %v1127_v34, %v397_v25  ;;  %v430_v31 = vsel %vm366_vm1, %v1129_v35, %v398_v26  ;;  %vm369_vm4 = vcmp.ge.f32.partialorder %v1135_v38, 0.0 }
  0x3f   : > { %vm370_vm5 = vcmp.ge.f32.partialorder %v1137_v39, 0.0  ;;  %v886_v32 = vpack.c.bf16 %v430_v31, %v429_v30  ;;  %v431_v33 = vsel %vm367_vm2, %v1131_v36, %v399_v28  ;;  %v432_v50 = vsel %vm368_vm3, %v1133_v37, %v400_v29 }
  0x40   : > { %944 = vst [vmem:[%s1164_s5 + $0x38] sm:$0xff] %v881_v27   ;;  %v401_v51 = vmul.f32 0.01, %v1135_v38  ;;  %v891_v52 = vpack.c.bf16 %v432_v50, %v431_v33  ;;  %v402_v53 = vmul.f32 0.01, %v1137_v39  ;;  %vm371_vm6 = vcmp.ge.f32.partialorder %v1139_v40, 0.0 }
  0x41   : > { %vm372_vm7 = vcmp.ge.f32.partialorder %v1141_v41, 0.0  ;;  %945 = vst [vmem:[%s1164_s5 + $0x40] sm:$0xff] %v886_v32   ;;  %v403_v35 = vmul.f32 0.01, %v1139_v40  ;;  %v404_v54 = vmul.f32 0.01, %v1141_v41 }
  0x42   : > { %v433_v34 = vsel %vm369_vm4, %v1135_v38, %v401_v51  ;;  %vm373_vm8 = vcmp.ge.f32.partialorder %v1143_v42, 0.0  ;;  %946 = vst [vmem:[%s1164_s5 + $0x48] sm:$0xff] %v891_v52   ;;  %v434_v36 = vsel %vm370_vm5, %v1137_v39, %v402_v53  ;;  %vm374_vm9 = vcmp.ge.f32.partialorder %v1145_v43, 0.0 }
  0x43   : > { %v405_v37 = vmul.f32 0.01, %v1143_v42  ;;  %v406_v55 = vmul.f32 0.01, %v1145_v43  ;;  %v896_v38 = vpack.c.bf16 %v434_v36, %v433_v34  ;;  %v435_v56 = vsel %vm371_vm6, %v1139_v40, %v403_v35 }
  0x44   : > { %v436_v57 = vsel %vm372_vm7, %v1141_v41, %v404_v54  ;;  %vm375_vm10 = vcmp.ge.f32.partialorder %v1147_v44, 0.0  ;;  %vm376_vm11 = vcmp.ge.f32.partialorder %v1149_v45, 0.0  ;;  %v407_v61 = vmul.f32 0.01, %v1147_v44 }
  0x45   : > { %v901_v58 = vpack.c.bf16 %v436_v57, %v435_v56  ;;  %v437_v59 = vsel %vm373_vm8, %v1143_v42, %v405_v37  ;;  %v438_v39 = vsel %vm374_vm9, %v1145_v43, %v406_v55  ;;  %947 = vst [vmem:[%s1164_s5 + $0x50] sm:$0xff] %v896_v38   ;;  %v408_v62 = vmul.f32 0.01, %v1149_v45 }
  0x46   : > { %v906_v60 = vpack.c.bf16 %v438_v39, %v437_v59  ;;  %vm377_vm12 = vcmp.ge.f32.partialorder %v1151_v46, 0.0  ;;  %vm378_vm13 = vcmp.ge.f32.partialorder %v1153_v47, 0.0  ;;  %v409_v40 = vmul.f32 0.01, %v1151_v46 }
  0x47   : > { %948 = vst [vmem:[%s1164_s5 + $0x58] sm:$0xff] %v901_v58   ;;  %v410_v41 = vmul.f32 0.01, %v1153_v47  ;;  %vm379_vm14 = vcmp.ge.f32.partialorder %v1155_v48, 0.0  ;;  %v439_v42 = vsel %vm375_vm10, %v1147_v44, %v407_v61  ;;  %v440_v43 = vsel %vm376_vm11, %v1149_v45, %v408_v62 }
  0x48   : > { %949 = vst [vmem:[%s1164_s5 + $0x60] sm:$0xff] %v906_v60   ;;  %vm380_vm15 = vcmp.ge.f32.partialorder %v1157_v49, 0.0  ;;  %v411_v63 = vmul.f32 0.01, %v1155_v48  ;;  %v911_v0 = vpack.c.bf16 %v440_v43, %v439_v42  ;;  %v441_v1 = vsel %vm377_vm12, %v1151_v46, %v409_v40 }
  0x49   : > { %v442_v2 = vsel %vm378_vm13, %v1153_v47, %v410_v41  ;;  %v412_v7 = vmul.f32 0.01, %v1157_v49 }
  0x4a   : > { %v916_v8 = vpack.c.bf16 %v442_v2, %v441_v1  ;;  %v443_v3 = vsel %vm379_vm14, %v1155_v48, %v411_v63  ;;  %950 = vst [vmem:[%s1164_s5 + $0x68] sm:$0xff] %v911_v0  }
  0x4b   : > { %v444_v4 = vsel %vm380_vm15, %v1157_v49, %v412_v7 }
  0x4c   : > { %951 = vst [vmem:[%s1164_s5 + $0x70] sm:$0xff] %v916_v8   ;;  %v921_v44 = vpack.c.bf16 %v444_v4, %v443_v3 }
  0x4e   : > { %952 = vst [vmem:[%s1164_s5 + $0x78] sm:$0xff] %v921_v44  }
  0x4f PF: > { %s13_s16 = sadd.s32 1, %s1031_s16   ;;  %s1273_s12 = smov %s1023_s14 }
  0x50   : > { %p10_p7 = scmp.ge.s32.totalorder %s13_s16, 10   ;;  %s1274_s13 = smov %s1027_s15 }
  0x51   : > { %s1275_s14 = smov %s1278_s17  ;;  %s1276_s15 = smov %s1282_s18 }
  0x52   :  { %12 = sbr.rel (!%p10_p7) target bundleno = 3 (0x3), region = 62 }

// kernel: up_forward.9
= control target key start
LH: loop header
LB: loop body
LE: loop exit
PB: predicated region body
PF: predicated region fallthrough
CT: control target
= control target key end

     0   :  { %s802_s12 = smov 0   ;;  %s804_s13 = smov 0   ;;  %s958_s0 = inlined_call_operand.vmem [shape: bf16[2,4,256,128], index: 0, kind: input, shape index: {}]   ;;  %s959_s1 = inlined_call_operand.vmem [shape: f32[1,128], index: 1, kind: input, shape index: {}]   ;;  %s960_s2 = inlined_call_operand.vmem [shape: f32[1,128], index: 2, kind: input, shape index: {}]   ;;  %s961_s3 = inlined_call_operand.vmem [shape: f32[2,4,1024], index: 3, kind: output, shape index: {}]  }
   0x1   :  { %s806_s14 = smov 0   ;;  %s808_s15 = smov 0  }
   0x2   :  { %s810_s16 = smov 0  }
   0x3 LB: > { %s22_s17 = sadd.s32 1, %s772_s14  ;;  %s25_s18 = sadd.s32 1, %s776_s15  ;;  %s780_s16 = sphi %s810_s16, %s13_s16   ;;  %s776_s15 = sphi %s808_s15, %s965_s15   ;;  %s772_s14 = sphi %s806_s14, %s964_s14   ;;  %s768_s13 = sphi %s804_s13, %s963_s13   ;;  %s764_s12 = sphi %s802_s12, %s962_s12  }
   0x4   : > { %p23_p0 = scmp.ge.s32.totalorder %s22_s17, 4  ;;  %p612_p1 = scmp.ge.s32.totalorder %s780_s16, 1 }
   0x5   : > { %p157_p2 = scmp.lt.s32.totalorder %s780_s16, 9 }
   0x6   : > { %s967_s17 = smov (%p23_p0, %s22_s17), 0  ;;  %s969_s18 = smov (!%p23_p0, %s25_s18), %s776_s15 }
   0x7   : > { %p158_p3 = pnand %p612_p1, %p157_p2  ;;  %p27_p4 = scmp.ge.s32.totalorder %s969_s18, 2 }
   0x8   : > { %p189_p5 = scmp.lt.s32.totalorder (!%p158_p3), %s768_s13, 1  ;;  %p191_p6 = scmp.lt.s32.totalorder (!%p158_p3), %s764_s12, 3  ;;  %v847_v0 = vld [vmem:[%s959_s1] ss:$0 sm:$0xff] (!%p158_p3) }
   0x9   : > { %s971_s18 = smov (%p27_p4, %s969_s18), 0  ;;  %161 = sbr.rel (%p158_p3) target bundleno = 166 (0xa6), region = 32 }
   0xa   : > { %v856_v9 = vld [vmem:[%s960_s2] ss:$0 sm:$0xff] (!%p158_p3)  ;;  %s616_s4 = sshll.u32 (!%p158_p3), %s764_s12, 1 }
   0xb   : > { %p201_p7 = scmp.lt.s32.totalorder (!%p158_p3), %s616_s4, 7 }
  0x10   : > { %s973_s13 = smov (!%p189_p5, %s768_s13), 1  ;;  %s975_s4 = smov (!%p201_p7, %s616_s4), 7 }
  0x11   : > { %s192_s19 = scalar_select %p191_p6, %s764_s12, 3 }
  0x12   : > { %s614_s20 = sshll.u32 %s973_s13, 7  ;;  %s617_s5 = sshll.u32 %s973_s13, 3 }
  0x13   : > { %s613_s21 = sshll.u32 %s192_s19, 5  ;;  %s204_s6 = sadd.s32 %s617_s5, %s975_s4 }
  0x14   : > { %s195_s22 = sadd.s32 %s614_s20, %s613_s21  ;;  %s618_s7 = sshll.u32 %s204_s6, 2 }
  0x15   : > { %s615_s23 = sshll.u32 %s195_s22, 2  ;;  %s206_s10 = scalar_lea.vmem %s961_s3, %s618_s7 }
  0x16   : > { %s842_s26 = scalar_lea.vmem %s958_s0, %s615_s23 }
  0x17   : > { %v694_v1 = vld [vmem:[%s842_s26 + $0x40] sm:$0xff]   ;;  %v695_v3 = vld [vmem:[%s842_s26 + $0x48] sm:$0xff]   ;;  %v696_v36 = vld [vmem:[%s842_s26 + $0x50] sm:$0xff]  }
  0x18   : > { %v624_v2 = vld [vmem:[%s842_s26] sm:$0xff]   ;;  %v657_v4 = vunpack.c.l.bf16 %v694_v1  ;;  %v658_v6 = vunpack.c.h.bf16 %v694_v1  ;;  %v687_v8 = vld [vmem:[%s842_s26 + $0x8] sm:$0xff]   ;;  %v661_v10 = vunpack.c.l.bf16 %v695_v3  ;;  %v662_v12 = vunpack.c.h.bf16 %v695_v3  ;;  %v688_v37 = vld [vmem:[%s842_s26 + $0x10] sm:$0xff]  }
  0x19   : > { %v625_v5 = vunpack.c.l.bf16 %v624_v2  ;;  %v626_v7 = vunpack.c.h.bf16 %v624_v2  ;;  %v629_v11 = vunpack.c.l.bf16 %v687_v8  ;;  %v630_v13 = vunpack.c.h.bf16 %v687_v8  ;;  %v697_v39 = vld [vmem:[%s842_s26 + $0x58] sm:$0xff]   ;;  %v690_v8 = vld [vmem:[%s842_s26 + $0x20] sm:$0xff]  }
  0x1a   : > { %v295_v14 = vmul.f32 %v657_v4, %v847_v0  ;;  %v296_v16 = vmul.f32 %v658_v6, %v847_v0  ;;  %v297_v18 = vmul.f32 %v661_v10, %v847_v0  ;;  %v298_v20 = vmul.f32 %v662_v12, %v847_v0  ;;  %v689_v43 = vld [vmem:[%s842_s26 + $0x18] sm:$0xff]  }
  0x1b   : > { %v279_v15 = vmul.f32 %v625_v5, %v847_v0  ;;  %v280_v17 = vmul.f32 %v626_v7, %v847_v0  ;;  %v281_v19 = vmul.f32 %v629_v11, %v847_v0  ;;  %v282_v28 = vmul.f32 %v630_v13, %v847_v0  ;;  %v698_v7 = vld [vmem:[%s842_s26 + $0x60] sm:$0xff]  }
  0x1c   : > { %v334_v21 = vadd.f32 %v856_v9, %v295_v14  ;;  %v335_v23 = vadd.f32 %v856_v9, %v296_v16  ;;  %v336_v25 = vadd.f32 %v856_v9, %v297_v18  ;;  %v337_v27 = vadd.f32 %v856_v9, %v298_v20 }
  0x1d   : > { %v318_v22 = vadd.f32 %v856_v9, %v279_v15  ;;  %v319_v24 = vadd.f32 %v856_v9, %v280_v17  ;;  %v320_v26 = vadd.f32 %v856_v9, %v281_v19  ;;  %v321_v38 = vadd.f32 %v856_v9, %v282_v28 }
  0x1e   : > { %vm366_vm0 = vcmp.ge.f32.partialorder %v334_v21, 0.0  ;;  %v398_v29 = vmul.f32 0.01, %v334_v21  ;;  %vm367_vm2 = vcmp.ge.f32.partialorder %v335_v23, 0.0  ;;  %v399_v31 = vmul.f32 0.01, %v335_v23 }
  0x1f   : > { %vm350_vm1 = vcmp.ge.f32.partialorder %v318_v22, 0.0  ;;  %v382_v30 = vmul.f32 0.01, %v318_v22  ;;  %vm351_vm3 = vcmp.ge.f32.partialorder %v319_v24, 0.0  ;;  %v383_v32 = vmul.f32 0.01, %v319_v24 }
  0x20   : > { %v430_v33 = vsel %vm366_vm0, %v334_v21, %v398_v29  ;;  %vm368_vm4 = vcmp.ge.f32.partialorder %v336_v25, 0.0  ;;  %v400_v35 = vmul.f32 0.01, %v336_v25  ;;  %v431_v40 = vsel %vm367_vm2, %v335_v23, %v399_v31  ;;  %v691_v31 = vld [vmem:[%s842_s26 + $0x28] sm:$0xff]  }
  0x21   : > { %v414_v34 = vsel %vm350_vm1, %v318_v22, %v382_v30  ;;  %478 = vxpose.xlu1.b32.start [1/16] (narrow) %v430_v33, 8  ;;  %v415_v41 = vsel %vm351_vm3, %v319_v24, %v383_v32  ;;  %vm352_vm5 = vcmp.ge.f32.partialorder %v320_v26, 0.0  ;;  %v384_v42 = vmul.f32 0.01, %v320_v26 }
  0x22   : > { %446 = vxpose.xlu0.b32.start [1/16] (narrow) %v414_v34, 8  ;;  %v432_v44 = vsel %vm368_vm4, %v336_v25, %v400_v35  ;;  %vm369_vm6 = vcmp.ge.f32.partialorder %v337_v27, 0.0  ;;  %v665_v45 = vunpack.c.l.bf16 %v696_v36  ;;  %v633_v46 = vunpack.c.l.bf16 %v688_v37 }
  0x23   : > { %v401_v47 = vmul.f32 0.01, %v337_v27  ;;  %v666_v48 = vunpack.c.h.bf16 %v696_v36  ;;  %v634_v49 = vunpack.c.h.bf16 %v688_v37  ;;  %v669_v50 = vunpack.c.l.bf16 %v697_v39 }
  0x24   : > { %v385_v51 = vmul.f32 0.01, %v321_v38  ;;  %v299_v52 = vmul.f32 %v665_v45, %v847_v0  ;;  %v283_v53 = vmul.f32 %v633_v46, %v847_v0  ;;  %v637_v54 = vunpack.c.l.bf16 %v689_v43 }
  0x25   : > { %479 = vxpose.xlu1.b32.cont [2/16] (narrow) %v431_v40, 8  ;;  %v416_v55 = vsel %vm352_vm5, %v320_v26, %v384_v42  ;;  %vm353_vm7 = vcmp.ge.f32.partialorder %v321_v38, 0.0  ;;  %v300_v56 = vmul.f32 %v666_v48, %v847_v0  ;;  %v284_v57 = vmul.f32 %v634_v49, %v847_v0  ;;  %v699_v26 = vld [vmem:[%s842_s26 + $0x68] sm:$0xff]   ;;  %v700_v48 = vld [vmem:[%s842_s26 + $0x70] sm:$0xff]  }
  0x26   : > { %447 = vxpose.xlu0.b32.cont [2/16] (narrow) %v415_v41, 8  ;;  %v338_v58 = vadd.f32 %v856_v9, %v299_v52  ;;  %v322_v59 = vadd.f32 %v856_v9, %v283_v53  ;;  %v301_v61 = vmul.f32 %v669_v50, %v847_v0  ;;  %v670_v62 = vunpack.c.h.bf16 %v697_v39  ;;  %v692_v53 = vld [vmem:[%s842_s26 + $0x30] sm:$0xff]  }
  0x27   : > { %v339_v60 = vadd.f32 %v856_v9, %v300_v56  ;;  %v433_v63 = vsel %vm369_vm6, %v337_v27, %v401_v47  ;;  %v417_v1 = vsel %vm353_vm7, %v321_v38, %v385_v51  ;;  %v285_v3 = vmul.f32 %v637_v54, %v847_v0 }
  0x28   : > { %v402_v2 = vmul.f32 0.01, %v338_v58  ;;  %vm370_vm8 = vcmp.ge.f32.partialorder %v338_v58, 0.0  ;;  %v386_v4 = vmul.f32 0.01, %v322_v59  ;;  %v323_v5 = vadd.f32 %v856_v9, %v284_v57 }
  0x29   : > { %480 = vxpose.xlu1.b32.cont [3/16] (narrow) %v432_v44, 8  ;;  %v638_v6 = vunpack.c.h.bf16 %v689_v43  ;;  %vm354_vm9 = vcmp.ge.f32.partialorder %v322_v59, 0.0  ;;  %v403_v10 = vmul.f32 0.01, %v339_v60  ;;  %v340_v11 = vadd.f32 %v856_v9, %v301_v61 }
  0x2a   : > { %448 = vxpose.xlu0.b32.cont [3/16] (narrow) %v416_v55, 8  ;;  %v302_v12 = vmul.f32 %v670_v62, %v847_v0  ;;  %v434_v13 = vsel %vm370_vm8, %v338_v58, %v402_v2  ;;  %vm371_vm10 = vcmp.ge.f32.partialorder %v339_v60, 0.0  ;;  %v324_v14 = vadd.f32 %v856_v9, %v285_v3 }
  0x2b   : > { %v673_v15 = vunpack.c.l.bf16 %v698_v7  ;;  %v418_v16 = vsel %vm354_vm9, %v322_v59, %v386_v4  ;;  %v387_v17 = vmul.f32 0.01, %v323_v5  ;;  %v286_v18 = vmul.f32 %v638_v6, %v847_v0 }
  0x2c   : > { %v641_v19 = vunpack.c.l.bf16 %v690_v8  ;;  %vm355_vm11 = vcmp.ge.f32.partialorder %v323_v5, 0.0  ;;  %v435_v20 = vsel %vm371_vm10, %v339_v60, %v403_v10  ;;  %vm372_vm12 = vcmp.ge.f32.partialorder %v340_v11, 0.0 }
  0x2d   : > { %481 = vxpose.xlu1.b32.cont [4/16] (narrow) %v433_v63, 8  ;;  %v404_v21 = vmul.f32 0.01, %v340_v11  ;;  %v341_v22 = vadd.f32 %v856_v9, %v302_v12  ;;  %vm356_vm13 = vcmp.ge.f32.partialorder %v324_v14, 0.0  ;;  %v388_v23 = vmul.f32 0.01, %v324_v14 }
  0x2e   : > { %449 = vxpose.xlu0.b32.cont [4/16] (narrow) %v417_v1, 8  ;;  %v303_v24 = vmul.f32 %v673_v15, %v847_v0  ;;  %v674_v25 = vunpack.c.h.bf16 %v698_v7  ;;  %v419_v27 = vsel %vm355_vm11, %v323_v5, %v387_v17  ;;  %v325_v28 = vadd.f32 %v856_v9, %v286_v18  ;;  %v701_v12 = vld [vmem:[%s842_s26 + $0x78] sm:$0xff]  }
  0x2f   : > { %v287_v29 = vmul.f32 %v641_v19, %v847_v0  ;;  %v642_v30 = vunpack.c.h.bf16 %v690_v8  ;;  %v436_v32 = vsel %vm372_vm12, %v340_v11, %v404_v21  ;;  %v405_v33 = vmul.f32 0.01, %v341_v22 }
  0x30   : > { %v677_v34 = vunpack.c.l.bf16 %v699_v26  ;;  %v420_v35 = vsel %vm356_vm13, %v324_v14, %v388_v23  ;;  %vm373_vm14 = vcmp.ge.f32.partialorder %v341_v22, 0.0  ;;  %v342_v36 = vadd.f32 %v856_v9, %v303_v24 }
  0x31   : > { %482 = vxpose.xlu1.b32.cont [5/16] (narrow) %v434_v13, 8  ;;  %v304_v37 = vmul.f32 %v674_v25, %v847_v0  ;;  %v389_v38 = vmul.f32 0.01, %v325_v28  ;;  %v326_v39 = vadd.f32 %v856_v9, %v287_v29  ;;  %v288_v40 = vmul.f32 %v642_v30, %v847_v0  ;;  %v693_v13 = vld [vmem:[%s842_s26 + $0x38] sm:$0xff]  }
  0x32   : > { %450 = vxpose.xlu0.b32.cont [5/16] (narrow) %v418_v16, 8  ;;  %v645_v41 = vunpack.c.l.bf16 %v691_v31  ;;  %vm357_vm15 = vcmp.ge.f32.partialorder %v325_v28, 0.0  ;;  %v437_v42 = vsel %vm373_vm14, %v341_v22, %v405_v33  ;;  %v305_v43 = vmul.f32 %v677_v34, %v847_v0 }
  0x33   : > { %v678_v44 = vunpack.c.h.bf16 %v699_v26  ;;  %vm374_vm0 = vcmp.ge.f32.partialorder %v342_v36, 0.0  ;;  %v406_v45 = vmul.f32 0.01, %v342_v36  ;;  %v343_v46 = vadd.f32 %v856_v9, %v304_v37 }
  0x34   : > { %v646_v47 = vunpack.c.h.bf16 %v691_v31  ;;  %v421_v49 = vsel %vm357_vm15, %v325_v28, %v389_v38  ;;  %v390_v50 = vmul.f32 0.01, %v326_v39  ;;  %v327_v51 = vadd.f32 %v856_v9, %v288_v40 }
  0x35   : > { %483 = vxpose.xlu1.b32.cont [6/16] (narrow) %v435_v20, 8  ;;  %v289_v52 = vmul.f32 %v645_v41, %v847_v0  ;;  %vm358_vm1 = vcmp.ge.f32.partialorder %v326_v39, 0.0  ;;  %v344_v54 = vadd.f32 %v856_v9, %v305_v43  ;;  %v306_v55 = vmul.f32 %v678_v44, %v847_v0 }
  0x36   : > { %451 = vxpose.xlu0.b32.cont [6/16] (narrow) %v419_v27, 8  ;;  %v681_v56 = vunpack.c.l.bf16 %v700_v48  ;;  %v438_v57 = vsel %vm374_vm0, %v342_v36, %v406_v45  ;;  %v290_v58 = vmul.f32 %v646_v47, %v847_v0  ;;  %v649_v59 = vunpack.c.l.bf16 %v692_v53 }
  0x37   : > { %v422_v60 = vsel %vm358_vm1, %v326_v39, %v390_v50  ;;  %v407_v61 = vmul.f32 0.01, %v343_v46  ;;  %v391_v62 = vmul.f32 0.01, %v327_v51  ;;  %v328_v63 = vadd.f32 %v856_v9, %v289_v52 }
  0x38   : > { %vm375_vm2 = vcmp.ge.f32.partialorder %v343_v46, 0.0  ;;  %vm359_vm3 = vcmp.ge.f32.partialorder %v327_v51, 0.0  ;;  %v408_v1 = vmul.f32 0.01, %v344_v54  ;;  %v345_v2 = vadd.f32 %v856_v9, %v306_v55 }
  0x39   : > { %484 = vxpose.xlu1.b32.cont [7/16] (narrow) %v436_v32, 8  ;;  %v307_v3 = vmul.f32 %v681_v56, %v847_v0  ;;  %v682_v4 = vunpack.c.h.bf16 %v700_v48  ;;  %vm376_vm4 = vcmp.ge.f32.partialorder %v344_v54, 0.0  ;;  %v329_v5 = vadd.f32 %v856_v9, %v290_v58 }
  0x3a   : > { %452 = vxpose.xlu0.b32.cont [7/16] (narrow) %v420_v35, 8  ;;  %v291_v6 = vmul.f32 %v649_v59, %v847_v0  ;;  %v650_v7 = vunpack.c.h.bf16 %v692_v53  ;;  %v439_v8 = vsel %vm375_vm2, %v343_v46, %v407_v61  ;;  %v423_v10 = vsel %vm359_vm3, %v327_v51, %v391_v62 }
  0x3b   : > { %v392_v11 = vmul.f32 0.01, %v328_v63  ;;  %vm360_vm5 = vcmp.ge.f32.partialorder %v328_v63, 0.0  ;;  %v440_v14 = vsel %vm376_vm4, %v344_v54, %v408_v1  ;;  %v409_v15 = vmul.f32 0.01, %v345_v2 }
  0x3c   : > { %v346_v16 = vadd.f32 %v856_v9, %v307_v3  ;;  %v308_v17 = vmul.f32 %v682_v4, %v847_v0  ;;  %vm377_vm6 = vcmp.ge.f32.partialorder %v345_v2, 0.0  ;;  %v393_v18 = vmul.f32 0.01, %v329_v5 }
  0x3d   : > { %485 = vxpose.xlu1.b32.cont [8/16] (narrow) %v437_v42, 8  ;;  %v330_v19 = vadd.f32 %v856_v9, %v291_v6  ;;  %v292_v20 = vmul.f32 %v650_v7, %v847_v0  ;;  %v424_v21 = vsel %vm360_vm5, %v328_v63, %v392_v11  ;;  %vm361_vm7 = vcmp.ge.f32.partialorder %v329_v5, 0.0 }
  0x3e   : > { %453 = vxpose.xlu0.b32.cont [8/16] (narrow) %v421_v49, 8  ;;  %v685_v22 = vunpack.c.l.bf16 %v701_v12  ;;  %v653_v23 = vunpack.c.l.bf16 %v693_v13  ;;  %v441_v24 = vsel %vm377_vm6, %v345_v2, %v409_v15  ;;  %vm378_vm8 = vcmp.ge.f32.partialorder %v346_v16, 0.0 }
  0x3f   : > { %v410_v25 = vmul.f32 0.01, %v346_v16  ;;  %v347_v26 = vadd.f32 %v856_v9, %v308_v17  ;;  %v425_v27 = vsel %vm361_vm7, %v329_v5, %v393_v18  ;;  %vm362_vm9 = vcmp.ge.f32.partialorder %v330_v19, 0.0 }
  0x40   : > { %v394_v28 = vmul.f32 0.01, %v330_v19  ;;  %v331_v29 = vadd.f32 %v856_v9, %v292_v20  ;;  %v309_v30 = vmul.f32 %v685_v22, %v847_v0  ;;  %v293_v31 = vmul.f32 %v653_v23, %v847_v0 }
  0x41   : > { %486 = vxpose.xlu1.b32.cont [9/16] (narrow) %v438_v57, 8  ;;  %v686_v32 = vunpack.c.h.bf16 %v701_v12  ;;  %v654_v33 = vunpack.c.h.bf16 %v693_v13  ;;  %vm379_vm10 = vcmp.ge.f32.partialorder %v347_v26, 0.0  ;;  %v411_v34 = vmul.f32 0.01, %v347_v26 }
  0x42   : > { %454 = vxpose.xlu0.b32.cont [9/16] (narrow) %v422_v60, 8  ;;  %v442_v35 = vsel %vm378_vm8, %v346_v16, %v410_v25  ;;  %v426_v36 = vsel %vm362_vm9, %v330_v19, %v394_v28  ;;  %vm363_vm11 = vcmp.ge.f32.partialorder %v331_v29, 0.0  ;;  %v395_v37 = vmul.f32 0.01, %v331_v29 }
  0x43   : > { %v348_v38 = vadd.f32 %v856_v9, %v309_v30  ;;  %v332_v39 = vadd.f32 %v856_v9, %v293_v31  ;;  %v310_v40 = vmul.f32 %v686_v32, %v847_v0  ;;  %v294_v41 = vmul.f32 %v654_v33, %v847_v0 }
  0x44   : > { %v443_v42 = vsel %vm379_vm10, %v347_v26, %v411_v34  ;;  %v427_v43 = vsel %vm363_vm11, %v331_v29, %v395_v37 }
  0x45   : > { %487 = vxpose.xlu1.b32.cont [10/16] (narrow) %v439_v8, 8  ;;  %v412_v44 = vmul.f32 0.01, %v348_v38  ;;  %v396_v45 = vmul.f32 0.01, %v332_v39  ;;  %v349_v46 = vadd.f32 %v856_v9, %v310_v40  ;;  %v333_v47 = vadd.f32 %v856_v9, %v294_v41 }
  0x46   : > { %455 = vxpose.xlu0.b32.cont [10/16] (narrow) %v423_v10, 8  ;;  %vm380_vm12 = vcmp.ge.f32.partialorder %v348_v38, 0.0  ;;  %vm364_vm13 = vcmp.ge.f32.partialorder %v332_v39, 0.0 }
  0x47   : > { %v444_v48 = vsel %vm380_vm12, %v348_v38, %v412_v44  ;;  %v428_v49 = vsel %vm364_vm13, %v332_v39, %v396_v45  ;;  %v413_v50 = vmul.f32 0.01, %v349_v46  ;;  %v397_v0 = vmul.f32 0.01, %v333_v47 }
  0x48   : > { %vm381_vm14 = vcmp.ge.f32.partialorder %v349_v46, 0.0  ;;  %vm365_vm15 = vcmp.ge.f32.partialorder %v333_v47, 0.0 }
  0x49   : > { %488 = vxpose.xlu1.b32.cont [11/16] (narrow) %v440_v14, 8  ;;  %v445_v51 = vsel %vm381_vm14, %v349_v46, %v413_v50  ;;  %v429_v52 = vsel %vm365_vm15, %v333_v47, %v397_v0 }
  0x4a   : > { %456 = vxpose.xlu0.b32.cont [11/16] (narrow) %v424_v21, 8 }
  0x4d   : > { %489 = vxpose.xlu1.b32.cont [12/16] (narrow) %v441_v24, 8 }
  0x4e   : > { %457 = vxpose.xlu0.b32.cont [12/16] (narrow) %v425_v27, 8 }
  0x51   : > { %490 = vxpose.xlu1.b32.cont [13/16] (narrow) %v442_v35, 8 }
  0x52   : > { %458 = vxpose.xlu0.b32.cont [13/16] (narrow) %v426_v36, 8 }
  0x55   : > { %491 = vxpose.xlu1.b32.cont [14/16] (narrow) %v443_v42, 8 }
  0x56   : > { %459 = vxpose.xlu0.b32.cont [14/16] (narrow) %v427_v43, 8 }
  0x59   : > { %492 = vxpose.xlu1.b32.cont [15/16] (narrow) %v444_v48, 8 }
  0x5a   : > { %460 = vxpose.xlu0.b32.cont [15/16] (narrow) %v428_v49, 8 }
  0x5d   : > { %493 = vxpose.xlu1.b32.end [16/16] (narrow) %v445_v51, 8 }
  0x5e   : > { %461 = vxpose.xlu0.b32.end [16/16] (narrow) %v429_v52, 8 }
  0xa1   : > { %v494_v9 = vpop.trf.xlu1 }
  0xa2   : > { %v462_v53 = vpop.trf.xlu0 }
  0xa3   : > { %v512_v54 = vcombine.low %v462_v53, %v494_v9 }
  0xa5   : > { %514 = vst [vmem:[%s206_s10] sm:$0xff] %v512_v54 }
  0xa6 PF: > { %s13_s16 = sadd.s32 1, %s780_s16   ;;  %s962_s12 = smov %s772_s14 }
  0xa7   : > { %p10_p8 = scmp.ge.s32.totalorder %s13_s16, 10   ;;  %s963_s13 = smov %s776_s15 }
  0xa8   : > { %s964_s14 = smov %s967_s17  ;;  %s965_s15 = smov %s971_s18 }
  0xa9   :  { %12 = sbr.rel (!%p10_p8) target bundleno = 3 (0x3), region = 62 }

// kernel: up_forward.6
= control target key start
LH: loop header
LB: loop body
LE: loop exit
PB: predicated region body
PF: predicated region fallthrough
CT: control target
= control target key end

     0   :  { %s11081_s24 = smov 0   ;;  %s11083_s25 = smov 0   ;;  %s13690_s0 = inlined_call_operand.vmem [shape: bf16[2,6,18,18,128], index: 0, kind: input, shape index: {}, may-alias: {0,1,2}]   ;;  %s13691_s1 = inlined_call_operand.vmem [shape: bf16[2,6,18,18,128], index: 1, kind: input, shape index: {}, may-alias: {0,1,2}]   ;;  %s13692_s2 = inlined_call_operand.vmem [shape: bf16[2,6,18,18,128], index: 2, kind: input, shape index: {}, may-alias: {0,1,2}]   ;;  %s13693_s3 = inlined_call_operand.vmem [shape: bf16[3,3,384,128], index: 3, kind: input, shape index: {}]   ;;  %s13694_s4 = inlined_call_operand.vmem [shape: f32[1,128], index: 4, kind: input, shape index: {}]   ;;  %s13695_s5 = inlined_call_operand.vmem [shape: bf16[2,4,256,128], index: 5, kind: output, shape index: {0}]   ;;  %s13696_s6 = inlined_call_operand.vmem [shape: f32[2,4,1,128], index: 6, kind: output, shape index: {1}]   ;;  %s13697_s7 = inlined_call_operand.vmem [shape: f32[2,4,1,128], index: 7, kind: output, shape index: {2}]  }
   0x1   :  { %s11085_s26 = smov 0   ;;  %s11087_s27 = smov 0  }
   0x2   :  { %s11089_s28 = smov 0  }
   0x3 LB: > { %s27_s29 = sadd.s32 1, %s11031_s26  ;;  %s30_s30 = sadd.s32 1, %s11035_s27  ;;  %s11039_s28 = sphi %s11089_s28, %s18_s28   ;;  %s11035_s27 = sphi %s11087_s27, %s14156_s27   ;;  %s11031_s26 = sphi %s11085_s26, %s14155_s26   ;;  %s11027_s25 = sphi %s11083_s25, %s14154_s25   ;;  %s11023_s24 = sphi %s11081_s24, %s14153_s24  }
   0x4   : > { %p28_p0 = scmp.ge.s32.totalorder %s27_s29, 4  ;;  %p7391_p1 = scmp.ge.s32.totalorder %s11039_s28, 1 }
   0x5   : > { %p306_p2 = scmp.lt.s32.totalorder %s11039_s28, 9 }
   0x6   : > { %s14158_s29 = smov (%p28_p0, %s27_s29), 0  ;;  %s14160_s30 = smov (!%p28_p0, %s30_s30), %s11035_s27 }
   0x7   : > { %p307_p3 = pnand %p7391_p1, %p306_p2  ;;  %p32_p4 = scmp.ge.s32.totalorder %s14160_s30, 2 }
   0x9   : > { %s14162_s30 = smov (%p32_p4, %s14160_s30), 0  ;;  %310 = sbr.rel (%p307_p3) target bundleno = 1191 (0x4a7), region = 40 }
  0x10   : > { %v10530_v0 = vld [vmem:[%s13693_s3 + $0x100] sm:$0xff]   ;;  %p380_p5 = scmp.lt.s32.totalorder %s11027_s25, 1  ;;  %s389_s12 = sadd.s32 1, %s11023_s24  ;;  %v10532_v2 = vld [vmem:[%s13693_s3 + $0x108] sm:$0xff]   ;;  %v10534_v4 = vld [vmem:[%s13693_s3 + $0x110] sm:$0xff]   ;;  %vm2737_vm1 = vcmask 1046528  }
  0x11   : > { %v10531_v1 = vld [vmem:[%s13693_s3 + $0xc0] sm:$0xff]   ;;  %8270 = vmatprep.subr.bf16.mxu0 %v10530_v0  ;;  %9926 = vmatprep.subr.bf16.mxu1 %v10530_v0  ;;  %v10533_v3 = vld [vmem:[%s13693_s3 + $0xc8] sm:$0xff]   ;;  %p392_p6 = scmp.lt.s32.totalorder %s389_s12, 5  ;;  %p382_p7 = scmp.lt.s32.totalorder %s11023_s24, 5  ;;  %v10535_v5 = vld [vmem:[%s13693_s3 + $0xd0] sm:$0xff]  }
  0x12   : > { %s14164_s25 = smov (!%p380_p5, %s11027_s25), 1  ;;  %8271 = vmatpush3.bf16.msra.mxu0 %v10531_v1  ;;  %9934 = vmatpush3.bf16.msra.mxu1 %v10531_v1  ;;  %v10536_v6 = vld [vmem:[%s13693_s3 + $0x118] sm:$0xff]   ;;  %v10538_v8 = vld [vmem:[%s13693_s3 + $0x120] sm:$0xff]   ;;  %s400_s17 = sadd.s32 2, %s11023_s24  ;;  %v10540_v10 = vld [vmem:[%s13693_s3 + $0x128] sm:$0xff]  }
  0x13   : > { %8272 = vmatprep.subr.bf16.mxu0 %v10532_v2  ;;  %9927 = vmatprep.subr.bf16.mxu1 %v10532_v2  ;;  %s11132_s19 = smul.u32 324, %s14164_s25  ;;  %s14166_s12 = smov (!%p392_p6, %s389_s12), 5  ;;  %v10537_v7 = vld [vmem:[%s13693_s3 + $0xd8] sm:$0xff]   ;;  %v10539_v9 = vld [vmem:[%s13693_s3 + $0xe0] sm:$0xff]   ;;  %v10541_v11 = vld [vmem:[%s13693_s3 + $0xe8] sm:$0xff]  }
  0x14   : > { %s10488_s22 = smul.u32 54, %s14166_s12  ;;  %p11164_p8 = scmp.lt.s32.totalorder %s400_s17, 5  ;;  %vm1131_vm0 = vsmask.f32 7424  ;;  %v10542_v14 = vld [vmem:[%s13693_s3 + $0x130] sm:$0xff]   ;;  %v10544_v33 = vld [vmem:[%s13693_s3 + $0x138] sm:$0xff]  }
  0x15   : > { %s383_s9 = scalar_select %p382_p7, %s11023_s24, 5  ;;  %v10543_v21 = vld [vmem:[%s13693_s3 + $0xf0] sm:$0xff]   ;;  %v10545_v37 = vld [vmem:[%s13693_s3 + $0xf8] sm:$0xff]   ;;  %v10554_v44 = vld [vmem:[%s13693_s3 + $0x140] sm:$0xff]  }
  0x16   : > { %8273 = vmatpush3.bf16.msra.mxu0 %v10533_v3  ;;  %9935 = vmatpush3.bf16.msra.mxu1 %v10533_v3  ;;  %s396_s10 = sadd.s32 %s10488_s22, %s11132_s19  ;;  %v10555_v45 = vld [vmem:[%s13693_s3 + $0x1c0] sm:$0xff]   ;;  %v10557_v53 = vld [vmem:[%s13693_s3 + $0x148] sm:$0xff]   ;;  %s14168_s17 = smov (!%p11164_p8, %s400_s17), 5 }
  0x17   : > { %8274 = vmatprep.subr.bf16.mxu0 %v10534_v4  ;;  %9928 = vmatprep.subr.bf16.mxu1 %v10534_v4  ;;  %s7393_s14 = sshll.u32 %s396_s10, 2  ;;  %s10486_s15 = smul.u32 54, %s383_s9  ;;  %v10556_v52 = vld [vmem:[%s13693_s3 + $0x180] sm:$0xff]  }
  0x18   : > { %s11157_s8 = scalar_lea.vmem %s13691_s1, %s7393_s14  ;;  %s10489_s13 = smul.u32 54, %s14168_s17 }
  0x19   : > { %s386_s18 = sadd.s32 %s11132_s19, %s10486_s15  ;;  %v10546_v12 = vld [vmem:[%s11157_s8] sm:$0xff]   ;;  %v10547_v13 = vld [vmem:[%s11157_s8 + $0x8] ss:$0 sps:$4 sm:$0x11]   ;;  %v10548_v18 = vld [vmem:[%s11157_s8 + $0x90] sm:$0xff]   ;;  %p413_p9 = scmp.lt.s32.totalorder %s11023_s24, 3 }
  0x1a   : > { %8275 = vmatpush3.bf16.msra.mxu0 %v10535_v5  ;;  %9936 = vmatpush3.bf16.msra.mxu1 %v10535_v5  ;;  %s7392_s9 = sshll.u32 %s386_s18, 2  ;;  %v1145_v15 = vshrl.u32 %v10546_v12, 16  ;;  %v1147_v16 = vshll.u32 %v10546_v12, 16  ;;  %v1152_v17 = vshll.u32 %v10547_v13, 16  ;;  %v1577_v24 = vshrl.u32 %v10548_v18, 16  ;;  %v10558_v54 = vld [vmem:[%s11157_s8 + $0xc] sm:$0xff]   ;;  %s407_s20 = sadd.s32 %s10489_s13, %s11132_s19 }
  0x1b   : > { %8276 = vmatprep.subr.bf16.mxu0 %v10536_v6  ;;  %9929 = vmatprep.subr.bf16.mxu1 %v10536_v6  ;;  %s11176_s18 = scalar_lea.vmem %s13690_s0, %s7392_s9  ;;  %v10549_v19 = vld [vmem:[%s11157_s8 + $0x98] ss:$0 sps:$4 sm:$0x11]   ;;  %v1579_v25 = vshll.u32 %v10548_v18, 16  ;;  %v10560_v58 = vld [vmem:[%s11157_s8 + $0x9c] sm:$0xff]   ;;  %v1181_v59 = vshrl.u32 %v10558_v54, 16 }
  0x1c   : > { %v10550_v20 = vld [vmem:[%s11176_s18] sm:$0xff]   ;;  %v1149_v22 = vrot.slane %v1147_v16, 1  ;;  %v1154_v23 = vrot.slane %v1152_v17, 1  ;;  %v1584_v26 = vshll.u32 %v10549_v19, 16  ;;  %v10552_v32 = vld [vmem:[%s11176_s18 + $0x90] sm:$0xff]   ;;  %v1183_v60 = vshll.u32 %v10558_v54, 16 }
  0x1d   : > { %v10551_v27 = vld [vmem:[%s11176_s18 + $0x8] ss:$0 sps:$4 sm:$0x11]   ;;  %v1133_v28 = vshrl.u32 %v10550_v20, 16  ;;  %v1135_v29 = vshll.u32 %v10550_v20, 16  ;;  %v1581_v31 = vrot.slane %v1579_v25, 1 }
  0x1e   : > { %8277 = vmatpush3.bf16.msra.mxu0 %v10537_v7  ;;  %9937 = vmatpush3.bf16.msra.mxu1 %v10537_v7  ;;  %v1150_v30 = vor.u32 %v1149_v22, %v1145_v15  ;;  %v1586_v34 = vrot.slane %v1584_v26, 1  ;;  %v1140_v36 = vshll.u32 %v10551_v27, 16  ;;  %v10553_v40 = vld [vmem:[%s11176_s18 + $0x98] ss:$0 sps:$4 sm:$0x11]   ;;  %v1565_v41 = vshrl.u32 %v10552_v32, 16 }
  0x1f   : > { %8278 = vmatprep.subr.bf16.mxu0 %v10538_v8  ;;  %9930 = vmatprep.subr.bf16.mxu1 %v10538_v8  ;;  %v1137_v35 = vrot.slane %v1135_v29, 1  ;;  %v1582_v39 = vor.u32 %v1581_v31, %v1577_v24  ;;  %v1567_v42 = vshll.u32 %v10552_v32, 16  ;;  %v1572_v49 = vshll.u32 %v10553_v40, 16  ;;  %v10559_v57 = vld [vmem:[%s11157_s8 + $0x14] ss:$0 sps:$4 sm:$0x11]  }
  0x20   : > { %v1155_v38 = vsel %vm1131_vm0, %v1150_v30, %v1154_v23  ;;  %v1142_v43 = vrot.slane %v1140_v36, 1  ;;  %v1188_v61 = vshll.u32 %v10559_v57, 16  ;;  %v10561_v62 = vld [vmem:[%s11157_s8 + $0xa4] ss:$0 sps:$4 sm:$0x11]   ;;  %v1613_v63 = vshrl.u32 %v10560_v58, 16 }
  0x21   : > { %1981 = vmatprep.mubr.bf16.mxu0 %v1155_v38  ;;  %v11204_v46 = vsel %vm1131_vm0, %v1582_v39, %v1586_v34  ;;  %v1138_v47 = vor.u32 %v1137_v35, %v1133_v28  ;;  %v1569_v48 = vrot.slane %v1567_v42, 1  ;;  %v1574_v51 = vrot.slane %v1572_v49, 1  ;;  %v10562_v2 = vld [vmem:[%s11176_s18 + $0xc] sm:$0xff]   ;;  %v10564_v6 = vld [vmem:[%s11176_s18 + $0x9c] sm:$0xff]   ;;  %s7394_s23 = sshll.u32 %s407_s20, 2  ;;  %s14170_s24 = smov (!%p413_p9, %s11023_s24), 3 }
  0x22   : > { %8279 = vmatpush3.bf16.msra.mxu0 %v10539_v9  ;;  %9938 = vmatpush3.bf16.msra.mxu1 %v10539_v9  ;;  %13866 = vst [vmem:[#allocation2_spill] sm:$0xff] %v11204_v46  ;;  %v1615_v0 = vshll.u32 %v10560_v58, 16  ;;  %v1185_v1 = vrot.slane %v1183_v60, 1  ;;  %v1190_v3 = vrot.slane %v1188_v61, 1  ;;  %v1620_v5 = vshll.u32 %v10561_v62, 16  ;;  %v10567_v19 = vld [vmem:[%s13693_s3 + $0x158] sm:$0xff]   ;;  %s11336_s9 = scalar_lea.vmem %s13692_s2, %s7394_s23 }
  0x23   : > { %8280 = vmatprep.subr.bf16.mxu0 %v10540_v10  ;;  %9931 = vmatprep.subr.bf16.mxu1 %v10540_v10  ;;  %v1570_v50 = vor.u32 %v1569_v48, %v1565_v41  ;;  %v1143_v55 = vsel %vm1131_vm0, %v1138_v47, %v1142_v43  ;;  %v10563_v8 = vld [vmem:[%s11176_s18 + $0x14] ss:$0 sps:$4 sm:$0x11]   ;;  %v1169_v9 = vshrl.u32 %v10562_v2, 16  ;;  %v1171_v10 = vshll.u32 %v10562_v2, 16  ;;  %v10568_v22 = vld [vmem:[%s13693_s3 + $0x1c8] sm:$0xff]  }
  0x24   : > { %2077 = vmatprep.mubr.bf16.mxu1 %v11204_v46  ;;  %v1617_v4 = vrot.slane %v1615_v0, 1  ;;  %v1186_v7 = vor.u32 %v1185_v1, %v1181_v59  ;;  %v1622_v13 = vrot.slane %v1620_v5, 1  ;;  %v1176_v17 = vshll.u32 %v10563_v8, 16  ;;  %v10569_v27 = vld [vmem:[%s13693_s3 + $0x188] sm:$0xff]   ;;  %v10570_v31 = vld [vmem:[%s11157_s8 + $0x18] sm:$0xff]   ;;  %v10578_v61 = vld [vmem:[%s13693_s3 + $0x160] sm:$0xff]  }
  0x25   : > { %v11222_v56 = vsel %vm1131_vm0, %v1570_v50, %v1574_v51  ;;  %v1173_v16 = vrot.slane %v1171_v10, 1  ;;  %v1603_v18 = vshll.u32 %v10564_v6, 16  ;;  %v10571_v32 = vld [vmem:[%s11157_s8 + $0x20] ss:$0 sps:$4 sm:$0x11]   ;;  %v1217_v35 = vshrl.u32 %v10570_v31, 16 }
  0x26   : > { %8281 = vmatpush3.bf16.msra.mxu0 %v10541_v11  ;;  %9939 = vmatpush3.bf16.msra.mxu1 %v10541_v11  ;;  %13867 = vst [vmem:[#allocation3_spill] sm:$0xff] %v11222_v56  ;;  %v10566_v11 = vld [vmem:[%s13693_s3 + $0x150] sm:$0xff]   ;;  %v1618_v12 = vor.u32 %v1617_v4, %v1613_v63  ;;  %v11235_v15 = vsel %vm1131_vm0, %v1186_v7, %v1190_v3  ;;  %v1178_v24 = vrot.slane %v1176_v17, 1  ;;  %v1219_v36 = vshll.u32 %v10570_v31, 16  ;;  %v10574_v42 = vld [vmem:[%s11176_s18 + $0x18] sm:$0xff]   ;;  %v10579_v1 = vld [vmem:[%s13693_s3 + $0x168] sm:$0xff]  }
  0x27   : > { %8282 = vmatprep.subr.bf16.mxu0 %v10542_v14  ;;  %9932 = vmatprep.subr.bf16.mxu1 %v10542_v14  ;;  %v1601_v14 = vshrl.u32 %v10564_v6, 16  ;;  %v1174_v23 = vor.u32 %v1173_v16, %v1169_v9  ;;  %v1605_v25 = vrot.slane %v1603_v18, 1  ;;  %v10573_v38 = vld [vmem:[%s11157_s8 + $0xb0] ss:$0 sps:$4 sm:$0x11]   ;;  %v1205_v49 = vshrl.u32 %v10574_v42, 16 }
  0x28   : > { %v11242_v20 = vsel %vm1131_vm0, %v1618_v12, %v1622_v13  ;;  %v1221_v39 = vrot.slane %v1219_v36, 1  ;;  %v10575_v48 = vld [vmem:[%s11176_s18 + $0x20] ss:$0 sps:$4 sm:$0x11]   ;;  %v1207_v50 = vshll.u32 %v10574_v42, 16  ;;  %v10580_v5 = vld [vmem:[%s11157_s8 + $0x24] sm:$0xff]  }
  0x29   : > { %13868 = vst [vmem:[#allocation4_spill] sm:$0xff] %v11242_v20  ;;  %v11253_v28 = vsel %vm1131_vm0, %v1174_v23, %v1178_v24  ;;  %v1606_v29 = vor.u32 %v1605_v25, %v1601_v14  ;;  %v1212_v57 = vshll.u32 %v10575_v48, 16  ;;  %v10577_v58 = vld [vmem:[%s11176_s18 + $0xb0] ss:$0 sps:$4 sm:$0x11]   ;;  %v1253_v9 = vshrl.u32 %v10580_v5, 16 }
  0x2a   : > { %8283 = vmatpush3.bf16.msra.mxu0 %v10543_v21  ;;  %9940 = vmatpush3.bf16.msra.mxu1 %v10543_v21  ;;  %v10565_v21 = vld [vmem:[%s11176_s18 + $0xa4] ss:$0 sps:$4 sm:$0x11]   ;;  %v1644_v3 = vshll.u32 %v10577_v58, 16  ;;  %v1255_v10 = vshll.u32 %v10580_v5, 16  ;;  %v10582_v13 = vld [vmem:[%s11157_s8 + $0xb4] sm:$0xff]  }
  0x2b   : > { %8284 = vmatprep.subr.bf16.mxu0 %v10544_v33  ;;  %9933 = vmatprep.subr.bf16.mxu1 %v10544_v33  ;;  %v1608_v26 = vshll.u32 %v10565_v21, 16  ;;  %v10572_v33 = vld [vmem:[%s11157_s8 + $0xa8] sm:$0xff]   ;;  %v1214_v0 = vrot.slane %v1212_v57, 1  ;;  %v10583_v14 = vld [vmem:[%s11157_s8 + $0xbc] ss:$0 sps:$4 sm:$0x11]  }
  0x2c   : > { %v1649_v40 = vshrl.u32 %v10572_v33, 16  ;;  %v1651_v41 = vshll.u32 %v10572_v33, 16  ;;  %v1646_v7 = vrot.slane %v1644_v3, 1  ;;  %v10581_v8 = vld [vmem:[%s11157_s8 + $0x2c] ss:$0 sps:$4 sm:$0x11]  }
  0x2d   : > { %v1610_v30 = vrot.slane %v1608_v26, 1  ;;  %v1260_v12 = vshll.u32 %v10581_v8, 16  ;;  %v10584_v16 = vld [vmem:[%s11176_s18 + $0x24] sm:$0xff]   ;;  %v1257_v17 = vrot.slane %v1255_v10, 1  ;;  %v10586_v18 = vld [vmem:[%s11176_s18 + $0xb4] sm:$0xff]   ;;  %v1685_v21 = vshrl.u32 %v10582_v13, 16 }
  0x2e   : > { %8285 = vmatpush3.bf16.msra.mxu0 %v10545_v37  ;;  %9941 = vmatpush3.bf16.msra.mxu1 %v10545_v37  ;;  %v1224_v37 = vshll.u32 %v10571_v32, 16  ;;  %v1653_v47 = vrot.slane %v1651_v41, 1  ;;  %v1692_v23 = vshll.u32 %v10583_v14, 16  ;;  %v10585_v25 = vld [vmem:[%s11176_s18 + $0x2c] ss:$0 sps:$4 sm:$0x11]  }
  0x2f   : > { %9494 = vmatprep.subr.bf16.mxu1 %v10554_v44  ;;  %8542 = vmatprep.subr.bf16.mxu0 %v10555_v45  ;;  %v11260_v34 = vsel %vm1131_vm0, %v1606_v29, %v1610_v30  ;;  %v1222_v45 = vor.u32 %v1221_v39, %v1217_v35  ;;  %v1258_v24 = vor.u32 %v1257_v17, %v1253_v9  ;;  %v1241_v26 = vshrl.u32 %v10584_v16, 16  ;;  %v10587_v39 = vld [vmem:[%s11176_s18 + $0xbc] ss:$0 sps:$4 sm:$0x11]   ;;  %v10596_v57 = vld [vmem:[%s11176_s18 + $0x30] sm:$0xff]   ;;  %s7398_s10 = sshll.u32 %s14164_s25, 2 }
  0x30   : > { %13869 = vst [vmem:[#allocation5_spill] sm:$0xff] %v11260_v34  ;;  %v1226_v43 = vrot.slane %v1224_v37, 1  ;;  %v1654_v54 = vor.u32 %v1653_v47, %v1649_v40  ;;  %v1673_v29 = vshrl.u32 %v10586_v18, 16  ;;  %v1694_v31 = vrot.slane %v1692_v23, 1  ;;  %v10588_v37 = vld [vmem:[%s13693_s3 + $0x170] sm:$0xff]   ;;  %s425_s11 = sadd.s32 %s7398_s10, %s14170_s24 }
  0x31   : > { %1982 = vmatmul.mubr.bf16.vlgmr.msra.gmra.mrb[0].mxu0 %v1143_v55  ;;  %2078 = vmatmul.mubr.bf16.vlgmr.msra.gmra.mrb[0].mxu1 %v11222_v56  ;;  %v1209_v55 = vrot.slane %v1207_v50, 1  ;;  %v1248_v35 = vshll.u32 %v10585_v25, 16  ;;  %v1675_v36 = vshll.u32 %v10586_v18, 16  ;;  %v10589_v40 = vld [vmem:[%s13693_s3 + $0x1d0] sm:$0xff]   ;;  %v1277_v5 = vshrl.u32 %v10596_v57, 16  ;;  %s426_s12 = scalar_lea.vmem %s13696_s6, %s425_s11 }
  0x32   : > { %9495 = vmatpush3.bf16.msra.mxu1 %v10554_v44  ;;  %8543 = vmatpush3.bf16.msra.mxu0 %v10556_v52  ;;  %v1656_v44 = vshll.u32 %v10573_v38, 16  ;;  %v10576_v52 = vld [vmem:[%s11176_s18 + $0xa8] sm:$0xff]   ;;  %v10590_v47 = vld [vmem:[%s13693_s3 + $0x190] sm:$0xff]   ;;  %v10597_v3 = vld [vmem:[%s11176_s18 + $0x38] ss:$0 sps:$4 sm:$0x11]  }
  0x33   : > { %9496 = vmatprep.subr.bf16.mxu1 %v10557_v53  ;;  %1989 = vmatprep.mubr.bf16.mxu0 %v11235_v15  ;;  %v1637_v59 = vshrl.u32 %v10576_v52, 16  ;;  %v1639_v60 = vshll.u32 %v10576_v52, 16  ;;  %v1210_v63 = vor.u32 %v1209_v55, %v1205_v49  ;;  %v1250_v42 = vrot.slane %v1248_v35, 1  ;;  %v10592_v52 = vld [vmem:[%s11157_s8 + $0x30] sm:$0xff]  }
  0x34   : > { %2085 = vmatprep.mubr.bf16.mxu1 %v11242_v20  ;;  %8544 = vmatprep.subr.bf16.mxu0 %v10568_v22  ;;  %v1658_v51 = vrot.slane %v1656_v44, 1  ;;  %v1687_v22 = vshll.u32 %v10582_v13, 16  ;;  %v1289_v58 = vshrl.u32 %v10592_v52, 16  ;;  %v1284_v14 = vshll.u32 %v10597_v3, 16 }
  0x35   : > { %v1641_v2 = vrot.slane %v1639_v60, 1  ;;  %v11283_v4 = vsel %vm1131_vm0, %v1210_v63, %v1214_v0 }
  0x36   : > { %9497 = vmatpush3.bf16.msra.mxu1 %v10557_v53  ;;  %8545 = vmatpush3.bf16.msra.mxu0 %v10569_v27  ;;  %v11268_v53 = vsel %vm1131_vm0, %v1222_v45, %v1226_v43  ;;  %v11276_v62 = vsel %vm1131_vm0, %v1654_v54, %v1658_v51  ;;  %v1243_v27 = vshll.u32 %v10584_v16, 16  ;;  %v1689_v30 = vrot.slane %v1687_v22, 1  ;;  %v10591_v51 = vld [vmem:[%s13693_s3 + $0x178] sm:$0xff]  }
  0x37   : > { %9498 = vmatprep.subr.bf16.mxu1 %v10566_v11  ;;  %13870 = vst [vmem:[#allocation6_spill] sm:$0xff] %v11276_v62  ;;  %v1642_v6 = vor.u32 %v1641_v2, %v1637_v59  ;;  %v1677_v43 = vrot.slane %v1675_v36, 1  ;;  %v1680_v45 = vshll.u32 %v10587_v39, 16  ;;  %8546 = vmatprep.subr.bf16.mxu0 %v10589_v40  ;;  %v10593_v54 = vld [vmem:[%s11157_s8 + $0x38] ss:$0 sps:$4 sm:$0x11]  }
  0x38   : > { %v1245_v33 = vrot.slane %v1243_v27, 1  ;;  %v1690_v38 = vor.u32 %v1689_v30, %v1685_v21  ;;  %v1291_v59 = vshll.u32 %v10592_v52, 16  ;;  %v1296_v60 = vshll.u32 %v10593_v54, 16  ;;  %v10595_v2 = vld [vmem:[%s11336_s9 + $0x8] ss:$0 sps:$4 sm:$0x11]  }
  0x39   : > { %1990 = vmatmul.mubr.bf16.gmra.mrb[4].mxu0 %v11253_v28  ;;  %2086 = vmatmul.mubr.bf16.gmra.mrb[4].mxu1 %v11260_v34  ;;  %v1678_v49 = vor.u32 %v1677_v43, %v1673_v29  ;;  %v1682_v50 = vrot.slane %v1680_v45, 1  ;;  %v1286_v23 = vrot.slane %v1284_v14, 1  ;;  %v10602_v27 = vld [vmem:[%s13693_s3 + $0x1d8] sm:$0xff]   ;;  %v10605_v39 = vld [vmem:[%s11157_s8 + $0x44] ss:$0 sps:$4 sm:$0x11]  }
  0x3a   : > { %9499 = vmatpush3.bf16.msra.mxu1 %v10566_v11  ;;  %1997 = vmatprep.mubr.bf16.mxu0 %v11268_v53  ;;  %v11290_v11 = vsel %vm1131_vm0, %v1642_v6, %v1646_v7  ;;  %v1246_v41 = vor.u32 %v1245_v33, %v1241_v26  ;;  %v11310_v44 = vsel %vm1131_vm0, %v1690_v38, %v1694_v31  ;;  %v1293_v63 = vrot.slane %v1291_v59, 1  ;;  %v10598_v7 = vld [vmem:[%s11336_s9 + $0xc] sm:$0xff]   ;;  %v10601_v31 = vld [vmem:[%s13693_s3] sm:$0xff]   ;;  %v10603_v33 = vld [vmem:[%s13693_s3 + $0x198] sm:$0xff]  }
  0x3b   : > { %9500 = vmatprep.subr.bf16.mxu1 %v10567_v19  ;;  %2093 = vmatprep.mubr.bf16.mxu1 %v11276_v62  ;;  %13871 = vst [vmem:[#allocation7_spill] sm:$0xff] %v11290_v11  ;;  %13872 = vst [vmem:[#allocation8_spill] sm:$0xff] %v11310_v44  ;;  %v11329_v55 = vsel %vm1131_vm0, %v1678_v49, %v1682_v50  ;;  %v1298_v0 = vrot.slane %v1296_v60, 1  ;;  %v1279_v6 = vshll.u32 %v10596_v57, 16  ;;  %v1193_v21 = vshrl.u32 %v10598_v7, 16  ;;  %v10608_v52 = vld [vmem:[%s11176_s18 + $0x3c] sm:$0xff]  }
  0x3c   : > { %v11317_v48 = vsel %vm1131_vm0, %v1246_v41, %v1250_v42  ;;  %8547 = vmatpush3.bf16.msra.mxu0 %v10590_v47  ;;  %13873 = vst [vmem:[#allocation9_spill] sm:$0xff] %v11329_v55  ;;  %v1294_v8 = vor.u32 %v1293_v63, %v1289_v58  ;;  %v10606_v42 = vld [vmem:[%s11336_s9 + $0x18] sm:$0xff]   ;;  %v1332_v47 = vshll.u32 %v10605_v39, 16  ;;  %v10607_v49 = vld [vmem:[%s11336_s9 + $0x20] ss:$0 sps:$4 sm:$0x11]  }
  0x3d   : > { %v1281_v13 = vrot.slane %v1279_v6, 1  ;;  %8548 = vmatprep.subr.bf16.mxu0 %v10602_v27  ;;  %v1229_v50 = vshrl.u32 %v10606_v42, 16  ;;  %v1236_v58 = vshll.u32 %v10607_v49, 16  ;;  %v10609_v60 = vld [vmem:[%s11176_s18 + $0x44] ss:$0 sps:$4 sm:$0x11]  }
  0x3e   : > { %9501 = vmatpush3.bf16.msra.mxu1 %v10567_v19  ;;  %v1262_v19 = vrot.slane %v1260_v12, 1  ;;  %v1164_v12 = vshll.u32 %v10595_v2, 16  ;;  %v11346_v16 = vsel %vm1131_vm0, %v1294_v8, %v1298_v0  ;;  %v1334_v57 = vrot.slane %v1332_v47, 1  ;;  %v10610_v2 = vld [vmem:[%s11336_s9 + $0x24] sm:$0xff]  }
  0x3f   : > { %9502 = vmatprep.subr.bf16.mxu1 %v10578_v61  ;;  %v1282_v22 = vor.u32 %v1281_v13, %v1277_v5  ;;  %v1315_v63 = vshll.u32 %v10608_v52, 16  ;;  %v1320_v6 = vshll.u32 %v10609_v60, 16  ;;  %v10612_v8 = vld [vmem:[%s13693_s3 + $0x48] sm:$0xff]  }
  0x40   : > { %v11299_v32 = vsel %vm1131_vm0, %v1258_v24, %v1262_v19  ;;  %v1166_v18 = vrot.slane %v1164_v12, 1  ;;  %v10599_v19 = vld [vmem:[%s11336_s9 + $0x14] ss:$0 sps:$4 sm:$0x11]   ;;  %v1195_v24 = vshll.u32 %v10598_v7, 16  ;;  %8549 = vmatpush3.bf16.msra.mxu0 %v10603_v33  ;;  %v10618_v39 = vld [vmem:[%s11176_s18 + $0x48] sm:$0xff]  }
  0x41   : > { %1998 = vmatmul.mubr.bf16.gmra.mrb[8].mxu0 %v11283_v4  ;;  %2094 = vmatmul.mubr.bf16.gmra.mrb[8].mxu1 %v11290_v11  ;;  %v1200_v26 = vshll.u32 %v10599_v19, 16  ;;  %v11354_v29 = vsel %vm1131_vm0, %v1282_v22, %v1286_v23  ;;  %v1317_v5 = vrot.slane %v1315_v63, 1  ;;  %v10611_v7 = vld [vmem:[%s11336_s9 + $0x2c] ss:$0 sps:$4 sm:$0x11]   ;;  %v1322_v14 = vrot.slane %v1320_v6, 1 }
  0x42   : > { %9503 = vmatpush3.bf16.msra.mxu1 %v10578_v61  ;;  %2005 = vmatprep.mubr.bf16.mxu0 %v11299_v32  ;;  %v10600_v61 = vld [vmem:[%s13693_s3 + $0x40] sm:$0xff]   ;;  %13874 = vst [vmem:[#allocation10_spill] sm:$0xff] %v11354_v29  ;;  %v1197_v30 = vrot.slane %v1195_v24, 1  ;;  %v10613_v19 = vld [vmem:[%s13693_s3 + $0x8] sm:$0xff]   ;;  %v1349_v49 = vshrl.u32 %v10618_v39, 16 }
  0x43   : > { %9504 = vmatprep.subr.bf16.mxu1 %v10579_v1  ;;  %2101 = vmatprep.mubr.bf16.mxu1 %v11310_v44  ;;  %v1202_v36 = vrot.slane %v1200_v26, 1  ;;  %v10614_v23 = vld [vmem:[%s11157_s8 + $0x48] sm:$0xff]   ;;  %v10616_v26 = vld [vmem:[%s11336_s9 + $0x30] sm:$0xff]   ;;  %v10666_v44 = vld [vmem:[%s11336_s9 + $0x9c] sm:$0xff]  }
  0x44   : > { %v1198_v38 = vor.u32 %v1197_v30, %v1193_v21  ;;  %v1361_v27 = vshrl.u32 %v10614_v23, 16  ;;  %v1363_v30 = vshll.u32 %v10614_v23, 16  ;;  %v1625_v62 = vshrl.u32 %v10666_v44, 16 }
  0x45   : > { %v1627_v34 = vshll.u32 %v10666_v44, 16 }
  0x46   : > { %9505 = vmatpush3.bf16.msra.mxu1 %v10579_v1  ;;  %v10594_v1 = vld [vmem:[%s11336_s9] sm:$0xff]   ;;  %v11368_v43 = vsel %vm1131_vm0, %v1198_v38, %v1202_v36  ;;  %v1301_v36 = vshrl.u32 %v10616_v26, 16  ;;  %v1365_v38 = vrot.slane %v1363_v30, 1  ;;  %v10629_v30 = vld [vmem:[%s11336_s9 + $0x50] ss:$0 sps:$4 sm:$0x11]  }
  0x47   : > { %9506 = vmatprep.subr.bf16.mxu1 %v10588_v37  ;;  %v1157_v9 = vshrl.u32 %v10594_v1, 16  ;;  %v1159_v10 = vshll.u32 %v10594_v1, 16  ;;  %13875 = vst [vmem:[#allocation11_spill] sm:$0xff] %v11368_v43  ;;  %v1238_v1 = vrot.slane %v1236_v58, 1  ;;  %v10622_v58 = vld [vmem:[%s13693_s3 + $0x50] sm:$0xff]  }
  0x48   : > { %v1366_v47 = vor.u32 %v1365_v38, %v1361_v27 }
  0x49   : > { %2006 = vmatmul.mubr.bf16.gmra.mrb[12].mxu0 %v11317_v48  ;;  %2102 = vmatmul.mubr.bf16.gmra.mrb[12].mxu1 %v11329_v55  ;;  %v1161_v17 = vrot.slane %v1159_v10, 1  ;;  %v1267_v10 = vshll.u32 %v10610_v2, 16 }
  0x4a   : > { %9507 = vmatpush3.bf16.msra.mxu1 %v10588_v37  ;;  %2013 = vmatprep.mubr.bf16.mxu0 %v11346_v16  ;;  %v10604_v37 = vld [vmem:[%s11157_s8 + $0x3c] sm:$0xff]  }
  0x4b   : > { %9508 = vmatprep.subr.bf16.mxu1 %v10591_v51  ;;  %v1162_v25 = vor.u32 %v1161_v17, %v1157_v9  ;;  %v1325_v40 = vshrl.u32 %v10604_v37, 16  ;;  %v1327_v41 = vshll.u32 %v10604_v37, 16  ;;  %v1265_v9 = vshrl.u32 %v10610_v2, 16 }
  0x4c   : > { %v1272_v17 = vshll.u32 %v10611_v7, 16  ;;  %v1303_v37 = vshll.u32 %v10616_v26, 16 }
  0x4d   : > { %v1167_v35 = vsel %vm1131_vm0, %v1162_v25, %v1166_v18  ;;  %v1329_v45 = vrot.slane %v1327_v41, 1  ;;  %v1269_v18 = vrot.slane %v1267_v10, 1  ;;  %v10615_v25 = vld [vmem:[%s11157_s8 + $0x50] ss:$0 sps:$4 sm:$0x11]   ;;  %v10625_v10 = vld [vmem:[%s13693_s3 + $0x1a0] sm:$0xff]  }
  0x4e   : > { %9509 = vmatpush3.bf16.msra.mxu1 %v10591_v51  ;;  %9510 = vmatprep.mubr.bf16.mxu1 %v1167_v35  ;;  %v1231_v51 = vshll.u32 %v10606_v42, 16  ;;  %v1274_v22 = vrot.slane %v1272_v17, 1  ;;  %v1368_v33 = vshll.u32 %v10615_v25, 16  ;;  %v10617_v35 = vld [vmem:[%s11336_s9 + $0x38] ss:$0 sps:$4 sm:$0x11]  }
  0x4f   : > { %8406 = vmatprep.subr.bf16.mxu1 %v10600_v61  ;;  %v1330_v54 = vor.u32 %v1329_v45, %v1325_v40  ;;  %v1313_v61 = vshrl.u32 %v10608_v52, 16  ;;  %v1270_v24 = vor.u32 %v1269_v18, %v1265_v9  ;;  %v1305_v41 = vrot.slane %v1303_v37, 1  ;;  %v10619_v45 = vld [vmem:[%s11176_s18 + $0x50] ss:$0 sps:$4 sm:$0x11]   ;;  %v10626_v17 = vld [vmem:[%s11157_s8 + $0x54] sm:$0xff]  }
  0x50   : > { %v1233_v59 = vrot.slane %v1231_v51, 1  ;;  %v1370_v40 = vrot.slane %v1368_v33, 1  ;;  %v1308_v42 = vshll.u32 %v10617_v35, 16  ;;  %v1399_v23 = vshll.u32 %v10626_v17, 16 }
  0x51   : > { %2014 = vmatmul.mubr.bf16.gmra.mrb[16].mxu0 %v11354_v29  ;;  %9511 = vmatmul.mubr.bf16.vlgmr.msra.gmra.mrb[16].mxu1 %v11368_v43  ;;  %v11375_v0 = vsel %vm1131_vm0, %v1330_v54, %v1334_v57  ;;  %v1318_v13 = vor.u32 %v1317_v5, %v1313_v61  ;;  %v1306_v51 = vor.u32 %v1305_v41, %v1301_v36  ;;  %v1356_v54 = vshll.u32 %v10619_v45, 16  ;;  %v10620_v57 = vld [vmem:[%s11336_s9 + $0x3c] sm:$0xff]   ;;  %v10621_v61 = vld [vmem:[%s11336_s9 + $0x44] ss:$0 sps:$4 sm:$0x11]   ;;  %v11439_v36 = vld [vmem:[%s11176_s18 + $0x54] sm:$0xff]  }
  0x52   : > { %8407 = vmatpush3.bf16.msra.mxu1 %v10601_v31  ;;  %13876 = vst [vmem:[#allocation12_spill] sm:$0xff] %v11375_v0  ;;  %2021 = vmatprep.mubr.bf16.mxu0 %v11375_v0  ;;  %v1234_v3 = vor.u32 %v1233_v59, %v1229_v50  ;;  %v11398_v31 = vsel %vm1131_vm0, %v1270_v24, %v1274_v22  ;;  %v1351_v50 = vshll.u32 %v10618_v39, 16  ;;  %v1310_v52 = vrot.slane %v1308_v42, 1  ;;  %v10623_v5 = vld [vmem:[%s13693_s3 + $0x1e0] sm:$0xff]   ;;  %v10628_v24 = vld [vmem:[%s11336_s9 + $0x48] sm:$0xff]   ;;  %v10938_v0 = vld [vmem:[%s11157_s8 + $0x78] sm:$0xff]  }
  0x53   : > { %8408 = vmatprep.subr.bf16.mxu1 %v10612_v8  ;;  %v11391_v21 = vsel %vm1131_vm0, %v1318_v13, %v1322_v14  ;;  %13879 = vst [vmem:[#allocation15_spill] sm:$0xff] %v11398_v31  ;;  %v11409_v59 = vsel %vm1131_vm0, %v1366_v47, %v1370_v40  ;;  %v1337_v2 = vshrl.u32 %v10620_v57, 16  ;;  %v1344_v7 = vshll.u32 %v10621_v61, 16  ;;  %v10624_v8 = vld [vmem:[%s13693_s3 + $0x10] sm:$0xff]   ;;  %8550 = vmatprep.subr.bf16.mxu0 %v10623_v5  ;;  %v10921_v43 = vld [vmem:[%s11157_s8 + $0x3c] sm:$0xff]  }
  0x54   : > { %v11384_v12 = vsel %vm1131_vm0, %v1234_v3, %v1238_v1  ;;  %13878 = vst [vmem:[#allocation14_spill] sm:$0xff] %v11391_v21  ;;  %13880 = vst [vmem:[#allocation16_spill] sm:$0xff] %v11409_v59  ;;  %v1353_v60 = vrot.slane %v1351_v50, 1  ;;  %v11414_v63 = vsel %vm1131_vm0, %v1306_v51, %v1310_v52  ;;  %v1358_v1 = vrot.slane %v1356_v54, 1  ;;  %8551 = vmatpush3.bf16.msra.mxu0 %v10625_v10  ;;  %v10632_v50 = vld [vmem:[%s11336_s9 + $0x54] sm:$0xff]   ;;  %v10636_v10 = vld [vmem:[%s13693_s3 + $0x1e8] sm:$0xff]  }
  0x55   : > { %13877 = vst [vmem:[#allocation13_spill] sm:$0xff] %v11384_v12  ;;  %9514 = vmatprep.mubr.bf16.mxu1 %v11384_v12  ;;  %13881 = vst [vmem:[#allocation17_spill] sm:$0xff] %v11414_v63  ;;  %v1339_v3 = vshll.u32 %v10620_v57, 16  ;;  %v1346_v14 = vrot.slane %v1344_v7, 1  ;;  %v1397_v22 = vshrl.u32 %v10626_v17, 16  ;;  %v1401_v26 = vrot.slane %v1399_v23, 1  ;;  %8552 = vmatprep.subr.bf16.mxu0 %v10636_v10 }
  0x56   : > { %8409 = vmatpush3.bf16.msra.mxu1 %v10613_v19  ;;  %v1354_v6 = vor.u32 %v1353_v60, %v1349_v49  ;;  %v10627_v19 = vld [vmem:[%s11157_s8 + $0x5c] ss:$0 sps:$4 sm:$0x11]   ;;  %v1373_v33 = vshrl.u32 %v10628_v24, 16  ;;  %v1375_v35 = vshll.u32 %v10628_v24, 16  ;;  %v1380_v39 = vshll.u32 %v10629_v30, 16 }
  0x57   : > { %8410 = vmatprep.subr.bf16.mxu1 %v10622_v58  ;;  %v1341_v9 = vrot.slane %v1339_v3, 1  ;;  %v1404_v27 = vshll.u32 %v10627_v19, 16  ;;  %v1402_v37 = vor.u32 %v1401_v26, %v1397_v22  ;;  %v11442_v41 = vld [vmem:[%s11176_s18 + $0x5c] ss:$0 sps:$4 sm:$0x11]   ;;  %v1385_v42 = vshrl.u32 %v11439_v36, 16 }
  0x58   : > { %v11427_v13 = vsel %vm1131_vm0, %v1354_v6, %v1358_v1  ;;  %v1377_v40 = vrot.slane %v1375_v35, 1  ;;  %v1387_v45 = vshll.u32 %v11439_v36, 16  ;;  %v1382_v49 = vrot.slane %v1380_v39, 1  ;;  %v10633_v57 = vld [vmem:[%s11336_s9 + $0x5c] ss:$0 sps:$4 sm:$0x11]  }
  0x59   : > { %2022 = vmatmul.mubr.bf16.gmra.mrb[20].mxu0 %v11391_v21  ;;  %9515 = vmatmul.mubr.bf16.gmra.mrb[20].mxu1 %v11398_v31  ;;  %13882 = vst [vmem:[#allocation18_spill] sm:$0xff] %v11427_v13  ;;  %v1342_v18 = vor.u32 %v1341_v9, %v1337_v2  ;;  %v1406_v38 = vrot.slane %v1404_v27, 1  ;;  %v1392_v54 = vshll.u32 %v11442_v41, 16  ;;  %v10634_v58 = vld [vmem:[%s13693_s3 + $0x58] sm:$0xff]   ;;  %v1409_v60 = vshrl.u32 %v10632_v50, 16  ;;  %v10637_v17 = vld [vmem:[%s13693_s3 + $0x1a8] sm:$0xff]  }
  0x5a   : > { %2029 = vmatprep.mubr.bf16.mxu0 %v11409_v59  ;;  %9518 = vmatprep.mubr.bf16.mxu1 %v11414_v63  ;;  %v1378_v51 = vor.u32 %v1377_v40, %v1373_v33  ;;  %v1389_v52 = vrot.slane %v1387_v45, 1  ;;  %v1411_v61 = vshll.u32 %v10632_v50, 16  ;;  %v1416_v5 = vshll.u32 %v10633_v57, 16  ;;  %v10635_v7 = vld [vmem:[%s13693_s3 + $0x18] sm:$0xff]   ;;  %v10640_v27 = vld [vmem:[%s11336_s9 + $0x60] sm:$0xff]  }
  0x5b   : > { %8411 = vmatpush3.bf16.msra.mxu1 %v10624_v8  ;;  %v11434_v25 = vsel %vm1131_vm0, %v1342_v18, %v1346_v14  ;;  %v11447_v47 = vsel %vm1131_vm0, %v1402_v37, %v1406_v38  ;;  %v1394_v3 = vrot.slane %v1392_v54, 1  ;;  %v11474_v18 = vld [vmem:[%s11157_s8 + $0x60] sm:$0xff]   ;;  %v11477_v19 = vld [vmem:[%s11157_s8 + $0x68] ss:$0 sps:$4 sm:$0x11]   ;;  %8553 = vmatpush3.bf16.msra.mxu0 %v10637_v17  ;;  %v1445_v38 = vshrl.u32 %v10640_v27, 16 }
  0x5c   : > { %13883 = vst [vmem:[#allocation19_spill] sm:$0xff] %v11434_v25  ;;  %13884 = vst [vmem:[#allocation20_spill] sm:$0xff] %v11447_v47  ;;  %v11457_v1 = vsel %vm1131_vm0, %v1378_v51, %v1382_v49  ;;  %v1390_v2 = vor.u32 %v1389_v52, %v1385_v42  ;;  %8412 = vmatprep.subr.bf16.mxu1 %v10634_v58  ;;  %v1413_v6 = vrot.slane %v1411_v61, 1  ;;  %v1418_v9 = vrot.slane %v1416_v5, 1  ;;  %v11489_v33 = vld [vmem:[%s11176_s18 + $0x60] sm:$0xff]   ;;  %v10644_v52 = vld [vmem:[%s11336_s9 + $0x6c] sm:$0xff]  }
  0x5d   : > { %13885 = vst [vmem:[#allocation21_spill] sm:$0xff] %v11457_v1  ;;  %v1433_v23 = vshrl.u32 %v11474_v18, 16  ;;  %v1435_v24 = vshll.u32 %v11474_v18, 16  ;;  %v1440_v26 = vshll.u32 %v11477_v19, 16  ;;  %v1447_v39 = vshll.u32 %v10640_v27, 16 }
  0x5e   : > { %v11464_v8 = vsel %vm1131_vm0, %v1390_v2, %v1394_v3  ;;  %v1414_v14 = vor.u32 %v1413_v6, %v1409_v60  ;;  %v10641_v30 = vld [vmem:[%s11336_s9 + $0x68] ss:$0 sps:$4 sm:$0x11]   ;;  %v1421_v45 = vshrl.u32 %v11489_v33, 16  ;;  %v1423_v49 = vshll.u32 %v11489_v33, 16  ;;  %v10646_v60 = vld [vmem:[%s13693_s3 + $0x60] sm:$0xff]  }
  0x5f   : > { %13886 = vst [vmem:[#allocation22_spill] sm:$0xff] %v11464_v8  ;;  %8413 = vmatpush3.bf16.msra.mxu1 %v10635_v7  ;;  %v1437_v35 = vrot.slane %v1435_v24, 1  ;;  %v1442_v37 = vrot.slane %v1440_v26, 1  ;;  %v1452_v40 = vshll.u32 %v10641_v30, 16  ;;  %v1449_v51 = vrot.slane %v1447_v39, 1  ;;  %v10647_v7 = vld [vmem:[%s13693_s3 + $0x20] sm:$0xff]  }
  0x60   : > { %v11480_v22 = vsel %vm1131_vm0, %v1414_v14, %v1418_v9  ;;  %v11492_v42 = vld [vmem:[%s11176_s18 + $0x68] ss:$0 sps:$4 sm:$0x11]   ;;  %v1425_v57 = vrot.slane %v1423_v49, 1  ;;  %v1481_v5 = vshrl.u32 %v10644_v52, 16  ;;  %v1483_v6 = vshll.u32 %v10644_v52, 16  ;;  %8414 = vmatprep.subr.bf16.mxu1 %v10646_v60 }
  0x61   : > { %2030 = vmatmul.mubr.bf16.gmra.mrb[24].mxu0 %v11427_v13  ;;  %9519 = vmatmul.mubr.bf16.gmra.mrb[24].mxu1 %v11434_v25  ;;  %13887 = vst [vmem:[#allocation23_spill] sm:$0xff] %v11480_v22  ;;  %v1438_v50 = vor.u32 %v1437_v35, %v1433_v23  ;;  %v1454_v54 = vrot.slane %v1452_v40, 1  ;;  %v1428_v58 = vshll.u32 %v11492_v42, 16  ;;  %v1450_v2 = vor.u32 %v1449_v51, %v1445_v38  ;;  %v10645_v3 = vld [vmem:[%s11336_s9 + $0x74] ss:$0 sps:$4 sm:$0x11]  }
  0x62   : > { %2037 = vmatprep.mubr.bf16.mxu0 %v11447_v47  ;;  %9522 = vmatprep.mubr.bf16.mxu1 %v11457_v1  ;;  %v1426_v9 = vor.u32 %v1425_v57, %v1421_v45  ;;  %v11510_v14 = vld [vmem:[%s11157_s8 + $0x6c] sm:$0xff]   ;;  %v1485_v23 = vrot.slane %v1483_v6, 1  ;;  %v1488_v24 = vshll.u32 %v10645_v3, 16  ;;  %v11521_v35 = vld [vmem:[%s11157_s8 + $0x74] ss:$0 sps:$4 sm:$0x11]  }
  0x63   : > { %v11502_v61 = vsel %vm1131_vm0, %v1438_v50, %v1442_v37  ;;  %v1430_v10 = vrot.slane %v1428_v58, 1  ;;  %v11513_v17 = vsel %vm1131_vm0, %v1450_v2, %v1454_v54  ;;  %8415 = vmatpush3.bf16.msra.mxu1 %v10647_v7  ;;  %v1469_v37 = vshrl.u32 %v11510_v14, 16  ;;  %v10650_v49 = vld [vmem:[%s11336_s9 + $0x78] sm:$0xff]   ;;  %v10651_v50 = vld [vmem:[%s11336_s9 + $0x80] ss:$0 sps:$4 sm:$0x11]  }
  0x64   : > { %13888 = vst [vmem:[#allocation24_spill] sm:$0xff] %v11502_v61  ;;  %13889 = vst [vmem:[#allocation25_spill] sm:$0xff] %v11513_v17  ;;  %v1486_v27 = vor.u32 %v1485_v23, %v1481_v5  ;;  %v1490_v30 = vrot.slane %v1488_v24, 1  ;;  %v1471_v38 = vshll.u32 %v11510_v14, 16  ;;  %v1476_v45 = vshll.u32 %v11521_v35, 16  ;;  %v11533_v58 = vld [vmem:[%s11176_s18 + $0x6c] sm:$0xff]  }
  0x65   : > { %v11517_v26 = vsel %vm1131_vm0, %v1426_v9, %v1430_v10  ;;  %v1517_v54 = vshrl.u32 %v10650_v49, 16  ;;  %v1519_v57 = vshll.u32 %v10650_v49, 16  ;;  %v1524_v60 = vshll.u32 %v10651_v50, 16  ;;  %v11536_v2 = vld [vmem:[%s11176_s18 + $0x74] ss:$0 sps:$4 sm:$0x11]  }
  0x66   : > { %13890 = vst [vmem:[#allocation26_spill] sm:$0xff] %v11517_v26  ;;  %v11526_v39 = vsel %vm1131_vm0, %v1486_v27, %v1490_v30  ;;  %v1473_v40 = vrot.slane %v1471_v38, 1  ;;  %v1478_v52 = vrot.slane %v1476_v45, 1  ;;  %v1457_v6 = vshrl.u32 %v11533_v58, 16  ;;  %v10654_v9 = vld [vmem:[%s11336_s9 + $0x84] sm:$0xff]   ;;  %v10657_v45 = vld [vmem:[%s13693_s3 + $0x1f0] sm:$0xff]  }
  0x67   : > { %13891 = vst [vmem:[#allocation27_spill] sm:$0xff] %v11526_v39  ;;  %v1521_v5 = vrot.slane %v1519_v57, 1  ;;  %v1459_v7 = vshll.u32 %v11533_v58, 16  ;;  %v1526_v10 = vrot.slane %v1524_v60, 1  ;;  %v1464_v23 = vshll.u32 %v11536_v2, 16  ;;  %v10656_v27 = vld [vmem:[%s13693_s3 + $0x68] sm:$0xff]   ;;  %8554 = vmatprep.subr.bf16.mxu0 %v10657_v45 }
  0x68   : > { %v1474_v51 = vor.u32 %v1473_v40, %v1469_v37  ;;  %v10655_v24 = vld [vmem:[%s11336_s9 + $0x8c] ss:$0 sps:$4 sm:$0x11]   ;;  %v1553_v38 = vshrl.u32 %v10654_v9, 16  ;;  %v1555_v40 = vshll.u32 %v10654_v9, 16  ;;  %8416 = vmatprep.subr.bf16.mxu1 %v10656_v27  ;;  %v11568_v9 = vld [vmem:[%s11157_s8 + $0x78] sm:$0xff]  }
  0x69   : > { %2038 = vmatmul.mubr.bf16.gmra.mrb[28].mxu0 %v11464_v8  ;;  %9523 = vmatmul.mubr.bf16.gmra.mrb[28].mxu1 %v11480_v22  ;;  %v1522_v30 = vor.u32 %v1521_v5, %v1517_v54  ;;  %v1461_v37 = vrot.slane %v1459_v7, 1  ;;  %v1466_v49 = vrot.slane %v1464_v23, 1  ;;  %v1560_v50 = vshll.u32 %v10655_v24, 16  ;;  %v10658_v54 = vld [vmem:[%s13693_s3 + $0x28] sm:$0xff]   ;;  %v10659_v5 = vld [vmem:[%s13693_s3 + $0x1b0] sm:$0xff]  }
  0x6a   : > { %2045 = vmatprep.mubr.bf16.mxu0 %v11502_v61  ;;  %9526 = vmatprep.mubr.bf16.mxu1 %v11513_v17  ;;  %v11539_v3 = vsel %vm1131_vm0, %v1474_v51, %v1478_v52  ;;  %v1557_v57 = vrot.slane %v1555_v40, 1  ;;  %v1505_v24 = vshrl.u32 %v11568_v9, 16  ;;  %v1507_v27 = vshll.u32 %v11568_v9, 16  ;;  %v11583_v40 = vld [vmem:[%s11176_s18 + $0x78] sm:$0xff]   ;;  %v12181_v8 = vld [vmem:[%s11336_s9 + $0x84] sm:$0xff]   ;;  %v12185_v47 = vld [vmem:[%s11336_s9 + $0x90] sm:$0xff]  }
  0x6b   : > { %13892 = vst [vmem:[#allocation28_spill] sm:$0xff] %v11539_v3  ;;  %v11554_v51 = vsel %vm1131_vm0, %v1522_v30, %v1526_v10  ;;  %v1462_v52 = vor.u32 %v1461_v37, %v1457_v6  ;;  %v1562_v60 = vrot.slane %v1560_v50, 1  ;;  %8417 = vmatpush3.bf16.msra.mxu1 %v10658_v54  ;;  %v11571_v10 = vld [vmem:[%s11157_s8 + $0x80] ss:$0 sps:$4 sm:$0x11]   ;;  %8555 = vmatpush3.bf16.msra.mxu0 %v10659_v5  ;;  %v10662_v37 = vld [vmem:[%s11336_s9 + $0x90] sm:$0xff]  }
  0x6c   : > { %13893 = vst [vmem:[#allocation29_spill] sm:$0xff] %v11554_v51  ;;  %v1558_v6 = vor.u32 %v1557_v57, %v1553_v38  ;;  %v1512_v30 = vshll.u32 %v11571_v10, 16  ;;  %v10663_v38 = vld [vmem:[%s11336_s9 + $0x98] ss:$0 sps:$4 sm:$0x11]   ;;  %v1509_v45 = vrot.slane %v1507_v27, 1 }
  0x6d   : > { %v11564_v7 = vsel %vm1131_vm0, %v1462_v52, %v1466_v49  ;;  %v1589_v50 = vshrl.u32 %v10662_v37, 16  ;;  %v1591_v52 = vshll.u32 %v10662_v37, 16  ;;  %v1596_v57 = vshll.u32 %v10663_v38, 16  ;;  %v11586_v54 = vld [vmem:[%s11176_s18 + $0x80] ss:$0 sps:$4 sm:$0x11]  }
  0x6e   : > { %13894 = vst [vmem:[#allocation30_spill] sm:$0xff] %v11564_v7  ;;  %v11574_v23 = vsel %vm1131_vm0, %v1558_v6, %v1562_v60  ;;  %v1514_v49 = vrot.slane %v1512_v30, 1  ;;  %v1493_v60 = vshrl.u32 %v11583_v40, 16  ;;  %v1495_v5 = vshll.u32 %v11583_v40, 16  ;;  %v10668_v27 = vld [vmem:[%s13693_s3 + $0x70] sm:$0xff]  }
  0x6f   : > { %13895 = vst [vmem:[#allocation31_spill] sm:$0xff] %v11574_v23  ;;  %v1510_v6 = vor.u32 %v1509_v45, %v1505_v24  ;;  %v1593_v55 = vrot.slane %v1591_v52, 1  ;;  %v1598_v11 = vrot.slane %v1596_v57, 1  ;;  %v10667_v38 = vld [vmem:[%s11336_s9 + $0xa4] ss:$0 sps:$4 sm:$0x11]   ;;  %8418 = vmatprep.subr.bf16.mxu1 %v10668_v27 }
  0x70   : > { %v10669_v24 = vld [vmem:[%s13693_s3 + $0x30] sm:$0xff]   ;;  %v1632_v44 = vshll.u32 %v10667_v38, 16  ;;  %v11628_v27 = vld [vmem:[%s11157_s8 + $0x8c] ss:$0 sps:$4 sm:$0x11]  }
  0x71   : > { %2046 = vmatmul.mubr.bf16.gmra.mrb[32].mxu0 %v11517_v26  ;;  %9527 = vmatmul.mubr.bf16.gmra.mrb[32].mxu1 %v11526_v39  ;;  %v11596_v30 = vsel %vm1131_vm0, %v1510_v6, %v1514_v49  ;;  %v1594_v37 = vor.u32 %v1593_v55, %v1589_v50  ;;  %v10670_v49 = vld [vmem:[%s13693_s3 + $0x1f8] sm:$0xff]   ;;  %v1629_v50 = vrot.slane %v1627_v34, 1  ;;  %v11618_v34 = vld [vmem:[%s11157_s8 + $0x84] sm:$0xff]   ;;  %v11641_v17 = vld [vmem:[%s11176_s18 + $0x8c] ss:$0 sps:$4 sm:$0x11]  }
  0x72   : > { %2053 = vmatprep.mubr.bf16.mxu0 %v11539_v3  ;;  %9530 = vmatprep.mubr.bf16.mxu1 %v11554_v51  ;;  %v1500_v51 = vshll.u32 %v11586_v54, 16  ;;  %13896 = vst [vmem:[#allocation32_spill] sm:$0xff] %v11596_v30  ;;  %v1543_v38 = vshll.u32 %v11618_v34, 16  ;;  %v10929_v61 = vld [vmem:[%s11157_s8 + $0x54] sm:$0xff]  }
  0x73   : > { %v11607_v55 = vsel %vm1131_vm0, %v1594_v37, %v1598_v11  ;;  %8419 = vmatpush3.bf16.msra.mxu1 %v10669_v24  ;;  %8556 = vmatprep.subr.bf16.mxu0 %v10670_v49  ;;  %v10671_v11 = vld [vmem:[%s13693_s3 + $0x1b8] sm:$0xff]   ;;  %v1541_v37 = vshrl.u32 %v11618_v34, 16  ;;  %v1548_v24 = vshll.u32 %v11628_v27, 16  ;;  %v10934_v59 = vld [vmem:[%s11336_s9 + $0x8] ss:$0 sps:$4 sm:$0x11]  }
  0x74   : > { %v1502_v52 = vrot.slane %v1500_v51, 1  ;;  %13897 = vst [vmem:[#allocation33_spill] sm:$0xff] %v11607_v55  ;;  %v1630_v51 = vor.u32 %v1629_v50, %v1625_v62  ;;  %8557 = vmatpush3.bf16.msra.mxu0 %v10671_v11  ;;  %v10674_v62 = vld [vmem:[%s11336_s9 + $0xa8] sm:$0xff]   ;;  %v1545_v50 = vrot.slane %v1543_v38, 1  ;;  %v2745_v21 = vrot.slane %v10934_v59, 1 }
  0x75   : > { %v1663_v49 = vshll.u32 %v10674_v62, 16  ;;  %v10937_v59 = vld [vmem:[%s11336_s9 + $0x20] ss:$0 sps:$4 sm:$0x11]  }
  0x76   : > { %v1546_v39 = vor.u32 %v1545_v50, %v1541_v37  ;;  %v1536_v37 = vshll.u32 %v11641_v17, 16  ;;  %v10681_v50 = vld [vmem:[%s13693_s3 + $0x38] sm:$0xff]  }
  0x79   : > { %2054 = vmatmul.mubr.bf16.gmra.mrb[36].mxu0 %v11564_v7  ;;  %9531 = vmatmul.mubr.bf16.gmra.mrb[36].mxu1 %v11574_v23  ;;  %v1497_v23 = vrot.slane %v1495_v5, 1  ;;  %v10917_v7 = vld [vmem:[%s11157_s8 + $0x30] sm:$0xff]  }
  0x7a   : > { %2061 = vmatprep.mubr.bf16.mxu0 %v11596_v30  ;;  %9534 = vmatprep.mubr.bf16.mxu1 %v11607_v55  ;;  %v10678_v55 = vld [vmem:[%s11336_s9 + $0xb4] sm:$0xff]  }
  0x7b   : > { %v1498_v45 = vor.u32 %v1497_v23, %v1493_v60  ;;  %v1634_v23 = vrot.slane %v1632_v44, 1  ;;  %v11621_v60 = vld [vmem:[%s11157_s8] sm:$0xff]   ;;  %v1697_v22 = vshrl.u32 %v10678_v55, 16 }
  0x7c   : > { %v2741_v5 = vrot.slane %v11621_v60, 1  ;;  %v11637_v44 = vld [vmem:[%s11176_s18 + $0x84] sm:$0xff]  }
  0x7d   : > { %v11611_v57 = vsel %vm1131_vm0, %v1498_v45, %v1502_v52  ;;  %v11625_v6 = vsel %vm1131_vm0, %v1630_v51, %v1634_v23  ;;  %v10675_v45 = vld [vmem:[%s11336_s9 + $0xb0] ss:$0 sps:$4 sm:$0x11]   ;;  %v1661_v52 = vshrl.u32 %v10674_v62, 16  ;;  %v1550_v51 = vrot.slane %v1548_v24, 1  ;;  %v10680_v62 = vld [vmem:[%s13693_s3 + $0x78] sm:$0xff]  }
  0x7e   : > { %13898 = vst [vmem:[#allocation34_spill] sm:$0xff] %v11611_v57  ;;  %13899 = vst [vmem:[#allocation35_spill] sm:$0xff] %v11625_v6  ;;  %v1665_v23 = vrot.slane %v1663_v49, 1  ;;  %v1668_v11 = vshll.u32 %v10675_v45, 16  ;;  %v1531_v20 = vshll.u32 %v11637_v44, 16  ;;  %v1699_v49 = vshll.u32 %v10678_v55, 16  ;;  %8420 = vmatprep.subr.bf16.mxu1 %v10680_v62 }
  0x7f   : > { %v11649_v24 = vsel %vm1131_vm0, %v1546_v39, %v1550_v51  ;;  %v1538_v39 = vrot.slane %v1536_v37, 1  ;;  %8421 = vmatpush3.bf16.msra.mxu1 %v10681_v50  ;;  %v10856_v37 = vld [vmem:[%s11176_s18] sm:$0xff]  }
  0x80   : > { %v1666_v38 = vor.u32 %v1665_v23, %v1661_v52  ;;  %v1670_v56 = vrot.slane %v1668_v11, 1  ;;  %13900 = vst [vmem:[#allocation36_spill] sm:$0xff] %v11649_v24  ;;  %v1533_v45 = vrot.slane %v1531_v20, 1  ;;  %v10679_v52 = vld [vmem:[%s11336_s9 + $0xbc] ss:$0 sps:$4 sm:$0x11]  }
  0x81   : > { %2062 = vmatmul.mubr.bf16.gmra.mrb[40].mxu0 %v11611_v57  ;;  %9535 = vmatmul.mubr.bf16.gmra.mrb[40].mxu1 %v11625_v6  ;;  %v1529_v6 = vshrl.u32 %v11637_v44, 16  ;;  %v10855_v23 = vld [vmem:[%s11157_s8 + $0x8] ss:$0 sps:$4 sm:$0x11]   ;;  %v1701_v55 = vrot.slane %v1699_v49, 1  ;;  %v1704_v51 = vshll.u32 %v10679_v52, 16 }
  0x82   : > { %2069 = vmatprep.mubr.bf16.mxu0 %v11649_v24  ;;  %v11657_v1 = vsel %vm1131_vm0, %v1666_v38, %v1670_v56  ;;  %v2742_v11 = vrot.slane %v10855_v23, 1  ;;  %v10682_v56 = vld [vmem:[%s13693_s3 + $0x80] sm:$0xff]   ;;  %v10857_v49 = vld [vmem:[%s11176_s18 + $0x8] ss:$0 sps:$4 sm:$0x11]  }
  0x83   : > { %13901 = vst [vmem:[#allocation37_spill] sm:$0xff] %v11657_v1  ;;  %9538 = vmatprep.mubr.bf16.mxu1 %v11657_v1  ;;  %v1534_v20 = vor.u32 %v1533_v45, %v1529_v6  ;;  %v1702_v23 = vor.u32 %v1701_v55, %v1697_v22  ;;  %v1706_v6 = vrot.slane %v1704_v51, 1  ;;  %9542 = vmatprep.subr.bf16.mxu1 %v10682_v56  ;;  %v10683_v45 = vld [vmem:[%s13693_s3 + $0x280] sm:$0xff]   ;;  %v2739_v50 = vrot.slane %v10857_v49, 1  ;;  %v10858_v22 = vld [vmem:[%s11157_s8 + $0xc] sm:$0xff]  }
  0x84   : > { %v2743_v62 = vsel %vm2737_vm1, %v2741_v5, %v2742_v11  ;;  %v2738_v5 = vrot.slane %v10856_v37, 1  ;;  %8678 = vmatprep.subr.bf16.mxu0 %v10683_v45  ;;  %v2750_v11 = vrot.slane %v10858_v22, 1  ;;  %v10684_v51 = vld [vmem:[%s13693_s3 + $0x240] sm:$0xff]   ;;  %v10861_v45 = vld [vmem:[%s11176_s18 + $0x14] ss:$0 sps:$4 sm:$0x11]  }
  0x85   : > { %v11667_v38 = vsel %vm1131_vm0, %v1534_v20, %v1538_v39  ;;  %v11676_v52 = vsel %vm1131_vm0, %v1702_v23, %v1706_v6  ;;  %v10859_v20 = vld [vmem:[%s11157_s8 + $0x14] ss:$0 sps:$4 sm:$0x11]   ;;  %v10686_v23 = vld [vmem:[%s13693_s3 + $0x288] sm:$0xff]   ;;  %v2748_v49 = vrot.slane %v10861_v45, 1 }
  0x86   : > { %13902 = vst [vmem:[#allocation38_spill] sm:$0xff] %v11667_v38  ;;  %13903 = vst [vmem:[#allocation39_spill] sm:$0xff] %v11676_v52  ;;  %v2751_v39 = vrot.slane %v10859_v20, 1  ;;  %v2740_v55 = vsel %vm2737_vm1, %v2738_v5, %v2739_v50  ;;  %v10860_v6 = vld [vmem:[%s11176_s18 + $0xc] sm:$0xff]  }
  0x87   : > { %v10685_v5 = vld [vmem:[%s13693_s3 + $0x88] sm:$0xff]   ;;  %v10688_v45 = vld [vmem:[%s13693_s3 + $0x90] sm:$0xff]  }
  0x88   : > { %v10687_v50 = vld [vmem:[%s13693_s3 + $0x248] sm:$0xff]   ;;  %v10881_v57 = vld [vmem:[%s11176_s18 + $0x50] ss:$0 sps:$4 sm:$0x11]  }
  0x89   : > { %2070 = vmatmul.mubr.bf16.gmra.mrb[44].mxu0 %v11667_v38  ;;  %9539 = vmatmul.mubr.bf16.gmra.mrb[44].mxu1 %v11676_v52  ;;  %v10877_v38 = vld [vmem:[%s11176_s18 + $0x44] ss:$0 sps:$4 sm:$0x11]   ;;  %v2793_v31 = vrot.slane %v10881_v57, 1  ;;  %v10882_v57 = vld [vmem:[%s11157_s8 + $0x54] sm:$0xff]  }
  0x8a   : > { %3155 = vmatprep.mubr.bf16.mxu0 %v2743_v62  ;;  %2447 = vmatprep.mubr.bf16.mxu1 %v11621_v60  ;;  %v11687_v62 = vsel %vm2737_vm1, %v2750_v11, %v2751_v39  ;;  %v2747_v60 = vrot.slane %v10860_v6, 1  ;;  %v10862_v11 = vld [vmem:[%s11157_s8 + $0x18] sm:$0xff]   ;;  %v10863_v39 = vld [vmem:[%s11157_s8 + $0x20] ss:$0 sps:$4 sm:$0x11]   ;;  %v2784_v25 = vrot.slane %v10877_v38, 1 }
  0x8b   : > { %13904 = vst [vmem:[#allocation40_spill] sm:$0xff] %v11687_v62  ;;  %v2759_v20 = vrot.slane %v10862_v11, 1  ;;  %v2760_v52 = vrot.slane %v10863_v39, 1  ;;  %v10880_v38 = vld [vmem:[%s11176_s18 + $0x48] sm:$0xff]  }
  0x91   : > { %3156 = vmatmul.mubr.bf16.vlgmr.msra.gmra.mrb[48].mxu0 %v2740_v55  ;;  %v10689_v55 = vld [vmem:[%s13693_s3 + $0x290] sm:$0xff]   ;;  %2448 = vmatmul.mubr.bf16.vlgmr.msra.gmra.mrb[48].mxu1 %v10856_v37  ;;  %v10692_v37 = vld [vmem:[%s13693_s3 + $0x298] sm:$0xff]  }
  0x92   : > { %8679 = vmatpush3.bf16.msra.mxu0 %v10684_v51  ;;  %3163 = vmatprep.mubr.bf16.mxu0 %v11687_v62  ;;  %v11707_v51 = vsel %vm2737_vm1, %v2747_v60, %v2748_v49  ;;  %v10865_v49 = vld [vmem:[%s11176_s18 + $0x20] ss:$0 sps:$4 sm:$0x11]  }
  0x93   : > { %8680 = vmatprep.subr.bf16.mxu0 %v10686_v23  ;;  %9543 = vmatpush3.bf16.msra.mxu1 %v10682_v56  ;;  %13905 = vst [vmem:[#allocation41_spill] sm:$0xff] %v11707_v51  ;;  %v11713_v23 = vsel %vm2737_vm1, %v2759_v20, %v2760_v52  ;;  %v10690_v56 = vld [vmem:[%s13693_s3 + $0x250] sm:$0xff]   ;;  %v10691_v52 = vld [vmem:[%s13693_s3 + $0x98] sm:$0xff]   ;;  %v10866_v20 = vld [vmem:[%s11157_s8 + $0x24] sm:$0xff]  }
  0x94   : > { %2455 = vmatprep.mubr.bf16.mxu1 %v10858_v22  ;;  %9544 = vmatprep.subr.bf16.mxu1 %v10685_v5  ;;  %13906 = vst [vmem:[#allocation42_spill] sm:$0xff] %v11713_v23  ;;  %v10864_v22 = vld [vmem:[%s11176_s18 + $0x18] sm:$0xff]   ;;  %v2768_v39 = vrot.slane %v10866_v20, 1 }
  0x95   : > { %v2756_v60 = vrot.slane %v10864_v22, 1 }
  0x96   : > { %8681 = vmatpush3.bf16.msra.mxu0 %v10687_v50  ;;  %v2757_v50 = vrot.slane %v10865_v49, 1  ;;  %v10695_v49 = vld [vmem:[%s13693_s3 + $0x2a0] sm:$0xff]  }
  0x97   : > { %8682 = vmatprep.subr.bf16.mxu0 %v10689_v55  ;;  %9545 = vmatpush3.bf16.msra.mxu1 %v10685_v5  ;;  %v10867_v55 = vld [vmem:[%s11157_s8 + $0x2c] ss:$0 sps:$4 sm:$0x11]   ;;  %v10693_v5 = vld [vmem:[%s13693_s3 + $0x258] sm:$0xff]  }
  0x98   : > { %9546 = vmatprep.subr.bf16.mxu1 %v10688_v45  ;;  %v2769_v62 = vrot.slane %v10867_v55, 1 }
  0x99   : > { %3164 = vmatmul.mubr.bf16.gmra.mrb[52].mxu0 %v11707_v51  ;;  %2456 = vmatmul.mubr.bf16.gmra.mrb[52].mxu1 %v10860_v6  ;;  %v10871_v51 = vld [vmem:[%s11157_s8 + $0x38] ss:$0 sps:$4 sm:$0x11]  }
  0x9a   : > { %3171 = vmatprep.mubr.bf16.mxu0 %v11713_v23  ;;  %8683 = vmatpush3.bf16.msra.mxu0 %v10690_v56  ;;  %v11737_v23 = vsel %vm2737_vm1, %v2756_v60, %v2757_v50  ;;  %v10694_v56 = vld [vmem:[%s13693_s3 + $0xa0] sm:$0xff]   ;;  %v11743_v6 = vsel %vm2737_vm1, %v2768_v39, %v2769_v62  ;;  %v10869_v60 = vld [vmem:[%s11176_s18 + $0x2c] ss:$0 sps:$4 sm:$0x11]   ;;  %v10870_v39 = vld [vmem:[%s11157_s8 + $0x30] sm:$0xff]  }
  0x9b   : > { %8684 = vmatprep.subr.bf16.mxu0 %v10692_v37  ;;  %2463 = vmatprep.mubr.bf16.mxu1 %v10862_v11  ;;  %13907 = vst [vmem:[#allocation43_spill] sm:$0xff] %v11737_v23  ;;  %13908 = vst [vmem:[#allocation44_spill] sm:$0xff] %v11743_v6  ;;  %v10696_v37 = vld [vmem:[%s13693_s3 + $0x260] sm:$0xff]   ;;  %v10698_v11 = vld [vmem:[%s13693_s3 + $0x2a8] sm:$0xff]   ;;  %v2766_v50 = vrot.slane %v10869_v60, 1  ;;  %v2777_v55 = vrot.slane %v10870_v39, 1 }
  0x9c   : > { %9547 = vmatpush3.bf16.msra.mxu1 %v10688_v45  ;;  %v10868_v45 = vld [vmem:[%s11176_s18 + $0x24] sm:$0xff]   ;;  %v10701_v60 = vld [vmem:[%s13693_s3 + $0x2b0] sm:$0xff]  }
  0x9d   : > { %9548 = vmatprep.subr.bf16.mxu1 %v10691_v52  ;;  %v2765_v62 = vrot.slane %v10868_v45, 1 }
  0x9e   : > { %8685 = vmatpush3.bf16.msra.mxu0 %v10693_v5  ;;  %v10697_v5 = vld [vmem:[%s13693_s3 + $0xa8] sm:$0xff]  }
  0x9f   : > { %8686 = vmatprep.subr.bf16.mxu0 %v10695_v49  ;;  %v2778_v49 = vrot.slane %v10871_v51, 1  ;;  %v11768_v51 = vsel %vm2737_vm1, %v2765_v62, %v2766_v50  ;;  %v10875_v62 = vld [vmem:[%s11157_s8 + $0x44] ss:$0 sps:$4 sm:$0x11]  }
  0xa0   : > { %9549 = vmatpush3.bf16.msra.mxu1 %v10691_v52  ;;  %v10699_v52 = vld [vmem:[%s13693_s3 + $0x268] sm:$0xff]   ;;  %13909 = vst [vmem:[#allocation45_spill] sm:$0xff] %v11768_v51  ;;  %v2787_v50 = vrot.slane %v10875_v62, 1  ;;  %v10879_v62 = vld [vmem:[%s11157_s8 + $0x50] ss:$0 sps:$4 sm:$0x11]  }
  0xa1   : > { %3172 = vmatmul.mubr.bf16.gmra.mrb[56].mxu0 %v11737_v23  ;;  %9550 = vmatprep.subr.bf16.mxu1 %v10694_v56  ;;  %v2796_v24 = vrot.slane %v10879_v62, 1 }
  0xa2   : > { %3179 = vmatprep.mubr.bf16.mxu0 %v11743_v6  ;;  %8687 = vmatpush3.bf16.msra.mxu0 %v10696_v37  ;;  %v10872_v6 = vld [vmem:[%s11176_s18 + $0x30] sm:$0xff]   ;;  %v10873_v37 = vld [vmem:[%s11176_s18 + $0x38] ss:$0 sps:$4 sm:$0x11]  }
  0xa3   : > { %2464 = vmatmul.mubr.bf16.gmra.mrb[56].mxu1 %v10864_v22  ;;  %8688 = vmatprep.subr.bf16.mxu0 %v10698_v11  ;;  %v2774_v23 = vrot.slane %v10872_v6, 1  ;;  %v2775_v1 = vrot.slane %v10873_v37, 1  ;;  %v10700_v22 = vld [vmem:[%s13693_s3 + $0xb0] sm:$0xff]   ;;  %v11775_v11 = vsel %vm2737_vm1, %v2777_v55, %v2778_v49  ;;  %v10704_v37 = vld [vmem:[%s13693_s3 + $0x2b8] sm:$0xff]  }
  0xa4   : > { %2471 = vmatprep.mubr.bf16.mxu1 %v10866_v20  ;;  %9551 = vmatpush3.bf16.msra.mxu1 %v10694_v56  ;;  %13910 = vst [vmem:[#allocation46_spill] sm:$0xff] %v11775_v11  ;;  %v10874_v20 = vld [vmem:[%s11157_s8 + $0x3c] sm:$0xff]   ;;  %v10702_v56 = vld [vmem:[%s13693_s3 + $0x270] sm:$0xff]  }
  0xa5   : > { %9552 = vmatprep.subr.bf16.mxu1 %v10697_v5  ;;  %v2786_v46 = vrot.slane %v10874_v20, 1  ;;  %v10876_v55 = vld [vmem:[%s11176_s18 + $0x3c] sm:$0xff]  }
  0xa6   : > { %8689 = vmatpush3.bf16.msra.mxu0 %v10699_v52  ;;  %v2783_v49 = vrot.slane %v10876_v55, 1  ;;  %v10878_v52 = vld [vmem:[%s11157_s8 + $0x48] sm:$0xff]  }
  0xa7   : > { %8690 = vmatprep.subr.bf16.mxu0 %v10701_v60  ;;  %v2795_v63 = vrot.slane %v10878_v52, 1  ;;  %v10703_v60 = vld [vmem:[%s13693_s3 + $0xb8] sm:$0xff]  }
  0xa8   : > { %9553 = vmatpush3.bf16.msra.mxu1 %v10697_v5  ;;  %v2792_v5 = vrot.slane %v10880_v38, 1 }
  0xa9   : > { %3180 = vmatmul.mubr.bf16.gmra.mrb[60].mxu0 %v11768_v51  ;;  %9554 = vmatprep.subr.bf16.mxu1 %v10700_v22  ;;  %v10705_v51 = vld [vmem:[%s13693_s3 + $0x278] sm:$0xff]  }
  0xaa   : > { %3187 = vmatprep.mubr.bf16.mxu0 %v11775_v11  ;;  %8691 = vmatpush3.bf16.msra.mxu0 %v10702_v56  ;;  %v10707_v11 = vld [vmem:[%s13693_s3 + $0x340] sm:$0xff]  }
  0xab   : > { %2472 = vmatmul.mubr.bf16.gmra.mrb[60].mxu1 %v10868_v45  ;;  %8692 = vmatprep.subr.bf16.mxu0 %v10704_v37  ;;  %v11805_v56 = vld [vmem:[%s13693_s3 + $0x200] sm:$0xff]   ;;  %v11808_v45 = vsel %vm2737_vm1, %v2774_v23, %v2775_v1  ;;  %v11811_v37 = vsel %vm2737_vm1, %v2786_v46, %v2787_v50  ;;  %v2801_v1 = vrot.slane %v11439_v36, 1  ;;  %v2802_v23 = vrot.slane %v11442_v41, 1 }
  0xac   : > { %2479 = vmatprep.mubr.bf16.mxu1 %v10870_v39  ;;  %9555 = vmatpush3.bf16.msra.mxu1 %v10700_v22  ;;  %13911 = vst [vmem:[#allocation47_spill] sm:$0xff] %v11808_v45  ;;  %13912 = vst [vmem:[#allocation48_spill] sm:$0xff] %v11811_v37  ;;  %v2804_v39 = vrot.slane %v10882_v57, 1  ;;  %v10883_v22 = vld [vmem:[%s11157_s8 + $0x5c] ss:$0 sps:$4 sm:$0x11]   ;;  %v11821_v46 = vsel %vm2737_vm1, %v2783_v49, %v2784_v25  ;;  %v11831_v36 = vsel %vm2737_vm1, %v2792_v5, %v2793_v31 }
  0xad   : > { %9556 = vmatprep.subr.bf16.mxu1 %v10703_v60  ;;  %v2805_v62 = vrot.slane %v10883_v22, 1  ;;  %13913 = vst [vmem:[#allocation49_spill] sm:$0xff] %v11821_v46  ;;  %13915 = vst [vmem:[#allocation51_spill] sm:$0xff] %v11831_v36  ;;  %v2811_v41 = vrot.slane %v11492_v42, 1  ;;  %v11843_v31 = vsel %vm2737_vm1, %v2801_v1, %v2802_v23  ;;  %v2820_v42 = vrot.slane %v11536_v2, 1  ;;  %v11879_v22 = vld [vmem:[%s11157_s8 + $0x6c] sm:$0xff]  }
  0xae   : > { %8693 = vmatpush3.bf16.msra.mxu0 %v10705_v51  ;;  %v11824_v51 = vsel %vm2737_vm1, %v2795_v63, %v2796_v24  ;;  %v2810_v63 = vrot.slane %v11489_v33, 1  ;;  %13917 = vst [vmem:[#allocation53_spill] sm:$0xff] %v11843_v31  ;;  %v2819_v33 = vrot.slane %v11533_v58, 1  ;;  %v2832_v50 = vrot.slane %v11571_v10, 1 }
  0xaf   : > { %8814 = vmatprep.subr.bf16.mxu0 %v10707_v11  ;;  %13914 = vst [vmem:[#allocation50_spill] sm:$0xff] %v11824_v51  ;;  %v2814_v11 = vrot.slane %v11477_v19, 1  ;;  %v11834_v25 = vsel %vm2737_vm1, %v2804_v39, %v2805_v62  ;;  %v2823_v19 = vrot.slane %v11521_v35, 1  ;;  %v2831_v35 = vrot.slane %v11568_v9, 1 }
  0xb0   : > { %9557 = vmatpush3.bf16.msra.mxu1 %v10703_v60  ;;  %13916 = vst [vmem:[#allocation52_spill] sm:$0xff] %v11834_v25  ;;  %v2828_v62 = vrot.slane %v11583_v40, 1  ;;  %v2829_v1 = vrot.slane %v11586_v54, 1  ;;  %v2841_v40 = vrot.slane %v11628_v27, 1 }
  0xb1   : > { %3188 = vmatmul.mubr.bf16.gmra.mrb[64].mxu0 %v11808_v45  ;;  %9590 = vmatprep.subr.bf16.mxu1 %v11805_v56 }
  0xb2   : > { %3195 = vmatprep.mubr.bf16.mxu0 %v11811_v37 }
  0xb3   : > { %2480 = vmatmul.mubr.bf16.gmra.mrb[64].mxu1 %v10872_v6  ;;  %v2813_v6 = vrot.slane %v11474_v18, 1  ;;  %v2822_v18 = vrot.slane %v11510_v14, 1  ;;  %v11857_v14 = vld [vmem:[%s11157_s8 + $0x60] sm:$0xff]  }
  0xb4   : > { %2487 = vmatprep.mubr.bf16.mxu1 %v10874_v20  ;;  %v11851_v20 = vld [vmem:[%s11176_s18 + $0x54] sm:$0xff]  }
  0xb5   : > { %v11846_v24 = vsel %vm2737_vm1, %v2813_v6, %v2814_v11  ;;  %v11866_v49 = vsel %vm2737_vm1, %v2822_v18, %v2823_v19  ;;  %v11885_v11 = vsel %vm2737_vm1, %v2819_v33, %v2820_v42  ;;  %v11893_v19 = vsel %vm2737_vm1, %v2831_v35, %v2832_v50 }
  0xb6   : > { %13918 = vst [vmem:[#allocation54_spill] sm:$0xff] %v11846_v24  ;;  %13920 = vst [vmem:[#allocation56_spill] sm:$0xff] %v11866_v49  ;;  %v11906_v50 = vsel %vm2737_vm1, %v2828_v62, %v2829_v1 }
  0xb7   : > { %13922 = vst [vmem:[#allocation58_spill] sm:$0xff] %v11885_v11  ;;  %13924 = vst [vmem:[#allocation60_spill] sm:$0xff] %v11893_v19 }
  0xb8   : > { %13925 = vst [vmem:[#allocation61_spill] sm:$0xff] %v11906_v50 }
  0xb9   : > { %3196 = vmatmul.mubr.bf16.gmra.mrb[68].mxu0 %v11821_v46 }
  0xba   : > { %3203 = vmatprep.mubr.bf16.mxu0 %v11824_v51 }
  0xbb   : > { %2488 = vmatmul.mubr.bf16.gmra.mrb[68].mxu1 %v10876_v55  ;;  %v11863_v55 = vsel %vm2737_vm1, %v2810_v63, %v2811_v41  ;;  %v2840_v63 = vrot.slane %v11618_v34, 1 }
  0xbc   : > { %2495 = vmatprep.mubr.bf16.mxu1 %v10878_v52  ;;  %13919 = vst [vmem:[#allocation55_spill] sm:$0xff] %v11863_v55 }
  0xbd   : > { %v11909_v27 = vsel %vm2737_vm1, %v2840_v63, %v2841_v40  ;;  %v10890_v63 = vld [vmem:[%s11157_s8 + $0x98] ss:$0 sps:$4 sm:$0x11]  }
  0xbe   : > { %13926 = vst [vmem:[#allocation62_spill] sm:$0xff] %v11909_v27  ;;  %v2850_v40 = vrot.slane %v10890_v63, 1  ;;  %v10893_v63 = vld [vmem:[%s11176_s18 + $0x98] ss:$0 sps:$4 sm:$0x11]  }
  0xc1   : > { %3204 = vmatmul.mubr.bf16.gmra.mrb[72].mxu0 %v11831_v36  ;;  %v11991_v36 = vld [vmem:[%s11176_s18 + $0xa8] sm:$0xff]  }
  0xc2   : > { %3211 = vmatprep.mubr.bf16.mxu0 %v11834_v25  ;;  %v2864_v51 = vrot.slane %v11991_v36, 1 }
  0xc3   : > { %2496 = vmatmul.mubr.bf16.gmra.mrb[72].mxu1 %v10880_v38  ;;  %v11871_v38 = vld [vmem:[%s11176_s18 + $0x60] sm:$0xff]  }
  0xc4   : > { %2503 = vmatprep.mubr.bf16.mxu1 %v10882_v57 }
  0xc9   : > { %3212 = vmatmul.mubr.bf16.gmra.mrb[76].mxu0 %v11843_v31 }
  0xca   : > { %3219 = vmatprep.mubr.bf16.mxu0 %v11846_v24  ;;  %v11966_v24 = vld [vmem:[%s11176_s18 + $0x9c] sm:$0xff]  }
  0xcb   : > { %2504 = vmatmul.mubr.bf16.gmra.mrb[76].mxu1 %v11851_v20 }
  0xcc   : > { %2511 = vmatprep.mubr.bf16.mxu1 %v11857_v14 }
  0xd1   : > { %3220 = vmatmul.mubr.bf16.gmra.mrb[80].mxu0 %v11863_v55 }
  0xd2   : > { %3227 = vmatprep.mubr.bf16.mxu0 %v11866_v49 }
  0xd3   : > { %2512 = vmatmul.mubr.bf16.gmra.mrb[80].mxu1 %v11871_v38 }
  0xd4   : > { %2519 = vmatprep.mubr.bf16.mxu1 %v11879_v22 }
  0xd9   : > { %3228 = vmatmul.mubr.bf16.gmra.mrb[84].mxu0 %v11885_v11 }
  0xda   : > { %3235 = vmatprep.mubr.bf16.mxu0 %v11893_v19 }
  0xe1   : > { %3236 = vmatmul.mubr.bf16.gmra.mrb[88].mxu0 %v11906_v50 }
  0xe2   : > { %3243 = vmatprep.mubr.bf16.mxu0 %v11909_v27  ;;  %v11944_v27 = vld [vmem:[%s11157_s8 + $0x9c] sm:$0xff]  }
  0xe3   : > { %v2858_v50 = vrot.slane %v11944_v27, 1 }
 0x104   : > { %v8286_v58 = vpop.f32.mrb[0].mxu0  ;;  %v8358_v2 = vpop.f32.mrb[0].mxu1 }
 0x105   : > { %v8287_v52 = vpop.f32.mrb[1].mxu0  ;;  %v8359_v60 = vpop.f32.mrb[1].mxu1 }
 0x106   : > { %v11874_v5 = vadd.f32 %v8287_v52, %v8286_v58  ;;  %v11876_v10 = vadd.f32 %v8359_v60, %v8358_v2  ;;  %v8289_v57 = vpop.f32.mrb[2].mxu0  ;;  %v8361_v39 = vpop.f32.mrb[2].mxu1  ;;  %v11899_v58 = vld [vmem:[%s11176_s18 + $0x6c] sm:$0xff]  }
 0x107   : > { %v8290_v23 = vpop.f32.mrb[3].mxu0  ;;  %v8362_v6 = vpop.f32.mrb[3].mxu1  ;;  %2520 = vmatmul.mubr.bf16.gmra.mrb[84].mxu1 %v11899_v58 }
 0x108   : > { %13921 = vst [vmem:[#allocation57_spill] sm:$0xff] %v11876_v10  ;;  %v11888_v41 = vadd.f32 %v8290_v23, %v8289_v57  ;;  %v11890_v18 = vadd.f32 %v8362_v6, %v8361_v39  ;;  %2527 = vmatprep.mubr.bf16.mxu1 %v11568_v9  ;;  %v2837_v39 = vrot.slane %v11637_v44, 1  ;;  %v2838_v9 = vrot.slane %v11641_v17, 1  ;;  %v11916_v23 = vld [vmem:[%s11157_s8 + $0x90] sm:$0xff]   ;;  %v11927_v17 = vld [vmem:[%s11176_s18 + $0x78] sm:$0xff]  }
 0x109   : > { %v2849_v6 = vrot.slane %v11916_v23, 1  ;;  %v10721_v10 = vld [vmem:[%s13693_s3 + $0x238] sm:$0xff]  }
 0x10a   : > { %13923 = vst [vmem:[#allocation59_spill] sm:$0xff] %v11890_v18 }
 0x10c   : > { %v8292_v54 = vpop.f32.mrb[4].mxu0  ;;  %v8364_v2 = vpop.f32.mrb[4].mxu1 }
 0x10d   : > { %v8293_v33 = vpop.f32.mrb[5].mxu0  ;;  %v8365_v60 = vpop.f32.mrb[5].mxu1 }
 0x10e   : > { %v11903_v42 = vadd.f32 %v8293_v33, %v8292_v54  ;;  %v8295_v35 = vpop.f32.mrb[6].mxu0  ;;  %v11919_v62 = vadd.f32 %v8365_v60, %v8364_v2  ;;  %v8367_v1 = vpop.f32.mrb[6].mxu1  ;;  %v11935_v2 = vsel %vm2737_vm1, %v2849_v6, %v2850_v40  ;;  %v11939_v60 = vld [vmem:[%s11176_s18 + $0x90] sm:$0xff]  }
 0x10f   : > { %v8296_v52 = vpop.f32.mrb[7].mxu0  ;;  %v8368_v54 = vpop.f32.mrb[7].mxu1  ;;  %2528 = vmatmul.mubr.bf16.gmra.mrb[88].mxu1 %v11927_v17  ;;  %13930 = vst [vmem:[#allocation66_spill] sm:$0xff] %v11935_v2 }
 0x110   : > { %v11911_v57 = vadd.f32 %v8296_v52, %v8295_v35  ;;  %13927 = vst [vmem:[#allocation63_spill] sm:$0xff] %v11919_v62  ;;  %v11924_v33 = vadd.f32 %v8368_v54, %v8367_v1  ;;  %2535 = vmatprep.mubr.bf16.mxu1 %v11618_v34  ;;  %v11932_v35 = vsel %vm2737_vm1, %v2837_v39, %v2838_v9  ;;  %v2846_v1 = vrot.slane %v11939_v60, 1  ;;  %v10895_v39 = vld [vmem:[%s11157_s8 + $0xa4] ss:$0 sps:$4 sm:$0x11]  }
 0x111   : > { %13929 = vst [vmem:[#allocation65_spill] sm:$0xff] %v11932_v35  ;;  %3244 = vmatmul.mubr.bf16.gmra.mrb[92].mxu0 %v11932_v35  ;;  %v2847_v54 = vrot.slane %v10893_v63, 1  ;;  %v2859_v9 = vrot.slane %v10895_v39, 1  ;;  %v10724_v62 = vld [vmem:[%s13693_s3 + $0x320] sm:$0xff]  }
 0x112   : > { %13928 = vst [vmem:[#allocation64_spill] sm:$0xff] %v11924_v33  ;;  %3251 = vmatprep.mubr.bf16.mxu0 %v11935_v2 }
 0x113   : > { %v11958_v39 = vsel %vm2737_vm1, %v2846_v1, %v2847_v54  ;;  %v10899_v1 = vld [vmem:[%s11157_s8 + $0xb0] ss:$0 sps:$4 sm:$0x11]  }
 0x114   : > { %v8298_v52 = vpop.f32.mrb[8].mxu0  ;;  %v8370_v35 = vpop.f32.mrb[8].mxu1  ;;  %13932 = vst [vmem:[#allocation68_spill] sm:$0xff] %v11958_v39  ;;  %v2868_v54 = vrot.slane %v10899_v1, 1 }
 0x115   : > { %v8299_v34 = vpop.f32.mrb[9].mxu0  ;;  %v8371_v63 = vpop.f32.mrb[9].mxu1 }
 0x116   : > { %v11949_v6 = vadd.f32 %v8299_v34, %v8298_v52  ;;  %v8301_v40 = vpop.f32.mrb[10].mxu0  ;;  %v11955_v49 = vadd.f32 %v8371_v63, %v8370_v35  ;;  %v8373_v2 = vpop.f32.mrb[10].mxu1  ;;  %v11961_v34 = vsel %vm2737_vm1, %v2858_v50, %v2859_v9  ;;  %v11972_v35 = vld [vmem:[%s11157_s8 + $0xa8] sm:$0xff]  }
 0x117   : > { %v8302_v19 = vpop.f32.mrb[11].mxu0  ;;  %2536 = vmatmul.mubr.bf16.gmra.mrb[92].mxu1 %v11637_v44  ;;  %v8374_v52 = vpop.f32.mrb[11].mxu1  ;;  %13933 = vst [vmem:[#allocation69_spill] sm:$0xff] %v11961_v34  ;;  %v2855_v44 = vrot.slane %v11966_v24, 1  ;;  %v2867_v63 = vrot.slane %v11972_v35, 1 }
 0x118   : > { %v11952_v11 = vadd.f32 %v8302_v19, %v8301_v40  ;;  %2543 = vmatprep.mubr.bf16.mxu1 %v11916_v23  ;;  %13931 = vst [vmem:[#allocation67_spill] sm:$0xff] %v11955_v49  ;;  %v11963_v55 = vadd.f32 %v8374_v52, %v8373_v2  ;;  %v10897_v19 = vld [vmem:[%s11176_s18 + $0xa4] ss:$0 sps:$4 sm:$0x11]  }
 0x119   : > { %v2856_v40 = vrot.slane %v10897_v19, 1  ;;  %3252 = vmatmul.mubr.bf16.gmra.mrb[96].mxu0 %v11958_v39  ;;  %v11985_v39 = vsel %vm2737_vm1, %v2867_v63, %v2868_v54 }
 0x11a   : > { %13934 = vst [vmem:[#allocation70_spill] sm:$0xff] %v11963_v55  ;;  %3259 = vmatprep.mubr.bf16.mxu0 %v11961_v34  ;;  %13936 = vst [vmem:[#allocation72_spill] sm:$0xff] %v11985_v39  ;;  %v10715_v55 = vld [vmem:[%s13693_s3 + $0x350] sm:$0xff]  }
 0x11b   : > { %v11980_v9 = vsel %vm2737_vm1, %v2855_v44, %v2856_v40  ;;  %v10901_v44 = vld [vmem:[%s11176_s18 + $0xb0] ss:$0 sps:$4 sm:$0x11]  }
 0x11c   : > { %v8304_v50 = vpop.f32.mrb[12].mxu0  ;;  %13935 = vst [vmem:[#allocation71_spill] sm:$0xff] %v11980_v9  ;;  %v8376_v1 = vpop.f32.mrb[12].mxu1  ;;  %v2865_v40 = vrot.slane %v10901_v44, 1 }
 0x11d   : > { %v8305_v2 = vpop.f32.mrb[13].mxu0  ;;  %v8377_v31 = vpop.f32.mrb[13].mxu1 }
 0x11e   : > { %v11982_v52 = vadd.f32 %v8305_v2, %v8304_v50  ;;  %v8307_v19 = vpop.f32.mrb[14].mxu0  ;;  %v11996_v50 = vld [vmem:[%s11157_s8 + $0xb4] sm:$0xff]   ;;  %v11999_v63 = vadd.f32 %v8377_v31, %v8376_v1  ;;  %v8379_v54 = vpop.f32.mrb[14].mxu1  ;;  %v12008_v44 = vsel %vm2737_vm1, %v2864_v51, %v2865_v40 }
 0x11f   : > { %2544 = vmatmul.mubr.bf16.gmra.mrb[96].mxu1 %v11939_v60  ;;  %v8308_v34 = vpop.f32.mrb[15].mxu0  ;;  %v2876_v2 = vrot.slane %v11996_v50, 1  ;;  %13939 = vst [vmem:[#allocation75_spill] sm:$0xff] %v12008_v44  ;;  %v12015_v31 = vld [vmem:[%s11176_s18 + $0xb4] sm:$0xff]  }
 0x120   : > { %2551 = vmatprep.mubr.bf16.mxu1 %v11944_v27  ;;  %v11987_v25 = vadd.f32 %v8308_v34, %v8307_v19  ;;  %13937 = vst [vmem:[#allocation73_spill] sm:$0xff] %v11999_v63  ;;  %v10903_v34 = vld [vmem:[%s11157_s8 + $0xbc] ss:$0 sps:$4 sm:$0x11]   ;;  %v2873_v1 = vrot.slane %v12015_v31, 1 }
 0x121   : > { %3260 = vmatmul.mubr.bf16.gmra.mrb[100].mxu0 %v11980_v9  ;;  %v2877_v19 = vrot.slane %v10903_v34, 1  ;;  %v8380_v9 = vpop.f32.mrb[15].mxu1 }
 0x122   : > { %3267 = vmatprep.mubr.bf16.mxu0 %v11985_v39  ;;  %v12003_v46 = vadd.f32 %v8380_v9, %v8379_v54  ;;  %v10905_v9 = vld [vmem:[%s11176_s18 + $0xbc] ss:$0 sps:$4 sm:$0x11]  }
 0x123   : > { %v12011_v37 = vsel %vm2737_vm1, %v2876_v2, %v2877_v19  ;;  %v2874_v54 = vrot.slane %v10905_v9, 1 }
 0x124   : > { %13938 = vst [vmem:[#allocation74_spill] sm:$0xff] %v12003_v46  ;;  %13940 = vst [vmem:[#allocation76_spill] sm:$0xff] %v12011_v37  ;;  %v8310_v34 = vpop.f32.mrb[16].mxu0  ;;  %v10909_v46 = vld [vmem:[%s11157_s8 + $0x18] sm:$0xff]  }
 0x125   : > { %v8311_v39 = vpop.f32.mrb[17].mxu0  ;;  %v12027_v19 = vsel %vm2737_vm1, %v2873_v1, %v2874_v54  ;;  %v10711_v1 = vld [vmem:[%s13693_s3 + $0x348] sm:$0xff]  }
 0x126   : > { %v12020_v45 = vadd.f32 %v8311_v39, %v8310_v34  ;;  %v8313_v51 = vpop.f32.mrb[18].mxu0  ;;  %13941 = vst [vmem:[#allocation77_spill] sm:$0xff] %v12027_v19  ;;  %v12033_v39 = vld [vmem:[%s11336_s9] sm:$0xff]  }
 0x127   : > { %2552 = vmatmul.mubr.bf16.gmra.mrb[100].mxu1 %v11966_v24  ;;  %v8314_v40 = vpop.f32.mrb[19].mxu0  ;;  %v10708_v34 = vld [vmem:[%s13693_s3 + $0x300] sm:$0xff]  }
 0x128   : > { %2559 = vmatprep.mubr.bf16.mxu1 %v11972_v35  ;;  %v12024_v2 = vadd.f32 %v8314_v40, %v8313_v51  ;;  %v10908_v51 = vld [vmem:[%s11176_s18 + $0xc] sm:$0xff]  }
 0x129   : > { %3268 = vmatmul.mubr.bf16.gmra.mrb[104].mxu0 %v12008_v44  ;;  %v10712_v40 = vld [vmem:[%s13693_s3 + $0x308] sm:$0xff]  }
 0x12a   : > { %3275 = vmatprep.mubr.bf16.mxu0 %v12011_v37  ;;  %v10906_v37 = vld [vmem:[%s11157_s8 + $0xc] sm:$0xff]  }
 0x12c   : > { %v8316_v9 = vpop.f32.mrb[20].mxu0 }
 0x12d   : > { %v8317_v54 = vpop.f32.mrb[21].mxu0 }
 0x12e   : > { %v8319_v44 = vpop.f32.mrb[22].mxu0 }
 0x12f   : > { %2560 = vmatmul.mubr.bf16.gmra.mrb[104].mxu1 %v11991_v36  ;;  %v8320_v63 = vpop.f32.mrb[23].mxu0 }
 0x130   : > { %2567 = vmatprep.mubr.bf16.mxu1 %v11996_v50  ;;  %v12055_v49 = vadd.f32 %v8320_v63, %v8319_v44  ;;  %v10716_v63 = vld [vmem:[%s13693_s3 + $0x310] sm:$0xff]   ;;  %v10719_v44 = vld [vmem:[%s13693_s3 + $0x358] sm:$0xff]  }
 0x131   : > { %3276 = vmatmul.mubr.bf16.gmra.mrb[108].mxu0 %v12027_v19  ;;  %v12049_v19 = vadd.f32 %v8317_v54, %v8316_v9  ;;  %v10913_v9 = vld [vmem:[%s11157_s8 + $0x24] sm:$0xff]   ;;  %v10720_v54 = vld [vmem:[%s13693_s3 + $0x318] sm:$0xff]  }
 0x132   : > { %3702 = vmatprep.mubr.bf16.mxu0 %v10906_v37  ;;  %v10709_v37 = vld [vmem:[%s13693_s3 + $0x208] sm:$0xff]  }
 0x137   : > { %2568 = vmatmul.mubr.bf16.gmra.mrb[108].mxu1 %v12015_v31 }
 0x138   : > { %9558 = vmatprep.mubr.bf16.mxu1 %v12033_v39 }
 0x139   : > { %3703 = vmatmul.mubr.bf16.vlgmr.msra.gmra.mrb[112].mxu0 %v10908_v51  ;;  %v12058_v51 = vld [vmem:[%s11336_s9 + $0xc] sm:$0xff]  }
 0x13a   : > { %8815 = vmatpush3.bf16.msra.mxu0 %v10708_v34  ;;  %3710 = vmatprep.mubr.bf16.mxu0 %v10909_v46  ;;  %v10710_v34 = vld [vmem:[%s13693_s3 + $0x210] sm:$0xff]   ;;  %v12066_v46 = vld [vmem:[%s11336_s9 + $0x18] sm:$0xff]  }
 0x13b   : > { %8816 = vmatprep.subr.bf16.mxu0 %v10711_v1  ;;  %v10912_v1 = vld [vmem:[%s11176_s18 + $0x18] sm:$0xff]  }
 0x13e   : > { %8817 = vmatpush3.bf16.msra.mxu0 %v10712_v40  ;;  %v12084_v40 = vld [vmem:[%s11336_s9 + $0x24] sm:$0xff]  }
 0x13f   : > { %9559 = vmatmul.mubr.bf16.vlgmr.msra.gmra.mrb[16].mxu1 %v12058_v51  ;;  %8818 = vmatprep.subr.bf16.mxu0 %v10715_v55  ;;  %v8322_v55 = vpop.f32.mrb[24].mxu0 }
 0x140   : > { %9591 = vmatpush3.bf16.msra.mxu1 %v11805_v56  ;;  %9562 = vmatprep.mubr.bf16.mxu1 %v12066_v46  ;;  %v10713_v56 = vld [vmem:[%s13693_s3 + $0x218] sm:$0xff]   ;;  %v8323_v33 = vpop.f32.mrb[25].mxu0 }
 0x141   : > { %9592 = vmatprep.subr.bf16.mxu1 %v10709_v37  ;;  %3711 = vmatmul.mubr.bf16.gmra.mrb[116].mxu0 %v10912_v1  ;;  %v12091_v1 = vld [vmem:[%s11336_s9 + $0x30] sm:$0xff]   ;;  %v8325_v12 = vpop.f32.mrb[26].mxu0 }
 0x142   : > { %3718 = vmatprep.mubr.bf16.mxu0 %v10913_v9  ;;  %8819 = vmatpush3.bf16.msra.mxu0 %v10716_v63  ;;  %v10714_v63 = vld [vmem:[%s13693_s3 + $0x220] sm:$0xff]   ;;  %v12097_v9 = vadd.f32 %v8323_v33, %v8322_v55  ;;  %v10717_v33 = vld [vmem:[%s13693_s3 + $0x228] sm:$0xff]  }
 0x143   : > { %8820 = vmatprep.subr.bf16.mxu0 %v10719_v44  ;;  %v8326_v44 = vpop.f32.mrb[27].mxu0  ;;  %v10916_v55 = vld [vmem:[%s11176_s18 + $0x24] sm:$0xff]  }
 0x144   : > { %9593 = vmatpush3.bf16.msra.mxu1 %v10709_v37  ;;  %v10723_v37 = vld [vmem:[%s13693_s3 + $0x360] sm:$0xff]   ;;  %v12102_v30 = vadd.f32 %v8326_v44, %v8325_v12  ;;  %v10728_v12 = vld [vmem:[%s13693_s3 + $0x328] sm:$0xff]   ;;  %v8328_v44 = vpop.f32.mrb[28].mxu0 }
 0x145   : > { %9594 = vmatprep.subr.bf16.mxu1 %v10710_v34 }
 0x146   : > { %8821 = vmatpush3.bf16.msra.mxu0 %v10720_v54  ;;  %v12116_v54 = vld [vmem:[%s11336_s9 + $0x3c] sm:$0xff]  }
 0x147   : > { %9563 = vmatmul.mubr.bf16.gmra.mrb[20].mxu1 %v12084_v40  ;;  %8822 = vmatprep.subr.bf16.mxu0 %v10723_v37  ;;  %v10731_v37 = vld [vmem:[%s13693_s3 + $0x370] sm:$0xff]  }
 0x148   : > { %9566 = vmatprep.mubr.bf16.mxu1 %v12091_v1  ;;  %9595 = vmatpush3.bf16.msra.mxu1 %v10710_v34  ;;  %v10727_v34 = vld [vmem:[%s13693_s3 + $0x368] sm:$0xff]  }
 0x149   : > { %9596 = vmatprep.subr.bf16.mxu1 %v10713_v56  ;;  %3719 = vmatmul.mubr.bf16.gmra.mrb[120].mxu0 %v10916_v55  ;;  %v10920_v55 = vld [vmem:[%s11176_s18 + $0x30] sm:$0xff]  }
 0x14a   : > { %3726 = vmatprep.mubr.bf16.mxu0 %v10917_v7  ;;  %8823 = vmatpush3.bf16.msra.mxu0 %v10724_v62  ;;  %v10718_v7 = vld [vmem:[%s13693_s3 + $0x230] sm:$0xff]  }
 0x14b   : > { %8824 = vmatprep.subr.bf16.mxu0 %v10727_v34  ;;  %v10732_v62 = vld [vmem:[%s13693_s3 + $0x330] sm:$0xff]   ;;  %v10735_v34 = vld [vmem:[%s13693_s3 + $0x378] sm:$0xff]  }
 0x14c   : > { %9597 = vmatpush3.bf16.msra.mxu1 %v10713_v56  ;;  %v12123_v56 = vld [vmem:[%s11336_s9 + $0x48] sm:$0xff]  }
 0x14d   : > { %9598 = vmatprep.subr.bf16.mxu1 %v10714_v63 }
 0x14e   : > { %8825 = vmatpush3.bf16.msra.mxu0 %v10728_v12 }
 0x14f   : > { %9567 = vmatmul.mubr.bf16.gmra.mrb[24].mxu1 %v12116_v54  ;;  %8826 = vmatprep.subr.bf16.mxu0 %v10731_v37 }
 0x150   : > { %9570 = vmatprep.mubr.bf16.mxu1 %v12123_v56  ;;  %9599 = vmatpush3.bf16.msra.mxu1 %v10714_v63  ;;  %v8329_v63 = vpop.f32.mrb[29].mxu0 }
 0x151   : > { %9600 = vmatprep.subr.bf16.mxu1 %v10717_v33  ;;  %3727 = vmatmul.mubr.bf16.gmra.mrb[124].mxu0 %v10920_v55  ;;  %v12137_v18 = vadd.f32 %v8329_v63, %v8328_v44  ;;  %v8331_v12 = vpop.f32.mrb[30].mxu0  ;;  %v10736_v55 = vld [vmem:[%s13693_s3 + $0x338] sm:$0xff]   ;;  %v10741_v44 = vld [vmem:[%s13693_s3 + $0x4c0] sm:$0xff]  }
 0x152   : > { %3734 = vmatprep.mubr.bf16.mxu0 %v10921_v43  ;;  %v8332_v37 = vpop.f32.mrb[31].mxu0  ;;  %8827 = vmatpush3.bf16.msra.mxu0 %v10732_v62  ;;  %v12155_v63 = vld [vmem:[%s11336_s9 + $0x60] sm:$0xff]  }
 0x153   : > { %v12149_v43 = vadd.f32 %v8332_v37, %v8331_v12  ;;  %8828 = vmatprep.subr.bf16.mxu0 %v10735_v34  ;;  %v12161_v62 = vld [vmem:[%s13693_s3 + $0x2c0] sm:$0xff]   ;;  %v10925_v12 = vld [vmem:[%s11157_s8 + $0x48] sm:$0xff]  }
 0x154   : > { %9601 = vmatpush3.bf16.msra.mxu1 %v10717_v33  ;;  %v12146_v33 = vld [vmem:[%s11336_s9 + $0x54] sm:$0xff]   ;;  %v10924_v34 = vld [vmem:[%s11176_s18 + $0x3c] sm:$0xff]   ;;  %v12167_v37 = vld [vmem:[%s11336_s9 + $0x6c] sm:$0xff]  }
 0x155   : > { %9602 = vmatprep.subr.bf16.mxu1 %v10718_v7 }
 0x156   : > { %8829 = vmatpush3.bf16.msra.mxu0 %v10736_v55  ;;  %v8334_v55 = vpop.f32.mrb[32].mxu0 }
 0x157   : > { %9571 = vmatmul.mubr.bf16.gmra.mrb[28].mxu1 %v12146_v33  ;;  %9086 = vmatprep.subr.bf16.mxu0 %v10741_v44  ;;  %v8335_v44 = vpop.f32.mrb[33].mxu0 }
 0x158   : > { %9574 = vmatprep.mubr.bf16.mxu1 %v12155_v63  ;;  %9603 = vmatpush3.bf16.msra.mxu1 %v10718_v7  ;;  %v12171_v7 = vld [vmem:[%s11336_s9 + $0x78] sm:$0xff]   ;;  %v12174_v3 = vadd.f32 %v8335_v44, %v8334_v55 }
 0x159   : > { %9604 = vmatprep.subr.bf16.mxu1 %v10721_v10  ;;  %3735 = vmatmul.mubr.bf16.gmra.mrb[128].mxu0 %v10924_v34 }
 0x15a   : > { %3742 = vmatprep.mubr.bf16.mxu0 %v10925_v12  ;;  %13942 = vst [vmem:[#allocation78_spill] sm:$0xff] %v12174_v3  ;;  %v10928_v12 = vld [vmem:[%s11176_s18 + $0x48] sm:$0xff]  }
 0x15c   : > { %9605 = vmatpush3.bf16.msra.mxu1 %v10721_v10  ;;  %v8337_v10 = vpop.f32.mrb[34].mxu0 }
 0x15d   : > { %9638 = vmatprep.subr.bf16.mxu1 %v12161_v62  ;;  %v8338_v34 = vpop.f32.mrb[35].mxu0 }
 0x15e   : > { %v12177_v26 = vadd.f32 %v8338_v34, %v8337_v10  ;;  %v8340_v55 = vpop.f32.mrb[36].mxu0  ;;  %v12191_v10 = vld [vmem:[%s11336_s9 + $0x9c] sm:$0xff]  }
 0x15f   : > { %9575 = vmatmul.mubr.bf16.gmra.mrb[32].mxu1 %v12167_v37  ;;  %v8341_v44 = vpop.f32.mrb[37].mxu0 }
 0x160   : > { %9578 = vmatprep.mubr.bf16.mxu1 %v12171_v7  ;;  %13943 = vst [vmem:[#allocation79_spill] sm:$0xff] %v12177_v26  ;;  %v8343_v34 = vpop.f32.mrb[38].mxu0 }
 0x161   : > { %3743 = vmatmul.mubr.bf16.gmra.mrb[132].mxu0 %v10928_v12  ;;  %v12197_v12 = vld [vmem:[%s11336_s9 + $0xa8] sm:$0xff]   ;;  %v8344_v13 = vpop.f32.mrb[39].mxu0 }
 0x162   : > { %3750 = vmatprep.mubr.bf16.mxu0 %v10929_v61  ;;  %v12194_v61 = vadd.f32 %v8341_v44, %v8340_v55  ;;  %v12208_v55 = vld [vmem:[%s11336_s9 + $0xb4] sm:$0xff]   ;;  %v2753_v44 = vrot.slane %v12058_v51, 1 }
 0x164   : > { %13944 = vst [vmem:[#allocation80_spill] sm:$0xff] %v12194_v61  ;;  %v2763_v61 = vrot.slane %v10937_v59, 1  ;;  %v10726_v59 = vld [vmem:[%s13693_s3 + $0x2d0] sm:$0xff]  }
 0x167   : > { %9579 = vmatmul.mubr.bf16.gmra.mrb[36].mxu1 %v12181_v8 }
 0x168   : > { %9582 = vmatprep.mubr.bf16.mxu1 %v12185_v47 }
 0x169   : > { %3751 = vmatmul.mubr.bf16.gmra.mrb[136].mxu0 %v11851_v20  ;;  %v12200_v20 = vadd.f32 %v8344_v13, %v8343_v34  ;;  %v10936_v13 = vld [vmem:[%s11336_s9 + $0x14] ss:$0 sps:$4 sm:$0x11]  }
 0x16a   : > { %3758 = vmatprep.mubr.bf16.mxu0 %v11857_v14  ;;  %v2744_v14 = vrot.slane %v12033_v39, 1  ;;  %v2754_v34 = vrot.slane %v10936_v13, 1  ;;  %v2762_v39 = vrot.slane %v12066_v46, 1 }
 0x16b   : > { %13945 = vst [vmem:[#allocation81_spill] sm:$0xff] %v12200_v20  ;;  %v8346_v20 = vpop.f32.mrb[40].mxu0 }
 0x16c   : > { %v2746_v26 = vsel %vm2737_vm1, %v2744_v14, %v2745_v21  ;;  %v12218_v14 = vsel %vm2737_vm1, %v2753_v44, %v2754_v34  ;;  %v12224_v13 = vsel %vm2737_vm1, %v2762_v39, %v2763_v61  ;;  %v10939_v44 = vld [vmem:[%s11336_s9 + $0x2c] ss:$0 sps:$4 sm:$0x11]   ;;  %v2780_v61 = vrot.slane %v12091_v1, 1 }
 0x16d   : > { %13947 = vst [vmem:[#allocation83_spill] sm:$0xff] %v12218_v14  ;;  %13949 = vst [vmem:[#allocation85_spill] sm:$0xff] %v12224_v13  ;;  %v2772_v34 = vrot.slane %v10939_v44, 1  ;;  %v10940_v39 = vld [vmem:[%s11336_s9 + $0x38] ss:$0 sps:$4 sm:$0x11]  }
 0x16f   : > { %9583 = vmatmul.mubr.bf16.gmra.mrb[40].mxu1 %v12191_v10 }
 0x170   : > { %9586 = vmatprep.mubr.bf16.mxu1 %v12197_v12 }
 0x171   : > { %3759 = vmatmul.mubr.bf16.gmra.mrb[140].mxu0 %v11871_v38  ;;  %v8347_v38 = vpop.f32.mrb[41].mxu0 }
 0x172   : > { %3766 = vmatprep.mubr.bf16.mxu0 %v11879_v22  ;;  %v12215_v21 = vadd.f32 %v8347_v38, %v8346_v20  ;;  %v8349_v22 = vpop.f32.mrb[42].mxu0  ;;  %v10725_v20 = vld [vmem:[%s13693_s3 + $0x2c8] sm:$0xff]  }
 0x174   : > { %13946 = vst [vmem:[#allocation82_spill] sm:$0xff] %v12215_v21 }
 0x177   : > { %9587 = vmatmul.mubr.bf16.gmra.mrb[44].mxu1 %v12208_v55 }
 0x178   : > { %9606 = vmatprep.mubr.bf16.mxu1 %v2746_v26  ;;  %v8350_v26 = vpop.f32.mrb[43].mxu0 }
 0x179   : > { %3767 = vmatmul.mubr.bf16.gmra.mrb[144].mxu0 %v11899_v58  ;;  %v12221_v3 = vadd.f32 %v8350_v26, %v8349_v22  ;;  %v2771_v58 = vrot.slane %v12084_v40, 1  ;;  %v10941_v22 = vld [vmem:[%s11157_s8 + $0x84] sm:$0xff]   ;;  %v10729_v26 = vld [vmem:[%s13693_s3 + $0x2d8] sm:$0xff]   ;;  %v8352_v44 = vpop.f32.mrb[44].mxu0 }
 0x17a   : > { %3774 = vmatprep.mubr.bf16.mxu0 %v10938_v0  ;;  %v2781_v0 = vrot.slane %v10940_v39, 1  ;;  %v8353_v39 = vpop.f32.mrb[45].mxu0 }
 0x17b   : > { %13948 = vst [vmem:[#allocation84_spill] sm:$0xff] %v12221_v3  ;;  %v12241_v38 = vsel %vm2737_vm1, %v2771_v58, %v2772_v34  ;;  %v12255_v34 = vadd.f32 %v8353_v39, %v8352_v44  ;;  %v10733_v39 = vld [vmem:[%s13693_s3 + $0x2e8] sm:$0xff]  }
 0x17c   : > { %13950 = vst [vmem:[#allocation86_spill] sm:$0xff] %v12241_v38 }
 0x17d   : > { %13952 = vst [vmem:[#allocation88_spill] sm:$0xff] %v12255_v34 }
 0x17f   : > { %9607 = vmatmul.mubr.bf16.vlgmr.msra.gmra.mrb[16].mxu1 %v12218_v14 }
 0x180   : > { %9639 = vmatpush3.bf16.msra.mxu1 %v12161_v62  ;;  %9610 = vmatprep.mubr.bf16.mxu1 %v12224_v13  ;;  %v12245_v62 = vsel %vm2737_vm1, %v2780_v61, %v2781_v0  ;;  %v8355_v61 = vpop.f32.mrb[46].mxu0  ;;  %v2798_v0 = vrot.slane %v12123_v56, 1 }
 0x181   : > { %9640 = vmatprep.subr.bf16.mxu1 %v10725_v20  ;;  %3775 = vmatmul.mubr.bf16.gmra.mrb[148].mxu0 %v11927_v17  ;;  %13951 = vst [vmem:[#allocation87_spill] sm:$0xff] %v12245_v62  ;;  %v2789_v17 = vrot.slane %v12116_v54, 1  ;;  %v8356_v14 = vpop.f32.mrb[47].mxu0 }
 0x182   : > { %3782 = vmatprep.mubr.bf16.mxu0 %v10941_v22  ;;  %v10943_v22 = vld [vmem:[%s11336_s9 + $0x50] ss:$0 sps:$4 sm:$0x11]  }
 0x183   : > { %v2799_v13 = vrot.slane %v10943_v22, 1 }
 0x184   : > { %9641 = vmatpush3.bf16.msra.mxu1 %v10725_v20  ;;  %v10942_v20 = vld [vmem:[%s11336_s9 + $0x44] ss:$0 sps:$4 sm:$0x11]  }
 0x185   : > { %9642 = vmatprep.subr.bf16.mxu1 %v10726_v59  ;;  %v2790_v58 = vrot.slane %v10942_v20, 1  ;;  %v12269_v44 = vsel %vm2737_vm1, %v2798_v0, %v2799_v13  ;;  %v10946_v0 = vld [vmem:[%s11336_s9 + $0x68] ss:$0 sps:$4 sm:$0x11]  }
 0x186   : > { %13955 = vst [vmem:[#allocation91_spill] sm:$0xff] %v12269_v44  ;;  %v2817_v22 = vrot.slane %v10946_v0, 1 }
 0x187   : > { %9611 = vmatmul.mubr.bf16.gmra.mrb[20].mxu1 %v12241_v38  ;;  %v10730_v38 = vld [vmem:[%s13693_s3 + $0x2e0] sm:$0xff]   ;;  %v12265_v3 = vsel %vm2737_vm1, %v2789_v17, %v2790_v58  ;;  %v2807_v17 = vrot.slane %v12146_v33, 1 }
 0x188   : > { %9614 = vmatprep.mubr.bf16.mxu1 %v12245_v62  ;;  %9643 = vmatpush3.bf16.msra.mxu1 %v10726_v59  ;;  %v12262_v62 = vadd.f32 %v8356_v14, %v8355_v61  ;;  %13954 = vst [vmem:[#allocation90_spill] sm:$0xff] %v12265_v3  ;;  %v10944_v59 = vld [vmem:[%s11176_s18 + $0x84] sm:$0xff]   ;;  %v8558_v14 = vpop.f32.mrb[48].mxu0 }
 0x189   : > { %9644 = vmatprep.subr.bf16.mxu1 %v10729_v26  ;;  %3783 = vmatmul.mubr.bf16.gmra.mrb[152].mxu0 %v10944_v59  ;;  %v8559_v20 = vpop.f32.mrb[49].mxu0  ;;  %v10734_v59 = vld [vmem:[%s13693_s3 + $0x2f0] sm:$0xff]  }
 0x18a   : > { %13953 = vst [vmem:[#allocation89_spill] sm:$0xff] %v12262_v62  ;;  %3790 = vmatprep.mubr.bf16.mxu0 %v11916_v23  ;;  %v8560_v13 = vadd.f32 %v8559_v20, %v8558_v14  ;;  %v8561_v61 = vpop.f32.mrb[50].mxu0  ;;  %v2816_v23 = vrot.slane %v12155_v63, 1 }
 0x18b   : > { %v8562_v62 = vpop.f32.mrb[51].mxu0 }
 0x18c   : > { %9645 = vmatpush3.bf16.msra.mxu1 %v10729_v26  ;;  %v10945_v26 = vld [vmem:[%s11336_s9 + $0x5c] ss:$0 sps:$4 sm:$0x11]   ;;  %v12289_v14 = vsel %vm2737_vm1, %v2816_v23, %v2817_v22 }
 0x18d   : > { %9646 = vmatprep.subr.bf16.mxu1 %v10730_v38  ;;  %v2808_v58 = vrot.slane %v10945_v26, 1  ;;  %13957 = vst [vmem:[#allocation93_spill] sm:$0xff] %v12289_v14 }
 0x18f   : > { %9615 = vmatmul.mubr.bf16.gmra.mrb[24].mxu1 %v12265_v3  ;;  %v8422_v3 = vpop.f32.mrb[48].mxu1  ;;  %v12285_v26 = vsel %vm2737_vm1, %v2807_v17, %v2808_v58  ;;  %v10947_v58 = vld [vmem:[%s11336_s9 + $0x74] ss:$0 sps:$4 sm:$0x11]  }
 0x190   : > { %9618 = vmatprep.mubr.bf16.mxu1 %v12269_v44  ;;  %9647 = vmatpush3.bf16.msra.mxu1 %v10730_v38  ;;  %v8423_v34 = vpop.f32.mrb[49].mxu1  ;;  %v8563_v44 = vadd.f32 %v8562_v62, %v8561_v61  ;;  %13956 = vst [vmem:[#allocation92_spill] sm:$0xff] %v12285_v26  ;;  %v10739_v62 = vld [vmem:[%s13693_s3 + $0x2f8] sm:$0xff]   ;;  %v2826_v61 = vrot.slane %v10947_v58, 1 }
 0x191   : > { %9648 = vmatprep.subr.bf16.mxu1 %v10733_v39  ;;  %v8424_v21 = vadd.f32 %v8423_v34, %v8422_v3  ;;  %v8425_v29 = vpop.f32.mrb[50].mxu1  ;;  %3791 = vmatmul.mubr.bf16.gmra.mrb[156].mxu0 %v11939_v60  ;;  %v8564_v60 = vpop.f32.mrb[52].mxu0 }
 0x192   : > { %v8426_v38 = vpop.f32.mrb[51].mxu1  ;;  %3798 = vmatprep.mubr.bf16.mxu0 %v11944_v27  ;;  %v8565_v17 = vpop.f32.mrb[53].mxu0  ;;  %v2825_v27 = vrot.slane %v12167_v37, 1 }
 0x193   : > { %v9951_v3 = vadd.f32 %v8424_v21, %v11874_v5  ;;  %v8427_v34 = vadd.f32 %v8426_v38, %v8425_v29  ;;  %v8566_v23 = vadd.f32 %v8565_v17, %v8564_v60  ;;  %v8567_v0 = vpop.f32.mrb[54].mxu0  ;;  %v2834_v5 = vrot.slane %v12171_v7, 1  ;;  %v10948_v29 = vld [vmem:[%s11336_s9 + $0x80] ss:$0 sps:$4 sm:$0x11]   ;;  %v8428_v22 = vpop.f32.mrb[52].mxu1 }
 0x194   : > { %9649 = vmatpush3.bf16.msra.mxu1 %v10733_v39  ;;  %v2835_v21 = vrot.slane %v10948_v29, 1  ;;  %v8568_v38 = vpop.f32.mrb[55].mxu0  ;;  %v12313_v60 = vsel %vm2737_vm1, %v2825_v27, %v2826_v61 }
 0x195   : > { %9650 = vmatprep.subr.bf16.mxu1 %v10734_v59  ;;  %v12297_v20 = vadd.f32 %v9951_v3, %v8560_v13  ;;  %v9969_v39 = vadd.f32 %v8427_v34, %v11888_v41  ;;  %v12308_v13 = vld [vmem:[%s13693_s3 + $0x380] sm:$0xff]   ;;  %v8429_v3 = vpop.f32.mrb[53].mxu1  ;;  %v8569_v34 = vadd.f32 %v8568_v38, %v8567_v0  ;;  %13958 = vst [vmem:[#allocation94_spill] sm:$0xff] %v12313_v60  ;;  %v8570_v27 = vpop.f32.mrb[56].mxu0  ;;  %v2843_v0 = vrot.slane %v12181_v8, 1 }
 0x196   : > { %v8430_v58 = vadd.f32 %v8429_v3, %v8428_v22  ;;  %v12317_v29 = vsel %vm2737_vm1, %v2834_v5, %v2835_v21  ;;  %v10949_v5 = vld [vmem:[%s11336_s9 + $0x8c] ss:$0 sps:$4 sm:$0x11]   ;;  %v2852_v38 = vrot.slane %v12185_v47, 1 }
 0x197   : > { %9619 = vmatmul.mubr.bf16.gmra.mrb[28].mxu1 %v12285_v26  ;;  %v12310_v41 = vadd.f32 %v9969_v39, %v8563_v44  ;;  %13959 = vst [vmem:[#allocation95_spill] sm:$0xff] %v12317_v29 }
 0x198   : > { %9622 = vmatprep.mubr.bf16.mxu1 %v12289_v14  ;;  %9651 = vmatpush3.bf16.msra.mxu1 %v10734_v59  ;;  %v8431_v59 = vpop.f32.mrb[54].mxu1  ;;  %v9942_v44 = vadd.f32 %v8430_v58, %v11903_v42  ;;  %v10950_v42 = vld [vmem:[%s11336_s9 + $0x98] ss:$0 sps:$4 sm:$0x11]  }
 0x199   : > { %9652 = vmatprep.subr.bf16.mxu1 %v10739_v62  ;;  %3799 = vmatmul.mubr.bf16.gmra.mrb[160].mxu0 %v11966_v24  ;;  %v8432_v17 = vpop.f32.mrb[55].mxu1  ;;  %v2853_v3 = vrot.slane %v10950_v42, 1 }
 0x19a   : > { %3806 = vmatprep.mubr.bf16.mxu0 %v11972_v35  ;;  %v8433_v39 = vadd.f32 %v8432_v17, %v8431_v59  ;;  %v12323_v61 = vadd.f32 %v9942_v44, %v8566_v23  ;;  %v2844_v35 = vrot.slane %v10949_v5, 1  ;;  %v8434_v59 = vpop.f32.mrb[56].mxu1 }
 0x19b   : > { %v8435_v17 = vpop.f32.mrb[57].mxu1 }
 0x19c   : > { %9653 = vmatpush3.bf16.msra.mxu1 %v10739_v62  ;;  %v9960_v24 = vadd.f32 %v8433_v39, %v11911_v57  ;;  %v8571_v62 = vpop.f32.mrb[57].mxu0  ;;  %v8436_v57 = vadd.f32 %v8435_v17, %v8434_v59  ;;  %v8437_v39 = vpop.f32.mrb[58].mxu1  ;;  %v10952_v59 = vld [vmem:[%s11336_s9 + $0xb0] ss:$0 sps:$4 sm:$0x11]   ;;  %v12352_v17 = vld [vmem:[%s11157_s8 + $0xc0] sm:$0xff]  }
 0x19d   : > { %9686 = vmatprep.subr.bf16.mxu1 %v12308_v13  ;;  %v8572_v21 = vadd.f32 %v8571_v62, %v8570_v27  ;;  %v8573_v22 = vpop.f32.mrb[58].mxu0  ;;  %v8438_v27 = vpop.f32.mrb[59].mxu1  ;;  %v12338_v62 = vsel %vm2737_vm1, %v2852_v38, %v2853_v3  ;;  %v10951_v38 = vld [vmem:[%s11336_s9 + $0xa4] ss:$0 sps:$4 sm:$0x11]  }
 0x19e   : > { %v12331_v58 = vadd.f32 %v9960_v24, %v8569_v34  ;;  %v8574_v23 = vpop.f32.mrb[59].mxu0  ;;  %13961 = vst [vmem:[#allocation97_spill] sm:$0xff] %v12338_v62  ;;  %v9987_v34 = vadd.f32 %v8436_v57, %v11949_v6  ;;  %v8439_v24 = vadd.f32 %v8438_v27, %v8437_v39  ;;  %v2862_v42 = vrot.slane %v10951_v38, 1 }
 0x19f   : > { %9623 = vmatmul.mubr.bf16.gmra.mrb[32].mxu1 %v12313_v60  ;;  %v8575_v44 = vadd.f32 %v8574_v23, %v8573_v22  ;;  %v8576_v5 = vpop.f32.mrb[60].mxu0  ;;  %v2870_v6 = vrot.slane %v12197_v12, 1  ;;  %v2871_v23 = vrot.slane %v10952_v59, 1  ;;  %v10953_v59 = vld [vmem:[%s11336_s9 + $0xbc] ss:$0 sps:$4 sm:$0x11]  }
 0x1a0   : > { %9626 = vmatprep.mubr.bf16.mxu1 %v12317_v29  ;;  %v12334_v29 = vsel %vm2737_vm1, %v2843_v0, %v2844_v35  ;;  %v12343_v22 = vadd.f32 %v9987_v34, %v8572_v21  ;;  %v10005_v0 = vadd.f32 %v8439_v24, %v11952_v11  ;;  %v8577_v35 = vpop.f32.mrb[61].mxu0  ;;  %v8440_v21 = vpop.f32.mrb[60].mxu1 }
 0x1a1   : > { %13960 = vst [vmem:[#allocation96_spill] sm:$0xff] %v12334_v29  ;;  %3807 = vmatmul.mubr.bf16.gmra.mrb[164].mxu0 %v11991_v36  ;;  %v2861_v36 = vrot.slane %v12191_v10, 1  ;;  %v8578_v3 = vadd.f32 %v8577_v35, %v8576_v5  ;;  %v8441_v11 = vpop.f32.mrb[61].mxu1  ;;  %v12361_v35 = vsel %vm2737_vm1, %v2870_v6, %v2871_v23  ;;  %v2880_v6 = vrot.slane %v10953_v59, 1  ;;  %v12373_v23 = vld [vmem:[%s11176_s18 + $0xc0] sm:$0xff]  }
 0x1a2   : > { %3814 = vmatprep.mubr.bf16.mxu0 %v11996_v50  ;;  %v8579_v50 = vpop.f32.mrb[62].mxu0  ;;  %v12354_v57 = vadd.f32 %v10005_v0, %v8575_v44  ;;  %v8442_v34 = vadd.f32 %v8441_v11, %v8440_v21  ;;  %v8443_v24 = vpop.f32.mrb[62].mxu1  ;;  %13963 = vst [vmem:[#allocation99_spill] sm:$0xff] %v12361_v35  ;;  %v4025_v14 = vshrl.u32 %v12373_v23, 16 }
 0x1a3   : > { %v8580_v39 = vpop.f32.mrb[63].mxu0  ;;  %v8444_v5 = vpop.f32.mrb[63].mxu1 }
 0x1a4   : > { %v8581_v27 = vadd.f32 %v8580_v39, %v8579_v50  ;;  %v9978_v44 = vadd.f32 %v8442_v34, %v11982_v52  ;;  %v8445_v0 = vadd.f32 %v8444_v5, %v8443_v24  ;;  %v8582_v38 = vpop.f32.mrb[64].mxu0  ;;  %v8446_v11 = vpop.f32.mrb[64].mxu1 }
 0x1a5   : > { %v8447_v24 = vpop.f32.mrb[65].mxu1 }
 0x1a6   : > { %v12366_v50 = vadd.f32 %v9978_v44, %v8578_v3  ;;  %v8448_v5 = vadd.f32 %v8447_v24, %v8446_v11  ;;  %v8449_v44 = vpop.f32.mrb[66].mxu1  ;;  %v10742_v11 = vld [vmem:[%s13693_s3 + $0x480] sm:$0xff]  }
 0x1a7   : > { %9627 = vmatmul.mubr.bf16.gmra.mrb[36].mxu1 %v12334_v29  ;;  %v13997_v29 = vld [vmem:[#allocation19_spill] sm:$0xff] }
 0x1a8   : > { %9630 = vmatprep.mubr.bf16.mxu1 %v12338_v62  ;;  %v12357_v62 = vsel %vm2737_vm1, %v2861_v36, %v2862_v42  ;;  %v9996_v36 = vadd.f32 %v8445_v0, %v11987_v25  ;;  %v8583_v42 = vpop.f32.mrb[65].mxu0  ;;  %v8450_v0 = vpop.f32.mrb[67].mxu1  ;;  %v10023_v59 = vadd.f32 %v8448_v5, %v12020_v45 }
 0x1a9   : > { %13962 = vst [vmem:[#allocation98_spill] sm:$0xff] %v12357_v62  ;;  %3815 = vmatmul.mubr.bf16.gmra.mrb[168].mxu0 %v12015_v31  ;;  %v2879_v31 = vrot.slane %v12208_v55, 1  ;;  %v8584_v21 = vadd.f32 %v8583_v42, %v8582_v38  ;;  %v8585_v39 = vpop.f32.mrb[66].mxu0  ;;  %v8451_v38 = vadd.f32 %v8450_v0, %v8449_v44  ;;  %v8452_v45 = vpop.f32.mrb[68].mxu1  ;;  %v10746_v0 = vld [vmem:[%s13693_s3 + $0x488] sm:$0xff]  }
 0x1aa   : > { %3822 = vmatprep.mubr.bf16.mxu0 %v12352_v17  ;;  %v12375_v52 = vadd.f32 %v9996_v36, %v8581_v27  ;;  %v8586_v34 = vpop.f32.mrb[67].mxu0  ;;  %v8453_v24 = vpop.f32.mrb[69].mxu1 }
 0x1ab   : > { %v8587_v3 = vadd.f32 %v8586_v34, %v8585_v39  ;;  %v12378_v25 = vsel %vm2737_vm1, %v2879_v31, %v2880_v6  ;;  %v8588_v27 = vpop.f32.mrb[68].mxu0  ;;  %v12384_v36 = vadd.f32 %v10023_v59, %v8584_v21  ;;  %v10041_v42 = vadd.f32 %v8451_v38, %v12024_v2  ;;  %v10745_v21 = vld [vmem:[%s13693_s3 + $0x4c8] sm:$0xff]   ;;  %v8455_v44 = vpop.f32.mrb[70].mxu1 }
 0x1ac   : > { %13964 = vst [vmem:[#allocation100_spill] sm:$0xff] %v12378_v25  ;;  %v8589_v39 = vpop.f32.mrb[69].mxu0  ;;  %v8454_v2 = vadd.f32 %v8453_v24, %v8452_v45  ;;  %v10744_v45 = vld [vmem:[%s13693_s3 + $0x390] sm:$0xff]  }
 0x1ad   : > { %v8590_v31 = vadd.f32 %v8589_v39, %v8588_v27  ;;  %v8591_v6 = vpop.f32.mrb[70].mxu0 }
 0x1ae   : > { %v8592_v34 = vpop.f32.mrb[71].mxu0  ;;  %v10014_v59 = vadd.f32 %v8454_v2, %v12049_v19 }
 0x1af   : > { %9631 = vmatmul.mubr.bf16.gmra.mrb[40].mxu1 %v12357_v62  ;;  %v8593_v5 = vadd.f32 %v8592_v34, %v8591_v6  ;;  %v8594_v27 = vpop.f32.mrb[72].mxu0 }
 0x1b0   : > { %9634 = vmatprep.mubr.bf16.mxu1 %v12361_v35  ;;  %v8595_v6 = vpop.f32.mrb[73].mxu0 }
 0x1b1   : > { %3823 = vmatmul.mubr.bf16.gmra.mrb[172].mxu0 %v12373_v23  ;;  %v8597_v19 = vpop.f32.mrb[74].mxu0 }
 0x1b2   : > { %4288 = vmatprep.mubr.bf16.mxu0 %v11235_v15  ;;  %v12391_v15 = vadd.f32 %v10041_v42, %v8587_v3  ;;  %v10743_v3 = vld [vmem:[%s13693_s3 + $0x388] sm:$0xff]   ;;  %v12409_v42 = vadd.f32 %v10014_v59, %v8590_v31  ;;  %v8598_v31 = vpop.f32.mrb[75].mxu0  ;;  %v10754_v59 = vld [vmem:[%s13693_s3 + $0x498] sm:$0xff]  }
 0x1b7   : > { %9635 = vmatmul.mubr.bf16.gmra.mrb[44].mxu1 %v12378_v25 }
 0x1b8   : > { %9654 = vmatprep.mubr.bf16.mxu1 %v12058_v51  ;;  %v8456_v51 = vpop.f32.mrb[71].mxu1 }
 0x1b9   : > { %4289 = vmatmul.mubr.bf16.vlgmr.msra.gmra.mrb[176].mxu0 %v11253_v28  ;;  %v8457_v38 = vadd.f32 %v8456_v51, %v8455_v44  ;;  %v10749_v28 = vld [vmem:[%s13693_s3 + $0x4d0] sm:$0xff]   ;;  %v10747_v44 = vld [vmem:[%s13693_s3 + $0x398] sm:$0xff]  }
 0x1ba   : > { %9087 = vmatpush3.bf16.msra.mxu0 %v10742_v11  ;;  %4296 = vmatprep.mubr.bf16.mxu0 %v11268_v53  ;;  %v8596_v11 = vadd.f32 %v8595_v6, %v8594_v27 }
 0x1bb   : > { %9088 = vmatprep.subr.bf16.mxu0 %v10745_v21  ;;  %v10032_v39 = vadd.f32 %v8457_v38, %v12055_v49  ;;  %v10750_v49 = vld [vmem:[%s13693_s3 + $0x490] sm:$0xff]   ;;  %v8599_v21 = vadd.f32 %v8598_v31, %v8597_v19  ;;  %v8600_v38 = vpop.f32.mrb[76].mxu0 }
 0x1bd   : > { %v12417_v34 = vadd.f32 %v10032_v39, %v8593_v5  ;;  %v8601_v39 = vpop.f32.mrb[77].mxu0 }
 0x1be   : > { %9089 = vmatpush3.bf16.msra.mxu0 %v10746_v0  ;;  %v8603_v6 = vpop.f32.mrb[78].mxu0 }
 0x1bf   : > { %9655 = vmatmul.mubr.bf16.vlgmr.msra.gmra.mrb[16].mxu1 %v12066_v46  ;;  %v8458_v46 = vpop.f32.mrb[72].mxu1  ;;  %9090 = vmatprep.subr.bf16.mxu0 %v10749_v28  ;;  %v8604_v31 = vpop.f32.mrb[79].mxu0 }
 0x1c0   : > { %9687 = vmatpush3.bf16.msra.mxu1 %v12308_v13  ;;  %9658 = vmatprep.mubr.bf16.mxu1 %v12084_v40  ;;  %v8459_v13 = vpop.f32.mrb[73].mxu1  ;;  %v10753_v40 = vld [vmem:[%s13693_s3 + $0x4d8] sm:$0xff]  }
 0x1c1   : > { %9688 = vmatprep.subr.bf16.mxu1 %v10743_v3  ;;  %v8460_v24 = vadd.f32 %v8459_v13, %v8458_v46  ;;  %v8461_v2 = vpop.f32.mrb[74].mxu1  ;;  %4297 = vmatmul.mubr.bf16.gmra.mrb[180].mxu0 %v11283_v4 }
 0x1c2   : > { %v8462_v5 = vpop.f32.mrb[75].mxu1  ;;  %4304 = vmatprep.mubr.bf16.mxu0 %v11299_v32  ;;  %9091 = vmatpush3.bf16.msra.mxu0 %v10750_v49  ;;  %v8605_v49 = vadd.f32 %v8604_v31, %v8603_v6 }
 0x1c3   : > { %v10059_v51 = vadd.f32 %v8460_v24, %v12097_v9  ;;  %v8463_v0 = vadd.f32 %v8462_v5, %v8461_v2  ;;  %9092 = vmatprep.subr.bf16.mxu0 %v10753_v40  ;;  %v8602_v9 = vadd.f32 %v8601_v39, %v8600_v38  ;;  %v8464_v46 = vpop.f32.mrb[76].mxu1  ;;  %v10751_v40 = vld [vmem:[%s13693_s3 + $0x3a8] sm:$0xff]  }
 0x1c4   : > { %9689 = vmatpush3.bf16.msra.mxu1 %v10743_v3  ;;  %v10758_v3 = vld [vmem:[%s13693_s3 + $0x4e0] sm:$0xff]   ;;  %v10766_v5 = vld [vmem:[%s13693_s3 + $0x4a8] sm:$0xff]  }
 0x1c5   : > { %9690 = vmatprep.subr.bf16.mxu1 %v10744_v45  ;;  %v12438_v28 = vadd.f32 %v10059_v51, %v8596_v11  ;;  %v10077_v27 = vadd.f32 %v8463_v0, %v12102_v30  ;;  %v10760_v30 = vld [vmem:[%s13693_s3 + $0x4a0] sm:$0xff]   ;;  %v8465_v11 = vpop.f32.mrb[77].mxu1  ;;  %v8606_v51 = vpop.f32.mrb[80].mxu0 }
 0x1c6   : > { %9093 = vmatpush3.bf16.msra.mxu0 %v10754_v59  ;;  %v8467_v13 = vpop.f32.mrb[78].mxu1  ;;  %v8607_v38 = vpop.f32.mrb[81].mxu0 }
 0x1c7   : > { %9659 = vmatmul.mubr.bf16.gmra.mrb[20].mxu1 %v12091_v1  ;;  %v10748_v1 = vld [vmem:[%s13693_s3 + $0x3a0] sm:$0xff]   ;;  %v12445_v19 = vadd.f32 %v10077_v27, %v8599_v21  ;;  %9094 = vmatprep.subr.bf16.mxu0 %v10758_v3  ;;  %v8468_v21 = vpop.f32.mrb[79].mxu1  ;;  %v8609_v3 = vpop.f32.mrb[82].mxu0 }
 0x1c8   : > { %9662 = vmatprep.mubr.bf16.mxu1 %v12116_v54  ;;  %9691 = vmatpush3.bf16.msra.mxu1 %v10744_v45  ;;  %v10764_v54 = vld [vmem:[%s13693_s3 + $0x4e8] sm:$0xff]   ;;  %v8466_v45 = vadd.f32 %v8465_v11, %v8464_v46  ;;  %v8469_v2 = vadd.f32 %v8468_v21, %v8467_v13  ;;  %v8470_v39 = vpop.f32.mrb[80].mxu1  ;;  %v8610_v6 = vpop.f32.mrb[83].mxu0 }
 0x1c9   : > { %9692 = vmatprep.subr.bf16.mxu1 %v10747_v44  ;;  %4305 = vmatmul.mubr.bf16.gmra.mrb[184].mxu0 %v11317_v48  ;;  %v8611_v46 = vadd.f32 %v8610_v6, %v8609_v3 }
 0x1ca   : > { %4312 = vmatprep.mubr.bf16.mxu0 %v11346_v16  ;;  %v10050_v24 = vadd.f32 %v8466_v45, %v12137_v18  ;;  %9095 = vmatpush3.bf16.msra.mxu0 %v10760_v30  ;;  %v10068_v59 = vadd.f32 %v8469_v2, %v12149_v43  ;;  %v8608_v18 = vadd.f32 %v8607_v38, %v8606_v51  ;;  %v10772_v43 = vld [vmem:[%s13693_s3 + $0x4b0] sm:$0xff]   ;;  %v13965_v30 = vld [vmem:[#allocation10_spill] sm:$0xff]  ;;  %v8612_v2 = vpop.f32.mrb[84].mxu0  ;;  %v13968_v51 = vld [vmem:[#allocation79_spill] sm:$0xff] }
 0x1cb   : > { %9096 = vmatprep.subr.bf16.mxu0 %v10764_v54  ;;  %v10756_v54 = vld [vmem:[%s13693_s3 + $0x3b8] sm:$0xff]   ;;  %v13967_v45 = vld [vmem:[#allocation78_spill] sm:$0xff] }
 0x1cc   : > { %9693 = vmatpush3.bf16.msra.mxu1 %v10747_v44  ;;  %v10770_v44 = vld [vmem:[%s13693_s3 + $0x4f0] sm:$0xff]   ;;  %v12466_v0 = vadd.f32 %v10050_v24, %v8602_v9  ;;  %v12473_v27 = vadd.f32 %v10068_v59, %v8605_v49  ;;  %v8471_v9 = vpop.f32.mrb[81].mxu1  ;;  %v10778_v24 = vld [vmem:[%s13693_s3 + $0x4b8] sm:$0xff]   ;;  %v8613_v59 = vpop.f32.mrb[85].mxu0 }
 0x1cd   : > { %9694 = vmatprep.subr.bf16.mxu1 %v10748_v1  ;;  %v8473_v31 = vpop.f32.mrb[82].mxu1  ;;  %v13966_v49 = vld [vmem:[#allocation12_spill] sm:$0xff]  ;;  %v8614_v38 = vadd.f32 %v8613_v59, %v8612_v2  ;;  %v8615_v3 = vpop.f32.mrb[86].mxu0 }
 0x1ce   : > { %9097 = vmatpush3.bf16.msra.mxu0 %v10766_v5  ;;  %v8474_v11 = vpop.f32.mrb[83].mxu1 }
 0x1cf   : > { %9663 = vmatmul.mubr.bf16.gmra.mrb[24].mxu1 %v12123_v56  ;;  %v10752_v56 = vld [vmem:[%s13693_s3 + $0x3b0] sm:$0xff]   ;;  %9098 = vmatprep.subr.bf16.mxu0 %v10770_v44  ;;  %v8475_v21 = vadd.f32 %v8474_v11, %v8473_v31  ;;  %v13969_v31 = vld [vmem:[#allocation14_spill] sm:$0xff] }
 0x1d0   : > { %9666 = vmatprep.mubr.bf16.mxu1 %v12146_v33  ;;  %9695 = vmatpush3.bf16.msra.mxu1 %v10748_v1  ;;  %v10776_v33 = vld [vmem:[%s13693_s3 + $0x4f8] sm:$0xff]   ;;  %v8472_v1 = vadd.f32 %v8471_v9, %v8470_v39  ;;  %v13971_v11 = vld [vmem:[#allocation80_spill] sm:$0xff] }
 0x1d1   : > { %9696 = vmatprep.subr.bf16.mxu1 %v10751_v40  ;;  %4313 = vmatmul.mubr.bf16.gmra.mrb[188].mxu0 %v13965_v30  ;;  %v10113_v44 = vadd.f32 %v8475_v21, %v13968_v51 }
 0x1d2   : > { %4320 = vmatprep.mubr.bf16.mxu0 %v13966_v49  ;;  %v10095_v13 = vadd.f32 %v8472_v1, %v13967_v45  ;;  %9099 = vmatpush3.bf16.msra.mxu0 %v10772_v43  ;;  %v8616_v43 = vpop.f32.mrb[87].mxu0 }
 0x1d3   : > { %9100 = vmatprep.subr.bf16.mxu0 %v10776_v33  ;;  %v12501_v39 = vadd.f32 %v10113_v44, %v8611_v46  ;;  %v8617_v9 = vadd.f32 %v8616_v43, %v8615_v3  ;;  %v8618_v46 = vpop.f32.mrb[88].mxu0 }
 0x1d4   : > { %9697 = vmatpush3.bf16.msra.mxu1 %v10751_v40  ;;  %v10785_v40 = vld [vmem:[%s13693_s3 + $0x580] sm:$0xff]   ;;  %v12494_v5 = vadd.f32 %v10095_v13, %v8608_v18 }
 0x1d5   : > { %9698 = vmatprep.subr.bf16.mxu1 %v10752_v56 }
 0x1d6   : > { %9101 = vmatpush3.bf16.msra.mxu0 %v10778_v24  ;;  %v13972_v24 = vld [vmem:[#allocation81_spill] sm:$0xff] }
 0x1d7   : > { %9667 = vmatmul.mubr.bf16.gmra.mrb[28].mxu1 %v12155_v63  ;;  %v10757_v63 = vld [vmem:[%s13693_s3 + $0x400] sm:$0xff]   ;;  %9222 = vmatprep.subr.bf16.mxu0 %v10785_v40  ;;  %v8619_v40 = vpop.f32.mrb[89].mxu0 }
 0x1d8   : > { %9670 = vmatprep.mubr.bf16.mxu1 %v12167_v37  ;;  %9699 = vmatpush3.bf16.msra.mxu1 %v10752_v56  ;;  %v13970_v56 = vld [vmem:[#allocation16_spill] sm:$0xff]  ;;  %v8620_v51 = vadd.f32 %v8619_v40, %v8618_v46  ;;  %v8621_v44 = vpop.f32.mrb[90].mxu0 }
 0x1d9   : > { %9700 = vmatprep.subr.bf16.mxu1 %v10756_v54  ;;  %4321 = vmatmul.mubr.bf16.gmra.mrb[192].mxu0 %v13969_v31  ;;  %v8622_v3 = vpop.f32.mrb[91].mxu0 }
 0x1da   : > { %v8476_v6 = vpop.f32.mrb[84].mxu1  ;;  %4328 = vmatprep.mubr.bf16.mxu0 %v13970_v56 }
 0x1db   : > { %v8477_v18 = vpop.f32.mrb[85].mxu1 }
 0x1dc   : > { %v8478_v33 = vadd.f32 %v8477_v18, %v8476_v6  ;;  %v8479_v1 = vpop.f32.mrb[86].mxu1  ;;  %9701 = vmatpush3.bf16.msra.mxu1 %v10756_v54  ;;  %v8623_v6 = vadd.f32 %v8622_v3, %v8621_v44 }
 0x1dd   : > { %v8480_v37 = vpop.f32.mrb[87].mxu1  ;;  %8950 = vmatprep.subr.bf16.mxu1 %v10757_v63 }
 0x1de   : > { %v10086_v45 = vadd.f32 %v8478_v33, %v13971_v11  ;;  %v8481_v13 = vadd.f32 %v8480_v37, %v8479_v1  ;;  %v13973_v33 = vld [vmem:[#allocation18_spill] sm:$0xff] }
 0x1df   : > { %9671 = vmatmul.mubr.bf16.gmra.mrb[32].mxu1 %v12171_v7  ;;  %v13975_v1 = vld [vmem:[#allocation82_spill] sm:$0xff] }
 0x1e0   : > { %v12507_v21 = vadd.f32 %v10086_v45, %v8614_v38  ;;  %v10104_v2 = vadd.f32 %v8481_v13, %v13972_v24  ;;  %9674 = vmatprep.mubr.bf16.mxu1 %v12181_v8  ;;  %v13974_v38 = vld [vmem:[#allocation20_spill] sm:$0xff] }
 0x1e1   : > { %4329 = vmatmul.mubr.bf16.gmra.mrb[196].mxu0 %v13973_v33  ;;  %v14003_v33 = vld [vmem:[#allocation23_spill] sm:$0xff] }
 0x1e2   : > { %v12511_v54 = vadd.f32 %v10104_v2, %v8617_v9  ;;  %v8482_v59 = vpop.f32.mrb[88].mxu1  ;;  %4336 = vmatprep.mubr.bf16.mxu0 %v13974_v38  ;;  %v13976_v9 = vld [vmem:[#allocation84_spill] sm:$0xff] }
 0x1e3   : > { %v8483_v63 = vpop.f32.mrb[89].mxu1 }
 0x1e4   : > { %v8484_v43 = vadd.f32 %v8483_v63, %v8482_v59  ;;  %v8485_v18 = vpop.f32.mrb[90].mxu1  ;;  %v8624_v8 = vpop.f32.mrb[92].mxu0 }
 0x1e5   : > { %v8486_v7 = vpop.f32.mrb[91].mxu1  ;;  %v8625_v46 = vpop.f32.mrb[93].mxu0 }
 0x1e6   : > { %v10131_v37 = vadd.f32 %v8484_v43, %v13975_v1  ;;  %v8487_v11 = vadd.f32 %v8486_v7, %v8485_v18  ;;  %v8626_v24 = vadd.f32 %v8625_v46, %v8624_v8  ;;  %v8627_v2 = vpop.f32.mrb[94].mxu0  ;;  %v13977_v7 = vld [vmem:[#allocation22_spill] sm:$0xff]  ;;  %v13979_v1 = vld [vmem:[#allocation88_spill] sm:$0xff]  ;;  %v13980_v8 = vld [vmem:[#allocation89_spill] sm:$0xff] }
 0x1e7   : > { %9675 = vmatmul.mubr.bf16.gmra.mrb[36].mxu1 %v12185_v47  ;;  %v8628_v59 = vpop.f32.mrb[95].mxu0 }
 0x1e8   : > { %v12517_v45 = vadd.f32 %v10131_v37, %v8620_v51  ;;  %v10149_v13 = vadd.f32 %v8487_v11, %v13976_v9  ;;  %9678 = vmatprep.mubr.bf16.mxu1 %v12191_v10  ;;  %v8629_v63 = vadd.f32 %v8628_v59, %v8627_v2  ;;  %v13978_v51 = vld [vmem:[#allocation24_spill] sm:$0xff] }
 0x1e9   : > { %4337 = vmatmul.mubr.bf16.gmra.mrb[200].mxu0 %v13977_v7 }
 0x1ea   : > { %v12521_v40 = vadd.f32 %v10149_v13, %v8623_v6  ;;  %v8488_v44 = vpop.f32.mrb[92].mxu1  ;;  %4344 = vmatprep.mubr.bf16.mxu0 %v13978_v51 }
 0x1eb   : > { %v8489_v3 = vpop.f32.mrb[93].mxu1 }
 0x1ec   : > { %v8490_v43 = vadd.f32 %v8489_v3, %v8488_v44  ;;  %v8491_v18 = vpop.f32.mrb[94].mxu1  ;;  %v8630_v10 = vpop.f32.mrb[96].mxu0 }
 0x1ed   : > { %v8492_v47 = vpop.f32.mrb[95].mxu1  ;;  %v8631_v13 = vpop.f32.mrb[97].mxu0 }
 0x1ee   : > { %v10122_v37 = vadd.f32 %v8490_v43, %v13979_v1  ;;  %v8493_v11 = vadd.f32 %v8492_v47, %v8491_v18  ;;  %v8632_v46 = vadd.f32 %v8631_v13, %v8630_v10  ;;  %v8633_v2 = vpop.f32.mrb[98].mxu0  ;;  %v12534_v43 = vld [vmem:[%s11336_s9 + $0xc0] sm:$0xff]   ;;  %v13982_v1 = vld [vmem:[#allocation28_spill] sm:$0xff] }
 0x1ef   : > { %9679 = vmatmul.mubr.bf16.gmra.mrb[40].mxu1 %v12197_v12  ;;  %v8634_v3 = vpop.f32.mrb[99].mxu0  ;;  %v13981_v47 = vld [vmem:[#allocation26_spill] sm:$0xff] }
 0x1f0   : > { %v12527_v6 = vadd.f32 %v10122_v37, %v8626_v24  ;;  %v10140_v9 = vadd.f32 %v8493_v11, %v13980_v8  ;;  %9682 = vmatprep.mubr.bf16.mxu1 %v12208_v55  ;;  %v8635_v35 = vadd.f32 %v8634_v3, %v8633_v2  ;;  %v13983_v37 = vld [vmem:[#allocation57_spill] sm:$0xff]  ;;  %v13984_v8 = vld [vmem:[#allocation59_spill] sm:$0xff] }
 0x1f1   : > { %4345 = vmatmul.mubr.bf16.gmra.mrb[204].mxu0 %v13981_v47  ;;  %v13985_v2 = vld [vmem:[#allocation11_spill] sm:$0xff] }
 0x1f2   : > { %v12531_v44 = vadd.f32 %v10140_v9, %v8629_v63  ;;  %v8494_v59 = vpop.f32.mrb[96].mxu1  ;;  %4352 = vmatprep.mubr.bf16.mxu0 %v13982_v1 }
 0x1f3   : > { %v8495_v25 = vpop.f32.mrb[97].mxu1 }
 0x1f4   : > { %v8496_v18 = vadd.f32 %v8495_v25, %v8494_v59  ;;  %v8497_v12 = vpop.f32.mrb[98].mxu1  ;;  %v8636_v63 = vpop.f32.mrb[100].mxu0 }
 0x1f5   : > { %v8498_v24 = vpop.f32.mrb[99].mxu1  ;;  %v8637_v13 = vpop.f32.mrb[101].mxu0 }
 0x1f6   : > { %v10167_v11 = vadd.f32 %v8496_v18, %v13983_v37  ;;  %v8499_v55 = vadd.f32 %v8498_v24, %v8497_v12  ;;  %v8638_v25 = vadd.f32 %v8637_v13, %v8636_v63  ;;  %v8639_v59 = vpop.f32.mrb[102].mxu0  ;;  %v13986_v24 = vld [vmem:[#allocation30_spill] sm:$0xff] }
 0x1f7   : > { %9683 = vmatmul.mubr.bf16.gmra.mrb[44].mxu1 %v12534_v43  ;;  %v8640_v62 = vpop.f32.mrb[103].mxu0 }
 0x1f8   : > { %v12540_v10 = vadd.f32 %v10167_v11, %v8632_v46  ;;  %v10185_v9 = vadd.f32 %v8499_v55, %v13984_v8  ;;  %9702 = vmatprep.mubr.bf16.mxu1 %v13985_v2  ;;  %v8641_v51 = vadd.f32 %v8640_v62, %v8639_v59  ;;  %v10759_v46 = vld [vmem:[%s13693_s3 + $0x3c0] sm:$0xff]   ;;  %v13987_v11 = vld [vmem:[#allocation32_spill] sm:$0xff]  ;;  %v13988_v55 = vld [vmem:[#allocation63_spill] sm:$0xff] }
 0x1f9   : > { %4353 = vmatmul.mubr.bf16.gmra.mrb[208].mxu0 %v13986_v24  ;;  %v13991_v59 = vld [vmem:[#allocation15_spill] sm:$0xff] }
 0x1fa   : > { %v12544_v3 = vadd.f32 %v10185_v9, %v8635_v35  ;;  %v8500_v47 = vpop.f32.mrb[100].mxu1  ;;  %4360 = vmatprep.mubr.bf16.mxu0 %v13987_v11  ;;  %v10761_v35 = vld [vmem:[%s13693_s3 + $0x408] sm:$0xff]   ;;  %v13989_v9 = vld [vmem:[#allocation13_spill] sm:$0xff] }
 0x1fb   : > { %v8501_v1 = vpop.f32.mrb[101].mxu1  ;;  %v10762_v11 = vld [vmem:[%s13693_s3 + $0x3c8] sm:$0xff]  }
 0x1fc   : > { %v8502_v18 = vadd.f32 %v8501_v1, %v8500_v47  ;;  %v8503_v12 = vpop.f32.mrb[102].mxu1  ;;  %v8642_v62 = vpop.f32.mrb[104].mxu0  ;;  %v13990_v1 = vld [vmem:[#allocation64_spill] sm:$0xff] }
 0x1fd   : > { %v8504_v37 = vpop.f32.mrb[103].mxu1  ;;  %v8643_v2 = vpop.f32.mrb[105].mxu0 }
 0x1fe   : > { %v10158_v63 = vadd.f32 %v8502_v18, %v13988_v55  ;;  %v8505_v8 = vadd.f32 %v8504_v37, %v8503_v12  ;;  %v8644_v24 = vadd.f32 %v8643_v2, %v8642_v62  ;;  %v8645_v7 = vpop.f32.mrb[106].mxu0  ;;  %v10763_v18 = vld [vmem:[%s13693_s3 + $0x410] sm:$0xff]  }
 0x1ff   : > { %9703 = vmatmul.mubr.bf16.vlgmr.msra.gmra.mrb[16].mxu1 %v13989_v9  ;;  %v8646_v37 = vpop.f32.mrb[107].mxu0  ;;  %v10765_v62 = vld [vmem:[%s13693_s3 + $0x3d0] sm:$0xff]  }
 0x200   : > { %v12556_v47 = vadd.f32 %v10158_v63, %v8638_v25  ;;  %v10176_v13 = vadd.f32 %v8505_v8, %v13990_v1  ;;  %8951 = vmatpush3.bf16.msra.mxu1 %v10759_v46  ;;  %9706 = vmatprep.mubr.bf16.mxu1 %v13991_v59  ;;  %v8647_v46 = vadd.f32 %v8646_v37, %v8645_v7  ;;  %v13992_v1 = vld [vmem:[#allocation34_spill] sm:$0xff]  ;;  %v13993_v2 = vld [vmem:[#allocation36_spill] sm:$0xff] }
 0x201   : > { %8952 = vmatprep.subr.bf16.mxu1 %v10761_v35  ;;  %4361 = vmatmul.mubr.bf16.gmra.mrb[212].mxu0 %v13992_v1 }
 0x202   : > { %v12566_v12 = vadd.f32 %v10176_v13, %v8641_v51  ;;  %v8506_v25 = vpop.f32.mrb[104].mxu1  ;;  %4368 = vmatprep.mubr.bf16.mxu0 %v13993_v2  ;;  %v10767_v51 = vld [vmem:[%s13693_s3 + $0x418] sm:$0xff]   ;;  %v13994_v13 = vld [vmem:[#allocation67_spill] sm:$0xff] }
 0x203   : > { %v8507_v55 = vpop.f32.mrb[105].mxu1 }
 0x204   : > { %v8508_v63 = vadd.f32 %v8507_v55, %v8506_v25  ;;  %v8509_v8 = vpop.f32.mrb[106].mxu1  ;;  %8953 = vmatpush3.bf16.msra.mxu1 %v10762_v11  ;;  %v13995_v25 = vld [vmem:[#allocation17_spill] sm:$0xff]  ;;  %v8648_v37 = vpop.f32.mrb[108].mxu0  ;;  %v13996_v11 = vld [vmem:[#allocation70_spill] sm:$0xff] }
 0x205   : > { %v8510_v35 = vpop.f32.mrb[107].mxu1  ;;  %8954 = vmatprep.subr.bf16.mxu1 %v10763_v18  ;;  %v8649_v1 = vpop.f32.mrb[109].mxu0  ;;  %v10768_v18 = vld [vmem:[%s13693_s3 + $0x3d8] sm:$0xff]  }
 0x206   : > { %v10203_v59 = vadd.f32 %v8508_v63, %v13994_v13  ;;  %v8511_v7 = vadd.f32 %v8510_v35, %v8509_v8  ;;  %v8650_v2 = vadd.f32 %v8649_v1, %v8648_v37  ;;  %v8651_v38 = vpop.f32.mrb[110].mxu0  ;;  %v10769_v63 = vld [vmem:[%s13693_s3 + $0x420] sm:$0xff]  }
 0x207   : > { %9707 = vmatmul.mubr.bf16.gmra.mrb[20].mxu1 %v13995_v25  ;;  %v10771_v1 = vld [vmem:[%s13693_s3 + $0x3e0] sm:$0xff]  }
 0x208   : > { %v12578_v55 = vadd.f32 %v10203_v59, %v8644_v24  ;;  %v10221_v9 = vadd.f32 %v8511_v7, %v13996_v11  ;;  %9710 = vmatprep.mubr.bf16.mxu1 %v13997_v29  ;;  %8955 = vmatpush3.bf16.msra.mxu1 %v10765_v62  ;;  %v8652_v59 = vpop.f32.mrb[111].mxu0  ;;  %v13998_v62 = vld [vmem:[#allocation38_spill] sm:$0xff] }
 0x209   : > { %8956 = vmatprep.subr.bf16.mxu1 %v10767_v51  ;;  %v8653_v13 = vadd.f32 %v8652_v59, %v8651_v38  ;;  %4369 = vmatmul.mubr.bf16.gmra.mrb[216].mxu0 %v13998_v62  ;;  %v13999_v37 = vld [vmem:[#allocation2_spill] sm:$0xff] }
 0x20a   : > { %v12588_v8 = vadd.f32 %v10221_v9, %v8647_v46  ;;  %v8512_v24 = vpop.f32.mrb[108].mxu1  ;;  %4376 = vmatprep.mubr.bf16.mxu0 %v13999_v37  ;;  %v10773_v9 = vld [vmem:[%s13693_s3 + $0x428] sm:$0xff]   ;;  %v14000_v46 = vld [vmem:[#allocation73_spill] sm:$0xff] }
 0x20b   : > { %v8513_v35 = vpop.f32.mrb[109].mxu1 }
 0x20c   : > { %v8514_v7 = vadd.f32 %v8513_v35, %v8512_v24  ;;  %v8515_v11 = vpop.f32.mrb[110].mxu1  ;;  %8957 = vmatpush3.bf16.msra.mxu1 %v10768_v18  ;;  %v14001_v24 = vld [vmem:[#allocation21_spill] sm:$0xff]  ;;  %v8694_v59 = vpop.f32.mrb[112].mxu0  ;;  %v14002_v18 = vld [vmem:[#allocation74_spill] sm:$0xff] }
 0x20d   : > { %v8516_v51 = vpop.f32.mrb[111].mxu1  ;;  %8958 = vmatprep.subr.bf16.mxu1 %v10769_v63  ;;  %v8695_v62 = vpop.f32.mrb[113].mxu0  ;;  %v10774_v63 = vld [vmem:[%s13693_s3 + $0x3e8] sm:$0xff]  }
 0x20e   : > { %v10194_v29 = vadd.f32 %v8514_v7, %v14000_v46  ;;  %v8517_v38 = vadd.f32 %v8516_v51, %v8515_v11  ;;  %v8696_v37 = vadd.f32 %v8695_v62, %v8694_v59  ;;  %v8697_v60 = vpop.f32.mrb[114].mxu0  ;;  %v10775_v7 = vld [vmem:[%s13693_s3 + $0x430] sm:$0xff]   ;;  %v14004_v46 = vld [vmem:[#allocation3_spill] sm:$0xff] }
 0x20f   : > { %9711 = vmatmul.mubr.bf16.gmra.mrb[24].mxu1 %v14001_v24  ;;  %v10777_v62 = vld [vmem:[%s13693_s3 + $0x3f0] sm:$0xff]  }
 0x210   : > { %v12600_v35 = vadd.f32 %v10194_v29, %v8650_v2  ;;  %v10212_v25 = vadd.f32 %v8517_v38, %v14002_v18  ;;  %9714 = vmatprep.mubr.bf16.mxu1 %v14003_v33  ;;  %8959 = vmatpush3.bf16.msra.mxu1 %v10771_v1  ;;  %v8698_v29 = vpop.f32.mrb[115].mxu0  ;;  %v12613_v51 = vadd.f32 %v12297_v20, %v8696_v37  ;;  %v14005_v1 = vld [vmem:[#allocation4_spill] sm:$0xff]  ;;  %v10783_v38 = vld [vmem:[%s13693_s3 + $0x3f8] sm:$0xff]   ;;  %v4037_v33 = vshrl.u32 %v12352_v17, 16 }
 0x211   : > { %8960 = vmatprep.subr.bf16.mxu1 %v10773_v9  ;;  %v8699_v2 = vadd.f32 %v8698_v29, %v8697_v60  ;;  %4377 = vmatmul.mubr.bf16.gmra.mrb[220].mxu0 %v14004_v46  ;;  %v14006_v60 = vld [vmem:[#allocation25_spill] sm:$0xff]  ;;  %v14007_v9 = vld [vmem:[#allocation27_spill] sm:$0xff] }
 0x212   : > { %v12610_v11 = vadd.f32 %v10212_v25, %v8653_v13  ;;  %4384 = vmatprep.mubr.bf16.mxu0 %v14005_v1  ;;  %v10782_v25 = vld [vmem:[%s13693_s3 + $0x438] sm:$0xff]   ;;  %v12659_v1 = vld [vmem:[%s11176_s18 + $0xc8] ss:$0 sps:$4 sm:$0x11]  }
 0x213   : > { %v12624_v13 = vadd.f32 %v12310_v41, %v8699_v2  ;;  %v12634_v41 = vld [vmem:[%s13693_s3 + $0x440] sm:$0xff]   ;;  %v14008_v2 = vld [vmem:[#allocation5_spill] sm:$0xff] }
 0x214   : > { %8961 = vmatpush3.bf16.msra.mxu1 %v10774_v63  ;;  %v8700_v20 = vpop.f32.mrb[116].mxu0 }
 0x215   : > { %8962 = vmatprep.subr.bf16.mxu1 %v10775_v7  ;;  %v8701_v37 = vpop.f32.mrb[117].mxu0 }
 0x216   : > { %v8702_v59 = vadd.f32 %v8701_v37, %v8700_v20  ;;  %v8703_v18 = vpop.f32.mrb[118].mxu0  ;;  %v4039_v37 = vshll.u32 %v12352_v17, 16 }
 0x217   : > { %9715 = vmatmul.mubr.bf16.gmra.mrb[28].mxu1 %v14006_v60  ;;  %v8704_v63 = vpop.f32.mrb[119].mxu0 }
 0x218   : > { %9718 = vmatprep.mubr.bf16.mxu1 %v14007_v9  ;;  %8963 = vmatpush3.bf16.msra.mxu1 %v10777_v62  ;;  %v8705_v7 = vadd.f32 %v8704_v63, %v8703_v18  ;;  %v12637_v29 = vadd.f32 %v12323_v61, %v8702_v59  ;;  %v14009_v62 = vld [vmem:[#allocation6_spill] sm:$0xff]  ;;  %v14010_v9 = vld [vmem:[#allocation29_spill] sm:$0xff]  ;;  %v14011_v59 = vld [vmem:[#allocation31_spill] sm:$0xff]  ;;  %v4041_v24 = vrot.slane %v4039_v37, 1 }
 0x219   : > { %8964 = vmatprep.subr.bf16.mxu1 %v10782_v25  ;;  %4385 = vmatmul.mubr.bf16.gmra.mrb[224].mxu0 %v14008_v2  ;;  %v12646_v25 = vld [vmem:[%s11157_s8 + $0xc8] ss:$0 sps:$4 sm:$0x11]   ;;  %v14014_v37 = vld [vmem:[#allocation33_spill] sm:$0xff] }
 0x21a   : > { %4392 = vmatprep.mubr.bf16.mxu0 %v14009_v62  ;;  %v12643_v20 = vadd.f32 %v12331_v58, %v8705_v7  ;;  %v4044_v58 = vshll.u32 %v12646_v25, 16  ;;  %v14012_v2 = vld [vmem:[#allocation7_spill] sm:$0xff]  ;;  %v4042_v17 = vor.u32 %v4041_v24, %v4037_v33 }
 0x21c   : > { %8965 = vmatpush3.bf16.msra.mxu1 %v10783_v38  ;;  %v8706_v18 = vpop.f32.mrb[120].mxu0 }
 0x21d   : > { %9734 = vmatprep.subr.bf16.mxu1 %v12634_v41  ;;  %v8707_v61 = vpop.f32.mrb[121].mxu0 }
 0x21e   : > { %v8708_v63 = vadd.f32 %v8707_v61, %v8706_v18  ;;  %v8709_v38 = vpop.f32.mrb[122].mxu0  ;;  %v4027_v18 = vshll.u32 %v12373_v23, 16 }
 0x21f   : > { %9719 = vmatmul.mubr.bf16.gmra.mrb[32].mxu1 %v14010_v9  ;;  %v8710_v60 = vpop.f32.mrb[123].mxu0  ;;  %v14013_v9 = vld [vmem:[#allocation8_spill] sm:$0xff] }
 0x220   : > { %9722 = vmatprep.mubr.bf16.mxu1 %v14011_v59  ;;  %v8711_v7 = vadd.f32 %v8710_v60, %v8709_v38  ;;  %v12654_v62 = vadd.f32 %v12343_v22, %v8708_v63  ;;  %v4046_v59 = vrot.slane %v4044_v58, 1  ;;  %v14015_v38 = vld [vmem:[#allocation35_spill] sm:$0xff]  ;;  %v4051_v63 = vshll.u32 %v12534_v43, 16 }
 0x221   : > { %4393 = vmatmul.mubr.bf16.gmra.mrb[228].mxu0 %v14012_v2  ;;  %v12668_v22 = vld [vmem:[%s11336_s9 + $0xc8] ss:$0 sps:$4 sm:$0x11]   ;;  %v4029_v56 = vrot.slane %v4027_v18, 1 }
 0x222   : > { %4400 = vmatprep.mubr.bf16.mxu0 %v14013_v9  ;;  %v12663_v61 = vadd.f32 %v12354_v57, %v8711_v7  ;;  %v4032_v57 = vshll.u32 %v12659_v1, 16  ;;  %v12674_v33 = vsel %vm1131_vm0, %v4042_v17, %v4046_v59  ;;  %v4053_v31 = vrot.slane %v4051_v63, 1  ;;  %v14018_v59 = vld [vmem:[#allocation37_spill] sm:$0xff] }
 0x223   : > { %14016 = vst [vmem:[#allocation10_spill] sm:$0xff] %v12674_v33  ;;  %v4030_v23 = vor.u32 %v4029_v56, %v4025_v14 }
 0x224   : > { %v8712_v46 = vpop.f32.mrb[124].mxu0  ;;  %v4034_v18 = vrot.slane %v4032_v57, 1  ;;  %v10954_v57 = vld [vmem:[%s11157_s8 + $0x18] sm:$0xff]  }
 0x225   : > { %v8713_v60 = vpop.f32.mrb[125].mxu0 }
 0x226   : > { %v8714_v9 = vadd.f32 %v8713_v60, %v8712_v46  ;;  %v8715_v2 = vpop.f32.mrb[126].mxu0  ;;  %v4056_v46 = vshll.u32 %v12668_v22, 16 }
 0x227   : > { %9723 = vmatmul.mubr.bf16.gmra.mrb[36].mxu1 %v14014_v37  ;;  %v8716_v7 = vpop.f32.mrb[127].mxu0  ;;  %v4049_v37 = vshrl.u32 %v12534_v43, 16 }
 0x228   : > { %9726 = vmatprep.mubr.bf16.mxu1 %v14015_v38  ;;  %v8717_v24 = vadd.f32 %v8716_v7, %v8715_v2  ;;  %v12677_v58 = vadd.f32 %v12366_v50, %v8714_v9  ;;  %v14017_v38 = vld [vmem:[#allocation9_spill] sm:$0xff]  ;;  %v14019_v9 = vld [vmem:[#allocation39_spill] sm:$0xff]  ;;  %v4058_v7 = vrot.slane %v4056_v46, 1 }
 0x229   : > { %4401 = vmatmul.mubr.bf16.gmra.mrb[232].mxu0 %v14017_v38  ;;  %v4054_v17 = vor.u32 %v4053_v31, %v4049_v37  ;;  %v12689_v38 = vsel %vm1131_vm0, %v4030_v23, %v4034_v18  ;;  %v10786_v23 = vld [vmem:[%s13693_s3 + $0x540] sm:$0xff]  }
 0x22a   : > { %4408 = vmatprep.mubr.bf16.mxu0 %v12674_v33  ;;  %v12684_v60 = vadd.f32 %v12375_v52, %v8717_v24 }
 0x22b   : > { %v12696_v52 = vsel %vm1131_vm0, %v4054_v17, %v4058_v7  ;;  %v10955_v17 = vld [vmem:[%s11176_s18 + $0x18] sm:$0xff]   ;;  %v10956_v7 = vld [vmem:[%s11157_s8 + $0x24] sm:$0xff]  }
 0x22c   : > { %v8718_v2 = vpop.f32.mrb[128].mxu0  ;;  %14020 = vst [vmem:[#allocation12_spill] sm:$0xff] %v12696_v52 }
 0x22d   : > { %v8719_v50 = vpop.f32.mrb[129].mxu0 }
 0x22e   : > { %v8720_v43 = vadd.f32 %v8719_v50, %v8718_v2  ;;  %v8721_v63 = vpop.f32.mrb[130].mxu0  ;;  %v10788_v2 = vld [vmem:[%s13693_s3 + $0x588] sm:$0xff]  }
 0x22f   : > { %9727 = vmatmul.mubr.bf16.gmra.mrb[40].mxu1 %v14018_v59  ;;  %v8722_v33 = vpop.f32.mrb[131].mxu0  ;;  %v10963_v59 = vld [vmem:[%s11176_s18 + $0x48] sm:$0xff]  }
 0x230   : > { %9730 = vmatprep.mubr.bf16.mxu1 %v14019_v9  ;;  %v8723_v14 = vadd.f32 %v8722_v33, %v8721_v63  ;;  %v12692_v56 = vadd.f32 %v12384_v36, %v8720_v43  ;;  %v14021_v33 = vld [vmem:[#allocation40_spill] sm:$0xff]  ;;  %v10787_v43 = vld [vmem:[%s13693_s3 + $0x448] sm:$0xff]  }
 0x231   : > { %4409 = vmatmul.mubr.bf16.gmra.mrb[236].mxu0 %v12689_v38  ;;  %v10789_v63 = vld [vmem:[%s13693_s3 + $0x548] sm:$0xff]  }
 0x232   : > { %5394 = vmatprep.mubr.bf16.mxu0 %v10954_v57  ;;  %v12700_v31 = vadd.f32 %v12391_v15, %v8723_v14  ;;  %v14022_v57 = vld [vmem:[#allocation41_spill] sm:$0xff] }
 0x234   : > { %v8724_v37 = vpop.f32.mrb[132].mxu0 }
 0x235   : > { %v8725_v24 = vpop.f32.mrb[133].mxu0 }
 0x236   : > { %v8726_v36 = vadd.f32 %v8725_v24, %v8724_v37  ;;  %v8727_v46 = vpop.f32.mrb[134].mxu0 }
 0x237   : > { %9731 = vmatmul.mubr.bf16.gmra.mrb[44].mxu1 %v12696_v52  ;;  %v8728_v18 = vpop.f32.mrb[135].mxu0  ;;  %v10806_v52 = vld [vmem:[%s13693_s3 + $0x5b8] sm:$0xff]  }
 0x238   : > { %4847 = vmatprep.mubr.bf16.mxu1 %v14021_v33  ;;  %v8729_v50 = vadd.f32 %v8728_v18, %v8727_v46  ;;  %v12711_v15 = vadd.f32 %v12409_v42, %v8726_v36  ;;  %v10791_v42 = vld [vmem:[%s13693_s3 + $0x590] sm:$0xff]   ;;  %v14023_v33 = vld [vmem:[#allocation42_spill] sm:$0xff] }
 0x239   : > { %5395 = vmatmul.mubr.bf16.vlgmr.msra.gmra.mrb[240].mxu0 %v10955_v17  ;;  %v10792_v18 = vld [vmem:[%s13693_s3 + $0x550] sm:$0xff]   ;;  %v10957_v17 = vld [vmem:[%s11176_s18 + $0x24] sm:$0xff]  }
 0x23a   : > { %9223 = vmatpush3.bf16.msra.mxu0 %v10786_v23  ;;  %5402 = vmatprep.mubr.bf16.mxu0 %v10956_v7  ;;  %v12722_v14 = vadd.f32 %v12417_v34, %v8729_v50  ;;  %v10790_v34 = vld [vmem:[%s13693_s3 + $0x450] sm:$0xff]  }
 0x23b   : > { %9224 = vmatprep.subr.bf16.mxu0 %v10788_v2  ;;  %v10958_v7 = vld [vmem:[%s11157_s8 + $0x30] sm:$0xff]  }
 0x23c   : > { %v8730_v37 = vpop.f32.mrb[136].mxu0 }
 0x23d   : > { %v8731_v24 = vpop.f32.mrb[137].mxu0 }
 0x23e   : > { %v8732_v36 = vadd.f32 %v8731_v24, %v8730_v37  ;;  %v8733_v46 = vpop.f32.mrb[138].mxu0  ;;  %9225 = vmatpush3.bf16.msra.mxu0 %v10789_v63  ;;  %v10793_v63 = vld [vmem:[%s13693_s3 + $0x458] sm:$0xff]  }
 0x23f   : > { %4848 = vmatmul.mubr.bf16.vlgmr.msra.gmra.mrb[112].mxu1 %v14022_v57  ;;  %v8734_v23 = vpop.f32.mrb[139].mxu0  ;;  %9226 = vmatprep.subr.bf16.mxu0 %v10791_v42  ;;  %v10795_v57 = vld [vmem:[%s13693_s3 + $0x558] sm:$0xff]  }
 0x240   : > { %9735 = vmatpush3.bf16.msra.mxu1 %v12634_v41  ;;  %4855 = vmatprep.mubr.bf16.mxu1 %v14023_v33  ;;  %v8735_v2 = vadd.f32 %v8734_v23, %v8733_v46  ;;  %v10794_v41 = vld [vmem:[%s13693_s3 + $0x598] sm:$0xff]   ;;  %v12740_v50 = vadd.f32 %v12438_v28, %v8732_v36  ;;  %v14024_v28 = vld [vmem:[#allocation43_spill] sm:$0xff]  ;;  %v14025_v36 = vld [vmem:[#allocation44_spill] sm:$0xff] }
 0x241   : > { %9736 = vmatprep.subr.bf16.mxu1 %v10787_v43  ;;  %5403 = vmatmul.mubr.bf16.gmra.mrb[244].mxu0 %v10957_v17  ;;  %v10796_v23 = vld [vmem:[%s13693_s3 + $0x460] sm:$0xff]   ;;  %v10800_v17 = vld [vmem:[%s13693_s3 + $0x5a8] sm:$0xff]  }
 0x242   : > { %5410 = vmatprep.mubr.bf16.mxu0 %v10958_v7  ;;  %v12748_v42 = vadd.f32 %v12445_v19, %v8735_v2  ;;  %9227 = vmatpush3.bf16.msra.mxu0 %v10792_v18  ;;  %v10798_v2 = vld [vmem:[%s13693_s3 + $0x560] sm:$0xff]   ;;  %v10959_v7 = vld [vmem:[%s11176_s18 + $0x30] sm:$0xff]  }
 0x243   : > { %9228 = vmatprep.subr.bf16.mxu0 %v10794_v41 }
 0x244   : > { %9737 = vmatpush3.bf16.msra.mxu1 %v10787_v43  ;;  %v8736_v37 = vpop.f32.mrb[140].mxu0  ;;  %v10797_v43 = vld [vmem:[%s13693_s3 + $0x5a0] sm:$0xff]  }
 0x245   : > { %9738 = vmatprep.subr.bf16.mxu1 %v10790_v34  ;;  %v8737_v24 = vpop.f32.mrb[141].mxu0 }
 0x246   : > { %v8738_v19 = vadd.f32 %v8737_v24, %v8736_v37  ;;  %v8739_v46 = vpop.f32.mrb[142].mxu0  ;;  %9229 = vmatpush3.bf16.msra.mxu0 %v10795_v57  ;;  %v10960_v37 = vld [vmem:[%s11157_s8 + $0x3c] sm:$0xff]   ;;  %v10799_v57 = vld [vmem:[%s13693_s3 + $0x468] sm:$0xff]  }
 0x247   : > { %4856 = vmatmul.mubr.bf16.gmra.mrb[116].mxu1 %v14024_v28  ;;  %v8740_v18 = vpop.f32.mrb[143].mxu0  ;;  %9230 = vmatprep.subr.bf16.mxu0 %v10797_v43  ;;  %v10801_v43 = vld [vmem:[%s13693_s3 + $0x568] sm:$0xff]  }
 0x248   : > { %4863 = vmatprep.mubr.bf16.mxu1 %v14025_v36  ;;  %9739 = vmatpush3.bf16.msra.mxu1 %v10790_v34  ;;  %v8741_v41 = vadd.f32 %v8740_v18, %v8739_v46  ;;  %v12768_v34 = vadd.f32 %v12466_v0, %v8738_v19  ;;  %v14026_v0 = vld [vmem:[#allocation45_spill] sm:$0xff]  ;;  %v14027_v18 = vld [vmem:[#allocation46_spill] sm:$0xff] }
 0x249   : > { %9740 = vmatprep.subr.bf16.mxu1 %v10793_v63  ;;  %5411 = vmatmul.mubr.bf16.gmra.mrb[248].mxu0 %v10959_v7 }
 0x24a   : > { %5418 = vmatprep.mubr.bf16.mxu0 %v10960_v37  ;;  %v12776_v24 = vadd.f32 %v12473_v27, %v8741_v41  ;;  %9231 = vmatpush3.bf16.msra.mxu0 %v10798_v2  ;;  %v10802_v41 = vld [vmem:[%s13693_s3 + $0x470] sm:$0xff]  }
 0x24b   : > { %9232 = vmatprep.subr.bf16.mxu0 %v10800_v17  ;;  %v10804_v17 = vld [vmem:[%s13693_s3 + $0x570] sm:$0xff]  }
 0x24c   : > { %9741 = vmatpush3.bf16.msra.mxu1 %v10793_v63  ;;  %v8742_v19 = vpop.f32.mrb[144].mxu0  ;;  %v10803_v63 = vld [vmem:[%s13693_s3 + $0x5b0] sm:$0xff]  }
 0x24d   : > { %9742 = vmatprep.subr.bf16.mxu1 %v10796_v23  ;;  %v8743_v46 = vpop.f32.mrb[145].mxu0 }
 0x24e   : > { %v8744_v27 = vadd.f32 %v8743_v46, %v8742_v19  ;;  %v8745_v2 = vpop.f32.mrb[146].mxu0  ;;  %9233 = vmatpush3.bf16.msra.mxu0 %v10801_v43  ;;  %v10961_v19 = vld [vmem:[%s11176_s18 + $0x3c] sm:$0xff]   ;;  %v10962_v46 = vld [vmem:[%s11157_s8 + $0x48] sm:$0xff]  }
 0x24f   : > { %4864 = vmatmul.mubr.bf16.gmra.mrb[120].mxu1 %v14026_v0  ;;  %v8746_v7 = vpop.f32.mrb[147].mxu0  ;;  %9234 = vmatprep.subr.bf16.mxu0 %v10803_v63  ;;  %v10805_v43 = vld [vmem:[%s13693_s3 + $0x478] sm:$0xff]  }
 0x250   : > { %4871 = vmatprep.mubr.bf16.mxu1 %v14027_v18  ;;  %9743 = vmatpush3.bf16.msra.mxu1 %v10796_v23  ;;  %v8747_v37 = vadd.f32 %v8746_v7, %v8745_v2  ;;  %v12796_v23 = vadd.f32 %v12494_v5, %v8744_v27  ;;  %v10807_v63 = vld [vmem:[%s13693_s3 + $0x578] sm:$0xff]   ;;  %v14028_v5 = vld [vmem:[#allocation47_spill] sm:$0xff] }
 0x251   : > { %9744 = vmatprep.subr.bf16.mxu1 %v10799_v57  ;;  %5419 = vmatmul.mubr.bf16.gmra.mrb[252].mxu0 %v10961_v19  ;;  %v14029_v19 = vld [vmem:[#allocation48_spill] sm:$0xff] }
 0x252   : > { %5426 = vmatprep.mubr.bf16.mxu0 %v10962_v46  ;;  %v12804_v2 = vadd.f32 %v12501_v39, %v8747_v37  ;;  %9235 = vmatpush3.bf16.msra.mxu0 %v10804_v17  ;;  %v12817_v37 = vld [vmem:[%s13693_s3 + $0x500] sm:$0xff]  }
 0x253   : > { %9236 = vmatprep.subr.bf16.mxu0 %v10806_v52 }
 0x254   : > { %9745 = vmatpush3.bf16.msra.mxu1 %v10799_v57  ;;  %v8748_v27 = vpop.f32.mrb[148].mxu0  ;;  %v10811_v57 = vld [vmem:[%s13693_s3 + $0x640] sm:$0xff]  }
 0x255   : > { %9746 = vmatprep.subr.bf16.mxu1 %v10802_v41  ;;  %v8749_v7 = vpop.f32.mrb[149].mxu0 }
 0x256   : > { %v8750_v39 = vadd.f32 %v8749_v7, %v8748_v27  ;;  %v8751_v17 = vpop.f32.mrb[150].mxu0  ;;  %9237 = vmatpush3.bf16.msra.mxu0 %v10807_v63  ;;  %v14030_v7 = vld [vmem:[#allocation49_spill] sm:$0xff] }
 0x257   : > { %4872 = vmatmul.mubr.bf16.gmra.mrb[124].mxu1 %v14028_v5  ;;  %v8752_v46 = vpop.f32.mrb[151].mxu0  ;;  %9358 = vmatprep.subr.bf16.mxu0 %v10811_v57  ;;  %v14031_v57 = vld [vmem:[#allocation50_spill] sm:$0xff] }
 0x258   : > { %4879 = vmatprep.mubr.bf16.mxu1 %v14029_v19  ;;  %9747 = vmatpush3.bf16.msra.mxu1 %v10802_v41  ;;  %v8753_v52 = vadd.f32 %v8752_v46, %v8751_v17  ;;  %v12820_v9 = vadd.f32 %v12507_v21, %v8750_v39  ;;  %v10964_v41 = vld [vmem:[%s11157_s8 + $0x54] sm:$0xff]  }
 0x259   : > { %9748 = vmatprep.subr.bf16.mxu1 %v10805_v43  ;;  %5427 = vmatmul.mubr.bf16.gmra.mrb[0].mxu0 %v10963_v59 }
 0x25a   : > { %5434 = vmatprep.mubr.bf16.mxu0 %v10964_v41  ;;  %v12826_v27 = vadd.f32 %v12511_v54, %v8753_v52  ;;  %v10966_v41 = vld [vmem:[%s11157_s8 + $0x60] sm:$0xff]   ;;  %v14032_v52 = vld [vmem:[#allocation51_spill] sm:$0xff] }
 0x25c   : > { %9749 = vmatpush3.bf16.msra.mxu1 %v10805_v43  ;;  %v8754_v63 = vpop.f32.mrb[152].mxu0  ;;  %v10965_v43 = vld [vmem:[%s11176_s18 + $0x54] sm:$0xff]  }
 0x25d   : > { %9782 = vmatprep.subr.bf16.mxu1 %v12817_v37  ;;  %v8755_v17 = vpop.f32.mrb[153].mxu0 }
 0x25e   : > { %v8756_v21 = vadd.f32 %v8755_v17, %v8754_v63  ;;  %v8757_v39 = vpop.f32.mrb[154].mxu0  ;;  %v14033_v63 = vld [vmem:[#allocation52_spill] sm:$0xff] }
 0x25f   : > { %4880 = vmatmul.mubr.bf16.gmra.mrb[128].mxu1 %v14030_v7  ;;  %v8758_v46 = vpop.f32.mrb[155].mxu0 }
 0x260   : > { %4887 = vmatprep.mubr.bf16.mxu1 %v14031_v57  ;;  %v8759_v19 = vadd.f32 %v8758_v46, %v8757_v39  ;;  %v12831_v59 = vadd.f32 %v12517_v45, %v8756_v21  ;;  %v10967_v21 = vld [vmem:[%s11176_s18 + $0x60] sm:$0xff]  }
 0x261   : > { %5435 = vmatmul.mubr.bf16.gmra.mrb[4].mxu0 %v10965_v43  ;;  %v10968_v43 = vld [vmem:[%s11157_s8 + $0x6c] sm:$0xff]  }
 0x262   : > { %5442 = vmatprep.mubr.bf16.mxu0 %v10966_v41  ;;  %v12836_v54 = vadd.f32 %v12521_v40, %v8759_v19  ;;  %v14034_v19 = vld [vmem:[#allocation53_spill] sm:$0xff] }
 0x264   : > { %v8760_v7 = vpop.f32.mrb[156].mxu0 }
 0x265   : > { %v8761_v57 = vpop.f32.mrb[157].mxu0 }
 0x266   : > { %v8762_v17 = vadd.f32 %v8761_v57, %v8760_v7  ;;  %v8763_v39 = vpop.f32.mrb[158].mxu0  ;;  %v14035_v7 = vld [vmem:[#allocation54_spill] sm:$0xff] }
 0x267   : > { %4888 = vmatmul.mubr.bf16.gmra.mrb[132].mxu1 %v14032_v52  ;;  %v8764_v46 = vpop.f32.mrb[159].mxu0 }
 0x268   : > { %4895 = vmatprep.mubr.bf16.mxu1 %v14033_v63  ;;  %v8765_v5 = vadd.f32 %v8764_v46, %v8763_v39  ;;  %v12841_v45 = vadd.f32 %v12527_v6, %v8762_v17  ;;  %v10969_v17 = vld [vmem:[%s11176_s18 + $0x6c] sm:$0xff]  }
 0x269   : > { %5443 = vmatmul.mubr.bf16.gmra.mrb[8].mxu0 %v10967_v21  ;;  %v10970_v21 = vld [vmem:[%s11157_s8 + $0x78] sm:$0xff]  }
 0x26a   : > { %5450 = vmatprep.mubr.bf16.mxu0 %v10968_v43  ;;  %v12846_v40 = vadd.f32 %v12531_v44, %v8765_v5  ;;  %v14036_v5 = vld [vmem:[#allocation55_spill] sm:$0xff] }
 0x26c   : > { %v8766_v41 = vpop.f32.mrb[160].mxu0 }
 0x26d   : > { %v8767_v63 = vpop.f32.mrb[161].mxu0 }
 0x26e   : > { %v8768_v57 = vadd.f32 %v8767_v63, %v8766_v41  ;;  %v8769_v39 = vpop.f32.mrb[162].mxu0  ;;  %v14037_v63 = vld [vmem:[#allocation56_spill] sm:$0xff] }
 0x26f   : > { %4896 = vmatmul.mubr.bf16.gmra.mrb[136].mxu1 %v14034_v19  ;;  %v8770_v46 = vpop.f32.mrb[163].mxu0 }
 0x270   : > { %4903 = vmatprep.mubr.bf16.mxu1 %v14035_v7  ;;  %v8771_v52 = vadd.f32 %v8770_v46, %v8769_v39  ;;  %v12851_v6 = vadd.f32 %v12540_v10, %v8768_v57  ;;  %v10971_v57 = vld [vmem:[%s11176_s18 + $0x78] sm:$0xff]  }
 0x271   : > { %5451 = vmatmul.mubr.bf16.gmra.mrb[12].mxu0 %v10969_v17  ;;  %v10972_v17 = vld [vmem:[%s11157_s8 + $0x84] sm:$0xff]  }
 0x272   : > { %5458 = vmatprep.mubr.bf16.mxu0 %v10970_v21  ;;  %v12856_v44 = vadd.f32 %v12544_v3, %v8771_v52  ;;  %v14038_v52 = vld [vmem:[#allocation58_spill] sm:$0xff] }
 0x274   : > { %v8772_v43 = vpop.f32.mrb[164].mxu0 }
 0x275   : > { %v8773_v7 = vpop.f32.mrb[165].mxu0 }
 0x276   : > { %v8774_v41 = vadd.f32 %v8773_v7, %v8772_v43  ;;  %v8775_v39 = vpop.f32.mrb[166].mxu0  ;;  %v14039_v7 = vld [vmem:[#allocation60_spill] sm:$0xff] }
 0x277   : > { %4904 = vmatmul.mubr.bf16.gmra.mrb[140].mxu1 %v14036_v5  ;;  %v8776_v46 = vpop.f32.mrb[167].mxu0 }
 0x278   : > { %4911 = vmatprep.mubr.bf16.mxu1 %v14037_v63  ;;  %v8777_v19 = vadd.f32 %v8776_v46, %v8775_v39  ;;  %v12861_v10 = vadd.f32 %v12556_v47, %v8774_v41  ;;  %v10973_v41 = vld [vmem:[%s11176_s18 + $0x84] sm:$0xff]  }
 0x279   : > { %5459 = vmatmul.mubr.bf16.gmra.mrb[16].mxu0 %v10971_v57  ;;  %v10974_v57 = vld [vmem:[%s11157_s8 + $0x90] sm:$0xff]  }
 0x27a   : > { %5466 = vmatprep.mubr.bf16.mxu0 %v10972_v17  ;;  %v12866_v3 = vadd.f32 %v12566_v12, %v8777_v19  ;;  %v14040_v19 = vld [vmem:[#allocation61_spill] sm:$0xff] }
 0x27c   : > { %v8778_v21 = vpop.f32.mrb[168].mxu0 }
 0x27d   : > { %v8779_v63 = vpop.f32.mrb[169].mxu0 }
 0x27e   : > { %v8780_v43 = vadd.f32 %v8779_v63, %v8778_v21  ;;  %v8781_v39 = vpop.f32.mrb[170].mxu0  ;;  %v14041_v63 = vld [vmem:[#allocation62_spill] sm:$0xff] }
 0x27f   : > { %4912 = vmatmul.mubr.bf16.gmra.mrb[144].mxu1 %v14038_v52  ;;  %v8782_v46 = vpop.f32.mrb[171].mxu0 }
 0x280   : > { %4919 = vmatprep.mubr.bf16.mxu1 %v14039_v7  ;;  %v8783_v5 = vadd.f32 %v8782_v46, %v8781_v39  ;;  %v12871_v47 = vadd.f32 %v12578_v55, %v8780_v43  ;;  %v10975_v43 = vld [vmem:[%s11176_s18 + $0x90] sm:$0xff]  }
 0x281   : > { %5467 = vmatmul.mubr.bf16.gmra.mrb[20].mxu0 %v10973_v41  ;;  %v10976_v41 = vld [vmem:[%s11157_s8 + $0x9c] sm:$0xff]  }
 0x282   : > { %5474 = vmatprep.mubr.bf16.mxu0 %v10974_v57  ;;  %v12876_v12 = vadd.f32 %v12588_v8, %v8783_v5  ;;  %v14042_v5 = vld [vmem:[#allocation65_spill] sm:$0xff] }
 0x284   : > { %v8784_v17 = vpop.f32.mrb[172].mxu0 }
 0x285   : > { %v8785_v7 = vpop.f32.mrb[173].mxu0 }
 0x286   : > { %v8786_v21 = vadd.f32 %v8785_v7, %v8784_v17  ;;  %v8787_v39 = vpop.f32.mrb[174].mxu0  ;;  %v14043_v7 = vld [vmem:[#allocation66_spill] sm:$0xff] }
 0x287   : > { %4920 = vmatmul.mubr.bf16.gmra.mrb[148].mxu1 %v14040_v19  ;;  %v8788_v46 = vpop.f32.mrb[175].mxu0 }
 0x288   : > { %4927 = vmatprep.mubr.bf16.mxu1 %v14041_v63  ;;  %v8789_v52 = vadd.f32 %v8788_v46, %v8787_v39  ;;  %v12881_v55 = vadd.f32 %v12600_v35, %v8786_v21 }
 0x289   : > { %5475 = vmatmul.mubr.bf16.gmra.mrb[24].mxu0 %v10975_v43  ;;  %v10977_v43 = vld [vmem:[%s11176_s18 + $0x9c] sm:$0xff]  }
 0x28a   : > { %5482 = vmatprep.mubr.bf16.mxu0 %v10976_v41  ;;  %v12886_v8 = vadd.f32 %v12610_v11, %v8789_v52  ;;  %v10978_v52 = vld [vmem:[%s11157_s8 + $0xa8] sm:$0xff]   ;;  %v14044_v41 = vld [vmem:[#allocation68_spill] sm:$0xff] }
 0x28c   : > { %v8830_v57 = vpop.f32.mrb[176].mxu0 }
 0x28d   : > { %v8831_v63 = vpop.f32.mrb[177].mxu0 }
 0x28e   : > { %v8832_v17 = vadd.f32 %v8831_v63, %v8830_v57  ;;  %v8833_v39 = vpop.f32.mrb[178].mxu0  ;;  %v14045_v63 = vld [vmem:[#allocation69_spill] sm:$0xff] }
 0x28f   : > { %4928 = vmatmul.mubr.bf16.gmra.mrb[152].mxu1 %v14042_v5  ;;  %v8834_v46 = vpop.f32.mrb[179].mxu0 }
 0x290   : > { %4935 = vmatprep.mubr.bf16.mxu1 %v14043_v7  ;;  %v12891_v35 = vadd.f32 %v12613_v51, %v8832_v17  ;;  %v8835_v21 = vadd.f32 %v8834_v46, %v8833_v39  ;;  %v10979_v46 = vld [vmem:[%s11176_s18 + $0xa8] sm:$0xff]  }
 0x291   : > { %5483 = vmatmul.mubr.bf16.gmra.mrb[28].mxu0 %v10977_v43  ;;  %v14046_v43 = vld [vmem:[#allocation71_spill] sm:$0xff] }
 0x292   : > { %v12895_v11 = vadd.f32 %v12624_v13, %v8835_v21  ;;  %5490 = vmatprep.mubr.bf16.mxu0 %v10978_v52  ;;  %v10980_v21 = vld [vmem:[%s11157_s8 + $0xb4] sm:$0xff]  }
 0x294   : > { %v8836_v5 = vpop.f32.mrb[180].mxu0 }
 0x295   : > { %v8837_v7 = vpop.f32.mrb[181].mxu0 }
 0x296   : > { %v8838_v57 = vadd.f32 %v8837_v7, %v8836_v5  ;;  %v8839_v19 = vpop.f32.mrb[182].mxu0  ;;  %v14047_v5 = vld [vmem:[#allocation72_spill] sm:$0xff] }
 0x297   : > { %4936 = vmatmul.mubr.bf16.gmra.mrb[156].mxu1 %v14044_v41  ;;  %v8840_v51 = vpop.f32.mrb[183].mxu0 }
 0x298   : > { %4943 = vmatprep.mubr.bf16.mxu1 %v14045_v63  ;;  %v12901_v17 = vadd.f32 %v12637_v29, %v8838_v57  ;;  %v8841_v39 = vadd.f32 %v8840_v51, %v8839_v19  ;;  %v10981_v51 = vld [vmem:[%s11176_s18 + $0xb4] sm:$0xff]  }
 0x299   : > { %5491 = vmatmul.mubr.bf16.gmra.mrb[32].mxu0 %v10979_v46  ;;  %v14048_v46 = vld [vmem:[#allocation75_spill] sm:$0xff] }
 0x29a   : > { %v12905_v13 = vadd.f32 %v12643_v20, %v8841_v39  ;;  %5498 = vmatprep.mubr.bf16.mxu0 %v10980_v21  ;;  %v10982_v39 = vld [vmem:[%s11157_s8 + $0xc0] sm:$0xff]  }
 0x29b   : > { %v4613_v18 = vrot.slane %v10982_v39, 1 }
 0x29c   : > { %v8842_v52 = vpop.f32.mrb[184].mxu0 }
 0x29d   : > { %v8843_v63 = vpop.f32.mrb[185].mxu0 }
 0x29e   : > { %v8844_v7 = vadd.f32 %v8843_v63, %v8842_v52  ;;  %v8845_v41 = vpop.f32.mrb[186].mxu0  ;;  %v14049_v63 = vld [vmem:[#allocation76_spill] sm:$0xff] }
 0x29f   : > { %4944 = vmatmul.mubr.bf16.gmra.mrb[160].mxu1 %v14046_v43  ;;  %v8846_v29 = vpop.f32.mrb[187].mxu0 }
 0x2a0   : > { %4951 = vmatprep.mubr.bf16.mxu1 %v14047_v5  ;;  %v12911_v19 = vadd.f32 %v12654_v62, %v8844_v7  ;;  %v8847_v57 = vadd.f32 %v8846_v29, %v8845_v41  ;;  %v4614_v62 = vrot.slane %v12646_v25, 1  ;;  %v12922_v41 = vld [vmem:[%s11157_s8 + $0xcc] sm:$0xff]  }
 0x2a1   : > { %5499 = vmatmul.mubr.bf16.gmra.mrb[36].mxu0 %v10981_v51 }
 0x2a2   : > { %v12915_v20 = vadd.f32 %v12663_v61, %v8847_v57  ;;  %5506 = vmatprep.mubr.bf16.mxu0 %v10982_v39  ;;  %v10983_v57 = vld [vmem:[%s11176_s18 + $0xc0] sm:$0xff]  }
 0x2a4   : > { %v8848_v21 = vpop.f32.mrb[188].mxu0 }
 0x2a5   : > { %v8849_v5 = vpop.f32.mrb[189].mxu0 }
 0x2a6   : > { %v8850_v52 = vadd.f32 %v8849_v5, %v8848_v21  ;;  %v8851_v43 = vpop.f32.mrb[190].mxu0  ;;  %v14051_v5 = vld [vmem:[#allocation77_spill] sm:$0xff]  ;;  %v4610_v21 = vrot.slane %v10983_v57, 1 }
 0x2a7   : > { %4952 = vmatmul.mubr.bf16.gmra.mrb[164].mxu1 %v14048_v46  ;;  %v8852_v7 = vpop.f32.mrb[191].mxu0 }
 0x2a8   : > { %4959 = vmatprep.mubr.bf16.mxu1 %v14049_v63  ;;  %v12925_v61 = vadd.f32 %v12677_v58, %v8850_v52  ;;  %v8853_v29 = vadd.f32 %v8852_v7, %v8851_v43  ;;  %v12932_v63 = vsel %vm2737_vm1, %v4613_v18, %v4614_v62  ;;  %v4611_v58 = vrot.slane %v12659_v1, 1  ;;  %v12939_v43 = vld [vmem:[%s11176_s18 + $0xcc] sm:$0xff]  }
 0x2a9   : > { %5507 = vmatmul.mubr.bf16.gmra.mrb[40].mxu0 %v10983_v57  ;;  %14050 = vst [vmem:[#allocation78_spill] sm:$0xff] %v12932_v63 }
 0x2aa   : > { %v12929_v51 = vadd.f32 %v12684_v60, %v8853_v29  ;;  %5514 = vmatprep.mubr.bf16.mxu0 %v12922_v41  ;;  %v12945_v62 = vsel %vm2737_vm1, %v4610_v21, %v4611_v58  ;;  %v10812_v21 = vld [vmem:[%s13693_s3 + $0x600] sm:$0xff]  }
 0x2ab   : > { %14052 = vst [vmem:[#allocation79_spill] sm:$0xff] %v12945_v62 }
 0x2ac   : > { %v8854_v25 = vpop.f32.mrb[192].mxu0 }
 0x2ad   : > { %v8855_v39 = vpop.f32.mrb[193].mxu0 }
 0x2ae   : > { %v8856_v52 = vadd.f32 %v8855_v39, %v8854_v25  ;;  %v8857_v7 = vpop.f32.mrb[194].mxu0  ;;  %v14053_v25 = vld [vmem:[#allocation83_spill] sm:$0xff] }
 0x2af   : > { %4960 = vmatmul.mubr.bf16.gmra.mrb[168].mxu1 %v14051_v5  ;;  %v8858_v60 = vpop.f32.mrb[195].mxu0 }
 0x2b0   : > { %4967 = vmatprep.mubr.bf16.mxu1 %v12932_v63  ;;  %v12942_v29 = vadd.f32 %v12692_v56, %v8856_v52  ;;  %v8859_v18 = vadd.f32 %v8858_v60, %v8857_v7  ;;  %v10813_v60 = vld [vmem:[%s13693_s3 + $0x508] sm:$0xff]   ;;  %v14066_v63 = vld [vmem:[#allocation96_spill] sm:$0xff] }
 0x2b1   : > { %5515 = vmatmul.mubr.bf16.gmra.mrb[44].mxu0 %v12939_v43 }
 0x2b2   : > { %v12949_v5 = vadd.f32 %v12700_v31, %v8859_v18  ;;  %5980 = vmatprep.mubr.bf16.mxu0 %v11268_v53  ;;  %v10815_v31 = vld [vmem:[%s13693_s3 + $0x648] sm:$0xff]  }
 0x2b3   : > { %v10816_v18 = vld [vmem:[%s13693_s3 + $0x608] sm:$0xff]  }
 0x2b4   : > { %v8860_v1 = vpop.f32.mrb[196].mxu0 }
 0x2b5   : > { %v8861_v57 = vpop.f32.mrb[197].mxu0 }
 0x2b6   : > { %v8862_v39 = vadd.f32 %v8861_v57, %v8860_v1  ;;  %v8863_v56 = vpop.f32.mrb[198].mxu0 }
 0x2b7   : > { %4968 = vmatmul.mubr.bf16.gmra.mrb[172].mxu1 %v12945_v62  ;;  %v8864_v58 = vpop.f32.mrb[199].mxu0 }
 0x2b8   : > { %9750 = vmatprep.mubr.bf16.mxu1 %v14053_v25  ;;  %v12961_v52 = vadd.f32 %v12711_v15, %v8862_v39  ;;  %v8865_v53 = vadd.f32 %v8864_v58, %v8863_v56  ;;  %v10819_v15 = vld [vmem:[%s13693_s3 + $0x650] sm:$0xff]  }
 0x2b9   : > { %5981 = vmatmul.mubr.bf16.vlgmr.msra.gmra.mrb[48].mxu0 %v11283_v4  ;;  %v14054_v4 = vld [vmem:[#allocation85_spill] sm:$0xff]  ;;  %v10814_v39 = vld [vmem:[%s13693_s3 + $0x510] sm:$0xff]  }
 0x2ba   : > { %v12965_v7 = vadd.f32 %v12722_v14, %v8865_v53  ;;  %9359 = vmatpush3.bf16.msra.mxu0 %v10812_v21  ;;  %5988 = vmatprep.mubr.bf16.mxu0 %v11299_v32  ;;  %v14055_v32 = vld [vmem:[#allocation86_spill] sm:$0xff]  ;;  %v10820_v21 = vld [vmem:[%s13693_s3 + $0x610] sm:$0xff]  }
 0x2bb   : > { %9360 = vmatprep.subr.bf16.mxu0 %v10815_v31  ;;  %v10823_v31 = vld [vmem:[%s13693_s3 + $0x658] sm:$0xff]  }
 0x2bc   : > { %v8866_v14 = vpop.f32.mrb[200].mxu0 }
 0x2bd   : > { %v8867_v1 = vpop.f32.mrb[201].mxu0 }
 0x2be   : > { %v8868_v57 = vadd.f32 %v8867_v1, %v8866_v14  ;;  %v8869_v25 = vpop.f32.mrb[202].mxu0  ;;  %9361 = vmatpush3.bf16.msra.mxu0 %v10816_v18  ;;  %v10817_v18 = vld [vmem:[%s13693_s3 + $0x518] sm:$0xff]  }
 0x2bf   : > { %9751 = vmatmul.mubr.bf16.vlgmr.msra.gmra.mrb[16].mxu1 %v14054_v4  ;;  %v8870_v56 = vpop.f32.mrb[203].mxu0  ;;  %9362 = vmatprep.subr.bf16.mxu0 %v10819_v15  ;;  %v14056_v15 = vld [vmem:[#allocation87_spill] sm:$0xff] }
 0x2c0   : > { %9783 = vmatpush3.bf16.msra.mxu1 %v12817_v37  ;;  %9754 = vmatprep.mubr.bf16.mxu1 %v14055_v32  ;;  %v12987_v58 = vadd.f32 %v12740_v50, %v8868_v57  ;;  %v8871_v37 = vadd.f32 %v8870_v56, %v8869_v25  ;;  %v10824_v50 = vld [vmem:[%s13693_s3 + $0x618] sm:$0xff]   ;;  %v10818_v57 = vld [vmem:[%s13693_s3 + $0x520] sm:$0xff]  }
 0x2c1   : > { %9784 = vmatprep.subr.bf16.mxu1 %v10813_v60  ;;  %5989 = vmatmul.mubr.bf16.gmra.mrb[52].mxu0 %v11317_v48  ;;  %v10827_v48 = vld [vmem:[%s13693_s3 + $0x660] sm:$0xff]  }
 0x2c2   : > { %v12994_v53 = vadd.f32 %v12748_v42, %v8871_v37  ;;  %5996 = vmatprep.mubr.bf16.mxu0 %v11346_v16  ;;  %9363 = vmatpush3.bf16.msra.mxu0 %v10820_v21  ;;  %v14057_v16 = vld [vmem:[#allocation90_spill] sm:$0xff] }
 0x2c3   : > { %9364 = vmatprep.subr.bf16.mxu0 %v10823_v31  ;;  %v10828_v56 = vld [vmem:[%s13693_s3 + $0x620] sm:$0xff]  }
 0x2c4   : > { %9785 = vmatpush3.bf16.msra.mxu1 %v10813_v60  ;;  %v8872_v14 = vpop.f32.mrb[204].mxu0 }
 0x2c5   : > { %9786 = vmatprep.subr.bf16.mxu1 %v10814_v39  ;;  %v8873_v42 = vpop.f32.mrb[205].mxu0 }
 0x2c6   : > { %v8874_v60 = vadd.f32 %v8873_v42, %v8872_v14  ;;  %v8875_v1 = vpop.f32.mrb[206].mxu0  ;;  %9365 = vmatpush3.bf16.msra.mxu0 %v10824_v50  ;;  %v10832_v50 = vld [vmem:[%s13693_s3 + $0x628] sm:$0xff]   ;;  %v10822_v42 = vld [vmem:[%s13693_s3 + $0x530] sm:$0xff]  }
 0x2c7   : > { %9755 = vmatmul.mubr.bf16.gmra.mrb[20].mxu1 %v14056_v15  ;;  %v8876_v25 = vpop.f32.mrb[207].mxu0  ;;  %9366 = vmatprep.subr.bf16.mxu0 %v10827_v48  ;;  %v14058_v14 = vld [vmem:[#allocation91_spill] sm:$0xff] }
 0x2c8   : > { %9758 = vmatprep.mubr.bf16.mxu1 %v14057_v16  ;;  %9787 = vmatpush3.bf16.msra.mxu1 %v10814_v39  ;;  %v13015_v21 = vadd.f32 %v12768_v34, %v8874_v60  ;;  %v8877_v37 = vadd.f32 %v8876_v25, %v8875_v1  ;;  %v10831_v39 = vld [vmem:[%s13693_s3 + $0x668] sm:$0xff]   ;;  %v10836_v1 = vld [vmem:[%s13693_s3 + $0x630] sm:$0xff]  }
 0x2c9   : > { %9788 = vmatprep.subr.bf16.mxu1 %v10817_v18  ;;  %5997 = vmatmul.mubr.bf16.gmra.mrb[56].mxu0 %v13965_v30  ;;  %v10821_v34 = vld [vmem:[%s13693_s3 + $0x528] sm:$0xff]   ;;  %v10835_v30 = vld [vmem:[%s13693_s3 + $0x670] sm:$0xff]  }
 0x2ca   : > { %v13022_v31 = vadd.f32 %v12776_v24, %v8877_v37  ;;  %6004 = vmatprep.mubr.bf16.mxu0 %v13966_v49  ;;  %9367 = vmatpush3.bf16.msra.mxu0 %v10828_v56  ;;  %v14059_v37 = vld [vmem:[#allocation14_spill] sm:$0xff] }
 0x2cb   : > { %9368 = vmatprep.subr.bf16.mxu0 %v10831_v39 }
 0x2cc   : > { %9789 = vmatpush3.bf16.msra.mxu1 %v10817_v18  ;;  %v8878_v48 = vpop.f32.mrb[208].mxu0 }
 0x2cd   : > { %9790 = vmatprep.subr.bf16.mxu1 %v10818_v57  ;;  %v8879_v24 = vpop.f32.mrb[209].mxu0 }
 0x2ce   : > { %v8880_v49 = vadd.f32 %v8879_v24, %v8878_v48  ;;  %v8881_v18 = vpop.f32.mrb[210].mxu0  ;;  %9369 = vmatpush3.bf16.msra.mxu0 %v10832_v50  ;;  %v14060_v50 = vld [vmem:[#allocation16_spill] sm:$0xff]  ;;  %v10840_v48 = vld [vmem:[%s13693_s3 + $0x638] sm:$0xff]  }
 0x2cf   : > { %9759 = vmatmul.mubr.bf16.gmra.mrb[24].mxu1 %v14058_v14  ;;  %v8882_v60 = vpop.f32.mrb[211].mxu0  ;;  %9370 = vmatprep.subr.bf16.mxu0 %v10835_v30  ;;  %v14061_v30 = vld [vmem:[#allocation93_spill] sm:$0xff] }
 0x2d0   : > { %9762 = vmatprep.mubr.bf16.mxu1 %v12285_v26  ;;  %9791 = vmatpush3.bf16.msra.mxu1 %v10818_v57  ;;  %v13043_v25 = vadd.f32 %v12796_v23, %v8880_v49  ;;  %v8883_v56 = vadd.f32 %v8882_v60, %v8881_v18  ;;  %v10839_v57 = vld [vmem:[%s13693_s3 + $0x678] sm:$0xff]   ;;  %v14062_v49 = vld [vmem:[#allocation94_spill] sm:$0xff] }
 0x2d1   : > { %9792 = vmatprep.subr.bf16.mxu1 %v10821_v34  ;;  %6005 = vmatmul.mubr.bf16.gmra.mrb[60].mxu0 %v14059_v37  ;;  %v10825_v23 = vld [vmem:[%s13693_s3 + $0x538] sm:$0xff]   ;;  %v13064_v60 = vld [vmem:[%s13693_s3 + $0x5c0] sm:$0xff]  }
 0x2d2   : > { %v13050_v39 = vadd.f32 %v12804_v2, %v8883_v56  ;;  %6012 = vmatprep.mubr.bf16.mxu0 %v14060_v50  ;;  %9371 = vmatpush3.bf16.msra.mxu0 %v10836_v1  ;;  %v14063_v50 = vld [vmem:[#allocation18_spill] sm:$0xff] }
 0x2d3   : > { %9372 = vmatprep.subr.bf16.mxu0 %v10839_v57 }
 0x2d4   : > { %9793 = vmatpush3.bf16.msra.mxu1 %v10821_v34  ;;  %v8884_v24 = vpop.f32.mrb[212].mxu0 }
 0x2d5   : > { %9794 = vmatprep.subr.bf16.mxu1 %v10822_v42  ;;  %v8885_v34 = vpop.f32.mrb[213].mxu0 }
 0x2d6   : > { %v8886_v2 = vadd.f32 %v8885_v34, %v8884_v24  ;;  %v8887_v18 = vpop.f32.mrb[214].mxu0  ;;  %9373 = vmatpush3.bf16.msra.mxu0 %v10840_v48  ;;  %v14065_v24 = vld [vmem:[#allocation95_spill] sm:$0xff] }
 0x2d7   : > { %9763 = vmatmul.mubr.bf16.gmra.mrb[28].mxu1 %v14061_v30  ;;  %v8888_v1 = vpop.f32.mrb[215].mxu0 }
 0x2d8   : > { %9766 = vmatprep.mubr.bf16.mxu1 %v14062_v49  ;;  %9795 = vmatpush3.bf16.msra.mxu1 %v10822_v42  ;;  %v13067_v56 = vadd.f32 %v12820_v9, %v8886_v2  ;;  %v8889_v37 = vadd.f32 %v8888_v1, %v8887_v18  ;;  %v14064_v42 = vld [vmem:[#allocation20_spill] sm:$0xff]  ;;  %v14067_v1 = vld [vmem:[#allocation22_spill] sm:$0xff] }
 0x2d9   : > { %9796 = vmatprep.subr.bf16.mxu1 %v10825_v23  ;;  %6013 = vmatmul.mubr.bf16.gmra.mrb[64].mxu0 %v14063_v50  ;;  %v14069_v50 = vld [vmem:[#allocation97_spill] sm:$0xff]  ;;  %v10992_v49 = vld [vmem:[%s11336_s9 + $0x6c] sm:$0xff]  }
 0x2da   : > { %v13071_v57 = vadd.f32 %v12826_v27, %v8889_v37  ;;  %6020 = vmatprep.mubr.bf16.mxu0 %v14064_v42  ;;  %v14068_v37 = vld [vmem:[#allocation24_spill] sm:$0xff] }
 0x2dc   : > { %9797 = vmatpush3.bf16.msra.mxu1 %v10825_v23  ;;  %v8890_v34 = vpop.f32.mrb[216].mxu0 }
 0x2dd   : > { %9830 = vmatprep.subr.bf16.mxu1 %v13064_v60  ;;  %v8891_v62 = vpop.f32.mrb[217].mxu0 }
 0x2de   : > { %v8892_v48 = vadd.f32 %v8891_v62, %v8890_v34  ;;  %v8893_v9 = vpop.f32.mrb[218].mxu0 }
 0x2df   : > { %9767 = vmatmul.mubr.bf16.gmra.mrb[32].mxu1 %v14065_v24  ;;  %v8894_v2 = vpop.f32.mrb[219].mxu0 }
 0x2e0   : > { %9770 = vmatprep.mubr.bf16.mxu1 %v14066_v63  ;;  %v13078_v18 = vadd.f32 %v12831_v59, %v8892_v48  ;;  %v8895_v23 = vadd.f32 %v8894_v2, %v8893_v9  ;;  %v14070_v63 = vld [vmem:[#allocation98_spill] sm:$0xff]  ;;  %v14072_v2 = vld [vmem:[#allocation28_spill] sm:$0xff] }
 0x2e1   : > { %6021 = vmatmul.mubr.bf16.gmra.mrb[68].mxu0 %v14067_v1  ;;  %v14071_v9 = vld [vmem:[#allocation26_spill] sm:$0xff] }
 0x2e2   : > { %v13082_v27 = vadd.f32 %v12836_v54, %v8895_v23  ;;  %6028 = vmatprep.mubr.bf16.mxu0 %v14068_v37  ;;  %v14073_v23 = vld [vmem:[#allocation99_spill] sm:$0xff] }
 0x2e4   : > { %v8896_v42 = vpop.f32.mrb[220].mxu0 }
 0x2e5   : > { %v8897_v46 = vpop.f32.mrb[221].mxu0 }
 0x2e6   : > { %v8898_v62 = vadd.f32 %v8897_v46, %v8896_v42  ;;  %v8899_v34 = vpop.f32.mrb[222].mxu0  ;;  %v13098_v46 = vld [vmem:[%s11336_s9 + $0xc0] sm:$0xff]  }
 0x2e7   : > { %9771 = vmatmul.mubr.bf16.gmra.mrb[36].mxu1 %v14069_v50  ;;  %v8900_v24 = vpop.f32.mrb[223].mxu0  ;;  %v14074_v50 = vld [vmem:[#allocation100_spill] sm:$0xff] }
 0x2e8   : > { %9774 = vmatprep.mubr.bf16.mxu1 %v14070_v63  ;;  %v13088_v59 = vadd.f32 %v12841_v45, %v8898_v62  ;;  %v8901_v48 = vadd.f32 %v8900_v24, %v8899_v34  ;;  %v4616_v45 = vrot.slane %v13098_v46, 1  ;;  %v4617_v24 = vrot.slane %v12668_v22, 1 }
 0x2e9   : > { %6029 = vmatmul.mubr.bf16.gmra.mrb[72].mxu0 %v14071_v9 }
 0x2ea   : > { %v13092_v54 = vadd.f32 %v12846_v40, %v8901_v48  ;;  %6036 = vmatprep.mubr.bf16.mxu0 %v14072_v2  ;;  %v13106_v9 = vsel %vm2737_vm1, %v4616_v45, %v4617_v24  ;;  %v14076_v2 = vld [vmem:[#allocation30_spill] sm:$0xff] }
 0x2eb   : > { %14075 = vst [vmem:[#allocation80_spill] sm:$0xff] %v13106_v9 }
 0x2ec   : > { %v8902_v1 = vpop.f32.mrb[224].mxu0 }
 0x2ed   : > { %v8903_v37 = vpop.f32.mrb[225].mxu0 }
 0x2ee   : > { %v8904_v42 = vadd.f32 %v8903_v37, %v8902_v1  ;;  %v8905_v62 = vpop.f32.mrb[226].mxu0  ;;  %v10985_v37 = vld [vmem:[%s11336_s9 + $0x18] sm:$0xff]  }
 0x2ef   : > { %9775 = vmatmul.mubr.bf16.gmra.mrb[40].mxu1 %v14073_v23  ;;  %v8906_v34 = vpop.f32.mrb[227].mxu0  ;;  %v14077_v23 = vld [vmem:[#allocation32_spill] sm:$0xff] }
 0x2f0   : > { %9778 = vmatprep.mubr.bf16.mxu1 %v14074_v50  ;;  %v13103_v40 = vadd.f32 %v12851_v6, %v8904_v42  ;;  %v8907_v48 = vadd.f32 %v8906_v34, %v8905_v62  ;;  %v14078_v34 = vld [vmem:[#allocation34_spill] sm:$0xff] }
 0x2f1   : > { %6037 = vmatmul.mubr.bf16.gmra.mrb[76].mxu0 %v14076_v2  ;;  %v10986_v2 = vld [vmem:[%s11336_s9 + $0x24] sm:$0xff]  }
 0x2f2   : > { %v13110_v50 = vadd.f32 %v12856_v44, %v8907_v48  ;;  %6044 = vmatprep.mubr.bf16.mxu0 %v14077_v23  ;;  %v14079_v23 = vld [vmem:[#allocation36_spill] sm:$0xff]  ;;  %v10829_v48 = vld [vmem:[%s13693_s3 + $0x5c8] sm:$0xff]  }
 0x2f4   : > { %v8908_v22 = vpop.f32.mrb[228].mxu0 }
 0x2f5   : > { %v8909_v1 = vpop.f32.mrb[229].mxu0 }
 0x2f6   : > { %v8910_v6 = vadd.f32 %v8909_v1, %v8908_v22  ;;  %v8911_v42 = vpop.f32.mrb[230].mxu0 }
 0x2f7   : > { %9779 = vmatmul.mubr.bf16.gmra.mrb[44].mxu1 %v13106_v9  ;;  %v8912_v62 = vpop.f32.mrb[231].mxu0  ;;  %v14085_v9 = vld [vmem:[#allocation5_spill] sm:$0xff] }
 0x2f8   : > { %9798 = vmatprep.mubr.bf16.mxu1 %v10985_v37  ;;  %v13116_v45 = vadd.f32 %v12861_v10, %v8910_v6  ;;  %v8913_v24 = vadd.f32 %v8912_v62, %v8911_v42  ;;  %v10987_v10 = vld [vmem:[%s11336_s9 + $0x30] sm:$0xff]  }
 0x2f9   : > { %6045 = vmatmul.mubr.bf16.gmra.mrb[80].mxu0 %v14078_v34  ;;  %v14080_v34 = vld [vmem:[#allocation38_spill] sm:$0xff] }
 0x2fa   : > { %v13120_v44 = vadd.f32 %v12866_v3, %v8913_v24  ;;  %6052 = vmatprep.mubr.bf16.mxu0 %v14079_v23  ;;  %v10830_v3 = vld [vmem:[%s13693_s3 + $0x5d0] sm:$0xff]   ;;  %v14081_v23 = vld [vmem:[#allocation2_spill] sm:$0xff] }
 0x2fc   : > { %v8914_v22 = vpop.f32.mrb[232].mxu0 }
 0x2fd   : > { %v8915_v1 = vpop.f32.mrb[233].mxu0 }
 0x2fe   : > { %v8916_v37 = vadd.f32 %v8915_v1, %v8914_v22  ;;  %v8917_v6 = vpop.f32.mrb[234].mxu0  ;;  %v10988_v22 = vld [vmem:[%s11336_s9 + $0x3c] sm:$0xff]  }
 0x2ff   : > { %9799 = vmatmul.mubr.bf16.vlgmr.msra.gmra.mrb[16].mxu1 %v10986_v2  ;;  %v8918_v42 = vpop.f32.mrb[235].mxu0  ;;  %v10833_v2 = vld [vmem:[%s13693_s3 + $0x5d8] sm:$0xff]  }
 0x300   : > { %9831 = vmatpush3.bf16.msra.mxu1 %v13064_v60  ;;  %9802 = vmatprep.mubr.bf16.mxu1 %v10987_v10  ;;  %v13133_v62 = vadd.f32 %v12871_v47, %v8916_v37  ;;  %v8919_v24 = vadd.f32 %v8918_v42, %v8917_v6  ;;  %v10989_v47 = vld [vmem:[%s11336_s9 + $0x48] sm:$0xff]  }
 0x301   : > { %9832 = vmatprep.subr.bf16.mxu1 %v10829_v48  ;;  %6053 = vmatmul.mubr.bf16.gmra.mrb[84].mxu0 %v14080_v34  ;;  %v14082_v34 = vld [vmem:[#allocation3_spill] sm:$0xff] }
 0x302   : > { %v13137_v60 = vadd.f32 %v12876_v12, %v8919_v24  ;;  %6060 = vmatprep.mubr.bf16.mxu0 %v14081_v23  ;;  %v10834_v12 = vld [vmem:[%s13693_s3 + $0x5e0] sm:$0xff]  }
 0x304   : > { %9833 = vmatpush3.bf16.msra.mxu1 %v10829_v48  ;;  %v8920_v1 = vpop.f32.mrb[236].mxu0 }
 0x305   : > { %9834 = vmatprep.subr.bf16.mxu1 %v10830_v3  ;;  %v8921_v10 = vpop.f32.mrb[237].mxu0 }
 0x306   : > { %v8922_v37 = vadd.f32 %v8921_v10, %v8920_v1  ;;  %v8923_v48 = vpop.f32.mrb[238].mxu0  ;;  %v10990_v1 = vld [vmem:[%s11336_s9 + $0x54] sm:$0xff]  }
 0x307   : > { %9803 = vmatmul.mubr.bf16.gmra.mrb[20].mxu1 %v10988_v22  ;;  %v8924_v6 = vpop.f32.mrb[239].mxu0  ;;  %v10837_v22 = vld [vmem:[%s13693_s3 + $0x5e8] sm:$0xff]  }
 0x308   : > { %9806 = vmatprep.mubr.bf16.mxu1 %v10989_v47  ;;  %9835 = vmatpush3.bf16.msra.mxu1 %v10830_v3  ;;  %v13149_v42 = vadd.f32 %v12881_v55, %v8922_v37  ;;  %v8925_v24 = vadd.f32 %v8924_v6, %v8923_v48  ;;  %v14084_v3 = vld [vmem:[#allocation4_spill] sm:$0xff]  ;;  %v10991_v55 = vld [vmem:[%s11336_s9 + $0x60] sm:$0xff]  }
 0x309   : > { %9836 = vmatprep.subr.bf16.mxu1 %v10833_v2  ;;  %6061 = vmatmul.mubr.bf16.gmra.mrb[88].mxu0 %v14082_v34 }
 0x30a   : > { %v13153_v23 = vadd.f32 %v12886_v8, %v8925_v24  ;;  %6068 = vmatprep.mubr.bf16.mxu0 %v14084_v3  ;;  %v10838_v8 = vld [vmem:[%s13693_s3 + $0x5f0] sm:$0xff]  }
 0x30c   : > { %9837 = vmatpush3.bf16.msra.mxu1 %v10833_v2  ;;  %14083 = vst [vmem:[#allocation81_spill] sm:$0xff] %v13153_v23  ;;  %v9102_v10 = vpop.f32.mrb[240].mxu0  ;;  %v5717_v23 = vshrl.u32 %v12939_v43, 16 }
 0x30d   : > { %9838 = vmatprep.subr.bf16.mxu1 %v10834_v12  ;;  %v9103_v47 = vpop.f32.mrb[241].mxu0 }
 0x30e   : > { %v9104_v37 = vadd.f32 %v9103_v47, %v9102_v10  ;;  %v9105_v48 = vpop.f32.mrb[242].mxu0  ;;  %v10844_v10 = vld [vmem:[%s13693_s3 + $0x5f8] sm:$0xff]  }
 0x30f   : > { %9807 = vmatmul.mubr.bf16.gmra.mrb[24].mxu1 %v10990_v1  ;;  %v9106_v6 = vpop.f32.mrb[243].mxu0 }
 0x310   : > { %9810 = vmatprep.mubr.bf16.mxu1 %v10991_v55  ;;  %9839 = vmatpush3.bf16.msra.mxu1 %v10834_v12  ;;  %v9107_v34 = vadd.f32 %v9106_v6, %v9105_v48  ;;  %v14086_v12 = vld [vmem:[#allocation6_spill] sm:$0xff] }
 0x311   : > { %9840 = vmatprep.subr.bf16.mxu1 %v10837_v22  ;;  %6069 = vmatmul.mubr.bf16.gmra.mrb[92].mxu0 %v14085_v9 }
 0x312   : > { %v8966_v2 = vpop.f32.mrb[112].mxu1  ;;  %6076 = vmatprep.mubr.bf16.mxu0 %v14086_v12 }
 0x313   : > { %v8967_v24 = vpop.f32.mrb[113].mxu1 }
 0x314   : > { %v8968_v3 = vadd.f32 %v8967_v24, %v8966_v2  ;;  %v8969_v1 = vpop.f32.mrb[114].mxu1  ;;  %9841 = vmatpush3.bf16.msra.mxu1 %v10837_v22  ;;  %v9108_v48 = vpop.f32.mrb[244].mxu0  ;;  %v10993_v22 = vld [vmem:[%s11336_s9 + $0x78] sm:$0xff]  }
 0x315   : > { %v8970_v55 = vpop.f32.mrb[115].mxu1  ;;  %9842 = vmatprep.subr.bf16.mxu1 %v10838_v8  ;;  %v9109_v9 = vpop.f32.mrb[245].mxu0 }
 0x316   : > { %v9955_v47 = vadd.f32 %v12891_v35, %v8968_v3  ;;  %v8971_v63 = vadd.f32 %v8970_v55, %v8969_v1  ;;  %v9110_v24 = vadd.f32 %v9109_v9, %v9108_v48  ;;  %v9111_v12 = vpop.f32.mrb[246].mxu0  ;;  %v13178_v35 = vld [vmem:[%s13693_s3 + $0x680] sm:$0xff]   ;;  %v14090_v48 = vld [vmem:[#allocation8_spill] sm:$0xff] }
 0x317   : > { %9811 = vmatmul.mubr.bf16.gmra.mrb[28].mxu1 %v10992_v49 }
 0x318   : > { %v13171_v2 = vadd.f32 %v9955_v47, %v9104_v37  ;;  %v9973_v6 = vadd.f32 %v12895_v11, %v8971_v63  ;;  %9814 = vmatprep.mubr.bf16.mxu1 %v10993_v22  ;;  %9843 = vmatpush3.bf16.msra.mxu1 %v10838_v8  ;;  %v9112_v37 = vpop.f32.mrb[247].mxu0  ;;  %v14089_v47 = vld [vmem:[#allocation7_spill] sm:$0xff]  ;;  %v5731_v22 = vshll.u32 %v12922_v41, 16 }
 0x319   : > { %9844 = vmatprep.subr.bf16.mxu1 %v10844_v10  ;;  %v9113_v11 = vadd.f32 %v9112_v37, %v9111_v12  ;;  %6077 = vmatmul.mubr.bf16.gmra.mrb[96].mxu0 %v14089_v47 }
 0x31a   : > { %14087 = vst [vmem:[#allocation82_spill] sm:$0xff] %v13171_v2  ;;  %v13180_v3 = vadd.f32 %v9973_v6, %v9107_v34  ;;  %v8972_v49 = vpop.f32.mrb[116].mxu1  ;;  %6084 = vmatprep.mubr.bf16.mxu0 %v14090_v48  ;;  %v13187_v6 = vld [vmem:[%s11157_s8 + $0xd4] ss:$0 sps:$4 sm:$0x11]  }
 0x31b   : > { %v8973_v1 = vpop.f32.mrb[117].mxu1  ;;  %14091 = vst [vmem:[#allocation88_spill] sm:$0xff] %v13187_v6 }
 0x31c   : > { %14088 = vst [vmem:[#allocation84_spill] sm:$0xff] %v13180_v3  ;;  %v8974_v63 = vadd.f32 %v8973_v1, %v8972_v49  ;;  %v8975_v55 = vpop.f32.mrb[118].mxu1  ;;  %9845 = vmatpush3.bf16.msra.mxu1 %v10844_v10  ;;  %v10994_v3 = vld [vmem:[%s11336_s9 + $0x84] sm:$0xff]   ;;  %v9114_v12 = vpop.f32.mrb[248].mxu0  ;;  %v10995_v1 = vld [vmem:[%s11336_s9 + $0x90] sm:$0xff]  }
 0x31d   : > { %v8976_v8 = vpop.f32.mrb[119].mxu1  ;;  %9878 = vmatprep.subr.bf16.mxu1 %v13178_v35  ;;  %v9115_v10 = vpop.f32.mrb[249].mxu0 }
 0x31e   : > { %v9946_v9 = vadd.f32 %v12901_v17, %v8974_v63  ;;  %v8977_v34 = vadd.f32 %v8976_v8, %v8975_v55  ;;  %v9116_v47 = vadd.f32 %v9115_v10, %v9114_v12  ;;  %v9117_v48 = vpop.f32.mrb[250].mxu0  ;;  %v5729_v55 = vshrl.u32 %v12922_v41, 16  ;;  %v14095_v12 = vld [vmem:[#allocation10_spill] sm:$0xff] }
 0x31f   : > { %9815 = vmatmul.mubr.bf16.gmra.mrb[32].mxu1 %v10994_v3  ;;  %v9118_v63 = vpop.f32.mrb[251].mxu0  ;;  %v5733_v8 = vrot.slane %v5731_v22, 1  ;;  %v5736_v3 = vshll.u32 %v13187_v6, 16  ;;  %v10996_v6 = vld [vmem:[%s11336_s9 + $0x9c] sm:$0xff]  }
 0x320   : > { %v13191_v49 = vadd.f32 %v9946_v9, %v9110_v24  ;;  %v9964_v37 = vadd.f32 %v12905_v13, %v8977_v34  ;;  %9818 = vmatprep.mubr.bf16.mxu1 %v10995_v1  ;;  %v9119_v9 = vadd.f32 %v9118_v63, %v9117_v48  ;;  %v14094_v34 = vld [vmem:[#allocation9_spill] sm:$0xff] }
 0x321   : > { %6085 = vmatmul.mubr.bf16.gmra.mrb[100].mxu0 %v14094_v34  ;;  %v5734_v22 = vor.u32 %v5733_v8, %v5729_v55  ;;  %v10997_v34 = vld [vmem:[%s11336_s9 + $0xa8] sm:$0xff]  }
 0x322   : > { %14092 = vst [vmem:[#allocation89_spill] sm:$0xff] %v13191_v49  ;;  %v13195_v2 = vadd.f32 %v9964_v37, %v9113_v11  ;;  %v8978_v17 = vpop.f32.mrb[120].mxu1  ;;  %6092 = vmatprep.mubr.bf16.mxu0 %v14095_v12  ;;  %v13202_v11 = vld [vmem:[%s11176_s18 + $0xd4] ss:$0 sps:$4 sm:$0x11]   ;;  %v5719_v37 = vshll.u32 %v12939_v43, 16 }
 0x323   : > { %v8979_v24 = vpop.f32.mrb[121].mxu1 }
 0x324   : > { %14093 = vst [vmem:[#allocation57_spill] sm:$0xff] %v13195_v2  ;;  %v8980_v49 = vadd.f32 %v8979_v24, %v8978_v17  ;;  %v8981_v13 = vpop.f32.mrb[122].mxu1  ;;  %v5738_v2 = vrot.slane %v5736_v3, 1  ;;  %v9120_v48 = vpop.f32.mrb[252].mxu0  ;;  %v5721_v26 = vrot.slane %v5719_v37, 1 }
 0x325   : > { %v8982_v1 = vpop.f32.mrb[123].mxu1  ;;  %v9121_v24 = vpop.f32.mrb[253].mxu0 }
 0x326   : > { %v9991_v41 = vadd.f32 %v12911_v19, %v8980_v49  ;;  %v8983_v10 = vadd.f32 %v8982_v1, %v8981_v13  ;;  %v9122_v12 = vadd.f32 %v9121_v24, %v9120_v48  ;;  %v9123_v30 = vpop.f32.mrb[254].mxu0  ;;  %v5724_v19 = vshll.u32 %v13202_v11, 16 }
 0x327   : > { %9819 = vmatmul.mubr.bf16.gmra.mrb[36].mxu1 %v10996_v6  ;;  %v9124_v6 = vpop.f32.mrb[255].mxu0 }
 0x328   : > { %v13207_v17 = vadd.f32 %v9991_v41, %v9116_v47  ;;  %v10009_v63 = vadd.f32 %v12915_v20, %v8983_v10  ;;  %9822 = vmatprep.mubr.bf16.mxu1 %v10997_v34  ;;  %v5739_v47 = vsel %vm1131_vm0, %v5734_v22, %v5738_v2  ;;  %v9125_v3 = vadd.f32 %v9124_v6, %v9123_v30 }
 0x329   : > { %6093 = vmatmul.mubr.bf16.gmra.mrb[104].mxu0 %v12689_v38  ;;  %v5722_v41 = vor.u32 %v5721_v26, %v5717_v23  ;;  %v5726_v43 = vrot.slane %v5724_v19, 1 }
 0x32a   : > { %v13213_v49 = vadd.f32 %v10009_v63, %v9119_v9  ;;  %v8984_v55 = vpop.f32.mrb[124].mxu1  ;;  %6100 = vmatprep.mubr.bf16.mxu0 %v5739_v47  ;;  %v10998_v9 = vld [vmem:[%s11336_s9 + $0xb4] sm:$0xff]  }
 0x32b   : > { %v8985_v8 = vpop.f32.mrb[125].mxu1  ;;  %v5727_v24 = vsel %vm1131_vm0, %v5722_v41, %v5726_v43 }
 0x32c   : > { %v8986_v20 = vadd.f32 %v8985_v8, %v8984_v55  ;;  %v8987_v13 = vpop.f32.mrb[126].mxu1  ;;  %v9126_v48 = vpop.f32.mrb[0].mxu0  ;;  %v13227_v55 = vld [vmem:[%s11336_s9 + $0xcc] sm:$0xff]  }
 0x32d   : > { %v8988_v1 = vpop.f32.mrb[127].mxu1  ;;  %v9127_v30 = vpop.f32.mrb[1].mxu0 }
 0x32e   : > { %v9982_v37 = vadd.f32 %v12925_v61, %v8986_v20  ;;  %v8989_v10 = vadd.f32 %v8988_v1, %v8987_v13  ;;  %v9128_v22 = vadd.f32 %v9127_v30, %v9126_v48  ;;  %v9129_v38 = vpop.f32.mrb[2].mxu0  ;;  %v14096_v1 = vld [vmem:[#allocation13_spill] sm:$0xff] }
 0x32f   : > { %9823 = vmatmul.mubr.bf16.gmra.mrb[40].mxu1 %v10998_v9  ;;  %v9130_v61 = vpop.f32.mrb[3].mxu0 }
 0x330   : > { %v13219_v63 = vadd.f32 %v9982_v37, %v9122_v12  ;;  %v10000_v2 = vadd.f32 %v12929_v51, %v8989_v10  ;;  %9826 = vmatprep.mubr.bf16.mxu1 %v13098_v46  ;;  %v9131_v19 = vadd.f32 %v9130_v61, %v9129_v38 }
 0x331   : > { %6101 = vmatmul.mubr.bf16.gmra.mrb[108].mxu0 %v5727_v24  ;;  %v14097_v24 = vld [vmem:[#allocation15_spill] sm:$0xff] }
 0x332   : > { %v13224_v26 = vadd.f32 %v10000_v2, %v9125_v3  ;;  %v8990_v23 = vpop.f32.mrb[128].mxu1  ;;  %6539 = vmatprep.mubr.bf16.mxu0 %v14023_v33 }
 0x333   : > { %v8991_v34 = vpop.f32.mrb[129].mxu1 }
 0x334   : > { %v8992_v6 = vadd.f32 %v8991_v34, %v8990_v23  ;;  %v8993_v12 = vpop.f32.mrb[130].mxu1  ;;  %v9132_v8 = vpop.f32.mrb[4].mxu0 }
 0x335   : > { %v8994_v47 = vpop.f32.mrb[131].mxu1  ;;  %v9133_v13 = vpop.f32.mrb[5].mxu0 }
 0x336   : > { %v10027_v51 = vadd.f32 %v12942_v29, %v8992_v6  ;;  %v8995_v46 = vadd.f32 %v8994_v47, %v8993_v12  ;;  %v9134_v41 = vadd.f32 %v9133_v13, %v9132_v8  ;;  %v9135_v43 = vpop.f32.mrb[6].mxu0  ;;  %v14099_v13 = vld [vmem:[#allocation46_spill] sm:$0xff] }
 0x337   : > { %9827 = vmatmul.mubr.bf16.gmra.mrb[44].mxu1 %v13227_v55  ;;  %v9136_v9 = vpop.f32.mrb[7].mxu0 }
 0x338   : > { %v13232_v3 = vadd.f32 %v10027_v51, %v9128_v22  ;;  %v10045_v20 = vadd.f32 %v12949_v5, %v8995_v46  ;;  %9846 = vmatprep.mubr.bf16.mxu1 %v14096_v1  ;;  %v9137_v48 = vadd.f32 %v9136_v9, %v9135_v43  ;;  %v10846_v5 = vld [vmem:[%s13693_s3 + $0x688] sm:$0xff]   ;;  %v10848_v1 = vld [vmem:[%s13693_s3 + $0x698] sm:$0xff]  }
 0x339   : > { %6540 = vmatmul.mubr.bf16.vlgmr.msra.gmra.mrb[112].mxu0 %v14024_v28 }
 0x33a   : > { %v13236_v37 = vadd.f32 %v10045_v20, %v9131_v19  ;;  %v8996_v10 = vpop.f32.mrb[132].mxu1  ;;  %6547 = vmatprep.mubr.bf16.mxu0 %v14025_v36  ;;  %v14098_v19 = vld [vmem:[#allocation17_spill] sm:$0xff] }
 0x33b   : > { %v8997_v33 = vpop.f32.mrb[133].mxu1 }
 0x33c   : > { %v8998_v29 = vadd.f32 %v8997_v33, %v8996_v10  ;;  %v8999_v2 = vpop.f32.mrb[134].mxu1  ;;  %v9138_v23 = vpop.f32.mrb[8].mxu0  ;;  %v14100_v10 = vld [vmem:[#allocation19_spill] sm:$0xff] }
 0x33d   : > { %v9000_v30 = vpop.f32.mrb[135].mxu1  ;;  %v9139_v28 = vpop.f32.mrb[9].mxu0 }
 0x33e   : > { %v10018_v22 = vadd.f32 %v12961_v52, %v8998_v29  ;;  %v9001_v38 = vadd.f32 %v9000_v30, %v8999_v2  ;;  %v9140_v36 = vadd.f32 %v9139_v28, %v9138_v23  ;;  %v9141_v6 = vpop.f32.mrb[10].mxu0  ;;  %v10847_v52 = vld [vmem:[%s13693_s3 + $0x690] sm:$0xff]   ;;  %v14101_v29 = vld [vmem:[#allocation21_spill] sm:$0xff] }
 0x33f   : > { %9847 = vmatmul.mubr.bf16.vlgmr.msra.gmra.mrb[16].mxu1 %v14097_v24  ;;  %v9142_v51 = vpop.f32.mrb[11].mxu0 }
 0x340   : > { %v13245_v61 = vadd.f32 %v10018_v22, %v9134_v41  ;;  %v10036_v34 = vadd.f32 %v12965_v7, %v9001_v38  ;;  %9879 = vmatpush3.bf16.msra.mxu1 %v13178_v35  ;;  %9850 = vmatprep.mubr.bf16.mxu1 %v14098_v19  ;;  %v9143_v8 = vadd.f32 %v9142_v51, %v9141_v6  ;;  %v10850_v6 = vld [vmem:[%s13693_s3 + $0x6a8] sm:$0xff]  }
 0x341   : > { %9880 = vmatprep.subr.bf16.mxu1 %v10846_v5  ;;  %6548 = vmatmul.mubr.bf16.gmra.mrb[116].mxu0 %v14026_v0  ;;  %v14104_v51 = vld [vmem:[#allocation23_spill] sm:$0xff] }
 0x342   : > { %v13253_v12 = vadd.f32 %v10036_v34, %v9137_v48  ;;  %v9002_v47 = vpop.f32.mrb[136].mxu1  ;;  %6555 = vmatprep.mubr.bf16.mxu0 %v14099_v13 }
 0x343   : > { %v9003_v46 = vpop.f32.mrb[137].mxu1 }
 0x344   : > { %v9004_v20 = vadd.f32 %v9003_v46, %v9002_v47  ;;  %v9005_v7 = vpop.f32.mrb[138].mxu1  ;;  %9881 = vmatpush3.bf16.msra.mxu1 %v10846_v5  ;;  %v9144_v9 = vpop.f32.mrb[12].mxu0  ;;  %v10849_v5 = vld [vmem:[%s13693_s3 + $0x6a0] sm:$0xff]  }
 0x345   : > { %v9006_v35 = vpop.f32.mrb[139].mxu1  ;;  %9882 = vmatprep.subr.bf16.mxu1 %v10847_v52  ;;  %v9145_v0 = vpop.f32.mrb[13].mxu0 }
 0x346   : > { %v10063_v41 = vadd.f32 %v12987_v58, %v9004_v20  ;;  %v9007_v43 = vadd.f32 %v9006_v35, %v9005_v7  ;;  %v9146_v2 = vadd.f32 %v9145_v0, %v9144_v9  ;;  %v9147_v30 = vpop.f32.mrb[14].mxu0  ;;  %v14105_v35 = vld [vmem:[#allocation25_spill] sm:$0xff] }
 0x347   : > { %9851 = vmatmul.mubr.bf16.gmra.mrb[20].mxu1 %v14100_v10  ;;  %v9148_v38 = vpop.f32.mrb[15].mxu0 }
 0x348   : > { %v13262_v33 = vadd.f32 %v10063_v41, %v9140_v36  ;;  %v10081_v48 = vadd.f32 %v12994_v53, %v9007_v43  ;;  %9854 = vmatprep.mubr.bf16.mxu1 %v14101_v29  ;;  %9883 = vmatpush3.bf16.msra.mxu1 %v10847_v52  ;;  %v9149_v23 = vadd.f32 %v9148_v38, %v9147_v30  ;;  %v14102_v53 = vld [vmem:[#allocation47_spill] sm:$0xff]  ;;  %v14103_v36 = vld [vmem:[#allocation48_spill] sm:$0xff]  ;;  %v14107_v30 = vld [vmem:[#allocation50_spill] sm:$0xff] }
 0x349   : > { %9884 = vmatprep.subr.bf16.mxu1 %v10848_v1  ;;  %6556 = vmatmul.mubr.bf16.gmra.mrb[120].mxu0 %v14102_v53  ;;  %v10851_v41 = vld [vmem:[%s13693_s3 + $0x6b0] sm:$0xff]  }
 0x34a   : > { %v13269_v58 = vadd.f32 %v10081_v48, %v9143_v8  ;;  %v9008_v22 = vpop.f32.mrb[140].mxu1  ;;  %6563 = vmatprep.mubr.bf16.mxu0 %v14103_v36 }
 0x34b   : > { %v9009_v24 = vpop.f32.mrb[141].mxu1 }
 0x34c   : > { %v9010_v34 = vadd.f32 %v9009_v24, %v9008_v22  ;;  %v9011_v28 = vpop.f32.mrb[142].mxu1  ;;  %9885 = vmatpush3.bf16.msra.mxu1 %v10848_v1  ;;  %v9150_v46 = vpop.f32.mrb[16].mxu0  ;;  %v14108_v24 = vld [vmem:[#allocation27_spill] sm:$0xff] }
 0x34d   : > { %v9012_v19 = vpop.f32.mrb[143].mxu1  ;;  %9886 = vmatprep.subr.bf16.mxu1 %v10849_v5  ;;  %v9151_v7 = vpop.f32.mrb[17].mxu0 }
 0x34e   : > { %v10054_v52 = vadd.f32 %v13015_v21, %v9010_v34  ;;  %v9013_v47 = vadd.f32 %v9012_v19, %v9011_v28  ;;  %v9152_v13 = vadd.f32 %v9151_v7, %v9150_v46  ;;  %v9153_v1 = vpop.f32.mrb[18].mxu0  ;;  %v14109_v19 = vld [vmem:[#allocation29_spill] sm:$0xff] }
 0x34f   : > { %9855 = vmatmul.mubr.bf16.gmra.mrb[24].mxu1 %v14104_v51  ;;  %v9154_v10 = vpop.f32.mrb[19].mxu0 }
 0x350   : > { %v13278_v8 = vadd.f32 %v10054_v52, %v9146_v2  ;;  %v10072_v20 = vadd.f32 %v13022_v31, %v9013_v47  ;;  %9858 = vmatprep.mubr.bf16.mxu1 %v14105_v35  ;;  %9887 = vmatpush3.bf16.msra.mxu1 %v10849_v5  ;;  %v9155_v48 = vadd.f32 %v9154_v10, %v9153_v1  ;;  %v14106_v31 = vld [vmem:[#allocation49_spill] sm:$0xff]  ;;  %v14110_v35 = vld [vmem:[#allocation51_spill] sm:$0xff] }
 0x351   : > { %9888 = vmatprep.subr.bf16.mxu1 %v10850_v6  ;;  %6564 = vmatmul.mubr.bf16.gmra.mrb[124].mxu0 %v14106_v31  ;;  %v10853_v5 = vld [vmem:[%s13693_s3 + $0x6b8] sm:$0xff]  }
 0x352   : > { %v13285_v21 = vadd.f32 %v10072_v20, %v9149_v23  ;;  %v9014_v43 = vpop.f32.mrb[144].mxu1  ;;  %6571 = vmatprep.mubr.bf16.mxu0 %v14107_v30 }
 0x353   : > { %v9015_v9 = vpop.f32.mrb[145].mxu1 }
 0x354   : > { %v9016_v0 = vadd.f32 %v9015_v9, %v9014_v43  ;;  %v9017_v29 = vpop.f32.mrb[146].mxu1  ;;  %9889 = vmatpush3.bf16.msra.mxu1 %v10850_v6  ;;  %v9156_v23 = vpop.f32.mrb[20].mxu0  ;;  %v14112_v43 = vld [vmem:[#allocation31_spill] sm:$0xff] }
 0x355   : > { %v9018_v2 = vpop.f32.mrb[147].mxu1  ;;  %9890 = vmatprep.subr.bf16.mxu1 %v10851_v41  ;;  %v9157_v53 = vpop.f32.mrb[21].mxu0 }
 0x356   : > { %v10099_v22 = vadd.f32 %v13043_v25, %v9016_v0  ;;  %v9019_v38 = vadd.f32 %v9018_v2, %v9017_v29  ;;  %v9158_v36 = vadd.f32 %v9157_v53, %v9156_v23  ;;  %v9159_v6 = vpop.f32.mrb[22].mxu0  ;;  %v14113_v29 = vld [vmem:[#allocation33_spill] sm:$0xff] }
 0x357   : > { %9859 = vmatmul.mubr.bf16.gmra.mrb[28].mxu1 %v14108_v24  ;;  %v9160_v51 = vpop.f32.mrb[23].mxu0 }
 0x358   : > { %v13294_v34 = vadd.f32 %v10099_v22, %v9152_v13  ;;  %v10117_v28 = vadd.f32 %v13050_v39, %v9019_v38  ;;  %9862 = vmatprep.mubr.bf16.mxu1 %v14109_v19  ;;  %9891 = vmatpush3.bf16.msra.mxu1 %v10851_v41  ;;  %v9161_v46 = vadd.f32 %v9160_v51, %v9159_v6  ;;  %v14111_v39 = vld [vmem:[#allocation52_spill] sm:$0xff]  ;;  %v14115_v19 = vld [vmem:[#allocation54_spill] sm:$0xff]  ;;  %v14116_v6 = vld [vmem:[#allocation35_spill] sm:$0xff] }
 0x359   : > { %9892 = vmatprep.subr.bf16.mxu1 %v10853_v5  ;;  %6572 = vmatmul.mubr.bf16.gmra.mrb[128].mxu0 %v14110_v35  ;;  %v5743_v35 = vshll.u32 %v13227_v55, 16 }
 0x35a   : > { %v13298_v52 = vadd.f32 %v10117_v28, %v9155_v48  ;;  %v9020_v47 = vpop.f32.mrb[148].mxu1  ;;  %6579 = vmatprep.mubr.bf16.mxu0 %v14111_v39  ;;  %v14114_v28 = vld [vmem:[#allocation53_spill] sm:$0xff] }
 0x35b   : > { %v9021_v25 = vpop.f32.mrb[149].mxu1 }
 0x35c   : > { %v9022_v20 = vadd.f32 %v9021_v25, %v9020_v47  ;;  %v9023_v7 = vpop.f32.mrb[150].mxu1  ;;  %9893 = vmatpush3.bf16.msra.mxu1 %v10853_v5  ;;  %v9162_v10 = vpop.f32.mrb[24].mxu0 }
 0x35d   : > { %v9024_v13 = vpop.f32.mrb[151].mxu1  ;;  %v9163_v0 = vpop.f32.mrb[25].mxu0 }
 0x35e   : > { %v10090_v1 = vadd.f32 %v13067_v56, %v9022_v20  ;;  %v9025_v41 = vadd.f32 %v9024_v13, %v9023_v7  ;;  %v9164_v31 = vadd.f32 %v9163_v0, %v9162_v10  ;;  %v9165_v2 = vpop.f32.mrb[26].mxu0  ;;  %v14117_v20 = vld [vmem:[#allocation37_spill] sm:$0xff]  ;;  %v13319_v7 = vld [vmem:[%s11336_s9 + $0xd4] ss:$0 sps:$4 sm:$0x11]  }
 0x35f   : > { %9863 = vmatmul.mubr.bf16.gmra.mrb[32].mxu1 %v14112_v43  ;;  %v9166_v22 = vpop.f32.mrb[27].mxu0 }
 0x360   : > { %v13304_v9 = vadd.f32 %v10090_v1, %v9158_v36  ;;  %v10108_v48 = vadd.f32 %v13071_v57, %v9025_v41  ;;  %9866 = vmatprep.mubr.bf16.mxu1 %v14113_v29  ;;  %v9167_v56 = vadd.f32 %v9166_v22, %v9165_v2  ;;  %v14118_v29 = vld [vmem:[#allocation55_spill] sm:$0xff]  ;;  %v5748_v2 = vshll.u32 %v13319_v7, 16  ;;  %v14119_v22 = vld [vmem:[#allocation56_spill] sm:$0xff] }
 0x361   : > { %6580 = vmatmul.mubr.bf16.gmra.mrb[132].mxu0 %v14114_v28 }
 0x362   : > { %v13308_v30 = vadd.f32 %v10108_v48, %v9161_v46  ;;  %v9026_v5 = vpop.f32.mrb[152].mxu1  ;;  %6587 = vmatprep.mubr.bf16.mxu0 %v14115_v19 }
 0x363   : > { %v9027_v38 = vpop.f32.mrb[153].mxu1 }
 0x364   : > { %v9028_v24 = vadd.f32 %v9027_v38, %v9026_v5  ;;  %v9029_v23 = vpop.f32.mrb[154].mxu1  ;;  %v9168_v47 = vpop.f32.mrb[28].mxu0 }
 0x365   : > { %v9030_v53 = vpop.f32.mrb[155].mxu1  ;;  %v9169_v46 = vpop.f32.mrb[29].mxu0 }
 0x366   : > { %v10135_v57 = vadd.f32 %v13078_v18, %v9028_v24  ;;  %v9031_v36 = vadd.f32 %v9030_v53, %v9029_v23  ;;  %v9170_v13 = vadd.f32 %v9169_v46, %v9168_v47  ;;  %v9171_v39 = vpop.f32.mrb[30].mxu0  ;;  %v14120_v24 = vld [vmem:[#allocation39_spill] sm:$0xff] }
 0x367   : > { %9867 = vmatmul.mubr.bf16.gmra.mrb[36].mxu1 %v14116_v6  ;;  %v9172_v41 = vpop.f32.mrb[31].mxu0  ;;  %v5750_v6 = vrot.slane %v5748_v2, 1 }
 0x368   : > { %v13314_v51 = vadd.f32 %v10135_v57, %v9164_v31  ;;  %v10153_v25 = vadd.f32 %v13082_v27, %v9031_v36  ;;  %9870 = vmatprep.mubr.bf16.mxu1 %v14117_v20  ;;  %v9173_v10 = vadd.f32 %v9172_v41, %v9171_v39  ;;  %v5741_v27 = vshrl.u32 %v13227_v55, 16  ;;  %v14121_v57 = vld [vmem:[#allocation12_spill] sm:$0xff] }
 0x369   : > { %6588 = vmatmul.mubr.bf16.gmra.mrb[136].mxu0 %v14118_v29  ;;  %v5745_v31 = vrot.slane %v5743_v35, 1 }
 0x36a   : > { %v13322_v1 = vadd.f32 %v10153_v25, %v9167_v56  ;;  %v9032_v18 = vpop.f32.mrb[156].mxu1  ;;  %6595 = vmatprep.mubr.bf16.mxu0 %v14119_v22 }
 0x36b   : > { %v9033_v43 = vpop.f32.mrb[157].mxu1  ;;  %v5746_v36 = vor.u32 %v5745_v31, %v5741_v27 }
 0x36c   : > { %v9034_v48 = vadd.f32 %v9033_v43, %v9032_v18  ;;  %v9035_v0 = vpop.f32.mrb[158].mxu1  ;;  %v9174_v23 = vpop.f32.mrb[32].mxu0  ;;  %v14122_v43 = vld [vmem:[#allocation58_spill] sm:$0xff] }
 0x36d   : > { %v9036_v5 = vpop.f32.mrb[159].mxu1  ;;  %v9175_v19 = vpop.f32.mrb[33].mxu0 }
 0x36e   : > { %v10126_v38 = vadd.f32 %v13088_v59, %v9034_v48  ;;  %v9037_v56 = vadd.f32 %v9036_v5, %v9035_v0  ;;  %v9176_v47 = vadd.f32 %v9175_v19, %v9174_v23  ;;  %v9177_v25 = vpop.f32.mrb[34].mxu0  ;;  %v14123_v48 = vld [vmem:[#allocation60_spill] sm:$0xff] }
 0x36f   : > { %9871 = vmatmul.mubr.bf16.gmra.mrb[40].mxu1 %v14120_v24  ;;  %v9178_v35 = vpop.f32.mrb[35].mxu0 }
 0x370   : > { %v13330_v28 = vadd.f32 %v10126_v38, %v9170_v13  ;;  %v10144_v53 = vadd.f32 %v13092_v54, %v9037_v56  ;;  %9874 = vmatprep.mubr.bf16.mxu1 %v14121_v57  ;;  %v9179_v39 = vadd.f32 %v9178_v35, %v9177_v25  ;;  %v5751_v13 = vsel %vm1131_vm0, %v5746_v36, %v5750_v6  ;;  %v14124_v57 = vld [vmem:[#allocation61_spill] sm:$0xff]  ;;  %v14125_v6 = vld [vmem:[#allocation62_spill] sm:$0xff] }
 0x371   : > { %6596 = vmatmul.mubr.bf16.gmra.mrb[140].mxu0 %v14122_v43 }
 0x372   : > { %v13334_v46 = vadd.f32 %v10144_v53, %v9173_v10  ;;  %v9038_v20 = vpop.f32.mrb[160].mxu1  ;;  %6603 = vmatprep.mubr.bf16.mxu0 %v14123_v48 }
 0x373   : > { %v9039_v59 = vpop.f32.mrb[161].mxu1 }
 0x374   : > { %v9040_v18 = vadd.f32 %v9039_v59, %v9038_v20  ;;  %v9041_v41 = vpop.f32.mrb[162].mxu1  ;;  %v9180_v27 = vpop.f32.mrb[36].mxu0 }
 0x375   : > { %v9042_v54 = vpop.f32.mrb[163].mxu1  ;;  %v9181_v2 = vpop.f32.mrb[37].mxu0 }
 0x376   : > { %v10171_v0 = vadd.f32 %v13103_v40, %v9040_v18  ;;  %v9043_v29 = vadd.f32 %v9042_v54, %v9041_v41  ;;  %v9182_v5 = vadd.f32 %v9181_v2, %v9180_v27  ;;  %v9183_v22 = vpop.f32.mrb[38].mxu0 }
 0x377   : > { %9875 = vmatmul.mubr.bf16.gmra.mrb[44].mxu1 %v5751_v13  ;;  %v9184_v24 = vpop.f32.mrb[39].mxu0 }
 0x378   : > { %v13340_v10 = vadd.f32 %v10171_v0, %v9176_v47  ;;  %v10189_v31 = vadd.f32 %v13110_v50, %v9043_v29  ;;  %9894 = vmatprep.mubr.bf16.mxu1 %v14054_v4  ;;  %v9185_v53 = vadd.f32 %v9184_v24, %v9183_v22  ;;  %v14126_v0 = vld [vmem:[#allocation65_spill] sm:$0xff]  ;;  %v14127_v29 = vld [vmem:[#allocation66_spill] sm:$0xff] }
 0x379   : > { %6604 = vmatmul.mubr.bf16.gmra.mrb[144].mxu0 %v14124_v57 }
 0x37a   : > { %v13344_v38 = vadd.f32 %v10189_v31, %v9179_v39  ;;  %v9044_v56 = vpop.f32.mrb[164].mxu1  ;;  %6611 = vmatprep.mubr.bf16.mxu0 %v14125_v6  ;;  %v14129_v6 = vld [vmem:[#allocation69_spill] sm:$0xff] }
 0x37b   : > { %v9045_v23 = vpop.f32.mrb[165].mxu1 }
 0x37c   : > { %v9046_v19 = vadd.f32 %v9045_v23, %v9044_v56  ;;  %v9047_v40 = vpop.f32.mrb[166].mxu1  ;;  %v9186_v4 = vpop.f32.mrb[40].mxu0 }
 0x37d   : > { %v9048_v36 = vpop.f32.mrb[167].mxu1  ;;  %v9187_v35 = vpop.f32.mrb[41].mxu0 }
 0x37e   : > { %v10162_v50 = vadd.f32 %v13116_v45, %v9046_v19  ;;  %v9049_v47 = vadd.f32 %v9048_v36, %v9047_v40  ;;  %v9188_v59 = vadd.f32 %v9187_v35, %v9186_v4  ;;  %v9189_v39 = vpop.f32.mrb[42].mxu0  ;;  %v14128_v36 = vld [vmem:[#allocation68_spill] sm:$0xff] }
 0x37f   : > { %9895 = vmatmul.mubr.bf16.vlgmr.msra.gmra.mrb[16].mxu1 %v14055_v32  ;;  %v9190_v13 = vpop.f32.mrb[43].mxu0 }
 0x380   : > { %v13350_v25 = vadd.f32 %v10162_v50, %v9182_v5  ;;  %v10180_v20 = vadd.f32 %v13120_v44, %v9049_v47  ;;  %9898 = vmatprep.mubr.bf16.mxu1 %v14056_v15  ;;  %v9191_v54 = vadd.f32 %v9190_v13, %v9189_v39  ;;  %v14130_v47 = vld [vmem:[#allocation92_spill] sm:$0xff]  ;;  %v14132_v39 = vld [vmem:[#allocation93_spill] sm:$0xff] }
 0x381   : > { %6612 = vmatmul.mubr.bf16.gmra.mrb[148].mxu0 %v14126_v0  ;;  %v14134_v0 = vld [vmem:[#allocation71_spill] sm:$0xff] }
 0x382   : > { %v13354_v18 = vadd.f32 %v10180_v20, %v9185_v53  ;;  %v9050_v41 = vpop.f32.mrb[168].mxu1  ;;  %6619 = vmatprep.mubr.bf16.mxu0 %v14127_v29  ;;  %v14131_v20 = vld [vmem:[#allocation81_spill] sm:$0xff] }
 0x383   : > { %v9051_v43 = vpop.f32.mrb[169].mxu1 }
 0x384   : > { %v9052_v45 = vadd.f32 %v9051_v43, %v9050_v41  ;;  %v9053_v48 = vpop.f32.mrb[170].mxu1  ;;  %v9192_v15 = vpop.f32.mrb[44].mxu0 }
 0x385   : > { %v9054_v32 = vpop.f32.mrb[171].mxu1  ;;  %v9193_v5 = vpop.f32.mrb[45].mxu0 }
 0x386   : > { %v10207_v44 = vadd.f32 %v13133_v62, %v9052_v45  ;;  %v9055_v27 = vadd.f32 %v9054_v32, %v9053_v48  ;;  %v9194_v22 = vadd.f32 %v9193_v5, %v9192_v15  ;;  %v9195_v56 = vpop.f32.mrb[46].mxu0  ;;  %v14133_v45 = vld [vmem:[#allocation82_spill] sm:$0xff]  ;;  %v14135_v32 = vld [vmem:[#allocation84_spill] sm:$0xff]  ;;  %v14138_v5 = vld [vmem:[#allocation95_spill] sm:$0xff] }
 0x387   : > { %9899 = vmatmul.mubr.bf16.gmra.mrb[20].mxu1 %v14057_v16  ;;  %v9196_v53 = vpop.f32.mrb[47].mxu0 }
 0x388   : > { %v13360_v31 = vadd.f32 %v10207_v44, %v9188_v59  ;;  %v10225_v2 = vadd.f32 %v13137_v60, %v9055_v27  ;;  %9902 = vmatprep.mubr.bf16.mxu1 %v14058_v14  ;;  %v9197_v40 = vadd.f32 %v9196_v53, %v9195_v56  ;;  %v14136_v44 = vld [vmem:[#allocation72_spill] sm:$0xff]  ;;  %v14137_v27 = vld [vmem:[#allocation94_spill] sm:$0xff]  ;;  %v14139_v53 = vld [vmem:[#allocation89_spill] sm:$0xff] }
 0x389   : > { %6620 = vmatmul.mubr.bf16.gmra.mrb[152].mxu0 %v14128_v36 }
 0x38a   : > { %v13364_v24 = vadd.f32 %v10225_v2, %v9191_v54  ;;  %v9056_v23 = vpop.f32.mrb[172].mxu1  ;;  %6627 = vmatprep.mubr.bf16.mxu0 %v14129_v6  ;;  %v14143_v6 = vld [vmem:[#allocation96_spill] sm:$0xff] }
 0x38b   : > { %v9057_v19 = vpop.f32.mrb[173].mxu1 }
 0x38c   : > { %v9058_v62 = vadd.f32 %v9057_v19, %v9056_v23  ;;  %v9059_v57 = vpop.f32.mrb[174].mxu1  ;;  %v9238_v14 = vpop.f32.mrb[48].mxu0 }
 0x38d   : > { %v9060_v16 = vpop.f32.mrb[175].mxu1  ;;  %v9239_v59 = vpop.f32.mrb[49].mxu0 }
 0x38e   : > { %v10198_v60 = vadd.f32 %v13149_v42, %v9058_v62  ;;  %v9061_v50 = vadd.f32 %v9060_v16, %v9059_v57  ;;  %v9240_v41 = vadd.f32 %v9239_v59, %v9238_v14  ;;  %v9241_v13 = vpop.f32.mrb[50].mxu0  ;;  %v14140_v62 = vld [vmem:[#allocation75_spill] sm:$0xff]  ;;  %v14141_v57 = vld [vmem:[#allocation57_spill] sm:$0xff]  ;;  %v14142_v16 = vld [vmem:[#allocation76_spill] sm:$0xff] }
 0x38f   : > { %9903 = vmatmul.mubr.bf16.gmra.mrb[24].mxu1 %v14130_v47  ;;  %v9242_v54 = vpop.f32.mrb[51].mxu0  ;;  %v14144_v47 = vld [vmem:[#allocation97_spill] sm:$0xff] }
 0x390   : > { %v13370_v4 = vadd.f32 %v10198_v60, %v9194_v22  ;;  %v10216_v35 = vadd.f32 %v14131_v20, %v9061_v50  ;;  %9906 = vmatprep.mubr.bf16.mxu1 %v14132_v39  ;;  %v13377_v48 = vadd.f32 %v14133_v45, %v9240_v41  ;;  %v9243_v42 = vadd.f32 %v9242_v54, %v9241_v13  ;;  %v14145_v41 = vld [vmem:[#allocation77_spill] sm:$0xff]  ;;  %v14146_v54 = vld [vmem:[#allocation78_spill] sm:$0xff]  ;;  %v10999_v45 = vld [vmem:[%s11157_s8 + $0xcc] sm:$0xff]   ;;  %s7395_s8 = sshll.u32 %s14170_s24, 5 }
 0x391   : > { %6628 = vmatmul.mubr.bf16.gmra.mrb[156].mxu0 %v14134_v0  ;;  %v14147_v0 = vld [vmem:[#allocation88_spill] sm:$0xff] }
 0x392   : > { %v13374_v43 = vadd.f32 %v10216_v35, %v9197_v40  ;;  %v13381_v29 = vadd.f32 %v14135_v32, %v9243_v42  ;;  %6635 = vmatprep.mubr.bf16.mxu0 %v14136_v44  ;;  %v6305_v42 = vrot.slane %v10999_v45, 1  ;;  %v6306_v32 = vrot.slane %v14147_v0, 1  ;;  %v14148_v44 = vld [vmem:[#allocation98_spill] sm:$0xff] }
 0x394   : > { %v9244_v15 = vpop.f32.mrb[52].mxu0 }
 0x395   : > { %v9245_v2 = vpop.f32.mrb[53].mxu0 }
 0x396   : > { %v9246_v22 = vadd.f32 %v9245_v2, %v9244_v15  ;;  %v9247_v56 = vpop.f32.mrb[54].mxu0  ;;  %v14149_v2 = vld [vmem:[#allocation99_spill] sm:$0xff] }
 0x397   : > { %9907 = vmatmul.mubr.bf16.gmra.mrb[28].mxu1 %v14137_v27  ;;  %v9248_v23 = vpop.f32.mrb[55].mxu0 }
 0x398   : > { %9910 = vmatprep.mubr.bf16.mxu1 %v14138_v5  ;;  %v13387_v19 = vadd.f32 %v14139_v53, %v9246_v22  ;;  %v9249_v40 = vadd.f32 %v9248_v23, %v9247_v56  ;;  %v6307_v56 = vsel %vm2737_vm1, %v6305_v42, %v6306_v32  ;;  %v14150_v53 = vld [vmem:[#allocation79_spill] sm:$0xff] }
 0x399   : > { %6636 = vmatmul.mubr.bf16.gmra.mrb[160].mxu0 %v14140_v62  ;;  %v11000_v62 = vld [vmem:[%s11176_s18 + $0xcc] sm:$0xff]   ;;  %s7396_s18 = sshll.u32 %s14164_s25, 7 }
 0x39a   : > { %v13391_v36 = vadd.f32 %v14141_v57, %v9249_v40  ;;  %6643 = vmatprep.mubr.bf16.mxu0 %v14142_v16  ;;  %v6302_v57 = vrot.slane %v11000_v62, 1  ;;  %v6303_v16 = vrot.slane %v13202_v11, 1  ;;  %s417_s9 = sadd.s32 %s7396_s18, %s7395_s8  ;;  %s433_s8 = scalar_lea.vmem %s13697_s7, %s425_s11 }
 0x39b   : > { %s7397_s23 = sshll.u32 %s417_s9, 2 }
 0x39c   : > { %v9250_v60 = vpop.f32.mrb[56].mxu0  ;;  %s13568_s13 = scalar_lea.vmem %s13695_s5, %s7397_s23 }
 0x39d   : > { %v9251_v50 = vpop.f32.mrb[57].mxu0 }
 0x39e   : > { %v9252_v14 = vadd.f32 %v9251_v50, %v9250_v60  ;;  %v9253_v20 = vpop.f32.mrb[58].mxu0 }
 0x39f   : > { %9911 = vmatmul.mubr.bf16.gmra.mrb[32].mxu1 %v14143_v6  ;;  %v9254_v35 = vpop.f32.mrb[59].mxu0  ;;  %v14151_v6 = vld [vmem:[#allocation100_spill] sm:$0xff] }
 0x3a0   : > { %9914 = vmatprep.mubr.bf16.mxu1 %v14144_v47  ;;  %v13397_v59 = vadd.f32 %v13207_v17, %v9252_v14  ;;  %v9255_v39 = vadd.f32 %v9254_v35, %v9253_v20  ;;  %v14152_v47 = vld [vmem:[#allocation80_spill] sm:$0xff]  ;;  %v6309_v14 = vrot.slane %v13319_v7, 1 }
 0x3a1   : > { %6644 = vmatmul.mubr.bf16.gmra.mrb[164].mxu0 %v14145_v41 }
 0x3a2   : > { %v13401_v13 = vadd.f32 %v13213_v49, %v9255_v39  ;;  %6651 = vmatprep.mubr.bf16.mxu0 %v14146_v54 }
 0x3a4   : > { %v9256_v27 = vpop.f32.mrb[60].mxu0 }
 0x3a5   : > { %v9257_v15 = vpop.f32.mrb[61].mxu0 }
 0x3a6   : > { %v9258_v17 = vadd.f32 %v9257_v15, %v9256_v27  ;;  %v9259_v5 = vpop.f32.mrb[62].mxu0 }
 0x3a7   : > { %9915 = vmatmul.mubr.bf16.gmra.mrb[36].mxu1 %v14148_v44  ;;  %v9260_v22 = vpop.f32.mrb[63].mxu0 }
 0x3a8   : > { %9918 = vmatprep.mubr.bf16.mxu1 %v14149_v2  ;;  %v13410_v49 = vadd.f32 %v13219_v63, %v9258_v17  ;;  %v9261_v23 = vadd.f32 %v9260_v22, %v9259_v5  ;;  %v6308_v63 = vrot.slane %v13227_v55, 1 }
 0x3a9   : > { %6652 = vmatmul.mubr.bf16.gmra.mrb[168].mxu0 %v14150_v53 }
 0x3aa   : > { %v13414_v40 = vadd.f32 %v13224_v26, %v9261_v23  ;;  %6659 = vmatprep.mubr.bf16.mxu0 %v6307_v56  ;;  %v6304_v26 = vsel %vm2737_vm1, %v6302_v57, %v6303_v16  ;;  %v6310_v11 = vsel %vm2737_vm1, %v6308_v63, %v6309_v14 }
 0x3ac   : > { %v9262_v60 = vpop.f32.mrb[64].mxu0 }
 0x3ad   : > { %v9263_v50 = vpop.f32.mrb[65].mxu0 }
 0x3ae   : > { %v9264_v20 = vadd.f32 %v9263_v50, %v9262_v60  ;;  %v9265_v35 = vpop.f32.mrb[66].mxu0 }
 0x3af   : > { %9919 = vmatmul.mubr.bf16.gmra.mrb[40].mxu1 %v14151_v6  ;;  %v9266_v39 = vpop.f32.mrb[67].mxu0 }
 0x3b0   : > { %9922 = vmatprep.mubr.bf16.mxu1 %v14152_v47  ;;  %v13424_v41 = vadd.f32 %v13232_v3, %v9264_v20  ;;  %v9267_v54 = vadd.f32 %v9266_v39, %v9265_v35 }
 0x3b1   : > { %6660 = vmatmul.mubr.bf16.gmra.mrb[172].mxu0 %v6304_v26 }
 0x3b2   : > { %v13428_v45 = vadd.f32 %v13236_v37, %v9267_v54 }
 0x3b4   : > { %v9268_v42 = vpop.f32.mrb[68].mxu0 }
 0x3b5   : > { %v9269_v55 = vpop.f32.mrb[69].mxu0 }
 0x3b6   : > { %v9270_v0 = vadd.f32 %v9269_v55, %v9268_v42  ;;  %v9271_v7 = vpop.f32.mrb[70].mxu0 }
 0x3b7   : > { %9923 = vmatmul.mubr.bf16.gmra.mrb[44].mxu1 %v6310_v11  ;;  %v9272_v32 = vpop.f32.mrb[71].mxu0 }
 0x3b8   : > { %v13431_v44 = vadd.f32 %v13245_v61, %v9270_v0  ;;  %v9273_v27 = vadd.f32 %v9272_v32, %v9271_v7 }
 0x3ba   : > { %v13434_v3 = vadd.f32 %v13253_v12, %v9273_v27 }
 0x3bc   : > { %v9274_v15 = vpop.f32.mrb[72].mxu0 }
 0x3bd   : > { %v9275_v2 = vpop.f32.mrb[73].mxu0 }
 0x3be   : > { %v9276_v17 = vadd.f32 %v9275_v2, %v9274_v15  ;;  %v9277_v5 = vpop.f32.mrb[74].mxu0 }
 0x3bf   : > { %v9278_v22 = vpop.f32.mrb[75].mxu0 }
 0x3c0   : > { %v13437_v37 = vadd.f32 %v13262_v33, %v9276_v17  ;;  %v9279_v56 = vadd.f32 %v9278_v22, %v9277_v5 }
 0x3c2   : > { %v13440_v23 = vadd.f32 %v13269_v58, %v9279_v56 }
 0x3c4   : > { %v9280_v53 = vpop.f32.mrb[76].mxu0 }
 0x3c5   : > { %v9281_v62 = vpop.f32.mrb[77].mxu0 }
 0x3c6   : > { %v9282_v61 = vadd.f32 %v9281_v62, %v9280_v53  ;;  %v9283_v57 = vpop.f32.mrb[78].mxu0 }
 0x3c7   : > { %v9284_v16 = vpop.f32.mrb[79].mxu0 }
 0x3c8   : > { %v13443_v12 = vadd.f32 %v13278_v8, %v9282_v61  ;;  %v9285_v6 = vadd.f32 %v9284_v16, %v9283_v57 }
 0x3ca   : > { %v13446_v60 = vadd.f32 %v13285_v21, %v9285_v6 }
 0x3cc   : > { %v9286_v50 = vpop.f32.mrb[80].mxu0 }
 0x3cd   : > { %v9287_v47 = vpop.f32.mrb[81].mxu0 }
 0x3ce   : > { %v9288_v33 = vadd.f32 %v9287_v47, %v9286_v50  ;;  %v9289_v63 = vpop.f32.mrb[82].mxu0 }
 0x3cf   : > { %v9290_v14 = vpop.f32.mrb[83].mxu0 }
 0x3d0   : > { %v13449_v58 = vadd.f32 %v13294_v34, %v9288_v33  ;;  %v9291_v20 = vadd.f32 %v9290_v14, %v9289_v63 }
 0x3d2   : > { %v13452_v35 = vadd.f32 %v13298_v52, %v9291_v20 }
 0x3d4   : > { %v9292_v26 = vpop.f32.mrb[84].mxu0 }
 0x3d5   : > { %v9293_v39 = vpop.f32.mrb[85].mxu0 }
 0x3d6   : > { %v9294_v8 = vadd.f32 %v9293_v39, %v9292_v26  ;;  %v9295_v54 = vpop.f32.mrb[86].mxu0 }
 0x3d7   : > { %v9296_v11 = vpop.f32.mrb[87].mxu0 }
 0x3d8   : > { %v13455_v21 = vadd.f32 %v13304_v9, %v9294_v8  ;;  %v9297_v42 = vadd.f32 %v9296_v11, %v9295_v54 }
 0x3da   : > { %v13458_v55 = vadd.f32 %v13308_v30, %v9297_v42 }
 0x3dc   : > { %v9298_v0 = vpop.f32.mrb[88].mxu0 }
 0x3dd   : > { %v9299_v7 = vpop.f32.mrb[89].mxu0 }
 0x3de   : > { %v9300_v34 = vadd.f32 %v9299_v7, %v9298_v0  ;;  %v9301_v32 = vpop.f32.mrb[90].mxu0 }
 0x3df   : > { %v9302_v27 = vpop.f32.mrb[91].mxu0 }
 0x3e0   : > { %v13461_v52 = vadd.f32 %v13314_v51, %v9300_v34  ;;  %v9303_v15 = vadd.f32 %v9302_v27, %v9301_v32 }
 0x3e2   : > { %v13464_v2 = vadd.f32 %v13322_v1, %v9303_v15 }
 0x3e4   : > { %v9304_v17 = vpop.f32.mrb[92].mxu0 }
 0x3e5   : > { %v9305_v5 = vpop.f32.mrb[93].mxu0 }
 0x3e6   : > { %v9306_v9 = vadd.f32 %v9305_v5, %v9304_v17  ;;  %v9307_v22 = vpop.f32.mrb[94].mxu0 }
 0x3e7   : > { %v9308_v56 = vpop.f32.mrb[95].mxu0 }
 0x3e8   : > { %v13467_v30 = vadd.f32 %v13330_v28, %v9306_v9  ;;  %v9309_v53 = vadd.f32 %v9308_v56, %v9307_v22 }
 0x3ea   : > { %v13470_v62 = vadd.f32 %v13334_v46, %v9309_v53 }
 0x3ec   : > { %v9310_v61 = vpop.f32.mrb[96].mxu0 }
 0x3ed   : > { %v9311_v57 = vpop.f32.mrb[97].mxu0 }
 0x3ee   : > { %v9312_v51 = vadd.f32 %v9311_v57, %v9310_v61  ;;  %v9313_v16 = vpop.f32.mrb[98].mxu0 }
 0x3ef   : > { %v9314_v6 = vpop.f32.mrb[99].mxu0 }
 0x3f0   : > { %v13473_v1 = vadd.f32 %v13340_v10, %v9312_v51  ;;  %v9315_v50 = vadd.f32 %v9314_v6, %v9313_v16 }
 0x3f2   : > { %v13476_v47 = vadd.f32 %v13344_v38, %v9315_v50 }
 0x3f4   : > { %v9316_v33 = vpop.f32.mrb[100].mxu0 }
 0x3f5   : > { %v9317_v63 = vpop.f32.mrb[101].mxu0 }
 0x3f6   : > { %v9318_v28 = vadd.f32 %v9317_v63, %v9316_v33  ;;  %v9319_v14 = vpop.f32.mrb[102].mxu0 }
 0x3f7   : > { %v9320_v20 = vpop.f32.mrb[103].mxu0 }
 0x3f8   : > { %v13479_v46 = vadd.f32 %v13350_v25, %v9318_v28  ;;  %v9321_v26 = vadd.f32 %v9320_v20, %v9319_v14 }
 0x3fa   : > { %v13482_v39 = vadd.f32 %v13354_v18, %v9321_v26 }
 0x3fc   : > { %v9322_v8 = vpop.f32.mrb[104].mxu0 }
 0x3fd   : > { %v9323_v54 = vpop.f32.mrb[105].mxu0 }
 0x3fe   : > { %v9324_v10 = vadd.f32 %v9323_v54, %v9322_v8  ;;  %v9325_v11 = vpop.f32.mrb[106].mxu0 }
 0x3ff   : > { %v9326_v42 = vpop.f32.mrb[107].mxu0 }
 0x400   : > { %v13485_v38 = vadd.f32 %v13360_v31, %v9324_v10  ;;  %v9327_v0 = vadd.f32 %v9326_v42, %v9325_v11 }
 0x402   : > { %v13488_v7 = vadd.f32 %v13364_v24, %v9327_v0 }
 0x404   : > { %v9328_v34 = vpop.f32.mrb[108].mxu0 }
 0x405   : > { %v9329_v32 = vpop.f32.mrb[109].mxu0 }
 0x406   : > { %v9330_v25 = vadd.f32 %v9329_v32, %v9328_v34  ;;  %v9331_v27 = vpop.f32.mrb[110].mxu0 }
 0x407   : > { %v9332_v15 = vpop.f32.mrb[111].mxu0 }
 0x408   : > { %v13491_v18 = vadd.f32 %v13370_v4, %v9330_v25  ;;  %v9333_v17 = vadd.f32 %v9332_v15, %v9331_v27 }
 0x40a   : > { %v13494_v5 = vadd.f32 %v13374_v43, %v9333_v17 }
 0x40c   : > { %v9374_v9 = vpop.f32.mrb[112].mxu0 }
 0x40d   : > { %v9375_v22 = vpop.f32.mrb[113].mxu0 }
 0x40e   : > { %v9376_v31 = vadd.f32 %v9375_v22, %v9374_v9  ;;  %v9377_v56 = vpop.f32.mrb[114].mxu0 }
 0x40f   : > { %v9378_v53 = vpop.f32.mrb[115].mxu0 }
 0x410   : > { %v9379_v61 = vadd.f32 %v9378_v53, %v9377_v56  ;;  %v13497_v24 = vadd.f32 %v13377_v48, %v9376_v31 }
 0x412   : > { %v13500_v57 = vadd.f32 %v13381_v29, %v9379_v61 }
 0x414   : > { %v9380_v51 = vpop.f32.mrb[116].mxu0 }
 0x415   : > { %v9381_v16 = vpop.f32.mrb[117].mxu0 }
 0x416   : > { %v9382_v4 = vadd.f32 %v9381_v16, %v9380_v51  ;;  %v9383_v6 = vpop.f32.mrb[118].mxu0 }
 0x417   : > { %v9384_v50 = vpop.f32.mrb[119].mxu0 }
 0x418   : > { %v9385_v33 = vadd.f32 %v9384_v50, %v9383_v6  ;;  %v9949_v43 = vadd.f32 %v13387_v19, %v9382_v4 }
 0x41a   : > { %v13504_v63 = vadd.f32 %v13391_v36, %v9385_v33 }
 0x41c   : > { %v9386_v28 = vpop.f32.mrb[120].mxu0 }
 0x41d   : > { %v9387_v14 = vpop.f32.mrb[121].mxu0 }
 0x41e   : > { %v9388_v20 = vadd.f32 %v9387_v14, %v9386_v28  ;;  %v9389_v26 = vpop.f32.mrb[122].mxu0 }
 0x41f   : > { %v9390_v48 = vpop.f32.mrb[123].mxu0 }
 0x420   : > { %v9391_v8 = vadd.f32 %v9390_v48, %v9389_v26  ;;  %v13507_v29 = vadd.f32 %v13397_v59, %v9388_v20 }
 0x422   : > { %v13510_v54 = vadd.f32 %v13401_v13, %v9391_v8 }
 0x424   : > { %v9392_v10 = vpop.f32.mrb[124].mxu0 }
 0x425   : > { %v9393_v11 = vpop.f32.mrb[125].mxu0 }
 0x426   : > { %v9394_v42 = vadd.f32 %v9393_v11, %v9392_v10  ;;  %v9395_v0 = vpop.f32.mrb[126].mxu0 }
 0x427   : > { %v9396_v19 = vpop.f32.mrb[127].mxu0 }
 0x428   : > { %v9397_v34 = vadd.f32 %v9396_v19, %v9395_v0  ;;  %v13513_v36 = vadd.f32 %v13410_v49, %v9394_v42 }
 0x42a   : > { %v13516_v32 = vadd.f32 %v13414_v40, %v9397_v34 }
 0x42c   : > { %v9398_v25 = vpop.f32.mrb[128].mxu0 }
 0x42d   : > { %v9399_v27 = vpop.f32.mrb[129].mxu0 }
 0x42e   : > { %v9400_v15 = vadd.f32 %v9399_v27, %v9398_v25  ;;  %v9401_v59 = vpop.f32.mrb[130].mxu0  ;;  %v13551_v27 = vld [vmem:[%s13694_s4] ss:$0 sm:$0xff] }
 0x42f   : > { %v9402_v17 = vpop.f32.mrb[131].mxu0 }
 0x430   : > { %v9403_v9 = vadd.f32 %v9402_v17, %v9401_v59  ;;  %v13519_v13 = vadd.f32 %v13424_v41, %v9400_v15 }
 0x432   : > { %v13522_v22 = vadd.f32 %v13428_v45, %v9403_v9 }
 0x434   : > { %v9404_v31 = vpop.f32.mrb[132].mxu0 }
 0x435   : > { %v9405_v56 = vpop.f32.mrb[133].mxu0 }
 0x436   : > { %v9406_v49 = vadd.f32 %v9405_v56, %v9404_v31  ;;  %v9407_v53 = vpop.f32.mrb[134].mxu0 }
 0x437   : > { %v9408_v61 = vpop.f32.mrb[135].mxu0 }
 0x438   : > { %v9409_v40 = vadd.f32 %v9408_v61, %v9407_v53  ;;  %v13525_v51 = vadd.f32 %v13431_v44, %v9406_v49 }
 0x43a   : > { %v13528_v16 = vadd.f32 %v13434_v3, %v9409_v40 }
 0x43c   : > { %v9410_v4 = vpop.f32.mrb[136].mxu0 }
 0x43d   : > { %v9411_v41 = vpop.f32.mrb[137].mxu0 }
 0x43e   : > { %v9412_v6 = vadd.f32 %v9411_v41, %v9410_v4  ;;  %v9413_v50 = vpop.f32.mrb[138].mxu0 }
 0x43f   : > { %v9414_v45 = vpop.f32.mrb[139].mxu0 }
 0x440   : > { %v9415_v33 = vadd.f32 %v9414_v45, %v9413_v50  ;;  %v13531_v28 = vadd.f32 %v13437_v37, %v9412_v6 }
 0x442   : > { %v13534_v14 = vadd.f32 %v13440_v23, %v9415_v33 }
 0x444   : > { %v9416_v20 = vpop.f32.mrb[140].mxu0 }
 0x445   : > { %v9417_v44 = vpop.f32.mrb[141].mxu0 }
 0x446   : > { %v9418_v26 = vadd.f32 %v9417_v44, %v9416_v20  ;;  %v9419_v3 = vpop.f32.mrb[142].mxu0 }
 0x447   : > { %v9420_v48 = vpop.f32.mrb[143].mxu0 }
 0x448   : > { %v9421_v8 = vadd.f32 %v9420_v48, %v9419_v3  ;;  %v13541_v10 = vadd.f32 %v13443_v12, %v9418_v26 }
 0x44a   : > { %v13544_v11 = vadd.f32 %v13446_v60, %v9421_v8 }
 0x44c   : > { %v9422_v37 = vpop.f32.mrb[144].mxu0 }
 0x44d   : > { %v9423_v23 = vpop.f32.mrb[145].mxu0 }
 0x44e   : > { %v9424_v42 = vadd.f32 %v9423_v23, %v9422_v37  ;;  %v9425_v0 = vpop.f32.mrb[146].mxu0 }
 0x44f   : > { %v9426_v34 = vpop.f32.mrb[147].mxu0 }
 0x450   : > { %v9427_v15 = vadd.f32 %v9426_v34, %v9425_v0  ;;  %v13554_v60 = vadd.f32 %v13449_v58, %v9424_v42 }
 0x452   : > { %v9896_v19 = vpop.f32.mrb[16].mxu1  ;;  %v13559_v56 = vadd.f32 %v13452_v35, %v9427_v15 }
 0x453   : > { %v9950_v25 = vadd.f32 %v9949_v43, %v9896_v19  ;;  %v6702_v12 = vpop.f32.mrb[17].mxu1 }
 0x454   : > { %v9959_v59 = vadd.f32 %v13497_v24, %v6702_v12  ;;  %v9897_v17 = vpop.f32.mrb[18].mxu1  ;;  %v9428_v58 = vpop.f32.mrb[148].mxu0 }
 0x455   : > { %v9968_v9 = vadd.f32 %v13504_v63, %v9897_v17  ;;  %v6705_v31 = vpop.f32.mrb[19].mxu1  ;;  %v6870_v53 = vadd.f32 %v9950_v25, %v13551_v27  ;;  %v9429_v63 = vpop.f32.mrb[149].mxu0 }
 0x456   : > { %v6868_v43 = vadd.f32 %v9959_v59, %v13551_v27  ;;  %v9977_v49 = vadd.f32 %v13500_v57, %v6705_v31  ;;  %v9430_v40 = vadd.f32 %v9429_v63, %v9428_v58  ;;  %v9431_v4 = vpop.f32.mrb[150].mxu0 }
 0x457   : > { %v6871_v61 = vadd.f32 %v9968_v9, %v13551_v27  ;;  %v9432_v33 = vpop.f32.mrb[151].mxu0  ;;  %v7100_v48 = vmul.f32 %v6870_v53, %v6870_v53 }
 0x458   : > { %v6869_v24 = vadd.f32 %v9977_v49, %v13551_v27  ;;  %v7098_v41 = vmul.f32 %v6868_v43, %v6868_v43  ;;  %v9433_v26 = vadd.f32 %v9432_v33, %v9431_v4  ;;  %v13574_v3 = vadd.f32 %v13455_v21, %v9430_v40 }
 0x459   : > { %v8183_v35 = vpack.c.bf16 %v6871_v61, %v6870_v53  ;;  %v7101_v0 = vmul.f32 %v6871_v61, %v6871_v61 }
 0x45a   : > { %v8178_v57 = vpack.c.bf16 %v6869_v24, %v6868_v43  ;;  %v7060_v6 = vadd.f32 %v6869_v24, %v6868_v43  ;;  %v7099_v50 = vmul.f32 %v6869_v24, %v6869_v24  ;;  %v9900_v45 = vpop.f32.mrb[20].mxu1  ;;  %v13580_v25 = vadd.f32 %v13458_v55, %v9433_v26 }
 0x45b   : > { %8255 = vst [vmem:[%s13568_s13 + $0x8] sm:$0xff] %v8183_v35   ;;  %v9986_v20 = vadd.f32 %v13513_v36, %v9900_v45  ;;  %v6718_v44 = vpop.f32.mrb[21].mxu1 }
 0x45c   : > { %8179 = vst [vmem:[%s13568_s13] sm:$0xff] %v8178_v57   ;;  %v7061_v8 = vadd.f32 %v7060_v6, %v6870_v53  ;;  %v7130_v37 = vadd.f32 %v7099_v50, %v7098_v41  ;;  %v9995_v23 = vadd.f32 %v13507_v29, %v6718_v44  ;;  %v9901_v42 = vpop.f32.mrb[22].mxu1  ;;  %v9434_v29 = vpop.f32.mrb[152].mxu0 }
 0x45d   : > { %v10004_v19 = vadd.f32 %v13516_v32, %v9901_v42  ;;  %v6721_v34 = vpop.f32.mrb[23].mxu1  ;;  %v6874_v59 = vadd.f32 %v9986_v20, %v13551_v27  ;;  %v9435_v49 = vpop.f32.mrb[153].mxu0 }
 0x45e   : > { %v7131_v36 = vadd.f32 %v7130_v37, %v7100_v48  ;;  %v6872_v12 = vadd.f32 %v9995_v23, %v13551_v27  ;;  %v7062_v15 = vadd.f32 %v7061_v8, %v6871_v61  ;;  %v10013_v21 = vadd.f32 %v13510_v54, %v6721_v34  ;;  %v9437_v58 = vpop.f32.mrb[154].mxu0 }
 0x45f   : > { %v6875_v17 = vadd.f32 %v10004_v19, %v13551_v27  ;;  %v9436_v53 = vadd.f32 %v9435_v49, %v9434_v29  ;;  %v9438_v40 = vpop.f32.mrb[155].mxu0  ;;  %v7104_v50 = vmul.f32 %v6874_v59, %v6874_v59 }
 0x460   : > { %v7063_v9 = vadd.f32 %v7062_v15, %v6872_v12  ;;  %v7102_v31 = vmul.f32 %v6872_v12, %v6872_v12  ;;  %v7132_v43 = vadd.f32 %v7131_v36, %v7101_v0  ;;  %v6873_v32 = vadd.f32 %v10013_v21, %v13551_v27 }
 0x461   : > { %v8193_v55 = vpack.c.bf16 %v6875_v17, %v6874_v59  ;;  %v9439_v57 = vadd.f32 %v9438_v40, %v9437_v58  ;;  %v13590_v6 = vadd.f32 %v13461_v52, %v9436_v53  ;;  %v7105_v26 = vmul.f32 %v6875_v17, %v6875_v17 }
 0x462   : > { %v7133_v24 = vadd.f32 %v7132_v43, %v7102_v31  ;;  %v8188_v61 = vpack.c.bf16 %v6873_v32, %v6872_v12  ;;  %v7064_v63 = vadd.f32 %v7063_v9, %v6873_v32  ;;  %v7103_v54 = vmul.f32 %v6873_v32, %v6873_v32  ;;  %v9904_v35 = vpop.f32.mrb[24].mxu1 }
 0x463   : > { %8257 = vst [vmem:[%s13568_s13 + $0x18] sm:$0xff] %v8193_v55   ;;  %v10022_v4 = vadd.f32 %v13525_v51, %v9904_v35  ;;  %v6734_v41 = vpop.f32.mrb[25].mxu1  ;;  %v13596_v37 = vadd.f32 %v13464_v2, %v9439_v57 }
 0x464   : > { %8256 = vst [vmem:[%s13568_s13 + $0x10] sm:$0xff] %v8188_v61   ;;  %v7065_v45 = vadd.f32 %v7064_v63, %v6874_v59  ;;  %v7134_v33 = vadd.f32 %v7133_v24, %v7103_v54  ;;  %v10031_v20 = vadd.f32 %v13519_v13, %v6734_v41  ;;  %v9905_v44 = vpop.f32.mrb[26].mxu1  ;;  %v9440_v13 = vpop.f32.mrb[156].mxu0 }
 0x465   : > { %v10040_v48 = vadd.f32 %v13528_v16, %v9905_v44  ;;  %v6737_v8 = vpop.f32.mrb[27].mxu1  ;;  %v6878_v0 = vadd.f32 %v10022_v4, %v13551_v27  ;;  %v9441_v15 = vpop.f32.mrb[157].mxu0 }
 0x466   : > { %v7135_v51 = vadd.f32 %v7134_v33, %v7104_v50  ;;  %v6876_v23 = vadd.f32 %v10031_v20, %v13551_v27  ;;  %v7066_v42 = vadd.f32 %v7065_v45, %v6875_v17  ;;  %v10049_v52 = vadd.f32 %v13522_v22, %v6737_v8  ;;  %v9443_v59 = vpop.f32.mrb[158].mxu0 }
 0x467   : > { %v6879_v19 = vadd.f32 %v10040_v48, %v13551_v27  ;;  %v9442_v21 = vadd.f32 %v9441_v15, %v9440_v13  ;;  %v9444_v43 = vpop.f32.mrb[159].mxu0  ;;  %v7108_v58 = vmul.f32 %v6878_v0, %v6878_v0 }
 0x468   : > { %v7067_v34 = vadd.f32 %v7066_v42, %v6876_v23  ;;  %v7106_v36 = vmul.f32 %v6876_v23, %v6876_v23  ;;  %v7136_v12 = vadd.f32 %v7135_v51, %v7105_v26  ;;  %v6877_v16 = vadd.f32 %v10049_v52, %v13551_v27 }
 0x469   : > { %v8203_v2 = vpack.c.bf16 %v6879_v19, %v6878_v0  ;;  %v9445_v55 = vadd.f32 %v9444_v43, %v9443_v59  ;;  %v13606_v53 = vadd.f32 %v13467_v30, %v9442_v21  ;;  %v7109_v35 = vmul.f32 %v6879_v19, %v6879_v19 }
 0x46a   : > { %v7137_v29 = vadd.f32 %v7136_v12, %v7106_v36  ;;  %v8198_v17 = vpack.c.bf16 %v6877_v16, %v6876_v23  ;;  %v7068_v9 = vadd.f32 %v7067_v34, %v6877_v16  ;;  %v7107_v22 = vmul.f32 %v6877_v16, %v6877_v16  ;;  %v9908_v31 = vpop.f32.mrb[28].mxu1 }
 0x46b   : > { %8259 = vst [vmem:[%s13568_s13 + $0x28] sm:$0xff] %v8203_v2   ;;  %v10058_v32 = vadd.f32 %v13541_v10, %v9908_v31  ;;  %v6750_v49 = vpop.f32.mrb[29].mxu1  ;;  %v13612_v41 = vadd.f32 %v13470_v62, %v9445_v55 }
 0x46c   : > { %8258 = vst [vmem:[%s13568_s13 + $0x20] sm:$0xff] %v8198_v17   ;;  %v7069_v24 = vadd.f32 %v7068_v9, %v6878_v0  ;;  %v7138_v61 = vadd.f32 %v7137_v29, %v7107_v22  ;;  %v10067_v63 = vadd.f32 %v13531_v28, %v6750_v49  ;;  %v9909_v54 = vpop.f32.mrb[30].mxu1  ;;  %v9446_v28 = vpop.f32.mrb[160].mxu0 }
 0x46d   : > { %v10076_v40 = vadd.f32 %v13544_v11, %v9909_v54  ;;  %v6753_v4 = vpop.f32.mrb[31].mxu1  ;;  %v6882_v45 = vadd.f32 %v10058_v32, %v13551_v27  ;;  %v9447_v48 = vpop.f32.mrb[161].mxu0 }
 0x46e   : > { %v7139_v10 = vadd.f32 %v7138_v61, %v7108_v58  ;;  %v6880_v57 = vadd.f32 %v10067_v63, %v13551_v27  ;;  %v7070_v50 = vadd.f32 %v7069_v24, %v6879_v19  ;;  %v10085_v30 = vadd.f32 %v13534_v14, %v6753_v4  ;;  %v9449_v51 = vpop.f32.mrb[162].mxu0 }
 0x46f   : > { %v6883_v33 = vadd.f32 %v10076_v40, %v13551_v27  ;;  %v9448_v8 = vadd.f32 %v9447_v48, %v9446_v28  ;;  %v9450_v19 = vpop.f32.mrb[163].mxu0  ;;  %v7112_v16 = vmul.f32 %v6882_v45, %v6882_v45 }
 0x470   : > { %v7071_v20 = vadd.f32 %v7070_v50, %v6880_v57  ;;  %v7110_v44 = vmul.f32 %v6880_v57, %v6880_v57  ;;  %v7140_v26 = vadd.f32 %v7139_v10, %v7109_v35  ;;  %v6881_v11 = vadd.f32 %v10085_v30, %v13551_v27 }
 0x471   : > { %v8213_v62 = vpack.c.bf16 %v6883_v33, %v6882_v45  ;;  %v9451_v36 = vadd.f32 %v9450_v19, %v9449_v51  ;;  %v13622_v12 = vadd.f32 %v13473_v1, %v9448_v8  ;;  %v7113_v29 = vmul.f32 %v6883_v33, %v6883_v33 }
 0x472   : > { %v7141_v23 = vadd.f32 %v7140_v26, %v7110_v44  ;;  %v8208_v42 = vpack.c.bf16 %v6881_v11, %v6880_v57  ;;  %v7072_v52 = vadd.f32 %v7071_v20, %v6881_v11  ;;  %v7111_v14 = vmul.f32 %v6881_v11, %v6881_v11  ;;  %v9912_v0 = vpop.f32.mrb[32].mxu1 }
 0x473   : > { %8261 = vst [vmem:[%s13568_s13 + $0x38] sm:$0xff] %v8213_v62   ;;  %v10094_v13 = vadd.f32 %v13574_v3, %v9912_v0  ;;  %v6766_v34 = vpop.f32.mrb[33].mxu1  ;;  %v13628_v22 = vadd.f32 %v13476_v47, %v9451_v36 }
 0x474   : > { %8260 = vst [vmem:[%s13568_s13 + $0x30] sm:$0xff] %v8208_v42   ;;  %v7073_v15 = vadd.f32 %v7072_v52, %v6882_v45  ;;  %v7142_v2 = vadd.f32 %v7141_v23, %v7111_v14  ;;  %v10103_v21 = vadd.f32 %v13554_v60, %v6766_v34  ;;  %v9913_v59 = vpop.f32.mrb[34].mxu1  ;;  %v9452_v60 = vpop.f32.mrb[164].mxu0 }
 0x475   : > { %v10112_v17 = vadd.f32 %v13580_v25, %v9913_v59  ;;  %v6769_v9 = vpop.f32.mrb[35].mxu1  ;;  %v6886_v32 = vadd.f32 %v10094_v13, %v13551_v27  ;;  %v9453_v61 = vpop.f32.mrb[165].mxu0 }
 0x476   : > { %v7143_v3 = vadd.f32 %v7142_v2, %v7112_v16  ;;  %v6884_v31 = vadd.f32 %v10103_v21, %v13551_v27  ;;  %v7074_v43 = vadd.f32 %v7073_v15, %v6883_v33  ;;  %v10121_v1 = vadd.f32 %v13559_v56, %v6769_v9  ;;  %v9455_v54 = vpop.f32.mrb[166].mxu0 }
 0x477   : > { %v6887_v49 = vadd.f32 %v10112_v17, %v13551_v27  ;;  %v9454_v63 = vadd.f32 %v9453_v61, %v9452_v60  ;;  %v9456_v57 = vpop.f32.mrb[167].mxu0  ;;  %v7116_v28 = vmul.f32 %v6886_v32, %v6886_v32 }
 0x478   : > { %v7075_v55 = vadd.f32 %v7074_v43, %v6884_v31  ;;  %v7114_v58 = vmul.f32 %v6884_v31, %v6884_v31  ;;  %v7144_v24 = vadd.f32 %v7143_v3, %v7113_v29  ;;  %v6885_v25 = vadd.f32 %v10121_v1, %v13551_v27 }
 0x479   : > { %v8223_v47 = vpack.c.bf16 %v6887_v49, %v6886_v32  ;;  %v9457_v45 = vadd.f32 %v9456_v57, %v9455_v54  ;;  %v10165_v33 = vadd.f32 %v13479_v46, %v9454_v63  ;;  %v7117_v48 = vmul.f32 %v6887_v49, %v6887_v49 }
 0x47a   : > { %v7145_v35 = vadd.f32 %v7144_v24, %v7114_v58  ;;  %v8218_v40 = vpack.c.bf16 %v6885_v25, %v6884_v31  ;;  %v7076_v4 = vadd.f32 %v7075_v55, %v6885_v25  ;;  %v7115_v56 = vmul.f32 %v6885_v25, %v6885_v25  ;;  %v9916_v10 = vpop.f32.mrb[36].mxu1 }
 0x47b   : > { %8263 = vst [vmem:[%s13568_s13 + $0x48] sm:$0xff] %v8223_v47   ;;  %v10130_v50 = vadd.f32 %v13606_v53, %v9916_v10  ;;  %v6782_v30 = vpop.f32.mrb[37].mxu1  ;;  %v10183_v51 = vadd.f32 %v13482_v39, %v9457_v45 }
 0x47c   : > { %8262 = vst [vmem:[%s13568_s13 + $0x40] sm:$0xff] %v8218_v40   ;;  %v7077_v20 = vadd.f32 %v7076_v4, %v6886_v32  ;;  %v7146_v44 = vadd.f32 %v7145_v35, %v7115_v56  ;;  %v10139_v26 = vadd.f32 %v13590_v6, %v6782_v30  ;;  %v9917_v11 = vpop.f32.mrb[38].mxu1  ;;  %v9458_v0 = vpop.f32.mrb[168].mxu0 }
 0x47d   : > { %v10148_v62 = vadd.f32 %v13612_v41, %v9917_v11  ;;  %v6785_v8 = vpop.f32.mrb[39].mxu1  ;;  %v6890_v46 = vadd.f32 %v10130_v50, %v13551_v27  ;;  %v9459_v34 = vpop.f32.mrb[169].mxu0 }
 0x47e   : > { %v7147_v23 = vadd.f32 %v7146_v44, %v7116_v28  ;;  %v6888_v53 = vadd.f32 %v10139_v26, %v13551_v27  ;;  %v7078_v42 = vadd.f32 %v7077_v20, %v6887_v49  ;;  %v10157_v52 = vadd.f32 %v13596_v37, %v6785_v8  ;;  %v9461_v16 = vpop.f32.mrb[170].mxu0 }
 0x47f   : > { %v6891_v14 = vadd.f32 %v10148_v62, %v13551_v27  ;;  %v9460_v36 = vadd.f32 %v9459_v34, %v9458_v0  ;;  %v9462_v29 = vpop.f32.mrb[171].mxu0  ;;  %v7120_v43 = vmul.f32 %v6890_v46, %v6890_v46 }
 0x480   : > { %v7079_v6 = vadd.f32 %v7078_v42, %v6888_v53  ;;  %v7118_v19 = vmul.f32 %v6888_v53, %v6888_v53  ;;  %v7148_v13 = vadd.f32 %v7147_v23, %v7117_v48  ;;  %v6889_v41 = vadd.f32 %v10157_v52, %v13551_v27 }
 0x481   : > { %v8233_v39 = vpack.c.bf16 %v6891_v14, %v6890_v46  ;;  %v9463_v3 = vadd.f32 %v9462_v29, %v9461_v16  ;;  %v10210_v31 = vadd.f32 %v13485_v38, %v9460_v36  ;;  %v7121_v55 = vmul.f32 %v6891_v14, %v6891_v14 }
 0x482   : > { %v7149_v15 = vadd.f32 %v7148_v13, %v7118_v19  ;;  %v8228_v2 = vpack.c.bf16 %v6889_v41, %v6888_v53  ;;  %v7080_v21 = vadd.f32 %v7079_v6, %v6889_v41  ;;  %v7119_v37 = vmul.f32 %v6889_v41, %v6889_v41  ;;  %v9920_v59 = vpop.f32.mrb[40].mxu1 }
 0x483   : > { %8265 = vst [vmem:[%s13568_s13 + $0x58] sm:$0xff] %v8233_v39   ;;  %v10166_v17 = vadd.f32 %v10165_v33, %v9920_v59  ;;  %v6798_v9 = vpop.f32.mrb[41].mxu1  ;;  %v10228_v25 = vadd.f32 %v13488_v7, %v9463_v3 }
 0x484   : > { %8264 = vst [vmem:[%s13568_s13 + $0x50] sm:$0xff] %v8228_v2   ;;  %v7081_v1 = vadd.f32 %v7080_v21, %v6890_v46  ;;  %v7150_v32 = vadd.f32 %v7149_v15, %v7119_v37  ;;  %v10175_v49 = vadd.f32 %v13622_v12, %v6798_v9  ;;  %v9921_v60 = vpop.f32.mrb[42].mxu1  ;;  %v9464_v40 = vpop.f32.mrb[172].mxu0 }
 0x485   : > { %v10184_v58 = vadd.f32 %v10183_v51, %v9921_v60  ;;  %v6801_v24 = vpop.f32.mrb[43].mxu1  ;;  %v6894_v38 = vadd.f32 %v10166_v17, %v13551_v27  ;;  %v9465_v57 = vpop.f32.mrb[173].mxu0 }
 0x486   : > { %v7151_v61 = vadd.f32 %v7150_v32, %v7120_v43  ;;  %v6892_v47 = vadd.f32 %v10175_v49, %v13551_v27  ;;  %v7082_v63 = vadd.f32 %v7081_v1, %v6891_v14  ;;  %v10193_v54 = vadd.f32 %v13628_v22, %v6801_v24  ;;  %v9467_v30 = vpop.f32.mrb[174].mxu0 }
 0x487   : > { %v6895_v35 = vadd.f32 %v10184_v58, %v13551_v27  ;;  %v9466_v50 = vadd.f32 %v9465_v57, %v9464_v40  ;;  %v9468_v44 = vpop.f32.mrb[175].mxu0  ;;  %v7124_v62 = vmul.f32 %v6894_v38, %v6894_v38 }
 0x488   : > { %v7083_v4 = vadd.f32 %v7082_v63, %v6892_v47  ;;  %v7122_v12 = vmul.f32 %v6892_v47, %v6892_v47  ;;  %v7152_v56 = vadd.f32 %v7151_v61, %v7121_v55  ;;  %v6893_v10 = vadd.f32 %v10193_v54, %v13551_v27 }
 0x489   : > { %v8243_v7 = vpack.c.bf16 %v6895_v35, %v6894_v38  ;;  %v10201_v26 = vadd.f32 %v13491_v18, %v9466_v50  ;;  %v9469_v48 = vadd.f32 %v9468_v44, %v9467_v30  ;;  %v7125_v42 = vmul.f32 %v6895_v35, %v6895_v35 }
 0x48a   : > { %v7153_v45 = vadd.f32 %v7152_v56, %v7122_v12  ;;  %v8238_v33 = vpack.c.bf16 %v6893_v10, %v6892_v47  ;;  %v7084_v28 = vadd.f32 %v7083_v4, %v6893_v10  ;;  %v7123_v22 = vmul.f32 %v6893_v10, %v6893_v10  ;;  %v9924_v20 = vpop.f32.mrb[44].mxu1 }
 0x48b   : > { %8267 = vst [vmem:[%s13568_s13 + $0x68] sm:$0xff] %v8243_v7   ;;  %v6814_v11 = vpop.f32.mrb[45].mxu1  ;;  %v10202_v52 = vadd.f32 %v10201_v26, %v9924_v20  ;;  %v10219_v46 = vadd.f32 %v13494_v5, %v9469_v48 }
 0x48c   : > { %8266 = vst [vmem:[%s13568_s13 + $0x60] sm:$0xff] %v8238_v33   ;;  %v7085_v8 = vadd.f32 %v7084_v28, %v6894_v38  ;;  %v7154_v51 = vadd.f32 %v7153_v45, %v7123_v22  ;;  %v10211_v23 = vadd.f32 %v10210_v31, %v6814_v11  ;;  %v9925_v53 = vpop.f32.mrb[46].mxu1 }
 0x48d   : > { %v6817_v14 = vpop.f32.mrb[47].mxu1  ;;  %v6898_v18 = vadd.f32 %v10202_v52, %v13551_v27  ;;  %v10220_v41 = vadd.f32 %v10219_v46, %v9925_v53 }
 0x48e   : > { %v7155_v0 = vadd.f32 %v7154_v51, %v7124_v62  ;;  %v6896_v6 = vadd.f32 %v10211_v23, %v13551_v27  ;;  %v7086_v19 = vadd.f32 %v7085_v8, %v6895_v35  ;;  %v10229_v13 = vadd.f32 %v10228_v25, %v6817_v14 }
 0x48f   : > { %v7128_v15 = vmul.f32 %v6898_v18, %v6898_v18  ;;  %v6899_v2 = vadd.f32 %v10220_v41, %v13551_v27 }
 0x490   : > { %v7087_v34 = vadd.f32 %v7086_v19, %v6896_v6  ;;  %v7126_v39 = vmul.f32 %v6896_v6, %v6896_v6  ;;  %v7156_v36 = vadd.f32 %v7155_v0, %v7125_v42  ;;  %v6897_v16 = vadd.f32 %v10229_v13, %v13551_v27 }
 0x491   : > { %v8253_v29 = vpack.c.bf16 %v6899_v2, %v6898_v18  ;;  %v7129_v17 = vmul.f32 %v6899_v2, %v6899_v2 }
 0x492   : > { %v7157_v5 = vadd.f32 %v7156_v36, %v7126_v39  ;;  %v8248_v21 = vpack.c.bf16 %v6897_v16, %v6896_v6  ;;  %v7088_v37 = vadd.f32 %v7087_v34, %v6897_v16  ;;  %v7127_v59 = vmul.f32 %v6897_v16, %v6897_v16 }
 0x493   : > { %8269 = vst [vmem:[%s13568_s13 + $0x78] sm:$0xff] %v8253_v29  }
 0x494   : > { %8268 = vst [vmem:[%s13568_s13 + $0x70] sm:$0xff] %v8248_v21   ;;  %v7089_v9 = vadd.f32 %v7088_v37, %v6898_v18  ;;  %v7158_v3 = vadd.f32 %v7157_v5, %v7127_v59 }
 0x496   : > { %v7090_v31 = vadd.f32 %v7089_v9, %v6899_v2  ;;  %v7159_v43 = vadd.f32 %v7158_v3, %v7128_v15 }
 0x498   : > { %v7091_v1 = vrot.slane %v7090_v31, 4  ;;  %v7160_v32 = vadd.f32 %v7159_v43, %v7129_v17 }
 0x49a   : > { %v7092_v49 = vadd.f32 %v7091_v1, %v7090_v31  ;;  %v7161_v60 = vrot.slane %v7160_v32, 4 }
 0x49c   : > { %v7093_v27 = vrot.slane %v7092_v49, 2  ;;  %v7162_v55 = vadd.f32 %v7161_v60, %v7160_v32 }
 0x49e   : > { %v7094_v58 = vadd.f32 %v7093_v27, %v7092_v49  ;;  %v7163_v24 = vrot.slane %v7162_v55, 2 }
 0x4a0   : > { %v7095_v25 = vrot.slane %v7094_v58, 1  ;;  %v7164_v61 = vadd.f32 %v7163_v24, %v7162_v55 }
 0x4a2   : > { %v7096_v47 = vadd.f32 %v7095_v25, %v7094_v58  ;;  %v7165_v63 = vrot.slane %v7164_v61, 1 }
 0x4a4   : > { %7097 = vst [vmem:[%s426_s12] sm:$0x1] %v7096_v47  ;;  %v7166_v54 = vadd.f32 %v7165_v63, %v7164_v61 }
 0x4a6   : > { %7167 = vst [vmem:[%s433_s8] sm:$0x1] %v7166_v54 }
 0x4a7 PF: > { %s18_s28 = sadd.s32 1, %s11039_s28   ;;  %s14153_s24 = smov %s11031_s26 }
 0x4a8   : > { %p15_p10 = scmp.ge.s32.totalorder %s18_s28, 10   ;;  %s14154_s25 = smov %s11035_s27 }
 0x4a9   : > { %s14155_s26 = smov %s14158_s29  ;;  %s14156_s27 = smov %s14162_s30 }
 0x4aa   :  { %17 = sbr.rel (!%p15_p10) target bundleno = 3 (0x3), region = 108 }

</bundles_post_ra>
